<compile_context>
chip_gen: v5e
topology: v5e:2x2
jax: 0.10.0
libtpu: 0.0.40
codegen_flags: <defaults>
</compile_context>

<pallas_src>
import functools

import numpy as np
import jax
import jax.numpy as jnp
from jax.experimental import pallas as pl
from jax.experimental.pallas import tpu as pltpu


# ----------------------------------------------------------------------------
# Fused forward kernel.  Activations are carried as dense (rows, C) matrices
# (rows = N*H*W), channels on the lane axis.
# ----------------------------------------------------------------------------
def _fused_kernel(x_ref, w_in_ref, g_ref, b_ref, w_blk_ref, sel_mp_ref,
                  sel_ap_ref, o_ref, stem_pad_ref, mp_pad_ref, blk_pad_ref,
                  *, N, H, W, Cin, C, Hp, Wp, S, n_blocks, alpha, beta, eps):
    f32 = jnp.float32

    # ---------------- stem: conv3x3 (pad 1, no bias) ------------------------
    # Cin is tiny (1 by default): do the 9*Cin taps as VPU broadcast-MACs.
    stem_pad_ref[...] = jnp.zeros_like(stem_pad_ref)
    stem_pad_ref[:, 1:H + 1, 1:W + 1, :] = x_ref[...].astype(f32)
    xp = stem_pad_ref[...]                                # (N, H+2, W+2, Cin)
    w_in = w_in_ref[...]                                  # (9*Cin, C)
    acc = jnp.zeros((N, H, W, C), f32)
    for kh in range(3):
        for kw in range(3):
            win = xp[:, kh:kh + H, kw:kw + W, :]          # (N, H, W, Cin)
            for ci in range(Cin):
                r = (kh * 3 + kw) * Cin + ci
                acc = acc + win[..., ci:ci + 1] * w_in[r:r + 1, :]
    conv = acc.reshape(N * H * W, C)                      # (N*H*W, C)

    # ---------------- stem: BN (train-mode batch stats) + tanh --------------
    cnt = float(N * H * W)
    mean = jnp.sum(conv, axis=0, keepdims=True) * (1.0 / cnt)
    d = conv - mean
    var = jnp.sum(d * d, axis=0, keepdims=True) * (1.0 / cnt)   # biased var
    act = jnp.tanh(d * jax.lax.rsqrt(var + eps) * g_ref[...] + b_ref[...])

    # ---------------- maxpool 3x3 / stride 2 / pad 1 -------------------------
    mp_pad_ref[...] = jnp.full(mp_pad_ref.shape, -jnp.inf, f32)
    mp_pad_ref[:, 1:H + 1, 1:W + 1, :] = act.reshape(N, H, W, C)
    mp = mp_pad_ref[...]                                  # (N, H+2, W+2, C)
    m1 = mp[:, 0:H, 0:W, :]
    for dh in range(3):
        for dw in range(3):
            if dh == 0 and dw == 0:
                continue
            m1 = jnp.maximum(m1, mp[:, dh:dh + H, dw:dw + W, :])
    # Stride-2 decimation as an exact 0/1 selection matmul (MXU): keeps the
    # activation as a dense matrix and avoids any strided sublane slicing.
    h = jnp.dot(sel_mp_ref[...], m1.reshape(N * H * W, C),
                preferred_element_type=f32)               # (N*Hp*Wp, C)

    # ---------------- residual blocks ----------------------------------------
    for blk in range(n_blocks):
        # conv3x3 as a single im2col matmul, K = 9*C.
        blk_pad_ref[...] = jnp.zeros_like(blk_pad_ref)
        blk_pad_ref[:, 1:Hp + 1, 1:Wp + 1, :] = h.reshape(N, Hp, Wp, C)
        xb = blk_pad_ref[...]                             # (N, Hp+2, Wp+2, C)
        patches = jnp.concatenate(
            [xb[:, kh:kh + Hp, kw:kw + Wp, :]
             for kh in range(3) for kw in range(3)], axis=-1)   # (N,Hp,Wp,9C)
        t = jnp.dot(patches.reshape(N * Hp * Wp, 9 * C), w_blk_ref[blk],
                    preferred_element_type=f32)           # (N*Hp*Wp, C)

        # BN (affine=False, train-mode batch stats) + tanh.
        cntb = float(N * Hp * Wp)
        mu = jnp.sum(t, axis=0, keepdims=True) * (1.0 / cntb)
        dt = t - mu
        vr = jnp.sum(dt * dt, axis=0, keepdims=True) * (1.0 / cntb)
        tb = jnp.tanh(dt * jax.lax.rsqrt(vr + eps))

        # avgpool 3x3 / s1 / p1 (count_include_pad -> /9) + residual combine.
        blk_pad_ref[...] = jnp.zeros_like(blk_pad_ref)
        blk_pad_ref[:, 1:Hp + 1, 1:Wp + 1, :] = tb.reshape(N, Hp, Wp, C)
        xa = blk_pad_ref[...]
        asum = xa[:, 0:Hp, 0:Wp, :]
        for dh in range(3):
            for dw in range(3):
                if dh == 0 and dw == 0:
                    continue
                asum = asum + xa[:, dh:dh + Hp, dw:dw + Wp, :]
        h = alpha * h + beta * (asum.reshape(N * Hp * Wp, C) * (1.0 / 9.0))

    # ---------------- adaptive avg-pool (Hp, Wp) -> (S, S) --------------------
    inv_pool = 1.0 / float((Hp // S) * (Wp // S))
    o_ref[...] = (jnp.dot(sel_ap_ref[...], h, preferred_element_type=f32)
                  * inv_pool).astype(o_ref.dtype)         # (N*S*S, C)


# ----------------------------------------------------------------------------
# Host-side helpers: exact 0/1 selection / averaging matrices (precomputed).
# ----------------------------------------------------------------------------
def _decimation_matrix(N, H, W, Hp, Wp):
    m = np.zeros((N * Hp * Wp, N * H * W), np.float32)
    for n in range(N):
        for i in range(Hp):
            for j in range(Wp):
                m[n * Hp * Wp + i * Wp + j,
                  n * H * W + (2 * i) * W + 2 * j] = 1.0
    return m


def _adaptive_pool_matrix(N, Hp, Wp, S):
    kh, kw = Hp // S, Wp // S
    m = np.zeros((N * S * S, N * Hp * Wp), np.float32)
    for n in range(N):
        for i in range(S):
            for j in range(S):
                r = n * S * S + i * S + j
                for hh in range(i * kh, (i + 1) * kh):
                    for ww in range(j * kw, (j + 1) * kw):
                        m[r, n * Hp * Wp + hh * Wp + ww] = 1.0
    return m


# ----------------------------------------------------------------------------
# Full randResNet forward (single fused pallas_call).
# ----------------------------------------------------------------------------
def randresnet_forward(x_nchw, params, *, alpha=1.0, beta=1.0,
                       adaptive_size=2, eps=1e-5):
    N, Cin, H, W = x_nchw.shape
    C = params["in_conv_w"].shape[-1]
    S = adaptive_size
    Hp, Wp = (H + 1) // 2, (W + 1) // 2               # MaxPool2d(3, 2, 1) out
    assert Hp % S == 0 and Wp % S == 0

    x = jnp.transpose(x_nchw, (0, 2, 3, 1)).astype(jnp.float32)   # NHWC

    w_in = params["in_conv_w"].reshape(9 * Cin, C).astype(jnp.float32)
    g_in = params["in_bn_gamma"].reshape(1, C).astype(jnp.float32)
    b_in = params["in_bn_beta"].reshape(1, C).astype(jnp.float32)

    blocks = params["block_conv_ws"]
    n_blocks = len(blocks)
    if n_blocks:
        w_blk = jnp.stack([w.reshape(9 * C, C) for w in blocks]).astype(jnp.float32)
    else:
        w_blk = jnp.zeros((1, 9 * C, C), jnp.float32)   # dummy, never indexed

    sel_mp = jnp.asarray(_decimation_matrix(N, H, W, Hp, Wp))
    sel_ap = jnp.asarray(_adaptive_pool_matrix(N, Hp, Wp, S))

    kernel = functools.partial(
        _fused_kernel, N=N, H=H, W=W, Cin=Cin, C=C, Hp=Hp, Wp=Wp, S=S,
        n_blocks=n_blocks, alpha=float(alpha), beta=float(beta),
        eps=float(eps))

    pooled = pl.pallas_call(
        kernel,
        out_shape=jax.ShapeDtypeStruct((N * S * S, C), jnp.float32),
        grid_spec=pltpu.PrefetchScalarGridSpec(
            num_scalar_prefetch=0,
            grid=(1,),
            in_specs=[
                pl.BlockSpec((N, H, W, Cin), lambda i: (0, 0, 0, 0)),
                pl.BlockSpec((9 * Cin, C), lambda i: (0, 0)),
                pl.BlockSpec((1, C), lambda i: (0, 0)),
                pl.BlockSpec((1, C), lambda i: (0, 0)),
                pl.BlockSpec((max(n_blocks, 1), 9 * C, C), lambda i: (0, 0, 0)),
                pl.BlockSpec((N * Hp * Wp, N * H * W), lambda i: (0, 0)),
                pl.BlockSpec((N * S * S, N * Hp * Wp), lambda i: (0, 0)),
            ],
            out_specs=pl.BlockSpec((N * S * S, C), lambda i: (0, 0)),
            scratch_shapes=[
                pltpu.VMEM((N, H + 2, W + 2, Cin), jnp.float32),   # stem halo
                pltpu.VMEM((N, H + 2, W + 2, C), jnp.float32),     # maxpool halo
                pltpu.VMEM((N, Hp + 2, Wp + 2, C), jnp.float32),   # block halo
            ],
        ),
        compiler_params=pltpu.CompilerParams(
            dimension_semantics=("arbitrary",),
            vmem_limit_bytes=32 * 1024 * 1024),
    )(x, w_in, g_in, b_in, w_blk, sel_mp, sel_ap)

    # PyTorch flatten order: view(N, -1) on NCHW (C, S, S) -> index c*S*S+i*S+j.
    # (single 512-byte tail op; everything else is inside the fused kernel)
    out = jnp.transpose(pooled.reshape(N, S * S, C), (0, 2, 1))
    return out.reshape(N, C * S * S)


def init_params(key, in_channels, n_filters, n_layers, scaling):
    # TODO(synk): `init_weights` is not defined in the source; assume
    # 'uniform' init == U(-scaling, scaling) on conv weights (BN stays 1/0).
    k1, k2 = jax.random.split(key)
    params = {
        "in_conv_w": jax.random.uniform(
            k1, (3, 3, in_channels, n_filters), jnp.float32, -scaling, scaling),
        "in_bn_gamma": jnp.ones((n_filters,), jnp.float32),
        "in_bn_beta": jnp.zeros((n_filters,), jnp.float32),
    }
    block_ws = []
    if n_layers > 1:
        bkeys = jax.random.split(k2, n_layers - 1)
        for i in range(n_layers - 1):
            block_ws.append(jax.random.uniform(
                bkeys[i], (3, 3, n_filters, n_filters), jnp.float32,
                -scaling, scaling))
    params["block_conv_ws"] = block_ws
    return params


if __name__ == "__main__":
    key = jax.random.PRNGKey(0)
    kx, kp = jax.random.split(key)

    # Module defaults: in_channels=1, n_filters=16, alpha=beta=1,
    # adaptive_size=2, skip_option='identity'.  n_layers=2 -> one ResidualBlock.
    N, Cin, H, W = 2, 1, 16, 16
    n_filters, n_layers = 16, 2

    x = jax.random.normal(kx, (N, Cin, H, W), jnp.float32)
    params = init_params(kp, Cin, n_filters, n_layers, scaling=0.1)

    out = randresnet_forward(x, params, alpha=1.0, beta=1.0, adaptive_size=2)
    out = jax.block_until_ready(out)
    assert out.shape == (N, n_filters * 2 * 2), out.shape
    assert bool(jnp.all(jnp.isfinite(out)))
    print("KERNEL_OK")
</pallas_src>

<mosaic_0001>
module attributes {stable_mosaic.version = 11 : i64} {
  func.func @_fused_kernel(%arg0: i32, %arg1: memref<2x16x16x1xf32, #tpu.memory_space<vmem>>, %arg2: memref<9x16xf32, #tpu.memory_space<vmem>>, %arg3: memref<1x16xf32, #tpu.memory_space<vmem>>, %arg4: memref<1x16xf32, #tpu.memory_space<vmem>>, %arg5: memref<1x144x16xf32, #tpu.memory_space<vmem>>, %arg6: memref<128x512xf32, #tpu.memory_space<vmem>>, %arg7: memref<8x128xf32, #tpu.memory_space<vmem>>, %arg8: memref<8x16xf32, #tpu.memory_space<vmem>>, %arg9: memref<2x18x18x1xf32, #tpu.memory_space<vmem>>, %arg10: memref<2x18x18x16xf32, #tpu.memory_space<vmem>>, %arg11: memref<2x10x10x16xf32, #tpu.memory_space<vmem>>) attributes {dimension_semantics = [#tpu.dimension_semantics<arbitrary>], iteration_bounds = array<i64: 1>, scalar_prefetch = 0 : i64, scratch_operands = 3 : i64, tpu.core_type = #tpu.core_type<tc>, window_params = [{pipeline_mode = #tpu.pipeline_mode<synchronous>, transform_indices = @transform_0, window_bounds = array<i64: 2, 16, 16, 1>}, {pipeline_mode = #tpu.pipeline_mode<synchronous>, transform_indices = @transform_1, window_bounds = array<i64: 9, 16>}, {pipeline_mode = #tpu.pipeline_mode<synchronous>, transform_indices = @transform_2, window_bounds = array<i64: 1, 16>}, {pipeline_mode = #tpu.pipeline_mode<synchronous>, transform_indices = @transform_3, window_bounds = array<i64: 1, 16>}, {pipeline_mode = #tpu.pipeline_mode<synchronous>, transform_indices = @transform_4, window_bounds = array<i64: 1, 144, 16>}, {pipeline_mode = #tpu.pipeline_mode<synchronous>, transform_indices = @transform_5, window_bounds = array<i64: 128, 512>}, {pipeline_mode = #tpu.pipeline_mode<synchronous>, transform_indices = @transform_6, window_bounds = array<i64: 8, 128>}, {pipeline_mode = #tpu.pipeline_mode<synchronous>, transform_indices = @transform_7, window_bounds = array<i64: 8, 16>}]} {
    %cst = arith.constant 0.000000e+00 : f32
    %0 = vector.broadcast %cst : f32 to vector<2x18x18x1xf32>
    %c0 = arith.constant 0 : index
    %c0_0 = arith.constant 0 : index
    %c0_1 = arith.constant 0 : index
    %c0_2 = arith.constant 0 : index
    %1 = vector.load %arg9[%c0, %c0_0, %c0_1, %c0_2] : memref<2x18x18x1xf32, #tpu.memory_space<vmem>>, vector<2x18x18x1xf32>
    tpu.vector_store %arg9[%c0, %c0_0, %c0_1, %c0_2], %0 {strides = array<i32>} : memref<2x18x18x1xf32, #tpu.memory_space<vmem>>, vector<2x18x18x1xf32>,
    %c0_3 = arith.constant 0 : index
    %c0_4 = arith.constant 0 : index
    %c0_5 = arith.constant 0 : index
    %c0_6 = arith.constant 0 : index
    %2 = vector.load %arg1[%c0_3, %c0_4, %c0_5, %c0_6] : memref<2x16x16x1xf32, #tpu.memory_space<vmem>>, vector<2x16x16x1xf32>
    %c0_7 = arith.constant 0 : index
    %c1 = arith.constant 1 : index
    %c1_8 = arith.constant 1 : index
    %c0_9 = arith.constant 0 : index
    %3 = vector.load %arg9[%c0_7, %c1, %c1_8, %c0_9] : memref<2x18x18x1xf32, #tpu.memory_space<vmem>>, vector<2x16x16x1xf32>
    tpu.vector_store %arg9[%c0_7, %c1, %c1_8, %c0_9], %2 {strides = array<i32>} : memref<2x18x18x1xf32, #tpu.memory_space<vmem>>, vector<2x16x16x1xf32>,
    %c0_10 = arith.constant 0 : index
    %c0_11 = arith.constant 0 : index
    %c0_12 = arith.constant 0 : index
    %c0_13 = arith.constant 0 : index
    %4 = vector.load %arg9[%c0_10, %c0_11, %c0_12, %c0_13] : memref<2x18x18x1xf32, #tpu.memory_space<vmem>>, vector<2x18x18x1xf32>
    %c0_14 = arith.constant 0 : index
    %c0_15 = arith.constant 0 : index
    %5 = vector.load %arg2[%c0_14, %c0_15] : memref<9x16xf32, #tpu.memory_space<vmem>>, vector<9x16xf32>
    %cst_16 = arith.constant 0.000000e+00 : f32
    %6 = vector.broadcast %cst_16 : f32 to vector<2x16x16x16xf32>
    %7 = vector.extract_strided_slice %4 {offsets = [0, 0, 0, 0], sizes = [2, 16, 16, 1], strides = [1, 1, 1, 1]} : vector<2x18x18x1xf32> to vector<2x16x16x1xf32>
    %8 = vector.extract_strided_slice %5 {offsets = [0, 0], sizes = [1, 16], strides = [1, 1]} : vector<9x16xf32> to vector<1x16xf32>
    %9 = vector.shape_cast %8 : vector<1x16xf32> to vector<1x1x1x16xf32>
    %10 = vector.broadcast %7 : vector<2x16x16x1xf32> to vector<2x16x16x16xf32>
    %11 = vector.broadcast %9 : vector<1x1x1x16xf32> to vector<2x16x16x16xf32>
    %12 = arith.mulf %10, %11 : vector<2x16x16x16xf32>
    %13 = arith.addf %6, %12 : vector<2x16x16x16xf32>
    %14 = vector.extract_strided_slice %4 {offsets = [0, 0, 1, 0], sizes = [2, 16, 16, 1], strides = [1, 1, 1, 1]} : vector<2x18x18x1xf32> to vector<2x16x16x1xf32>
    %15 = vector.extract_strided_slice %5 {offsets = [1, 0], sizes = [1, 16], strides = [1, 1]} : vector<9x16xf32> to vector<1x16xf32>
    %16 = vector.shape_cast %15 : vector<1x16xf32> to vector<1x1x1x16xf32>
    %17 = vector.broadcast %14 : vector<2x16x16x1xf32> to vector<2x16x16x16xf32>
    %18 = vector.broadcast %16 : vector<1x1x1x16xf32> to vector<2x16x16x16xf32>
    %19 = arith.mulf %17, %18 : vector<2x16x16x16xf32>
    %20 = arith.addf %13, %19 : vector<2x16x16x16xf32>
    %21 = vector.extract_strided_slice %4 {offsets = [0, 0, 2, 0], sizes = [2, 16, 16, 1], strides = [1, 1, 1, 1]} : vector<2x18x18x1xf32> to vector<2x16x16x1xf32>
    %22 = vector.extract_strided_slice %5 {offsets = [2, 0], sizes = [1, 16], strides = [1, 1]} : vector<9x16xf32> to vector<1x16xf32>
    %23 = vector.shape_cast %22 : vector<1x16xf32> to vector<1x1x1x16xf32>
    %24 = vector.broadcast %21 : vector<2x16x16x1xf32> to vector<2x16x16x16xf32>
    %25 = vector.broadcast %23 : vector<1x1x1x16xf32> to vector<2x16x16x16xf32>
    %26 = arith.mulf %24, %25 : vector<2x16x16x16xf32>
    %27 = arith.addf %20, %26 : vector<2x16x16x16xf32>
    %28 = vector.extract_strided_slice %4 {offsets = [0, 1, 0, 0], sizes = [2, 16, 16, 1], strides = [1, 1, 1, 1]} : vector<2x18x18x1xf32> to vector<2x16x16x1xf32>
    %29 = vector.extract_strided_slice %5 {offsets = [3, 0], sizes = [1, 16], strides = [1, 1]} : vector<9x16xf32> to vector<1x16xf32>
    %30 = vector.shape_cast %29 : vector<1x16xf32> to vector<1x1x1x16xf32>
    %31 = vector.broadcast %28 : vector<2x16x16x1xf32> to vector<2x16x16x16xf32>
    %32 = vector.broadcast %30 : vector<1x1x1x16xf32> to vector<2x16x16x16xf32>
    %33 = arith.mulf %31, %32 : vector<2x16x16x16xf32>
    %34 = arith.addf %27, %33 : vector<2x16x16x16xf32>
    %35 = vector.extract_strided_slice %4 {offsets = [0, 1, 1, 0], sizes = [2, 16, 16, 1], strides = [1, 1, 1, 1]} : vector<2x18x18x1xf32> to vector<2x16x16x1xf32>
    %36 = vector.extract_strided_slice %5 {offsets = [4, 0], sizes = [1, 16], strides = [1, 1]} : vector<9x16xf32> to vector<1x16xf32>
    %37 = vector.shape_cast %36 : vector<1x16xf32> to vector<1x1x1x16xf32>
    %38 = vector.broadcast %35 : vector<2x16x16x1xf32> to vector<2x16x16x16xf32>
    %39 = vector.broadcast %37 : vector<1x1x1x16xf32> to vector<2x16x16x16xf32>
    %40 = arith.mulf %38, %39 : vector<2x16x16x16xf32>
    %41 = arith.addf %34, %40 : vector<2x16x16x16xf32>
    %42 = vector.extract_strided_slice %4 {offsets = [0, 1, 2, 0], sizes = [2, 16, 16, 1], strides = [1, 1, 1, 1]} : vector<2x18x18x1xf32> to vector<2x16x16x1xf32>
    %43 = vector.extract_strided_slice %5 {offsets = [5, 0], sizes = [1, 16], strides = [1, 1]} : vector<9x16xf32> to vector<1x16xf32>
    %44 = vector.shape_cast %43 : vector<1x16xf32> to vector<1x1x1x16xf32>
    %45 = vector.broadcast %42 : vector<2x16x16x1xf32> to vector<2x16x16x16xf32>
    %46 = vector.broadcast %44 : vector<1x1x1x16xf32> to vector<2x16x16x16xf32>
    %47 = arith.mulf %45, %46 : vector<2x16x16x16xf32>
    %48 = arith.addf %41, %47 : vector<2x16x16x16xf32>
    %49 = vector.extract_strided_slice %4 {offsets = [0, 2, 0, 0], sizes = [2, 16, 16, 1], strides = [1, 1, 1, 1]} : vector<2x18x18x1xf32> to vector<2x16x16x1xf32>
    %50 = vector.extract_strided_slice %5 {offsets = [6, 0], sizes = [1, 16], strides = [1, 1]} : vector<9x16xf32> to vector<1x16xf32>
    %51 = vector.shape_cast %50 : vector<1x16xf32> to vector<1x1x1x16xf32>
    %52 = vector.broadcast %49 : vector<2x16x16x1xf32> to vector<2x16x16x16xf32>
    %53 = vector.broadcast %51 : vector<1x1x1x16xf32> to vector<2x16x16x16xf32>
    %54 = arith.mulf %52, %53 : vector<2x16x16x16xf32>
    %55 = arith.addf %48, %54 : vector<2x16x16x16xf32>
    %56 = vector.extract_strided_slice %4 {offsets = [0, 2, 1, 0], sizes = [2, 16, 16, 1], strides = [1, 1, 1, 1]} : vector<2x18x18x1xf32> to vector<2x16x16x1xf32>
    %57 = vector.extract_strided_slice %5 {offsets = [7, 0], sizes = [1, 16], strides = [1, 1]} : vector<9x16xf32> to vector<1x16xf32>
    %58 = vector.shape_cast %57 : vector<1x16xf32> to vector<1x1x1x16xf32>
    %59 = vector.broadcast %56 : vector<2x16x16x1xf32> to vector<2x16x16x16xf32>
    %60 = vector.broadcast %58 : vector<1x1x1x16xf32> to vector<2x16x16x16xf32>
    %61 = arith.mulf %59, %60 : vector<2x16x16x16xf32>
    %62 = arith.addf %55, %61 : vector<2x16x16x16xf32>
    %63 = vector.extract_strided_slice %4 {offsets = [0, 2, 2, 0], sizes = [2, 16, 16, 1], strides = [1, 1, 1, 1]} : vector<2x18x18x1xf32> to vector<2x16x16x1xf32>
    %64 = vector.extract_strided_slice %5 {offsets = [8, 0], sizes = [1, 16], strides = [1, 1]} : vector<9x16xf32> to vector<1x16xf32>
    %65 = vector.shape_cast %64 : vector<1x16xf32> to vector<1x1x1x16xf32>
    %66 = vector.broadcast %63 : vector<2x16x16x1xf32> to vector<2x16x16x16xf32>
    %67 = vector.broadcast %65 : vector<1x1x1x16xf32> to vector<2x16x16x16xf32>
    %68 = arith.mulf %66, %67 : vector<2x16x16x16xf32>
    %69 = arith.addf %62, %68 : vector<2x16x16x16xf32>
    %70 = vector.shape_cast %69 : vector<2x16x16x16xf32> to vector<512x16xf32>
    %cst_17 = arith.constant dense<0.000000e+00> : vector<16xf32>
    %71 = vector.multi_reduction <add>, %70, %cst_17 [0] : vector<512x16xf32> to vector<16xf32>
    %72 = vector.shape_cast %71 : vector<16xf32> to vector<1x16xf32>
    %cst_18 = arith.constant 0.001953125 : f32
    %73 = vector.broadcast %cst_18 : f32 to vector<1x16xf32>
    %74 = arith.mulf %72, %73 : vector<1x16xf32>
    %75 = vector.broadcast %74 : vector<1x16xf32> to vector<512x16xf32>
    %76 = arith.subf %70, %75 : vector<512x16xf32>
    %77 = arith.mulf %76, %76 : vector<512x16xf32>
    %cst_19 = arith.constant dense<0.000000e+00> : vector<16xf32>
    %78 = vector.multi_reduction <add>, %77, %cst_19 [0] : vector<512x16xf32> to vector<16xf32>
    %79 = vector.shape_cast %78 : vector<16xf32> to vector<1x16xf32>
    %cst_20 = arith.constant 0.001953125 : f32
    %80 = vector.broadcast %cst_20 : f32 to vector<1x16xf32>
    %81 = arith.mulf %79, %80 : vector<1x16xf32>
    %cst_21 = arith.constant 9.99999974E-6 : f32
    %82 = vector.broadcast %cst_21 : f32 to vector<1x16xf32>
    %83 = arith.addf %81, %82 : vector<1x16xf32>
    %84 = math.rsqrt %83 : vector<1x16xf32>
    %85 = vector.broadcast %84 : vector<1x16xf32> to vector<512x16xf32>
    %86 = arith.mulf %76, %85 : vector<512x16xf32>
    %c0_22 = arith.constant 0 : index
    %c0_23 = arith.constant 0 : index
    %87 = vector.load %arg3[%c0_22, %c0_23] : memref<1x16xf32, #tpu.memory_space<vmem>>, vector<1x16xf32>
    %88 = vector.broadcast %87 : vector<1x16xf32> to vector<512x16xf32>
    %89 = arith.mulf %86, %88 : vector<512x16xf32>
    %c0_24 = arith.constant 0 : index
    %c0_25 = arith.constant 0 : index
    %90 = vector.load %arg4[%c0_24, %c0_25] : memref<1x16xf32, #tpu.memory_space<vmem>>, vector<1x16xf32>
    %91 = vector.broadcast %90 : vector<1x16xf32> to vector<512x16xf32>
    %92 = arith.addf %89, %91 : vector<512x16xf32>
    %93 = math.tanh %92 : vector<512x16xf32>
    %cst_26 = arith.constant 0xFF800000 : f32
    %94 = vector.broadcast %cst_26 : f32 to vector<2x18x18x16xf32>
    %c0_27 = arith.constant 0 : index
    %c0_28 = arith.constant 0 : index
    %c0_29 = arith.constant 0 : index
    %c0_30 = arith.constant 0 : index
    %95 = vector.load %arg10[%c0_27, %c0_28, %c0_29, %c0_30] : memref<2x18x18x16xf32, #tpu.memory_space<vmem>>, vector<2x18x18x16xf32>
    tpu.vector_store %arg10[%c0_27, %c0_28, %c0_29, %c0_30], %94 {strides = array<i32>} : memref<2x18x18x16xf32, #tpu.memory_space<vmem>>, vector<2x18x18x16xf32>,
    %96 = vector.shape_cast %93 : vector<512x16xf32> to vector<2x16x16x16xf32>
    %c0_31 = arith.constant 0 : index
    %c1_32 = arith.constant 1 : index
    %c1_33 = arith.constant 1 : index
    %c0_34 = arith.constant 0 : index
    %97 = vector.load %arg10[%c0_31, %c1_32, %c1_33, %c0_34] : memref<2x18x18x16xf32, #tpu.memory_space<vmem>>, vector<2x16x16x16xf32>
    tpu.vector_store %arg10[%c0_31, %c1_32, %c1_33, %c0_34], %96 {strides = array<i32>} : memref<2x18x18x16xf32, #tpu.memory_space<vmem>>, vector<2x16x16x16xf32>,
    %c0_35 = arith.constant 0 : index
    %c0_36 = arith.constant 0 : index
    %c0_37 = arith.constant 0 : index
    %c0_38 = arith.constant 0 : index
    %98 = vector.load %arg10[%c0_35, %c0_36, %c0_37, %c0_38] : memref<2x18x18x16xf32, #tpu.memory_space<vmem>>, vector<2x18x18x16xf32>
    %99 = vector.extract_strided_slice %98 {offsets = [0, 0, 0, 0], sizes = [2, 16, 16, 16], strides = [1, 1, 1, 1]} : vector<2x18x18x16xf32> to vector<2x16x16x16xf32>
    %100 = vector.extract_strided_slice %98 {offsets = [0, 0, 1, 0], sizes = [2, 16, 16, 16], strides = [1, 1, 1, 1]} : vector<2x18x18x16xf32> to vector<2x16x16x16xf32>
    %101 = arith.maximumf %99, %100 : vector<2x16x16x16xf32>
    %102 = vector.extract_strided_slice %98 {offsets = [0, 0, 2, 0], sizes = [2, 16, 16, 16], strides = [1, 1, 1, 1]} : vector<2x18x18x16xf32> to vector<2x16x16x16xf32>
    %103 = arith.maximumf %101, %102 : vector<2x16x16x16xf32>
    %104 = vector.extract_strided_slice %98 {offsets = [0, 1, 0, 0], sizes = [2, 16, 16, 16], strides = [1, 1, 1, 1]} : vector<2x18x18x16xf32> to vector<2x16x16x16xf32>
    %105 = arith.maximumf %103, %104 : vector<2x16x16x16xf32>
    %106 = vector.extract_strided_slice %98 {offsets = [0, 1, 1, 0], sizes = [2, 16, 16, 16], strides = [1, 1, 1, 1]} : vector<2x18x18x16xf32> to vector<2x16x16x16xf32>
    %107 = arith.maximumf %105, %106 : vector<2x16x16x16xf32>
    %108 = vector.extract_strided_slice %98 {offsets = [0, 1, 2, 0], sizes = [2, 16, 16, 16], strides = [1, 1, 1, 1]} : vector<2x18x18x16xf32> to vector<2x16x16x16xf32>
    %109 = arith.maximumf %107, %108 : vector<2x16x16x16xf32>
    %110 = vector.extract_strided_slice %98 {offsets = [0, 2, 0, 0], sizes = [2, 16, 16, 16], strides = [1, 1, 1, 1]} : vector<2x18x18x16xf32> to vector<2x16x16x16xf32>
    %111 = arith.maximumf %109, %110 : vector<2x16x16x16xf32>
    %112 = vector.extract_strided_slice %98 {offsets = [0, 2, 1, 0], sizes = [2, 16, 16, 16], strides = [1, 1, 1, 1]} : vector<2x18x18x16xf32> to vector<2x16x16x16xf32>
    %113 = arith.maximumf %111, %112 : vector<2x16x16x16xf32>
    %114 = vector.extract_strided_slice %98 {offsets = [0, 2, 2, 0], sizes = [2, 16, 16, 16], strides = [1, 1, 1, 1]} : vector<2x18x18x16xf32> to vector<2x16x16x16xf32>
    %115 = arith.maximumf %113, %114 : vector<2x16x16x16xf32>
    %c0_39 = arith.constant 0 : index
    %c0_40 = arith.constant 0 : index
    %116 = vector.load %arg6[%c0_39, %c0_40] : memref<128x512xf32, #tpu.memory_space<vmem>>, vector<128x512xf32>
    %117 = vector.shape_cast %115 : vector<2x16x16x16xf32> to vector<512x16xf32>
    %cst_41 = arith.constant dense<0.000000e+00> : vector<128x16xf32>
    %118 = tpu.matmul %116, %117, %cst_41 {dimension_numbers = #tpu.dot_dimension_numbers<[1], [0], [0], [1], [0, 0, 1, 1], [], []>} : vector<128x512xf32>, vector<512x16xf32>, vector<128x16xf32> -> vector<128x16xf32>
    %cst_42 = arith.constant 0.000000e+00 : f32
    %119 = vector.broadcast %cst_42 : f32 to vector<2x10x10x16xf32>
    %c0_43 = arith.constant 0 : index
    %c0_44 = arith.constant 0 : index
    %c0_45 = arith.constant 0 : index
    %c0_46 = arith.constant 0 : index
    %120 = vector.load %arg11[%c0_43, %c0_44, %c0_45, %c0_46] : memref<2x10x10x16xf32, #tpu.memory_space<vmem>>, vector<2x10x10x16xf32>
    tpu.vector_store %arg11[%c0_43, %c0_44, %c0_45, %c0_46], %119 {strides = array<i32>} : memref<2x10x10x16xf32, #tpu.memory_space<vmem>>, vector<2x10x10x16xf32>,
    %121 = vector.shape_cast %118 : vector<128x16xf32> to vector<2x8x8x16xf32>
    %c0_47 = arith.constant 0 : index
    %c1_48 = arith.constant 1 : index
    %c1_49 = arith.constant 1 : index
    %c0_50 = arith.constant 0 : index
    %122 = vector.load %arg11[%c0_47, %c1_48, %c1_49, %c0_50] : memref<2x10x10x16xf32, #tpu.memory_space<vmem>>, vector<2x8x8x16xf32>
    tpu.vector_store %arg11[%c0_47, %c1_48, %c1_49, %c0_50], %121 {strides = array<i32>} : memref<2x10x10x16xf32, #tpu.memory_space<vmem>>, vector<2x8x8x16xf32>,
    %c0_51 = arith.constant 0 : index
    %c0_52 = arith.constant 0 : index
    %c0_53 = arith.constant 0 : index
    %c0_54 = arith.constant 0 : index
    %123 = vector.load %arg11[%c0_51, %c0_52, %c0_53, %c0_54] : memref<2x10x10x16xf32, #tpu.memory_space<vmem>>, vector<2x10x10x16xf32>
    %124 = vector.extract_strided_slice %123 {offsets = [0, 0, 0, 0], sizes = [2, 8, 8, 16], strides = [1, 1, 1, 1]} : vector<2x10x10x16xf32> to vector<2x8x8x16xf32>
    %125 = vector.extract_strided_slice %123 {offsets = [0, 0, 1, 0], sizes = [2, 8, 8, 16], strides = [1, 1, 1, 1]} : vector<2x10x10x16xf32> to vector<2x8x8x16xf32>
    %126 = vector.extract_strided_slice %123 {offsets = [0, 0, 2, 0], sizes = [2, 8, 8, 16], strides = [1, 1, 1, 1]} : vector<2x10x10x16xf32> to vector<2x8x8x16xf32>
    %127 = vector.extract_strided_slice %123 {offsets = [0, 1, 0, 0], sizes = [2, 8, 8, 16], strides = [1, 1, 1, 1]} : vector<2x10x10x16xf32> to vector<2x8x8x16xf32>
    %128 = vector.extract_strided_slice %123 {offsets = [0, 1, 1, 0], sizes = [2, 8, 8, 16], strides = [1, 1, 1, 1]} : vector<2x10x10x16xf32> to vector<2x8x8x16xf32>
    %129 = vector.extract_strided_slice %123 {offsets = [0, 1, 2, 0], sizes = [2, 8, 8, 16], strides = [1, 1, 1, 1]} : vector<2x10x10x16xf32> to vector<2x8x8x16xf32>
    %130 = vector.extract_strided_slice %123 {offsets = [0, 2, 0, 0], sizes = [2, 8, 8, 16], strides = [1, 1, 1, 1]} : vector<2x10x10x16xf32> to vector<2x8x8x16xf32>
    %131 = vector.extract_strided_slice %123 {offsets = [0, 2, 1, 0], sizes = [2, 8, 8, 16], strides = [1, 1, 1, 1]} : vector<2x10x10x16xf32> to vector<2x8x8x16xf32>
    %132 = vector.extract_strided_slice %123 {offsets = [0, 2, 2, 0], sizes = [2, 8, 8, 16], strides = [1, 1, 1, 1]} : vector<2x10x10x16xf32> to vector<2x8x8x16xf32>
    %133 = tpu.concatenate %124, %125, %126, %127, %128, %129, %130, %131, %132 in 3 : vector<2x8x8x16xf32>, vector<2x8x8x16xf32>, vector<2x8x8x16xf32>, vector<2x8x8x16xf32>, vector<2x8x8x16xf32>, vector<2x8x8x16xf32>, vector<2x8x8x16xf32>, vector<2x8x8x16xf32>, vector<2x8x8x16xf32> -> vector<2x8x8x144xf32>
    %134 = vector.shape_cast %133 : vector<2x8x8x144xf32> to vector<128x144xf32>
    %c0_55 = arith.constant 0 : index
    %c0_56 = arith.constant 0 : index
    %c0_57 = arith.constant 0 : index
    %135 = vector.load %arg5[%c0_55, %c0_56, %c0_57] : memref<1x144x16xf32, #tpu.memory_space<vmem>>, vector<1x144x16xf32>
    %136 = vector.shape_cast %135 : vector<1x144x16xf32> to vector<144x16xf32>
    %cst_58 = arith.constant dense<0.000000e+00> : vector<128x16xf32>
    %137 = tpu.matmul %134, %136, %cst_58 {dimension_numbers = #tpu.dot_dimension_numbers<[1], [0], [0], [1], [0, 0, 1, 1], [], []>} : vector<128x144xf32>, vector<144x16xf32>, vector<128x16xf32> -> vector<128x16xf32>
    %cst_59 = arith.constant dense<0.000000e+00> : vector<16xf32>
    %138 = vector.multi_reduction <add>, %137, %cst_59 [0] : vector<128x16xf32> to vector<16xf32>
    %139 = vector.shape_cast %138 : vector<16xf32> to vector<1x16xf32>
    %cst_60 = arith.constant 7.812500e-03 : f32
    %140 = vector.broadcast %cst_60 : f32 to vector<1x16xf32>
    %141 = arith.mulf %139, %140 : vector<1x16xf32>
    %142 = vector.broadcast %141 : vector<1x16xf32> to vector<128x16xf32>
    %143 = arith.subf %137, %142 : vector<128x16xf32>
    %144 = arith.mulf %143, %143 : vector<128x16xf32>
    %cst_61 = arith.constant dense<0.000000e+00> : vector<16xf32>
    %145 = vector.multi_reduction <add>, %144, %cst_61 [0] : vector<128x16xf32> to vector<16xf32>
    %146 = vector.shape_cast %145 : vector<16xf32> to vector<1x16xf32>
    %cst_62 = arith.constant 7.812500e-03 : f32
    %147 = vector.broadcast %cst_62 : f32 to vector<1x16xf32>
    %148 = arith.mulf %146, %147 : vector<1x16xf32>
    %cst_63 = arith.constant 9.99999974E-6 : f32
    %149 = vector.broadcast %cst_63 : f32 to vector<1x16xf32>
    %150 = arith.addf %148, %149 : vector<1x16xf32>
    %151 = math.rsqrt %150 : vector<1x16xf32>
    %152 = vector.broadcast %151 : vector<1x16xf32> to vector<128x16xf32>
    %153 = arith.mulf %143, %152 : vector<128x16xf32>
    %154 = math.tanh %153 : vector<128x16xf32>
    %cst_64 = arith.constant 0.000000e+00 : f32
    %155 = vector.broadcast %cst_64 : f32 to vector<2x10x10x16xf32>
    %c0_65 = arith.constant 0 : index
    %c0_66 = arith.constant 0 : index
    %c0_67 = arith.constant 0 : index
    %c0_68 = arith.constant 0 : index
    %156 = vector.load %arg11[%c0_65, %c0_66, %c0_67, %c0_68] : memref<2x10x10x16xf32, #tpu.memory_space<vmem>>, vector<2x10x10x16xf32>
    tpu.vector_store %arg11[%c0_65, %c0_66, %c0_67, %c0_68], %155 {strides = array<i32>} : memref<2x10x10x16xf32, #tpu.memory_space<vmem>>, vector<2x10x10x16xf32>,
    %157 = vector.shape_cast %154 : vector<128x16xf32> to vector<2x8x8x16xf32>
    %c0_69 = arith.constant 0 : index
    %c1_70 = arith.constant 1 : index
    %c1_71 = arith.constant 1 : index
    %c0_72 = arith.constant 0 : index
    %158 = vector.load %arg11[%c0_69, %c1_70, %c1_71, %c0_72] : memref<2x10x10x16xf32, #tpu.memory_space<vmem>>, vector<2x8x8x16xf32>
    tpu.vector_store %arg11[%c0_69, %c1_70, %c1_71, %c0_72], %157 {strides = array<i32>} : memref<2x10x10x16xf32, #tpu.memory_space<vmem>>, vector<2x8x8x16xf32>,
    %c0_73 = arith.constant 0 : index
    %c0_74 = arith.constant 0 : index
    %c0_75 = arith.constant 0 : index
    %c0_76 = arith.constant 0 : index
    %159 = vector.load %arg11[%c0_73, %c0_74, %c0_75, %c0_76] : memref<2x10x10x16xf32, #tpu.memory_space<vmem>>, vector<2x10x10x16xf32>
    %160 = vector.extract_strided_slice %159 {offsets = [0, 0, 0, 0], sizes = [2, 8, 8, 16], strides = [1, 1, 1, 1]} : vector<2x10x10x16xf32> to vector<2x8x8x16xf32>
    %161 = vector.extract_strided_slice %159 {offsets = [0, 0, 1, 0], sizes = [2, 8, 8, 16], strides = [1, 1, 1, 1]} : vector<2x10x10x16xf32> to vector<2x8x8x16xf32>
    %162 = arith.addf %160, %161 : vector<2x8x8x16xf32>
    %163 = vector.extract_strided_slice %159 {offsets = [0, 0, 2, 0], sizes = [2, 8, 8, 16], strides = [1, 1, 1, 1]} : vector<2x10x10x16xf32> to vector<2x8x8x16xf32>
    %164 = arith.addf %162, %163 : vector<2x8x8x16xf32>
    %165 = vector.extract_strided_slice %159 {offsets = [0, 1, 0, 0], sizes = [2, 8, 8, 16], strides = [1, 1, 1, 1]} : vector<2x10x10x16xf32> to vector<2x8x8x16xf32>
    %166 = arith.addf %164, %165 : vector<2x8x8x16xf32>
    %167 = vector.extract_strided_slice %159 {offsets = [0, 1, 1, 0], sizes = [2, 8, 8, 16], strides = [1, 1, 1, 1]} : vector<2x10x10x16xf32> to vector<2x8x8x16xf32>
    %168 = arith.addf %166, %167 : vector<2x8x8x16xf32>
    %169 = vector.extract_strided_slice %159 {offsets = [0, 1, 2, 0], sizes = [2, 8, 8, 16], strides = [1, 1, 1, 1]} : vector<2x10x10x16xf32> to vector<2x8x8x16xf32>
    %170 = arith.addf %168, %169 : vector<2x8x8x16xf32>
    %171 = vector.extract_strided_slice %159 {offsets = [0, 2, 0, 0], sizes = [2, 8, 8, 16], strides = [1, 1, 1, 1]} : vector<2x10x10x16xf32> to vector<2x8x8x16xf32>
    %172 = arith.addf %170, %171 : vector<2x8x8x16xf32>
    %173 = vector.extract_strided_slice %159 {offsets = [0, 2, 1, 0], sizes = [2, 8, 8, 16], strides = [1, 1, 1, 1]} : vector<2x10x10x16xf32> to vector<2x8x8x16xf32>
    %174 = arith.addf %172, %173 : vector<2x8x8x16xf32>
    %175 = vector.extract_strided_slice %159 {offsets = [0, 2, 2, 0], sizes = [2, 8, 8, 16], strides = [1, 1, 1, 1]} : vector<2x10x10x16xf32> to vector<2x8x8x16xf32>
    %176 = arith.addf %174, %175 : vector<2x8x8x16xf32>
    %cst_77 = arith.constant 1.000000e+00 : f32
    %177 = vector.broadcast %cst_77 : f32 to vector<128x16xf32>
    %178 = arith.mulf %177, %118 : vector<128x16xf32>
    %179 = vector.shape_cast %176 : vector<2x8x8x16xf32> to vector<128x16xf32>
    %cst_78 = arith.constant 0.111111112 : f32
    %180 = vector.broadcast %cst_78 : f32 to vector<128x16xf32>
    %181 = arith.mulf %179, %180 : vector<128x16xf32>
    %cst_79 = arith.constant 1.000000e+00 : f32
    %182 = vector.broadcast %cst_79 : f32 to vector<128x16xf32>
    %183 = arith.mulf %182, %181 : vector<128x16xf32>
    %184 = arith.addf %178, %183 : vector<128x16xf32>
    %c0_80 = arith.constant 0 : index
    %c0_81 = arith.constant 0 : index
    %185 = vector.load %arg7[%c0_80, %c0_81] : memref<8x128xf32, #tpu.memory_space<vmem>>, vector<8x128xf32>
    %cst_82 = arith.constant dense<0.000000e+00> : vector<8x16xf32>
    %186 = tpu.matmul %185, %184, %cst_82 {dimension_numbers = #tpu.dot_dimension_numbers<[1], [0], [0], [1], [0, 0, 1, 1], [], []>} : vector<8x128xf32>, vector<128x16xf32>, vector<8x16xf32> -> vector<8x16xf32>
    %cst_83 = arith.constant 6.250000e-02 : f32
    %187 = vector.broadcast %cst_83 : f32 to vector<8x16xf32>
    %188 = arith.mulf %186, %187 : vector<8x16xf32>
    %c0_84 = arith.constant 0 : index
    %c0_85 = arith.constant 0 : index
    %189 = vector.load %arg8[%c0_84, %c0_85] : memref<8x16xf32, #tpu.memory_space<vmem>>, vector<8x16xf32>
    tpu.vector_store %arg8[%c0_84, %c0_85], %188 {strides = array<i32>} : memref<8x16xf32, #tpu.memory_space<vmem>>, vector<8x16xf32>,
    return
  }
  func.func @transform_0(%arg0: i32) -> (i32, i32, i32, i32) {
    %c0_i32 = arith.constant 0 : i32
    %c0_i32_0 = arith.constant 0 : i32
    %c0_i32_1 = arith.constant 0 : i32
    %c0_i32_2 = arith.constant 0 : i32
    %c0_i32_3 = arith.constant 0 : i32
    return %c0_i32, %c0_i32_0, %c0_i32_1, %c0_i32_2 : i32, i32, i32, i32
  }
  func.func @transform_1(%arg0: i32) -> (i32, i32) {
    %c0_i32 = arith.constant 0 : i32
    %c0_i32_0 = arith.constant 0 : i32
    %c0_i32_1 = arith.constant 0 : i32
    return %c0_i32, %c0_i32_0 : i32, i32
  }
  func.func @transform_2(%arg0: i32) -> (i32, i32) {
    %c0_i32 = arith.constant 0 : i32
    %c0_i32_0 = arith.constant 0 : i32
    %c0_i32_1 = arith.constant 0 : i32
    return %c0_i32, %c0_i32_0 : i32, i32
  }
  func.func @transform_3(%arg0: i32) -> (i32, i32) {
    %c0_i32 = arith.constant 0 : i32
    %c0_i32_0 = arith.constant 0 : i32
    %c0_i32_1 = arith.constant 0 : i32
    return %c0_i32, %c0_i32_0 : i32, i32
  }
  func.func @transform_4(%arg0: i32) -> (i32, i32, i32) {
    %c0_i32 = arith.constant 0 : i32
    %c0_i32_0 = arith.constant 0 : i32
    %c0_i32_1 = arith.constant 0 : i32
    %c0_i32_2 = arith.constant 0 : i32
    return %c0_i32, %c0_i32_0, %c0_i32_1 : i32, i32, i32
  }
  func.func @transform_5(%arg0: i32) -> (i32, i32) {
    %c0_i32 = arith.constant 0 : i32
    %c0_i32_0 = arith.constant 0 : i32
    %c0_i32_1 = arith.constant 0 : i32
    return %c0_i32, %c0_i32_0 : i32, i32
  }
  func.func @transform_6(%arg0: i32) -> (i32, i32) {
    %c0_i32 = arith.constant 0 : i32
    %c0_i32_0 = arith.constant 0 : i32
    %c0_i32_1 = arith.constant 0 : i32
    return %c0_i32, %c0_i32_0 : i32, i32
  }
  func.func @transform_7(%arg0: i32) -> (i32, i32) {
    %c0_i32 = arith.constant 0 : i32
    %c0_i32_0 = arith.constant 0 : i32
    %c0_i32_1 = arith.constant 0 : i32
    return %c0_i32, %c0_i32_0 : i32, i32
  }
}

</mosaic_0001>

<bundles_post_ra>
// kernel: tpu_custom_call.1
= control target key start
LH: loop header
LB: loop body
LE: loop exit
PB: predicated region body
PF: predicated region fallthrough
CT: control target
= control target key end

     0   :  { %vm30_vm0 = vcmask 1024   ;;  %v8658_v0 = vmov 0   ;;  %v16442_v1 = vmov 0.0   ;;  %s16434_s0 = inlined_call_operand.vmem [shape: f32[2,16,16,1], index: 0, kind: input, shape index: {}]   ;;  %s16435_s1 = inlined_call_operand.vmem [shape: f32[9,16], index: 1, kind: input, shape index: {}]   ;;  %s16436_s2 = inlined_call_operand.vmem [shape: f32[1,16], index: 2, kind: input, shape index: {}]   ;;  %s16437_s3 = inlined_call_operand.vmem [shape: f32[1,16], index: 3, kind: input, shape index: {}]   ;;  %s16438_s4 = inlined_call_operand.vmem [shape: f32[1,144,16], index: 4, kind: input, shape index: {}]   ;;  %s16439_s5 = inlined_call_operand.vmem [shape: f32[128,512], index: 5, kind: input, shape index: {}]   ;;  %s16440_s6 = inlined_call_operand.vmem [shape: f32[8,128], index: 6, kind: input, shape index: {}]   ;;  %s16441_s7 = inlined_call_operand.hbm [shape: f32[8,16], index: 7, kind: output, shape index: {}]  }
   0x1   :  { %8190 = vset.pattern.permute.xlu1 %v8658_v0  ;;  %8189 = vset.pattern.permute.xlu0 %v8658_v0  ;;  %31 = vst.msk [vmem:[#allocation2 + $0x10] sm:$0x3] %vm30_vm0, %v16442_v1 }
   0x2   :  { %8191 = vset.pattern.permute.xlu2 %v8658_v0  ;;  %34 = vst.msk [vmem:[#allocation2 + $0x28] sm:$0x3] %vm30_vm0, %v16442_v1 }
   0x3   :  { %12 = vsyncpa [#allocation6], 0  ;;  %37 = vst.msk [vmem:[#allocation2 + $0x40] sm:$0x3] %vm30_vm0, %v16442_v1  ;;  %vm27_vm1 = vcmask 7168   ;;  %v137_v5 = vld [vmem:[%s16434_s0] sm:$0xff] }
   0x4   :  { %40 = vst.msk [vmem:[#allocation2 + $0x58] sm:$0x3] %vm30_vm0, %v16442_v1  ;;  %v138_v6 = vld [vmem:[%s16434_s0 + $0x8] sm:$0xff]  ;;  %v139_v7 = vld [vmem:[%s16434_s0 + $0x10] sm:$0xff]  ;;  %v140_v8 = vld [vmem:[%s16434_s0 + $0x18] sm:$0xff]  ;;  %vm4191_vm2 = vcmask 130048  }
   0x5   :  { %43 = vst.msk [vmem:[#allocation2 + $0x70] sm:$0x3] %vm30_vm0, %v16442_v1  ;;  %v141_v9 = vld [vmem:[%s16434_s0 + $0x20] sm:$0xff]  ;;  %v142_v10 = vld [vmem:[%s16434_s0 + $0x28] sm:$0xff]  ;;  %v143_v11 = vld [vmem:[%s16434_s0 + $0x30] sm:$0xff]  ;;  %vm1178_vm3 = vcmask 1046528  }
   0x6   :  { %46 = vst.msk [vmem:[#allocation2 + $0x88] sm:$0x3] %vm30_vm0, %v16442_v1  ;;  %v144_v12 = vld [vmem:[%s16434_s0 + $0x38] sm:$0xff]  ;;  %v145_v14 = vld [vmem:[%s16434_s0 + $0x40] sm:$0xff]  ;;  %v146_v15 = vld [vmem:[%s16434_s0 + $0x48] sm:$0xff]  ;;  %vm1660_vm4 = vcmask 1045504  }
   0x7   :  { %49 = vst.msk [vmem:[#allocation2 + $0xa0] sm:$0x3] %vm30_vm0, %v16442_v1  ;;  %v147_v21 = vld [vmem:[%s16434_s0 + $0x50] sm:$0xff]  ;;  %v148_v22 = vld [vmem:[%s16434_s0 + $0x58] sm:$0xff]  ;;  %v149_v26 = vld [vmem:[%s16434_s0 + $0x60] sm:$0xff]  ;;  %vm4865_vm5 = vcmask 123904  }
   0x8   :  { %v268_v2 = vld [vmem:[#allocation2 + $0x10] sm:$0x3]  ;;  %52 = vst.msk [vmem:[#allocation2 + $0xb8] sm:$0x3] %vm30_vm0, %v16442_v1  ;;  %v150_v27 = vld [vmem:[%s16434_s0 + $0x68] sm:$0xff]  ;;  %v152_v32 = vld [vmem:[%s16434_s0 + $0x78] sm:$0xff] }
   0x9   :  { %827 = vperm.xlu1 %8190, %v268_v2   ;;  %55 = vst.msk [vmem:[#allocation2 + $0xd0] sm:$0x3] %vm30_vm0, %v16442_v1  ;;  %v151_v31 = vld [vmem:[%s16434_s0 + $0x70] sm:$0xff]  ;;  %v153_v36 = vld [vmem:[%s16434_s0 + $0x80] sm:$0xff]  ;;  %v154_v37 = vld [vmem:[%s16434_s0 + $0x88] sm:$0xff]  ;;  %s8662_s27 = smov 16  }
   0xa   :  { %58 = vst.msk [vmem:[#allocation2 + $0xe8] sm:$0x3] %vm30_vm0, %v16442_v1  ;;  %v155_v41 = vld [vmem:[%s16434_s0 + $0x90] sm:$0xff]  ;;  %v156_v42 = vld [vmem:[%s16434_s0 + $0x98] sm:$0xff]  ;;  %v157_v46 = vld [vmem:[%s16434_s0 + $0xa0] sm:$0xff]  ;;  %s8663_s28 = smov 48  }
   0xb   :  { %61 = vst.msk [vmem:[#allocation2 + $0x100] sm:$0x3] %vm30_vm0, %v16442_v1  ;;  %v158_v47 = vld [vmem:[%s16434_s0 + $0xa8] sm:$0xff]  ;;  %v159_v51 = vld [vmem:[%s16434_s0 + $0xb0] sm:$0xff]  ;;  %v160_v52 = vld [vmem:[%s16434_s0 + $0xb8] sm:$0xff]  ;;  %s8664_s29 = smov 80  }
   0xc   :  { %64 = vst.msk [vmem:[#allocation2 + $0x118] sm:$0x3] %vm30_vm0, %v16442_v1  ;;  %v161_v56 = vld [vmem:[%s16434_s0 + $0xc0] sm:$0xff]  ;;  %v162_v57 = vld [vmem:[%s16434_s0 + $0xc8] sm:$0xff]  ;;  %v163_v61 = vld [vmem:[%s16434_s0 + $0xd0] sm:$0xff]  ;;  %s8667_s30 = smov 112  }
   0xd   :  { %67 = vst.msk [vmem:[#allocation2 + $0x130] sm:$0x3] %vm30_vm0, %v16442_v1  ;;  %v164_v62 = vld [vmem:[%s16434_s0 + $0xd8] sm:$0xff]  ;;  %vm7202_vm9 = vcmask 261120   ;;  %vm7219_vm10 = vcmask 392192   ;;  %vm7236_vm11 = vcmask 523264  }
   0xe   :  { %70 = vst.msk [vmem:[#allocation2 + $0x148] sm:$0x3] %vm30_vm0, %v16442_v1  ;;  %vm7253_vm12 = vcmask 654336   ;;  %vm7270_vm13 = vcmask 785408   ;;  %vm7287_vm14 = vcmask 916480  }
   0xf   :  { %73 = vst.msk [vmem:[#allocation2 + $0x160] sm:$0x3] %vm30_vm0, %v16442_v1 }
  0x10   :  { %76 = vst.msk [vmem:[#allocation2 + $0x178] sm:$0x3] %vm30_vm0, %v16442_v1 }
  0x11   :  { %79 = vst.msk [vmem:[#allocation2 + $0x190] sm:$0x3] %vm30_vm0, %v16442_v1 }
  0x12   :  { %82 = vst.msk [vmem:[#allocation2 + $0x1a8] sm:$0x3] %vm30_vm0, %v16442_v1 }
  0x13   :  { %85 = vst.msk [vmem:[#allocation2 + $0x1c0] sm:$0x3] %vm30_vm0, %v16442_v1 }
  0x14   :  { %88 = vst.msk [vmem:[#allocation2 + $0x1d8] sm:$0x3] %vm30_vm0, %v16442_v1 }
  0x15   :  { %91 = vst.msk [vmem:[#allocation2 + $0x1f0] sm:$0x3] %vm30_vm0, %v16442_v1 }
  0x16   :  { %94 = vst.msk [vmem:[#allocation2 + $0x208] sm:$0x3] %vm30_vm0, %v16442_v1 }
  0x17   :  { %97 = vst.msk [vmem:[#allocation2 + $0x220] sm:$0x3] %vm30_vm0, %v16442_v1 }
  0x18   :  { %100 = vst.msk [vmem:[#allocation2 + $0x238] sm:$0x3] %vm30_vm0, %v16442_v1 }
  0x19   :  { %103 = vst.msk [vmem:[#allocation2 + $0x250] sm:$0x3] %vm30_vm0, %v16442_v1 }
  0x1a   :  { %106 = vst.msk [vmem:[#allocation2 + $0x268] sm:$0x3] %vm30_vm0, %v16442_v1 }
  0x1b   :  { %109 = vst.msk [vmem:[#allocation2 + $0x280] sm:$0x3] %vm30_vm0, %v16442_v1 }
  0x1c   :  { %112 = vst.msk [vmem:[#allocation2 + $0x298] sm:$0x3] %vm30_vm0, %v16442_v1 }
  0x1d   :  { %115 = vst.msk [vmem:[#allocation2 + $0x2b0] sm:$0x3] %vm30_vm0, %v16442_v1 }
  0x1e   :  { %118 = vst.msk [vmem:[#allocation2 + $0x2c8] sm:$0x3] %vm30_vm0, %v16442_v1 }
  0x1f   :  { %121 = vst.msk [vmem:[#allocation2 + $0x2e0] sm:$0x3] %vm30_vm0, %v16442_v1 }
  0x20   :  { %124 = vst.msk [vmem:[#allocation2 + $0x2f8] sm:$0x3] %vm30_vm0, %v16442_v1 }
  0x21   :  { %127 = vst.msk [vmem:[#allocation2 + $0x310] sm:$0x3] %vm30_vm0, %v16442_v1 }
  0x22   :  { %130 = vst.msk [vmem:[#allocation2 + $0x328] sm:$0x3] %vm30_vm0, %v16442_v1 }
  0x23   :  { %133 = vst.msk [vmem:[#allocation2 + $0x340] sm:$0x3] %vm30_vm0, %v16442_v1 }
  0x24   :  { %136 = vst.msk [vmem:[#allocation2 + $0x358] sm:$0x3] %vm30_vm0, %v16442_v1 }
  0x25   :  { %28 = vst.msk [vmem:[#allocation2] sm:$0xff] %vm27_vm1, %v16442_v1 }
  0x26   :  { %29 = vst.msk [vmem:[#allocation2 + $0x8] sm:$0xff] %vm27_vm1, %v16442_v1 }
  0x27   :  { %32 = vst.msk [vmem:[#allocation2 + $0x18] sm:$0xff] %vm27_vm1, %v16442_v1 }
  0x28   :  { %33 = vst.msk [vmem:[#allocation2 + $0x20] sm:$0xff] %vm27_vm1, %v16442_v1 }
  0x29   :  { %35 = vst.msk [vmem:[#allocation2 + $0x30] sm:$0xff] %vm27_vm1, %v16442_v1 }
  0x2a   :  { %36 = vst.msk [vmem:[#allocation2 + $0x38] sm:$0xff] %vm27_vm1, %v16442_v1 }
  0x2b   :  { %38 = vst.msk [vmem:[#allocation2 + $0x48] sm:$0xff] %vm27_vm1, %v16442_v1 }
  0x2c   :  { %v266_v3 = vld [vmem:[#allocation2] sm:$0xff]  ;;  %39 = vst.msk [vmem:[#allocation2 + $0x50] sm:$0xff] %vm27_vm1, %v16442_v1 }
  0x2d   :  { %378 = vperm.xlu0 %8189, %v266_v3   ;;  %41 = vst.msk [vmem:[#allocation2 + $0x60] sm:$0xff] %vm27_vm1, %v16442_v1  ;;  %v267_v4 = vld [vmem:[#allocation2 + $0x8] sm:$0xff]  ;;  %v165_v3 = vld [vmem:[%s16434_s0 + $0xe0] sm:$0xff] }
  0x2e   :  { %42 = vst.msk [vmem:[#allocation2 + $0x68] sm:$0xff] %vm27_vm1, %v16442_v1 }
  0x2f   :  { %44 = vst.msk [vmem:[#allocation2 + $0x78] sm:$0xff] %vm27_vm1, %v16442_v1 }
  0x30   :  { %45 = vst.msk [vmem:[#allocation2 + $0x80] sm:$0xff] %vm27_vm1, %v16442_v1 }
  0x31   :  { %47 = vst.msk [vmem:[#allocation2 + $0x90] sm:$0xff] %vm27_vm1, %v16442_v1 }
  0x32   :  { %48 = vst.msk [vmem:[#allocation2 + $0x98] sm:$0xff] %vm27_vm1, %v16442_v1 }
  0x33   :  { %50 = vst.msk [vmem:[#allocation2 + $0xa8] sm:$0xff] %vm27_vm1, %v16442_v1 }
  0x34   :  { %51 = vst.msk [vmem:[#allocation2 + $0xb0] sm:$0xff] %vm27_vm1, %v16442_v1 }
  0x35   :  { %53 = vst.msk [vmem:[#allocation2 + $0xc0] sm:$0xff] %vm27_vm1, %v16442_v1  ;;  %383 = vperm.xlu0 %8189, %v267_v4   ;;  %v166_v4 = vld [vmem:[%s16434_s0 + $0xe8] sm:$0xff] }
  0x36   :  { %54 = vst.msk [vmem:[#allocation2 + $0xc8] sm:$0xff] %vm27_vm1, %v16442_v1 }
  0x37   :  { %56 = vst.msk [vmem:[#allocation2 + $0xd8] sm:$0xff] %vm27_vm1, %v16442_v1 }
  0x38   :  { %57 = vst.msk [vmem:[#allocation2 + $0xe0] sm:$0xff] %vm27_vm1, %v16442_v1 }
  0x39   :  { %59 = vst.msk [vmem:[#allocation2 + $0xf0] sm:$0xff] %vm27_vm1, %v16442_v1 }
  0x3a   :  { %60 = vst.msk [vmem:[#allocation2 + $0xf8] sm:$0xff] %vm27_vm1, %v16442_v1 }
  0x3b   :  { %62 = vst.msk [vmem:[#allocation2 + $0x108] sm:$0xff] %vm27_vm1, %v16442_v1 }
  0x3c   :  { %63 = vst.msk [vmem:[#allocation2 + $0x110] sm:$0xff] %vm27_vm1, %v16442_v1 }
  0x3d   :  { %65 = vst.msk [vmem:[#allocation2 + $0x120] sm:$0xff] %vm27_vm1, %v16442_v1 }
  0x3e   :  { %66 = vst.msk [vmem:[#allocation2 + $0x128] sm:$0xff] %vm27_vm1, %v16442_v1 }
  0x3f   :  { %68 = vst.msk [vmem:[#allocation2 + $0x138] sm:$0xff] %vm27_vm1, %v16442_v1 }
  0x40   :  { %69 = vst.msk [vmem:[#allocation2 + $0x140] sm:$0xff] %vm27_vm1, %v16442_v1 }
  0x41   :  { %71 = vst.msk [vmem:[#allocation2 + $0x150] sm:$0xff] %vm27_vm1, %v16442_v1 }
  0x42   :  { %72 = vst.msk [vmem:[#allocation2 + $0x158] sm:$0xff] %vm27_vm1, %v16442_v1 }
  0x43   :  { %74 = vst.msk [vmem:[#allocation2 + $0x168] sm:$0xff] %vm27_vm1, %v16442_v1 }
  0x44   :  { %75 = vst.msk [vmem:[#allocation2 + $0x170] sm:$0xff] %vm27_vm1, %v16442_v1 }
  0x45   :  { %77 = vst.msk [vmem:[#allocation2 + $0x180] sm:$0xff] %vm27_vm1, %v16442_v1 }
  0x46   :  { %78 = vst.msk [vmem:[#allocation2 + $0x188] sm:$0xff] %vm27_vm1, %v16442_v1 }
  0x47   :  { %80 = vst.msk [vmem:[#allocation2 + $0x198] sm:$0xff] %vm27_vm1, %v16442_v1 }
  0x48   :  { %81 = vst.msk [vmem:[#allocation2 + $0x1a0] sm:$0xff] %vm27_vm1, %v16442_v1 }
  0x49   :  { %83 = vst.msk [vmem:[#allocation2 + $0x1b0] sm:$0xff] %vm27_vm1, %v16442_v1 }
  0x4a   :  { %84 = vst.msk [vmem:[#allocation2 + $0x1b8] sm:$0xff] %vm27_vm1, %v16442_v1 }
  0x4b   :  { %86 = vst.msk [vmem:[#allocation2 + $0x1c8] sm:$0xff] %vm27_vm1, %v16442_v1 }
  0x4c   :  { %87 = vst.msk [vmem:[#allocation2 + $0x1d0] sm:$0xff] %vm27_vm1, %v16442_v1 }
  0x4d   :  { %89 = vst.msk [vmem:[#allocation2 + $0x1e0] sm:$0xff] %vm27_vm1, %v16442_v1 }
  0x4e   :  { %90 = vst.msk [vmem:[#allocation2 + $0x1e8] sm:$0xff] %vm27_vm1, %v16442_v1 }
  0x4f   :  { %92 = vst.msk [vmem:[#allocation2 + $0x1f8] sm:$0xff] %vm27_vm1, %v16442_v1 }
  0x50   :  { %93 = vst.msk [vmem:[#allocation2 + $0x200] sm:$0xff] %vm27_vm1, %v16442_v1 }
  0x51   :  { %95 = vst.msk [vmem:[#allocation2 + $0x210] sm:$0xff] %vm27_vm1, %v16442_v1 }
  0x52   :  { %96 = vst.msk [vmem:[#allocation2 + $0x218] sm:$0xff] %vm27_vm1, %v16442_v1 }
  0x53   :  { %98 = vst.msk [vmem:[#allocation2 + $0x228] sm:$0xff] %vm27_vm1, %v16442_v1 }
  0x54   :  { %99 = vst.msk [vmem:[#allocation2 + $0x230] sm:$0xff] %vm27_vm1, %v16442_v1 }
  0x55   :  { %101 = vst.msk [vmem:[#allocation2 + $0x240] sm:$0xff] %vm27_vm1, %v16442_v1 }
  0x56   :  { %102 = vst.msk [vmem:[#allocation2 + $0x248] sm:$0xff] %vm27_vm1, %v16442_v1 }
  0x57   :  { %104 = vst.msk [vmem:[#allocation2 + $0x258] sm:$0xff] %vm27_vm1, %v16442_v1 }
  0x58   :  { %105 = vst.msk [vmem:[#allocation2 + $0x260] sm:$0xff] %vm27_vm1, %v16442_v1 }
  0x59   :  { %107 = vst.msk [vmem:[#allocation2 + $0x270] sm:$0xff] %vm27_vm1, %v16442_v1 }
  0x5a   :  { %108 = vst.msk [vmem:[#allocation2 + $0x278] sm:$0xff] %vm27_vm1, %v16442_v1 }
  0x5b   :  { %110 = vst.msk [vmem:[#allocation2 + $0x288] sm:$0xff] %vm27_vm1, %v16442_v1 }
  0x5c   :  { %111 = vst.msk [vmem:[#allocation2 + $0x290] sm:$0xff] %vm27_vm1, %v16442_v1 }
  0x5d   :  { %113 = vst.msk [vmem:[#allocation2 + $0x2a0] sm:$0xff] %vm27_vm1, %v16442_v1 }
  0x5e   :  { %114 = vst.msk [vmem:[#allocation2 + $0x2a8] sm:$0xff] %vm27_vm1, %v16442_v1 }
  0x5f   :  { %116 = vst.msk [vmem:[#allocation2 + $0x2b8] sm:$0xff] %vm27_vm1, %v16442_v1 }
  0x60   :  { %117 = vst.msk [vmem:[#allocation2 + $0x2c0] sm:$0xff] %vm27_vm1, %v16442_v1 }
  0x61   :  { %119 = vst.msk [vmem:[#allocation2 + $0x2d0] sm:$0xff] %vm27_vm1, %v16442_v1 }
  0x62   :  { %120 = vst.msk [vmem:[#allocation2 + $0x2d8] sm:$0xff] %vm27_vm1, %v16442_v1 }
  0x63   :  { %122 = vst.msk [vmem:[#allocation2 + $0x2e8] sm:$0xff] %vm27_vm1, %v16442_v1 }
  0x64   :  { %123 = vst.msk [vmem:[#allocation2 + $0x2f0] sm:$0xff] %vm27_vm1, %v16442_v1 }
  0x65   :  { %125 = vst.msk [vmem:[#allocation2 + $0x300] sm:$0xff] %vm27_vm1, %v16442_v1 }
  0x66   :  { %126 = vst.msk [vmem:[#allocation2 + $0x308] sm:$0xff] %vm27_vm1, %v16442_v1 }
  0x67   :  { %128 = vst.msk [vmem:[#allocation2 + $0x318] sm:$0xff] %vm27_vm1, %v16442_v1 }
  0x68   :  { %129 = vst.msk [vmem:[#allocation2 + $0x320] sm:$0xff] %vm27_vm1, %v16442_v1 }
  0x69   :  { %131 = vst.msk [vmem:[#allocation2 + $0x330] sm:$0xff] %vm27_vm1, %v16442_v1 }
  0x6a   :  { %132 = vst.msk [vmem:[#allocation2 + $0x338] sm:$0xff] %vm27_vm1, %v16442_v1 }
  0x6b   :  { %134 = vst.msk [vmem:[#allocation2 + $0x348] sm:$0xff] %vm27_vm1, %v16442_v1 }
  0x6c   :  { %135 = vst.msk [vmem:[#allocation2 + $0x350] sm:$0xff] %vm27_vm1, %v16442_v1 }
  0x6d   :  { %202 = vst.msk [vmem:[#allocation2 + $0x19] sm:$0xff] %vm27_vm1, %v137_v5 }
  0x6e   :  { %203 = vst.msk [vmem:[#allocation2 + $0x21] sm:$0xff] %vm27_vm1, %v138_v6 }
  0x6f   :  { %204 = vst.msk [vmem:[#allocation2 + $0x31] sm:$0xff] %vm27_vm1, %v139_v7 }
  0x70   :  { %205 = vst.msk [vmem:[#allocation2 + $0x39] sm:$0xff] %vm27_vm1, %v140_v8 }
  0x71   :  { %206 = vst.msk [vmem:[#allocation2 + $0x49] sm:$0xff] %vm27_vm1, %v141_v9 }
  0x72   :  { %207 = vst.msk [vmem:[#allocation2 + $0x51] sm:$0xff] %vm27_vm1, %v142_v10  ;;  %v9052_v10 = vld [vmem:[%s16435_s1] sm:$0xff] }
  0x73   :  { %208 = vst.msk [vmem:[#allocation2 + $0x61] sm:$0xff] %vm27_vm1, %v143_v11 }
  0x74   :  { %v269_v13 = vld [vmem:[#allocation2 + $0x18] sm:$0xff]  ;;  %209 = vst.msk [vmem:[#allocation2 + $0x69] sm:$0xff] %vm27_vm1, %v144_v12 }
  0x75   :  { %v270_v16 = vld [vmem:[#allocation2 + $0x20] sm:$0xff]  ;;  %388 = vperm.xlu1 %8190, %v269_v13   ;;  %210 = vst.msk [vmem:[#allocation2 + $0x79] sm:$0xff] %vm27_vm1, %v145_v14  ;;  %v271_v19 = vld [vmem:[#allocation2 + $0x28] sm:$0x3]  ;;  %v9055_v14 = vperm.slane %v9052_v10, 1 }
  0x76   :  { %393 = vperm.xlu2 %8191, %v270_v16   ;;  %v272_v17 = vld [vmem:[#allocation2 + $0x30] sm:$0xff]  ;;  %211 = vst.msk [vmem:[#allocation2 + $0x81] sm:$0xff] %vm27_vm1, %v146_v15 }
  0x77   :  { %398 = vperm.xlu0 %8189, %v272_v17   ;;  %v273_v18 = vld [vmem:[#allocation2 + $0x38] sm:$0xff]  ;;  %212 = vst.msk [vmem:[#allocation2 + $0x91] sm:$0xff] %vm27_vm1, %v147_v21  ;;  %v274_v24 = vld [vmem:[#allocation2 + $0x40] sm:$0x3] }
  0x78   :  { %v275_v20 = vld [vmem:[#allocation2 + $0x48] sm:$0xff]  ;;  %213 = vst.msk [vmem:[#allocation2 + $0x99] sm:$0xff] %vm27_vm1, %v148_v22 }
  0x79   :  { %v276_v23 = vld [vmem:[#allocation2 + $0x50] sm:$0xff]  ;;  %214 = vst.msk [vmem:[#allocation2 + $0xa9] sm:$0xff] %vm27_vm1, %v149_v26  ;;  %v277_v29 = vld [vmem:[#allocation2 + $0x58] sm:$0x3] }
  0x7a   :  { %v278_v25 = vld [vmem:[#allocation2 + $0x60] sm:$0xff]  ;;  %215 = vst.msk [vmem:[#allocation2 + $0xb1] sm:$0xff] %vm27_vm1, %v150_v27  ;;  %v9081_v27 = vperm.slane %v9052_v10, 0 }
  0x7b   :  { %v279_v28 = vld [vmem:[#allocation2 + $0x68] sm:$0xff]  ;;  %216 = vst.msk [vmem:[#allocation2 + $0xc1] sm:$0xff] %vm27_vm1, %v151_v31  ;;  %v280_v34 = vld [vmem:[#allocation2 + $0x70] sm:$0x3]  ;;  %v828_v16 = vpop.permute.xlu1 %827  ;;  %v9093_v31 = vperm.slane %v9052_v10, 4 }
  0x7c   :  { %v281_v30 = vld [vmem:[#allocation2 + $0x78] sm:$0xff]  ;;  %217 = vst.msk [vmem:[#allocation2 + $0xc9] sm:$0xff] %vm27_vm1, %v152_v32 }
  0x7d   :  { %403 = vperm.xlu1 %8190, %v273_v18   ;;  %v282_v33 = vld [vmem:[#allocation2 + $0x80] sm:$0xff]  ;;  %218 = vst.msk [vmem:[#allocation2 + $0xd9] sm:$0xff] %vm27_vm1, %v153_v36  ;;  %v283_v39 = vld [vmem:[#allocation2 + $0x88] sm:$0x3]  ;;  %v988_v18 = vmul.f32 %v9055_v14, %v828_v16 }
  0x7e   :  { %832 = vperm.xlu2 %8191, %v271_v19   ;;  %v284_v35 = vld [vmem:[#allocation2 + $0x90] sm:$0xff]  ;;  %219 = vst.msk [vmem:[#allocation2 + $0xe1] sm:$0xff] %vm27_vm1, %v154_v37  ;;  %v9068_v19 = vperm.slane %v9052_v10, 2 }
  0x7f   :  { %408 = vperm.xlu0 %8189, %v275_v20   ;;  %v285_v38 = vld [vmem:[#allocation2 + $0x98] sm:$0xff]  ;;  %220 = vst.msk [vmem:[#allocation2 + $0xf1] sm:$0xff] %vm27_vm1, %v155_v41  ;;  %v286_v44 = vld [vmem:[#allocation2 + $0xa0] sm:$0x3]  ;;  %v9115_v41 = vperm.slane %v9052_v10, 5 }
  0x80   :  { %v287_v40 = vld [vmem:[#allocation2 + $0xa8] sm:$0xff]  ;;  %221 = vst.msk [vmem:[#allocation2 + $0xf9] sm:$0xff] %vm27_vm1, %v156_v42 }
  0x81   :  { %v288_v43 = vld [vmem:[#allocation2 + $0xb0] sm:$0xff]  ;;  %222 = vst.msk [vmem:[#allocation2 + $0x109] sm:$0xff] %vm27_vm1, %v157_v46  ;;  %v289_v49 = vld [vmem:[#allocation2 + $0xb8] sm:$0x3] }
  0x82   :  { %v290_v45 = vld [vmem:[#allocation2 + $0xc0] sm:$0xff]  ;;  %223 = vst.msk [vmem:[#allocation2 + $0x111] sm:$0xff] %vm27_vm1, %v158_v47  ;;  %v320_v46 = vld [vmem:[#allocation2 + $0x1b0] sm:$0xff] }
  0x83   :  { %v291_v48 = vld [vmem:[#allocation2 + $0xc8] sm:$0xff]  ;;  %224 = vst.msk [vmem:[#allocation2 + $0x121] sm:$0xff] %vm27_vm1, %v159_v51  ;;  %v292_v54 = vld [vmem:[#allocation2 + $0xd0] sm:$0x3] }
  0x84   :  { %v293_v50 = vld [vmem:[#allocation2 + $0xd8] sm:$0xff]  ;;  %225 = vst.msk [vmem:[#allocation2 + $0x129] sm:$0xff] %vm27_vm1, %v160_v52 }
  0x85   :  { %413 = vperm.xlu1 %8190, %v276_v23   ;;  %v294_v53 = vld [vmem:[#allocation2 + $0xe0] sm:$0xff]  ;;  %226 = vst.msk [vmem:[#allocation2 + $0x139] sm:$0xff] %vm27_vm1, %v161_v56  ;;  %v295_v59 = vld [vmem:[#allocation2 + $0xe8] sm:$0x3] }
  0x86   :  { %837 = vperm.xlu2 %8191, %v274_v24   ;;  %v296_v55 = vld [vmem:[#allocation2 + $0xf0] sm:$0xff]  ;;  %227 = vst.msk [vmem:[#allocation2 + $0x141] sm:$0xff] %vm27_vm1, %v162_v57  ;;  %v1182_v24 = vrot.slane %v988_v18, 1 }
  0x87   :  { %418 = vperm.xlu0 %8189, %v278_v25   ;;  %v297_v58 = vld [vmem:[#allocation2 + $0xf8] sm:$0xff]  ;;  %228 = vst.msk [vmem:[#allocation2 + $0x151] sm:$0xff] %vm27_vm1, %v163_v61  ;;  %v298_v0 = vld [vmem:[#allocation2 + $0x100] sm:$0x3] }
  0x88   :  { %v299_v60 = vld [vmem:[#allocation2 + $0x108] sm:$0xff]  ;;  %229 = vst.msk [vmem:[#allocation2 + $0x159] sm:$0xff] %vm27_vm1, %v164_v62  ;;  %v167_v62 = vld [vmem:[%s16434_s0 + $0xf0] sm:$0xff] }
  0x89   :  { %v300_v63 = vld [vmem:[#allocation2 + $0x110] sm:$0xff]  ;;  %230 = vst.msk [vmem:[#allocation2 + $0x169] sm:$0xff] %vm27_vm1, %v165_v3  ;;  %v301_v7 = vld [vmem:[#allocation2 + $0x118] sm:$0x3] }
  0x8a   :  { %v302_v2 = vld [vmem:[#allocation2 + $0x120] sm:$0xff]  ;;  %231 = vst.msk [vmem:[#allocation2 + $0x171] sm:$0xff] %vm27_vm1, %v166_v4  ;;  %v321_v4 = vld [vmem:[#allocation2 + $0x1b8] sm:$0xff] }
  0x8b   :  { %v303_v6 = vld [vmem:[#allocation2 + $0x128] sm:$0xff]  ;;  %v304_v12 = vld [vmem:[#allocation2 + $0x130] sm:$0x3]  ;;  %6593 = vst.msk [vmem:[#allocation4] sm:$0xff] %vm4191_vm2, %v16442_v1 }
  0x8c   :  { %v305_v8 = vld [vmem:[#allocation2 + $0x138] sm:$0xff]  ;;  %6595 = vst.msk [vmem:[#allocation4 + $0x10] sm:$0xff] %vm4191_vm2, %v16442_v1 }
  0x8d   :  { %423 = vperm.xlu1 %8190, %v279_v28   ;;  %v306_v11 = vld [vmem:[#allocation2 + $0x140] sm:$0xff]  ;;  %6597 = vst.msk [vmem:[#allocation4 + $0x20] sm:$0xff] %vm4191_vm2, %v16442_v1  ;;  %v307_v23 = vld [vmem:[#allocation2 + $0x148] sm:$0x3]  ;;  %v1470_v28 = vmul.f32 %v9068_v19, %v828_v16 }
  0x8e   :  { %842 = vperm.xlu2 %8191, %v277_v29   ;;  %v308_v15 = vld [vmem:[#allocation2 + $0x150] sm:$0xff]  ;;  %6599 = vst.msk [vmem:[#allocation4 + $0x30] sm:$0xff] %vm4191_vm2, %v16442_v1 }
  0x8f   :  { %428 = vperm.xlu0 %8189, %v281_v30   ;;  %v309_v21 = vld [vmem:[#allocation2 + $0x158] sm:$0xff]  ;;  %6601 = vst.msk [vmem:[#allocation4 + $0x40] sm:$0xff] %vm4191_vm2, %v16442_v1  ;;  %v1664_v36 = vrot.slane %v1470_v28, 2 }
  0x90   :  { %v311_v25 = vld [vmem:[#allocation2 + $0x168] sm:$0xff]  ;;  %6603 = vst.msk [vmem:[#allocation4 + $0x50] sm:$0xff] %vm4191_vm2, %v16442_v1 }
  0x91   :  { %6605 = vst.msk [vmem:[#allocation4 + $0x60] sm:$0xff] %vm4191_vm2, %v16442_v1  ;;  %v312_v37 = vld [vmem:[#allocation2 + $0x170] sm:$0xff] }
  0x92   :  { %6607 = vst.msk [vmem:[#allocation4 + $0x70] sm:$0xff] %vm4191_vm2, %v16442_v1 }
  0x93   :  { %6609 = vst.msk [vmem:[#allocation4 + $0x80] sm:$0xff] %vm4191_vm2, %v16442_v1 }
  0x94   :  { %6611 = vst.msk [vmem:[#allocation4 + $0x90] sm:$0xff] %vm4191_vm2, %v16442_v1 }
  0x95   :  { %433 = vperm.xlu1 %8190, %v282_v33   ;;  %6613 = vst.msk [vmem:[#allocation4 + $0xa0] sm:$0xff] %vm4191_vm2, %v16442_v1 }
  0x96   :  { %847 = vperm.xlu2 %8191, %v280_v34   ;;  %6615 = vst.msk [vmem:[#allocation4 + $0xb0] sm:$0xff] %vm4191_vm2, %v16442_v1 }
  0x97   :  { %438 = vperm.xlu0 %8189, %v284_v35   ;;  %6617 = vst.msk [vmem:[#allocation4 + $0xc0] sm:$0xff] %vm4191_vm2, %v16442_v1 }
  0x98   :  { %6619 = vst.msk [vmem:[#allocation4 + $0xd0] sm:$0xff] %vm4191_vm2, %v16442_v1 }
  0x99   :  { %6621 = vst.msk [vmem:[#allocation4 + $0xe0] sm:$0xff] %vm4191_vm2, %v16442_v1 }
  0x9a   :  { %6623 = vst.msk [vmem:[#allocation4 + $0xf0] sm:$0xff] %vm4191_vm2, %v16442_v1 }
  0x9b   :  { %6625 = vst.msk [vmem:[#allocation4 + $0x100] sm:$0xff] %vm4191_vm2, %v16442_v1 }
  0x9c   :  { %6627 = vst.msk [vmem:[#allocation4 + $0x110] sm:$0xff] %vm4191_vm2, %v16442_v1 }
  0x9d   :  { %443 = vperm.xlu1 %8190, %v285_v38   ;;  %v310_v38 = vld [vmem:[#allocation2 + $0x160] sm:$0x3]  ;;  %6629 = vst.msk [vmem:[#allocation4 + $0x120] sm:$0xff] %vm4191_vm2, %v16442_v1 }
  0x9e   :  { %852 = vperm.xlu2 %8191, %v283_v39   ;;  %6631 = vst.msk [vmem:[#allocation4 + $0x130] sm:$0xff] %vm4191_vm2, %v16442_v1 }
  0x9f   :  { %448 = vperm.xlu0 %8189, %v287_v40   ;;  %v9045_v5 = vpop.permute.xlu0 %378  ;;  %v9110_v40 = vperm.slane %v9052_v10, 3  ;;  %232 = vst.msk [vmem:[#allocation2 + $0x181] sm:$0xff] %vm27_vm1, %v167_v62 }
  0xa0   :  { %v986_v39 = vmul.f32 %v9055_v14, %v9045_v5 }
  0xa2   :  { %v1179_v52 = vrot.slane %v986_v39, 1 }
  0xa5   :  { %453 = vperm.xlu1 %8190, %v288_v43  }
  0xa6   :  { %857 = vperm.xlu2 %8191, %v286_v44  }
  0xa7   :  { %458 = vperm.xlu0 %8189, %v290_v45   ;;  %v384_v13 = vpop.permute.xlu0 %383 }
  0xa8   :  { %v9058_v17 = vmul.f32 %v9055_v14, %v384_v13  ;;  %v9076_v26 = vmul.f32 %v9068_v19, %v384_v13  ;;  %v698_v30 = vmul.f32 %v9081_v27, %v384_v13  ;;  %v168_v13 = vld [vmem:[%s16434_s0 + $0xf8] sm:$0xff] }
  0xa9   :  { %233 = vst.msk [vmem:[#allocation2 + $0x189] sm:$0xff] %vm27_vm1, %v168_v13 }
  0xaa   :  { %v1180_v22 = vrot.slane %v9058_v17, 1  ;;  %v1662_v32 = vrot.slane %v9076_v26, 2  ;;  %v169_v17 = vld [vmem:[%s16434_s0 + $0x100] sm:$0xff] }
  0xab   :  { %234 = vst.msk [vmem:[#allocation2 + $0x1c9] sm:$0xff] %vm27_vm1, %v169_v17 }
  0xac   :  { %v1183_v29 = vsel %vm1178_vm3, %v1180_v22, %v1182_v24  ;;  %v1665_v45 = vsel %vm1660_vm4, %v1662_v32, %v1664_v36  ;;  %v1181_v3 = vsel %vm1178_vm3, %v1179_v52, %v1180_v22  ;;  %v9222_v36 = vperm.slane %v9052_v10, 6  ;;  %v322_v52 = vld [vmem:[#allocation2 + $0x1c0] sm:$0x3] }
  0xad   :  { %463 = vperm.xlu1 %8190, %v291_v48   ;;  %v1404_v33 = vadd.f32 %v1183_v29, %v698_v30 }
  0xae   :  { %862 = vperm.xlu2 %8191, %v289_v49  }
  0xaf   :  { %468 = vperm.xlu0 %8189, %v293_v50   ;;  %v1886_v47 = vadd.f32 %v1665_v45, %v1404_v33 }
  0xb5   :  { %473 = vperm.xlu1 %8190, %v294_v53  }
  0xb6   :  { %867 = vperm.xlu2 %8191, %v292_v54  }
  0xb7   :  { %478 = vperm.xlu0 %8189, %v296_v55  }
  0xbd   :  { %483 = vperm.xlu1 %8190, %v297_v58  }
  0xbe   :  { %872 = vperm.xlu2 %8191, %v295_v59   ;;  %v1468_v59 = vmul.f32 %v9068_v19, %v9045_v5 }
  0xbf   :  { %488 = vperm.xlu0 %8189, %v299_v60  }
  0xc5   :  { %493 = vperm.xlu1 %8190, %v300_v63  }
  0xc6   :  { %877 = vperm.xlu2 %8191, %v298_v0  }
  0xc7   :  { %498 = vperm.xlu0 %8189, %v302_v2  }
  0xcd   :  { %503 = vperm.xlu1 %8190, %v303_v6   ;;  %v697_v6 = vmul.f32 %v9081_v27, %v9045_v5 }
  0xce   :  { %882 = vperm.xlu2 %8191, %v301_v7   ;;  %v313_v7 = vld [vmem:[#allocation2 + $0x178] sm:$0x3] }
  0xcf   :  { %508 = vperm.xlu0 %8189, %v305_v8  }
  0xd0   :  { %v9047_v9 = vpop.permute.xlu2 %393 }
  0xd1   :  { %v9102_v34 = vmul.f32 %v9055_v14, %v9047_v9  ;;  %v9119_v42 = vmul.f32 %v9093_v31, %v9047_v9  ;;  %v9134_v49 = vmul.f32 %v9068_v19, %v9047_v9  ;;  %v1971_v53 = vmul.f32 %v9110_v40, %v9047_v9 }
  0xd2   :  { %v9146_v55 = vmul.f32 %v9115_v41, %v9047_v9  ;;  %v700_v58 = vmul.f32 %v9081_v27, %v9047_v9 }
  0xd3   :  { %v1185_v48 = vrot.slane %v9102_v34, 1  ;;  %v2302_v54 = vrot.slane %v9119_v42, 1  ;;  %v2035_v61 = vadd.f32 %v1971_v53, %v1886_v47  ;;  %v1667_v63 = vrot.slane %v9134_v49, 2  ;;  %v314_v53 = vld [vmem:[#allocation2 + $0x180] sm:$0xff] }
  0xd4   :  { %v2783_v8 = vrot.slane %v9146_v55, 2  ;;  %v171_v55 = vld [vmem:[%s16434_s0 + $0x110] sm:$0xff] }
  0xd5   :  { %513 = vperm.xlu1 %8190, %v306_v11   ;;  %236 = vst.msk [vmem:[#allocation2 + $0x1e1] sm:$0xff] %vm27_vm1, %v171_v55 }
  0xd6   :  { %887 = vperm.xlu2 %8191, %v304_v12  }
  0xd7   :  { %518 = vperm.xlu0 %8189, %v308_v15   ;;  %v1403_v15 = vadd.f32 %v1181_v3, %v697_v6  ;;  %v315_v6 = vld [vmem:[#allocation2 + $0x188] sm:$0xff] }
  0xd8   :  { %v833_v20 = vpop.permute.xlu2 %832 }
  0xd9   :  { %v991_v35 = vmul.f32 %v9055_v14, %v833_v20  ;;  %v2111_v43 = vmul.f32 %v9093_v31, %v833_v20  ;;  %v1473_v51 = vmul.f32 %v9068_v19, %v833_v20  ;;  %v2592_v57 = vmul.f32 %v9115_v41, %v833_v20 }
  0xda   :  { %v9192_v20 = vperm.slane %v9052_v10, 7 }
  0xdb   :  { %v1187_v50 = vrot.slane %v991_v35, 1  ;;  %v2304_v56 = vrot.slane %v2111_v43, 1  ;;  %v1669_v2 = vrot.slane %v1473_v51, 2  ;;  %v2785_v11 = vrot.slane %v2592_v57, 2 }
  0xdd   :  { %523 = vperm.xlu1 %8190, %v309_v21   ;;  %v1188_v0 = vsel %vm1178_vm3, %v1185_v48, %v1187_v50  ;;  %v2305_v9 = vsel %vm1178_vm3, %v2302_v54, %v2304_v56  ;;  %v1670_v18 = vsel %vm1660_vm4, %v1667_v63, %v1669_v2  ;;  %v9197_v21 = vld [vmem:[%s16435_s1 + $0x8] ss:$0 sm:$0xff]  ;;  %v2786_v30 = vsel %vm1660_vm4, %v2783_v8, %v2785_v11 }
  0xde   :  { %892 = vperm.xlu2 %8191, %v307_v23   ;;  %v1406_v5 = vadd.f32 %v1188_v0, %v700_v58  ;;  %v2526_v16 = vadd.f32 %v2305_v9, %v2035_v61  ;;  %v1661_v23 = vrot.slane %v1468_v59, 2 }
  0xdf   :  { %528 = vperm.xlu0 %8189, %v311_v25   ;;  %v170_v25 = vld [vmem:[%s16434_s0 + $0x108] sm:$0xff] }
  0xe0   :  { %v9122_v44 = vpop.permute.xlu2 %837  ;;  %v1663_v35 = vsel %vm1660_vm4, %v1661_v23, %v1662_v32  ;;  %v9229_v43 = vadd.f32 %v2786_v30, %v2526_v16  ;;  %235 = vst.msk [vmem:[#allocation2 + $0x1d1] sm:$0xff] %vm27_vm1, %v170_v25 }
  0xe1   :  { %v9201_v22 = vmul.f32 %v9055_v14, %v9122_v44  ;;  %v9208_v28 = vmul.f32 %v9068_v19, %v9122_v44  ;;  %v9212_v29 = vmul.f32 %v9093_v31, %v9122_v44  ;;  %v1885_v39 = vadd.f32 %v1663_v35, %v1403_v15 }
  0xe2   :  { %v9235_v26 = vmul.f32 %v9115_v41, %v9122_v44  ;;  %v9239_v10 = vmul.f32 %v9192_v20, %v9122_v44  ;;  %v9243_v32 = vmul.f32 %v9197_v21, %v9122_v44 }
  0xe3   :  { %v1192_v45 = vrot.slane %v9201_v22, 1  ;;  %v2309_v47 = vrot.slane %v9212_v29, 1 }
  0xe4   :  { %v2790_v2 = vrot.slane %v9235_v26, 2  ;;  %v3425_v3 = vrot.slane %v9239_v10, 1 }
  0xe5   :  { %533 = vperm.xlu1 %8190, %v312_v37   ;;  %v9225_v37 = vadd.f32 %v1670_v18, %v1406_v5 }
  0xe6   :  { %897 = vperm.xlu2 %8191, %v310_v38  }
  0xe7   :  { %538 = vperm.xlu0 %8189, %v320_v46   ;;  %v9155_v60 = vpop.permute.xlu1 %388  ;;  %v1674_v46 = vrot.slane %v9208_v28, 2  ;;  %v324_v30 = vld [vmem:[#allocation2 + $0x1d0] sm:$0xff] }
  0xe8   :  { %v989_v12 = vmul.f32 %v9055_v14, %v9155_v60  ;;  %v843_v24 = vpop.permute.xlu2 %842  ;;  %v1471_v38 = vmul.f32 %v9068_v19, %v9155_v60  ;;  %v2109_v51 = vmul.f32 %v9093_v31, %v9155_v60  ;;  %v699_v62 = vmul.f32 %v9081_v27, %v9155_v60 }
  0xe9   :  { %v9248_v50 = vmul.f32 %v9055_v14, %v843_v24  ;;  %v9253_v56 = vmul.f32 %v9068_v19, %v843_v24  ;;  %v9256_v57 = vmul.f32 %v9093_v31, %v843_v24  ;;  %v9259_v44 = vmul.f32 %v9115_v41, %v843_v24  ;;  %v9282_v13 = vpop.permute.xlu0 %398 }
  0xea   :  { %v1184_v33 = vrot.slane %v989_v12, 1  ;;  %v9265_v59 = vmul.f32 %v9192_v20, %v843_v24  ;;  %v9268_v61 = vmul.f32 %v9197_v21, %v843_v24  ;;  %v1666_v0 = vrot.slane %v1471_v38, 2 }
  0xeb   :  { %v1970_v34 = vmul.f32 %v9110_v40, %v9155_v60  ;;  %v2301_v11 = vrot.slane %v2109_v51, 1  ;;  %v2590_v12 = vmul.f32 %v9115_v41, %v9155_v60  ;;  %v992_v35 = vmul.f32 %v9055_v14, %v9282_v13 }
  0xec   :  { %v1186_v58 = vsel %vm1178_vm3, %v1184_v33, %v1185_v48  ;;  %v3430_v23 = vrot.slane %v9265_v59, 1  ;;  %v1668_v25 = vsel %vm1660_vm4, %v1666_v0, %v1667_v63  ;;  %v9298_v33 = vmul.f32 %v9081_v27, %v9282_v13 }
  0xed   :  { %543 = vperm.xlu1 %8190, %v321_v4   ;;  %v3906_v4 = vrot.slane %v9243_v32, 2  ;;  %v1405_v9 = vadd.f32 %v1186_v58, %v699_v62  ;;  %v2034_v17 = vadd.f32 %v1970_v34, %v1885_v39  ;;  %v9304_v38 = vmul.f32 %v9068_v19, %v9282_v13 }
  0xee   :  { %902 = vperm.xlu2 %8191, %v313_v7   ;;  %v1972_v49 = vmul.f32 %v9110_v40, %v9282_v13  ;;  %v2782_v39 = vrot.slane %v2590_v12, 2  ;;  %v2303_v51 = vsel %vm1178_vm3, %v2301_v11, %v2302_v54  ;;  %v2112_v34 = vmul.f32 %v9093_v31, %v9282_v13 }
  0xef   :  { %1951 = vperm.xlu0 %8189, %v314_v53   ;;  %v9277_v48 = vpop.permute.xlu1 %403  ;;  %v1887_v63 = vadd.f32 %v1668_v25, %v1405_v9  ;;  %v323_v53 = vld [vmem:[#allocation2 + $0x1c8] sm:$0xff]  ;;  %v2525_v58 = vadd.f32 %v2303_v51, %v2034_v17  ;;  %v1189_v24 = vrot.slane %v992_v35, 1  ;;  %v3091_v10 = vmul.f32 %v9222_v36, %v9282_v13 }
  0xf0   :  { %v848_v18 = vpop.permute.xlu2 %847  ;;  %v9294_v60 = vmul.f32 %v9055_v14, %v9277_v48  ;;  %v9319_v0 = vmul.f32 %v9192_v20, %v9277_v48  ;;  %v702_v54 = vmul.f32 %v9081_v27, %v9277_v48  ;;  %v2113_v11 = vmul.f32 %v9093_v31, %v9277_v48 }
  0xf1   :  { %v9315_v62 = vmul.f32 %v9068_v19, %v848_v18  ;;  %v9324_v42 = vmul.f32 %v9093_v31, %v848_v18  ;;  %v9332_v12 = vmul.f32 %v9115_v41, %v848_v18  ;;  %v9335_v17 = vmul.f32 %v9192_v20, %v848_v18  ;;  %v409_v26 = vpop.permute.xlu0 %408 }
  0xf2   :  { %v1190_v9 = vrot.slane %v9294_v60, 1  ;;  %v9339_v25 = vmul.f32 %v9068_v19, %v9277_v48  ;;  %v2784_v60 = vsel %vm1660_vm4, %v2782_v39, %v2783_v8  ;;  %v9348_v1 = vmul.f32 %v9197_v21, %v848_v18  ;;  %v172_v8 = vld [vmem:[%s16434_s0 + $0x118] sm:$0xff] }
  0xf3   :  { %v3092_v5 = vmul.f32 %v9222_v36, %v9277_v48  ;;  %v3006_v16 = vadd.f32 %v2784_v60, %v2525_v58  ;;  %v3423_v15 = vrot.slane %v9319_v0, 1  ;;  %v2307_v58 = vrot.slane %v2113_v11, 1  ;;  %237 = vst.msk [vmem:[#allocation2 + $0x1e9] sm:$0xff] %vm27_vm1, %v172_v8 }
  0xf4   :  { %v1193_v39 = vsel %vm1178_vm3, %v1190_v9, %v1192_v45  ;;  %v2306_v51 = vrot.slane %v2112_v34, 1  ;;  %v9377_v22 = vmul.f32 %v9115_v41, %v9277_v48  ;;  %v325_v45 = vld [vmem:[#allocation2 + $0x1d8] sm:$0x3]  ;;  %v2036_v7 = vadd.f32 %v1972_v49, %v1887_v63 }
  0xf5   :  { %1956 = vperm.xlu1 %8190, %v315_v6   ;;  %v316_v6 = vld [vmem:[#allocation2 + $0x190] sm:$0x3]  ;;  %v3156_v0 = vadd.f32 %v3092_v5, %v9229_v43  ;;  %v3230_v43 = vmul.f32 %v9192_v20, %v9282_v13  ;;  %v1408_v5 = vadd.f32 %v1193_v39, %v702_v54  ;;  %v3426_v35 = vsel %vm1178_vm3, %v3423_v15, %v3425_v3 }
  0xf6   :  { %907 = vperm.xlu2 %8191, %v322_v52   ;;  %v9312_v52 = vmul.f32 %v9055_v14, %v848_v18  ;;  %v1672_v18 = vrot.slane %v9339_v25, 2  ;;  %v2310_v8 = vsel %vm1178_vm3, %v2307_v58, %v2309_v47  ;;  %v1191_v60 = vsel %vm1178_vm3, %v1189_v24, %v1190_v9 }
  0xf7   :  { %553 = vperm.xlu0 %8189, %v324_v30   ;;  %v1973_v30 = vmul.f32 %v9110_v40, %v9277_v48  ;;  %v2308_v54 = vsel %vm1178_vm3, %v2306_v51, %v2307_v58  ;;  %v414_v3 = vpop.permute.xlu1 %413  ;;  %v2788_v29 = vrot.slane %v9377_v22, 2  ;;  %v3711_v47 = vmul.f32 %v9197_v21, %v9282_v13 }
  0xf8   :  { %v853_v55 = vpop.permute.xlu2 %852  ;;  %v3155_v9 = vadd.f32 %v3091_v10, %v3006_v16  ;;  %v9411_v58 = vadd.f32 %v1191_v60, %v9298_v33  ;;  %v996_v10 = vmul.f32 %v9055_v14, %v414_v3  ;;  %v3233_v28 = vmul.f32 %v9192_v20, %v409_v26 }
  0xf9   :  { %v2037_v11 = vadd.f32 %v1973_v30, %v9225_v37  ;;  %v2593_v37 = vmul.f32 %v9115_v41, %v9282_v13  ;;  %v3422_v30 = vrot.slane %v3230_v43, 1  ;;  %v9400_v49 = vmul.f32 %v9055_v14, %v853_v55 }
  0xfa   :  { %v9406_v51 = vmul.f32 %v9068_v19, %v853_v55  ;;  %v9414_v13 = vmul.f32 %v9192_v20, %v414_v3  ;;  %v327_v22 = vld [vmem:[#allocation2 + $0x1e8] sm:$0xff]  ;;  %v9417_v32 = vmul.f32 %v9093_v31, %v853_v55  ;;  %v9423_v16 = vmul.f32 %v9192_v20, %v853_v55 }
  0xfb   :  { %v2528_v24 = vadd.f32 %v2310_v8, %v2037_v11  ;;  %v2787_v43 = vrot.slane %v2593_v37, 2  ;;  %v3424_v33 = vsel %vm1178_vm3, %v3422_v30, %v3423_v15  ;;  %v3903_v60 = vrot.slane %v3711_v47, 2  ;;  %v317_v11 = vld [vmem:[#allocation2 + $0x198] sm:$0xff] }
  0xfc   :  { %v9436_v15 = vmul.f32 %v9093_v31, %v414_v3  ;;  %v3428_v30 = vrot.slane %v9414_v13, 1  ;;  %v1195_v47 = vrot.slane %v996_v10, 1  ;;  %v3427_v8 = vrot.slane %v3233_v28, 1 }
  0xfd   :  { %2100 = vperm.xlu1 %8190, %v316_v6   ;;  %v1671_v6 = vrot.slane %v9304_v38, 2  ;;  %v9490_v28 = vmul.f32 %v9068_v19, %v409_v26 }
  0xfe   :  { %548 = vperm.xlu2 %8191, %v323_v53   ;;  %v9356_v53 = vmul.f32 %v9197_v21, %v9277_v48  ;;  %v3647_v48 = vadd.f32 %v3426_v35, %v3156_v0  ;;  %v2527_v0 = vadd.f32 %v2308_v54, %v2036_v7  ;;  %v3646_v35 = vadd.f32 %v3424_v33, %v3155_v9 }
  0xff   :  { %v3094_v54 = vmul.f32 %v9222_v36, %v414_v3 }
 0x100   :  { %v3904_v34 = vrot.slane %v9356_v53, 2  ;;  %v326_v53 = vld [vmem:[#allocation2 + $0x1e0] sm:$0xff] }
 0x101   :  { %558 = vperm.xlu0 %8189, %v326_v53  }
 0x102   :  { %v3907_v63 = vsel %vm1660_vm4, %v3904_v34, %v3906_v4  ;;  %v9420_v4 = vmul.f32 %v9115_v41, %v853_v55  ;;  %v3905_v9 = vsel %vm1660_vm4, %v3903_v60, %v3904_v34  ;;  %v704_v60 = vmul.f32 %v9081_v27, %v414_v3 }
 0x103   :  { %v9408_v39 = vadd.f32 %v3907_v63, %v3647_v48  ;;  %v9442_v63 = vmul.f32 %v9197_v21, %v853_v55  ;;  %v9454_v33 = vadd.f32 %v3905_v9, %v3646_v35  ;;  %v9457_v55 = vmul.f32 %v9068_v19, %v414_v3 }
 0x104   :  { %v2789_v35 = vsel %vm1660_vm4, %v2787_v43, %v2788_v29 }
 0x105   :  { %16554 = vst [vmem:[#allocation8_spill] sm:$0xff] %v9408_v39  ;;  %563 = vperm.xlu1 %8190, %v327_v22   ;;  %v4193_v37 = vsel %vm4191_vm2, %v9408_v39, 0.0  ;;  %v9452_v22 = vmul.f32 %v9197_v21, %v414_v3  ;;  %v3008_v10 = vadd.f32 %v2789_v35, %v2527_v0  ;;  %v1677_v59 = vrot.slane %v9457_v55, 2  ;;  %v858_v35 = vpop.permute.xlu2 %857 }
 0x106   :  { %912 = vperm.xlu2 %8191, %v325_v45   ;;  %v2791_v45 = vsel %vm1660_vm4, %v2788_v29, %v2790_v2  ;;  %16555 = vst [vmem:[#allocation9_spill] sm:$0xff] %v9454_v33  ;;  %v4192_v34 = vsel %vm4191_vm2, %v9454_v33, 0.0  ;;  %v16556_v29 = vrot.slane %v9248_v50, 1  ;;  %v16557_v2 = vrot.slane %v9256_v57, 1 }
 0x107   :  { %v3009_v48 = vadd.f32 %v2791_v45, %v2528_v24  ;;  %v1675_v24 = vsel %vm1660_vm4, %v1672_v18, %v1674_v46  ;;  %v1975_v46 = vmul.f32 %v9110_v40, %v414_v3  ;;  %v16558_v50 = vrot.slane %v9268_v61, 2 }
 0x108   :  { %v1890_v13 = vadd.f32 %v1675_v24, %v1408_v5  ;;  %v3431_v5 = vsel %vm1178_vm3, %v3428_v30, %v3430_v23  ;;  %v995_v24 = vmul.f32 %v9055_v14, %v409_v26  ;;  %v2115_v23 = vmul.f32 %v9093_v31, %v409_v26 }
 0x109   :  { %v3158_v45 = vadd.f32 %v3094_v54, %v3009_v48  ;;  %v9470_v48 = vmul.f32 %v9115_v41, %v414_v3  ;;  %v3909_v54 = vrot.slane %v9452_v22, 2  ;;  %v1198_v43 = vsel %vm1178_vm3, %v1195_v47, %v16556_v29 }
 0x10a   :  { %v2039_v3 = vadd.f32 %v1975_v46, %v1890_v13  ;;  %v1673_v22 = vsel %vm1660_vm4, %v1671_v6, %v1672_v18  ;;  %v2311_v38 = vrot.slane %v2115_v23, 1  ;;  %v9501_v18 = vmul.f32 %v9115_v41, %v409_v26 }
 0x10b   :  { %v3649_v9 = vadd.f32 %v3431_v5, %v3158_v45  ;;  %v1194_v45 = vrot.slane %v995_v24, 1  ;;  %v3714_v5 = vmul.f32 %v9197_v21, %v409_v26  ;;  %v3912_v13 = vsel %vm1660_vm4, %v3909_v54, %v16558_v50  ;;  %v9504_v24 = vpop.permute.xlu1 %423 }
 0x10c   :  { %v1889_v57 = vadd.f32 %v1673_v22, %v9411_v58  ;;  %v3429_v6 = vsel %vm1178_vm3, %v3427_v8, %v3428_v30  ;;  %v9506_v29 = vadd.f32 %v4193_v37, %v4192_v34  ;;  %v1410_v61 = vadd.f32 %v1198_v43, %v704_v60  ;;  %v328_v30 = vld [vmem:[#allocation2 + $0x1f0] sm:$0x3]  ;;  %v318_v34 = vld [vmem:[#allocation2 + $0x1a0] sm:$0xff]  ;;  %v319_v43 = vld [vmem:[#allocation2 + $0x1a8] sm:$0x3] }
 0x10d   :  { %v9498_v25 = vadd.f32 %v3912_v13, %v3649_v9  ;;  %v2793_v58 = vrot.slane %v9470_v48, 2  ;;  %v703_v22 = vmul.f32 %v9081_v27, %v409_v26  ;;  %v3908_v9 = vrot.slane %v3714_v5, 2  ;;  %917 = vperm.xlu1 %8190, %v328_v30   ;;  %3077 = vperm.xlu0 %8189, %v318_v34  }
 0x10e   :  { %3072 = vperm.xlu2 %8191, %v317_v11   ;;  %v2312_v11 = vrot.slane %v9436_v15, 1  ;;  %v3093_v15 = vmul.f32 %v9222_v36, %v409_v26  ;;  %v9513_v8 = vmul.f32 %v9055_v14, %v858_v35  ;;  %v9517_v37 = vmul.f32 %v9192_v20, %v9504_v24 }
 0x10f   :  { %16559 = vst [vmem:[#allocation10_spill] sm:$0xff] %v9498_v25  ;;  %v9521_v60 = vsel %vm4191_vm2, %v9498_v25, 0.0  ;;  %v9526_v48 = vmul.f32 %v9068_v19, %v858_v35  ;;  %v16560_v5 = vrot.slane %v9259_v44, 2  ;;  %v16562_v34 = vrot.slane %v9253_v56, 2  ;;  %v174_v56 = vld [vmem:[%s16434_s0 + $0x128] sm:$0xff] }
 0x110   :  { %v2315_v0 = vsel %vm1178_vm3, %v2312_v11, %v16557_v2  ;;  %v1974_v2 = vmul.f32 %v9110_v40, %v409_v26  ;;  %v3157_v46 = vadd.f32 %v3093_v15, %v3008_v10  ;;  %v1196_v10 = vsel %vm1178_vm3, %v1194_v45, %v1195_v47  ;;  %239 = vst.msk [vmem:[#allocation2 + $0x201] sm:$0xff] %vm27_vm1, %v174_v56 }
 0x111   :  { %v2530_v50 = vadd.f32 %v2315_v0, %v2039_v3  ;;  %v1676_v15 = vrot.slane %v9490_v28, 2  ;;  %v2313_v26 = vsel %vm1178_vm3, %v2311_v38, %v2312_v11  ;;  %v2792_v47 = vrot.slane %v9501_v18, 2 }
 0x112   :  { %v2038_v23 = vadd.f32 %v1974_v2, %v1889_v57  ;;  %v3648_v13 = vadd.f32 %v3429_v6, %v3157_v46  ;;  %v1409_v3 = vadd.f32 %v1196_v10, %v703_v22  ;;  %v9529_v0 = vmul.f32 %v9093_v31, %v858_v35  ;;  %v419_v10 = vpop.permute.xlu0 %418 }
 0x113   :  { %v9532_v45 = vmul.f32 %v9115_v41, %v858_v35  ;;  %v2796_v57 = vsel %vm1660_vm4, %v2793_v58, %v16560_v5  ;;  %v3910_v11 = vsel %vm1660_vm4, %v3908_v9, %v3909_v54  ;;  %v9539_v2 = vmul.f32 %v9192_v20, %v858_v35  ;;  %v9628_v28 = vpop.permute.xlu1 %433 }
 0x114   :  { %v3011_v46 = vadd.f32 %v2796_v57, %v2530_v50  ;;  %v3096_v38 = vmul.f32 %v9222_v36, %v9504_v24  ;;  %v2529_v18 = vadd.f32 %v2313_v26, %v2038_v23  ;;  %v9543_v6 = vadd.f32 %v3910_v11, %v3648_v13  ;;  %v173_v11 = vld [vmem:[%s16434_s0 + $0x120] sm:$0xff] }
 0x115   :  { %v3433_v44 = vrot.slane %v9517_v37, 1  ;;  %v9549_v54 = vmul.f32 %v9197_v21, %v858_v35  ;;  %v999_v50 = vmul.f32 %v9055_v14, %v9504_v24  ;;  %v9555_v9 = vmul.f32 %v9093_v31, %v9504_v24  ;;  %238 = vst.msk [vmem:[#allocation2 + $0x1f9] sm:$0xff] %vm27_vm1, %v173_v11 }
 0x116   :  { %3221 = vperm.xlu2 %8191, %v319_v43   ;;  %16561 = vst [vmem:[#allocation11_spill] sm:$0xff] %v9543_v6  ;;  %v1680_v37 = vsel %vm1660_vm4, %v1677_v59, %v16562_v34  ;;  %v9566_v35 = vmul.f32 %v9197_v21, %v9504_v24  ;;  %v3160_v5 = vadd.f32 %v3096_v38, %v3011_v46  ;;  %v4195_v34 = vsel %vm4191_vm2, %v9543_v6, 0.0 }
 0x117   :  { %v1892_v43 = vadd.f32 %v1680_v37, %v1410_v61  ;;  %v3236_v57 = vmul.f32 %v9192_v20, %v419_v10  ;;  %v1977_v13 = vmul.f32 %v9110_v40, %v9504_v24  ;;  %v16563_v26 = vrot.slane %v9335_v17, 1 }
 0x118   :  { %v998_v46 = vmul.f32 %v9055_v14, %v419_v10  ;;  %v1200_v37 = vrot.slane %v999_v50, 1  ;;  %v2317_v30 = vrot.slane %v9555_v9, 1  ;;  %v2794_v23 = vsel %vm1660_vm4, %v2792_v47, %v2793_v58 }
 0x119   :  { %v3436_v61 = vsel %vm1178_vm3, %v3433_v44, %v16563_v26  ;;  %v706_v22 = vmul.f32 %v9081_v27, %v9504_v24  ;;  %v3914_v17 = vrot.slane %v9566_v35, 2  ;;  %v3010_v7 = vadd.f32 %v2794_v23, %v2529_v18 }
 0x11a   :  { %v3095_v26 = vmul.f32 %v9222_v36, %v419_v10  ;;  %v4196_v53 = vadd.f32 %v4195_v34, %v9506_v29  ;;  %v9596_v11 = vmul.f32 %v9068_v19, %v9504_v24  ;;  %v3651_v50 = vadd.f32 %v3436_v61, %v3160_v5 }
 0x11b   :  { %v3432_v9 = vrot.slane %v3236_v57, 1  ;;  %v2041_v38 = vadd.f32 %v1977_v13, %v1892_v43  ;;  %v9600_v58 = vmul.f32 %v9115_v41, %v9504_v24  ;;  %v1199_v47 = vrot.slane %v998_v46, 1 }
 0x11c   :  { %v2118_v56 = vmul.f32 %v9093_v31, %v419_v10  ;;  %v16564_v18 = vrot.slane %v9312_v52, 1  ;;  %v16565_v29 = vrot.slane %v9324_v42, 1  ;;  %v1678_v13 = vsel %vm1660_vm4, %v1676_v15, %v1677_v59  ;;  %v329_v15 = vld [vmem:[#allocation2 + $0x1f8] sm:$0xff] }
 0x11d   :  { %v3717_v24 = vmul.f32 %v9197_v21, %v419_v10  ;;  %v16566_v43 = vrot.slane %v9348_v1, 2  ;;  %v1891_v57 = vadd.f32 %v1678_v13, %v1409_v3  ;;  %v9619_v52 = vmul.f32 %v9068_v19, %v419_v10  ;;  %568 = vperm.xlu0 %8189, %v329_v15  }
 0x11e   :  { %v1203_v23 = vsel %vm1178_vm3, %v1200_v37, %v16564_v18  ;;  %v2320_v35 = vsel %vm1178_vm3, %v2317_v30, %v16565_v29  ;;  %v3159_v34 = vadd.f32 %v3095_v26, %v3010_v7  ;;  %v1976_v61 = vmul.f32 %v9110_v40, %v419_v10  ;;  %v330_v7 = vld [vmem:[#allocation2 + $0x200] sm:$0xff]  ;;  %v331_v26 = vld [vmem:[#allocation2 + $0x208] sm:$0x3] }
 0x11f   :  { %v3917_v5 = vsel %vm1660_vm4, %v3914_v17, %v16566_v43  ;;  %v9625_v55 = vmul.f32 %v9115_v41, %v419_v10  ;;  %v3434_v59 = vsel %vm1178_vm3, %v3432_v9, %v3433_v44  ;;  %v1201_v46 = vsel %vm1178_vm3, %v1199_v47, %v1200_v37  ;;  %573 = vperm.xlu1 %8190, %v330_v7  }
 0x120   :  { %v9621_v42 = vadd.f32 %v3917_v5, %v3651_v50  ;;  %v2316_v18 = vrot.slane %v2118_v56, 1  ;;  %v1412_v50 = vadd.f32 %v1203_v23, %v706_v22  ;;  %v2532_v29 = vadd.f32 %v2320_v35, %v2041_v38  ;;  %v863_v5 = vpop.permute.xlu2 %862  ;;  %922 = vperm.xlu2 %8191, %v331_v26  }
 0x121   :  { %v705_v13 = vmul.f32 %v9081_v27, %v419_v10  ;;  %v3913_v43 = vrot.slane %v3717_v24, 2  ;;  %v4198_v44 = vadd.f32 %v9521_v60, %v4196_v53  ;;  %v1681_v9 = vrot.slane %v9619_v52, 2 }
 0x122   :  { %16567 = vst [vmem:[#allocation12_spill] sm:$0xff] %v9621_v42  ;;  %v3650_v1 = vadd.f32 %v3434_v59, %v3159_v34  ;;  %v9638_v3 = vmul.f32 %v9192_v20, %v9628_v28  ;;  %v9642_v37 = vsel %vm4191_vm2, %v9621_v42, 0.0  ;;  %v2040_v38 = vadd.f32 %v1976_v61, %v1891_v57 }
 0x123   :  { %v1411_v22 = vadd.f32 %v1201_v46, %v705_v13  ;;  %v2797_v10 = vrot.slane %v9625_v55, 2  ;;  %v2318_v47 = vsel %vm1178_vm3, %v2316_v18, %v2317_v30  ;;  %v9647_v53 = vmul.f32 %v9055_v14, %v863_v5 }
 0x124   :  { %v9650_v60 = vmul.f32 %v9068_v19, %v863_v5  ;;  %v16568_v56 = vrot.slane %v9332_v12, 2  ;;  %v16569_v23 = vrot.slane %v9600_v58, 2  ;;  %v3915_v24 = vsel %vm1660_vm4, %v3913_v43, %v3914_v17 }
 0x125   :  { %v9659_v57 = vmul.f32 %v9093_v31, %v863_v5  ;;  %v3098_v30 = vmul.f32 %v9222_v36, %v9628_v28  ;;  %v9663_v34 = vadd.f32 %v3915_v24, %v3650_v1  ;;  %v9667_v61 = vmul.f32 %v9055_v14, %v9628_v28 }
 0x126   :  { %v2801_v35 = vsel %vm1660_vm4, %v16569_v23, %v16568_v56  ;;  %v9671_v12 = vmul.f32 %v9093_v31, %v9628_v28  ;;  %v16444_v55 = vrot.slane %v9638_v3, 1  ;;  %v9675_v17 = vmul.f32 %v9115_v41, %v863_v5 }
 0x127   :  { %v3013_v52 = vadd.f32 %v2801_v35, %v2532_v29  ;;  %16570 = vst [vmem:[#allocation13_spill] sm:$0xff] %v9663_v34  ;;  %v9678_v59 = vmul.f32 %v9192_v20, %v863_v5  ;;  %v9681_v15 = vmul.f32 %v9197_v21, %v863_v5  ;;  %v9685_v1 = vmul.f32 %v9197_v21, %v9628_v28  ;;  %v429_v35 = vpop.permute.xlu0 %428 }
 0x128   :  { %v2531_v46 = vadd.f32 %v2318_v47, %v2040_v38  ;;  %v16571_v26 = vrot.slane %v9315_v62, 2  ;;  %v16572_v29 = vrot.slane %v9596_v11, 2  ;;  %v1979_v5 = vmul.f32 %v9110_v40, %v9628_v28 }
 0x129   :  { %v3162_v23 = vadd.f32 %v3098_v30, %v3013_v52  ;;  %v4199_v38 = vsel %vm4191_vm2, %v9663_v34, 0.0  ;;  %v1205_v47 = vrot.slane %v9667_v61, 1  ;;  %v2322_v24 = vrot.slane %v9671_v12, 1 }
 0x12a   :  { %v1685_v13 = vsel %vm1660_vm4, %v16572_v29, %v16571_v26  ;;  %v16573_v62 = vrot.slane %v9423_v16, 1  ;;  %v9714_v61 = vmul.f32 %v9068_v19, %v9628_v28  ;;  %v1001_v16 = vmul.f32 %v9055_v14, %v429_v35 }
 0x12b   :  { %v1894_v56 = vadd.f32 %v1685_v13, %v1412_v50  ;;  %v708_v13 = vmul.f32 %v9081_v27, %v9628_v28  ;;  %v2121_v12 = vmul.f32 %v9093_v31, %v429_v35  ;;  %v176_v50 = vld [vmem:[%s16434_s0 + $0x138] sm:$0xff]  ;;  %v4200_v7 = vadd.f32 %v4199_v38, %v4198_v44 }
 0x12c   :  { %v3441_v26 = vsel %vm1178_vm3, %v16444_v55, %v16573_v62  ;;  %v175_v62 = vld [vmem:[%s16434_s0 + $0x130] sm:$0xff]  ;;  %v9726_v29 = vmul.f32 %v9115_v41, %v9628_v28  ;;  %v16574_v18 = vrot.slane %v9400_v49, 1  ;;  %v16575_v30 = vrot.slane %v9417_v32, 1  ;;  %241 = vst.msk [vmem:[#allocation2 + $0x219] sm:$0xff] %vm27_vm1, %v176_v50 }
 0x12d   :  { %v2043_v52 = vadd.f32 %v1979_v5, %v1894_v56  ;;  %v3653_v43 = vadd.f32 %v3441_v26, %v3162_v23  ;;  %240 = vst.msk [vmem:[#allocation2 + $0x211] sm:$0xff] %vm27_vm1, %v175_v62  ;;  %v16576_v34 = vrot.slane %v9596_v11, 2  ;;  %v3239_v56 = vmul.f32 %v9192_v20, %v429_v35 }
 0x12e   :  { %v1208_v55 = vsel %vm1178_vm3, %v1205_v47, %v16574_v18  ;;  %v2325_v42 = vsel %vm1178_vm3, %v2322_v24, %v16575_v30  ;;  %v16577_v28 = vrot.slane %v9442_v63, 2  ;;  %v16578_v5 = vrot.slane %v9685_v1, 2 }
 0x12f   :  { %v1683_v44 = vsel %vm1660_vm4, %v1681_v9, %v16576_v34  ;;  %v16579_v18 = vrot.slane %v9600_v58, 2  ;;  %v1978_v38 = vmul.f32 %v9110_v40, %v429_v35  ;;  %v1204_v11 = vrot.slane %v1001_v16, 1  ;;  %v868_v16 = vpop.permute.xlu2 %867 }
 0x130   :  { %v3922_v49 = vsel %vm1660_vm4, %v16578_v5, %v16577_v28  ;;  %v1893_v23 = vadd.f32 %v1683_v44, %v1411_v22  ;;  %v1483_v9 = vmul.f32 %v9068_v19, %v429_v35  ;;  %v2321_v34 = vrot.slane %v2121_v12, 1 }
 0x131   :  { %v2799_v32 = vsel %vm1660_vm4, %v2797_v10, %v16579_v18  ;;  %v9751_v26 = vmul.f32 %v9115_v41, %v429_v35  ;;  %v1687_v63 = vrot.slane %v9714_v61, 2  ;;  %v9754_v50 = vadd.f32 %v3922_v49, %v3653_v43  ;;  %v9765_v43 = vpop.permute.xlu1 %443 }
 0x132   :  { %v3012_v30 = vadd.f32 %v2799_v32, %v2531_v46  ;;  %v3097_v22 = vmul.f32 %v9222_v36, %v429_v35  ;;  %v1414_v62 = vadd.f32 %v1208_v55, %v708_v13  ;;  %v3437_v10 = vrot.slane %v3239_v56, 1 }
 0x133   :  { %16580 = vst [vmem:[#allocation14_spill] sm:$0xff] %v9754_v50  ;;  %v3720_v44 = vmul.f32 %v9197_v21, %v429_v35  ;;  %v9759_v28 = vadd.f32 %v2325_v42, %v2043_v52  ;;  %v9762_v12 = vadd.f32 %v9642_v37, %v4200_v7  ;;  %v707_v5 = vmul.f32 %v9081_v27, %v429_v35 }
 0x134   :  { %v2042_v61 = vadd.f32 %v1978_v38, %v1893_v23  ;;  %v1206_v46 = vsel %vm1178_vm3, %v1204_v11, %v1205_v47  ;;  %v1686_v49 = vrot.slane %v1483_v9, 2  ;;  %v2323_v55 = vsel %vm1178_vm3, %v2321_v34, %v2322_v24  ;;  %v332_v56 = vld [vmem:[#allocation2 + $0x210] sm:$0xff]  ;;  %v333_v35 = vld [vmem:[#allocation2 + $0x218] sm:$0xff]  ;;  %v334_v47 = vld [vmem:[#allocation2 + $0x220] sm:$0x3] }
 0x135   :  { %v9772_v42 = vsel %vm4191_vm2, %v9754_v50, 0.0  ;;  %v3161_v52 = vadd.f32 %v3097_v22, %v3012_v30  ;;  %v9775_v37 = vmul.f32 %v9055_v14, %v868_v16  ;;  %v9778_v7 = vmul.f32 %v9068_v19, %v868_v16  ;;  %578 = vperm.xlu0 %8189, %v332_v56   ;;  %583 = vperm.xlu1 %8190, %v333_v35  }
 0x136   :  { %v16581_v23 = vrot.slane %v9638_v3, 1  ;;  %v3918_v18 = vrot.slane %v3720_v44, 2  ;;  %v9784_v32 = vmul.f32 %v9093_v31, %v868_v16  ;;  %v9788_v38 = vmul.f32 %v9055_v14, %v9765_v43  ;;  %927 = vperm.xlu2 %8191, %v334_v47  }
 0x137   :  { %v1413_v11 = vadd.f32 %v1206_v46, %v707_v5  ;;  %v9790_v9 = vadd.f32 %v2323_v55, %v2042_v61  ;;  %v16582_v34 = vrot.slane %v9406_v51, 2  ;;  %v9797_v3 = vmul.f32 %v9093_v31, %v9765_v43  ;;  %v9808_v61 = vpop.permute.xlu0 %438 }
 0x138   :  { %v3439_v24 = vsel %vm1178_vm3, %v3437_v10, %v16581_v23  ;;  %v9800_v22 = vmul.f32 %v9115_v41, %v868_v16  ;;  %v9804_v44 = vmul.f32 %v9068_v19, %v9765_v43  ;;  %v1981_v5 = vmul.f32 %v9110_v40, %v9765_v43 }
 0x139   :  { %v1690_v30 = vsel %vm1660_vm4, %v1687_v63, %v16582_v34  ;;  %v3652_v51 = vadd.f32 %v3439_v24, %v3161_v52  ;;  %v9814_v56 = vmul.f32 %v9115_v41, %v9765_v43  ;;  %v9821_v23 = vmul.f32 %v9192_v20, %v868_v16 }
 0x13a   :  { %v1896_v10 = vadd.f32 %v1690_v30, %v1414_v62  ;;  %v16583_v62 = vrot.slane %v9685_v1, 2  ;;  %v1210_v34 = vrot.slane %v9788_v38, 1  ;;  %v2327_v52 = vrot.slane %v9797_v3, 1  ;;  %v9841_v3 = vpop.permute.xlu1 %453 }
 0x13b   :  { %v1688_v24 = vsel %vm1660_vm4, %v1686_v49, %v1687_v63  ;;  %v1004_v30 = vmul.f32 %v9055_v14, %v9808_v61  ;;  %v1486_v55 = vmul.f32 %v9068_v19, %v9808_v61  ;;  %v1692_v1 = vrot.slane %v9804_v44, 2 }
 0x13c   :  { %v3920_v35 = vsel %vm1660_vm4, %v3918_v18, %v16583_v62  ;;  %v2045_v18 = vadd.f32 %v1981_v5, %v1896_v10  ;;  %v1895_v62 = vadd.f32 %v1688_v24, %v1413_v11  ;;  %v1980_v47 = vmul.f32 %v9110_v40, %v9808_v61 }
 0x13d   :  { %v9833_v46 = vadd.f32 %v3920_v35, %v3652_v51  ;;  %v9836_v38 = vmul.f32 %v9197_v21, %v868_v16  ;;  %v710_v63 = vmul.f32 %v9081_v27, %v9765_v43  ;;  %v2808_v49 = vrot.slane %v9814_v56, 2 }
 0x13e   :  { %v709_v44 = vmul.f32 %v9081_v27, %v9808_v61  ;;  %v2124_v11 = vmul.f32 %v9093_v31, %v9808_v61  ;;  %v2605_v10 = vmul.f32 %v9115_v41, %v9808_v61  ;;  %v16585_v5 = vrot.slane %v9513_v8, 1  ;;  %v177_v8 = vld [vmem:[%s16434_s0 + $0x140] sm:$0xff] }
 0x13f   :  { %16584 = vst [vmem:[#allocation15_spill] sm:$0xff] %v9833_v46  ;;  %v1209_v51 = vrot.slane %v1004_v30, 1  ;;  %v1691_v35 = vrot.slane %v1486_v55, 2  ;;  %v16586_v56 = vrot.slane %v9529_v0, 1  ;;  %v2044_v58 = vadd.f32 %v1980_v47, %v1895_v62  ;;  %v178_v0 = vld [vmem:[%s16434_s0 + $0x148] sm:$0xff] }
 0x140   :  { %v1213_v16 = vsel %vm1178_vm3, %v1210_v34, %v16585_v5  ;;  %v16587_v50 = vrot.slane %v9526_v48, 2  ;;  %v9860_v39 = vmul.f32 %v9055_v14, %v9841_v3  ;;  %v16588_v47 = vrot.slane %v9532_v45, 2  ;;  %242 = vst.msk [vmem:[#allocation2 + $0x229] sm:$0xff] %vm27_vm1, %v177_v8 }
 0x141   :  { %v1416_v24 = vadd.f32 %v1213_v16, %v710_v63  ;;  %v2330_v13 = vsel %vm1178_vm3, %v2327_v52, %v16586_v56  ;;  %v2326_v30 = vrot.slane %v2124_v11, 1  ;;  %243 = vst.msk [vmem:[#allocation2 + $0x231] sm:$0xff] %vm27_vm1, %v178_v0  ;;  %v3102_v16 = vmul.f32 %v9222_v36, %v9841_v3 }
 0x142   :  { %v1695_v25 = vsel %vm1660_vm4, %v1692_v1, %v16587_v50  ;;  %v2536_v6 = vadd.f32 %v2330_v13, %v2045_v18  ;;  %v2811_v48 = vsel %vm1660_vm4, %v2808_v49, %v16588_v47  ;;  %v1983_v50 = vmul.f32 %v9110_v40, %v9841_v3 }
 0x143   :  { %v1898_v55 = vadd.f32 %v1695_v25, %v1416_v24  ;;  %v2128_v13 = vmul.f32 %v9093_v31, %v9841_v3  ;;  %v2807_v18 = vrot.slane %v2605_v10, 2  ;;  %v1215_v63 = vrot.slane %v9860_v39, 1 }
 0x144   :  { %v3017_v62 = vadd.f32 %v2811_v48, %v2536_v6  ;;  %v712_v25 = vmul.f32 %v9081_v27, %v9841_v3  ;;  %v16589_v24 = vrot.slane %v9647_v53, 1  ;;  %v9887_v11 = vmul.f32 %v9192_v20, %v9841_v3 }
 0x145   :  { %v2047_v45 = vadd.f32 %v1983_v50, %v1898_v55  ;;  %v2332_v5 = vrot.slane %v2128_v13, 1  ;;  %v9891_v39 = vmul.f32 %v9197_v21, %v9841_v3  ;;  %v1211_v6 = vsel %vm1178_vm3, %v1209_v51, %v1210_v34  ;;  %v449_v51 = vpop.permute.xlu0 %448 }
 0x146   :  { %v1218_v56 = vsel %vm1178_vm3, %v1215_v63, %v16589_v24  ;;  %v16590_v8 = vrot.slane %v9659_v57, 1  ;;  %v3166_v55 = vadd.f32 %v3102_v16, %v3017_v62  ;;  %v1415_v53 = vadd.f32 %v1211_v6, %v709_v44 }
 0x147   :  { %v9894_v10 = vadd.f32 %v1218_v56, %v712_v25  ;;  %v16591_v47 = vrot.slane %v9420_v4, 2  ;;  %v16592_v48 = vrot.slane %v9726_v29, 2  ;;  %v3448_v24 = vrot.slane %v9887_v11, 1  ;;  %v335_v6 = vld [vmem:[#allocation2 + $0x228] sm:$0xff] }
 0x148   :  { %v2335_v0 = vsel %vm1178_vm3, %v2332_v5, %v16590_v8  ;;  %v3929_v34 = vrot.slane %v9891_v39, 2  ;;  %v4203_v57 = vsel %vm4191_vm2, %v9833_v46, 0.0  ;;  %v1693_v44 = vsel %vm1660_vm4, %v1691_v35, %v1692_v1  ;;  %v336_v35 = vld [vmem:[#allocation2 + $0x230] sm:$0xff]  ;;  %588 = vperm.xlu0 %8189, %v335_v6  }
 0x149   :  { %v2806_v50 = vsel %vm1660_vm4, %v16592_v48, %v16591_v47  ;;  %v9904_v13 = vadd.f32 %v2335_v0, %v2047_v45  ;;  %v2328_v4 = vsel %vm1178_vm3, %v2326_v30, %v2327_v52  ;;  %v16593_v62 = vrot.slane %v9678_v59, 1  ;;  %v337_v59 = vld [vmem:[#allocation2 + $0x238] sm:$0x3]  ;;  %593 = vperm.xlu1 %8190, %v336_v35  }
 0x14a   :  { %v3015_v25 = vadd.f32 %v2806_v50, %v9759_v28  ;;  %v16594_v45 = vrot.slane %v9681_v15, 2  ;;  %v1897_v11 = vadd.f32 %v1693_v44, %v1415_v53  ;;  %v2535_v39 = vadd.f32 %v2328_v4, %v2044_v58  ;;  %932 = vperm.xlu2 %8191, %v337_v59  }
 0x14b   :  { %v3451_v16 = vsel %vm1178_vm3, %v3448_v24, %v16593_v62  ;;  %v9921_v8 = vmul.f32 %v9192_v20, %v9765_v43  ;;  %v2809_v1 = vsel %vm1660_vm4, %v2807_v18, %v2808_v49  ;;  %v1007_v52 = vmul.f32 %v9055_v14, %v449_v51 }
 0x14c   :  { %v3932_v56 = vsel %vm1660_vm4, %v3929_v34, %v16594_v45  ;;  %v3657_v28 = vadd.f32 %v3451_v16, %v3166_v55  ;;  %v3100_v15 = vmul.f32 %v9222_v36, %v9765_v43  ;;  %v3016_v30 = vadd.f32 %v2809_v1, %v2535_v39 }
 0x14d   :  { %v1982_v0 = vmul.f32 %v9110_v40, %v449_v51  ;;  %v2127_v58 = vmul.f32 %v9093_v31, %v449_v51  ;;  %v9931_v53 = vmul.f32 %v9068_v19, %v9841_v3  ;;  %v9935_v49 = vmul.f32 %v9115_v41, %v9841_v3 }
 0x14e   :  { %v9937_v18 = vadd.f32 %v3932_v56, %v3657_v28  ;;  %v1214_v55 = vrot.slane %v1007_v52, 1  ;;  %v711_v47 = vmul.f32 %v9081_v27, %v449_v51  ;;  %v3101_v44 = vmul.f32 %v9222_v36, %v449_v51 }
 0x14f   :  { %v2046_v48 = vadd.f32 %v1982_v0, %v1897_v11  ;;  %v2331_v50 = vrot.slane %v2127_v58, 1  ;;  %v3443_v4 = vrot.slane %v9921_v8, 1  ;;  %v9944_v62 = vmul.f32 %v9197_v21, %v9765_v43 }
 0x150   :  { %16595 = vst [vmem:[#allocation16_spill] sm:$0xff] %v9937_v18  ;;  %v1216_v16 = vsel %vm1178_vm3, %v1214_v55, %v1215_v63  ;;  %v3245_v3 = vmul.f32 %v9192_v20, %v449_v51  ;;  %v3165_v39 = vadd.f32 %v3101_v44, %v3016_v30  ;;  %v3726_v6 = vmul.f32 %v9197_v21, %v449_v51 }
 0x151   :  { %v1417_v45 = vadd.f32 %v1216_v16, %v711_v47  ;;  %v2333_v56 = vsel %vm1178_vm3, %v2331_v50, %v2332_v5  ;;  %v1697_v11 = vrot.slane %v9931_v53, 2  ;;  %v2813_v28 = vrot.slane %v9935_v49, 2 }
 0x152   :  { %v2537_v1 = vadd.f32 %v2333_v56, %v2046_v48  ;;  %v3447_v52 = vrot.slane %v3245_v3, 1  ;;  %v2820_v35 = vrot.slane %v9800_v22, 2  ;;  %v3455_v43 = vrot.slane %v9821_v23, 1  ;;  %v464_v48 = vpop.permute.xlu1 %463 }
 0x153   :  { %v1489_v63 = vmul.f32 %v9068_v19, %v449_v51  ;;  %v3928_v59 = vrot.slane %v3726_v6, 2  ;;  %v9956_v0 = vadd.f32 %v4203_v57, %v9762_v12  ;;  %v3936_v5 = vrot.slane %v9836_v38, 2  ;;  %v179_v12 = vld [vmem:[%s16434_s0 + $0x150] sm:$0xff]  ;;  %v180_v38 = vld [vmem:[%s16434_s0 + $0x158] sm:$0xff] }
 0x154   :  { %v2608_v21 = vmul.f32 %v9115_v41, %v449_v51  ;;  %v3449_v30 = vsel %vm1178_vm3, %v3447_v52, %v3448_v24  ;;  %v3164_v58 = vadd.f32 %v3100_v15, %v3015_v25  ;;  %v16596_v53 = vrot.slane %v9726_v29, 2  ;;  %244 = vst.msk [vmem:[#allocation2 + $0x241] sm:$0xff] %vm27_vm1, %v179_v12 }
 0x155   :  { %v16597_v49 = vrot.slane %v9751_v26, 2  ;;  %v3656_v23 = vadd.f32 %v3449_v30, %v3165_v39  ;;  %v3930_v47 = vsel %vm1660_vm4, %v3928_v59, %v3929_v34  ;;  %v16598_v24 = vrot.slane %v9539_v2, 1  ;;  %245 = vst.msk [vmem:[#allocation2 + $0x249] sm:$0xff] %vm27_vm1, %v180_v38  ;;  %v459_v38 = vpop.permute.xlu0 %458 }
 0x156   :  { %v3924_v26 = vrot.slane %v9944_v62, 2  ;;  %v16599_v51 = vrot.slane %v9650_v60, 2  ;;  %v16600_v57 = vrot.slane %v9675_v17, 2  ;;  %v1696_v15 = vrot.slane %v1489_v63, 2 }
 0x157   :  { %v2804_v55 = vsel %vm1660_vm4, %v16597_v49, %v16596_v53  ;;  %v3446_v29 = vsel %vm1178_vm3, %v3443_v4, %v16598_v24  ;;  %v9986_v50 = vadd.f32 %v3930_v47, %v3656_v23  ;;  %v2812_v16 = vrot.slane %v2608_v21, 2 }
 0x158   :  { %v1700_v34 = vsel %vm1660_vm4, %v1697_v11, %v16599_v51  ;;  %v2816_v25 = vsel %vm1660_vm4, %v2813_v28, %v16600_v57  ;;  %v1011_v60 = vmul.f32 %v9055_v14, %v464_v48  ;;  %v1985_v3 = vmul.f32 %v9110_v40, %v464_v48 }
 0x159   :  { %16601 = vst [vmem:[#allocation17_spill] sm:$0xff] %v9986_v50  ;;  %v1900_v2 = vadd.f32 %v1700_v34, %v9894_v10  ;;  %v3019_v44 = vadd.f32 %v2816_v25, %v9904_v13  ;;  %v2131_v17 = vmul.f32 %v9093_v31, %v464_v48  ;;  %v3655_v56 = vadd.f32 %v3446_v29, %v3164_v58 }
 0x15a   :  { %v3014_v39 = vadd.f32 %v2804_v55, %v9790_v9  ;;  %v3104_v6 = vmul.f32 %v9222_v36, %v464_v48  ;;  %v9997_v52 = vmul.f32 %v9192_v20, %v464_v48  ;;  %v16602_v10 = vrot.slane %v9549_v54, 2  ;;  %v10014_v54 = vld [vmem:[%s16435_s1 + $0x8] ss:$0 sm:$0xff] }
 0x15b   :  { %v3099_v63 = vmul.f32 %v9222_v36, %v9808_v61  ;;  %v1220_v59 = vrot.slane %v1011_v60, 1  ;;  %v2049_v21 = vadd.f32 %v1985_v3, %v1900_v2  ;;  %v714_v30 = vmul.f32 %v9081_v27, %v464_v48  ;;  %v338_v57 = vld [vmem:[#allocation2 + $0x240] sm:$0xff] }
 0x15c   :  { %v3927_v13 = vsel %vm1660_vm4, %v3924_v26, %v16602_v10  ;;  %v2337_v58 = vrot.slane %v2131_v17, 1  ;;  %v3168_v9 = vadd.f32 %v3104_v6, %v3019_v44  ;;  %v3453_v53 = vrot.slane %v9997_v52, 1  ;;  %v339_v3 = vld [vmem:[#allocation2 + $0x248] sm:$0xff]  ;;  %598 = vperm.xlu0 %8189, %v338_v57   ;;  %v340_v17 = vld [vmem:[#allocation2 + $0x250] sm:$0x3]  ;;  %v873_v10 = vpop.permute.xlu2 %872 }
 0x15d   :  { %v16603_v49 = vrot.slane %v9775_v37, 1  ;;  %v3730_v23 = vmul.f32 %v10014_v54, %v464_v48  ;;  %v1698_v47 = vsel %vm1660_vm4, %v1696_v15, %v1697_v11  ;;  %v2814_v12 = vsel %vm1660_vm4, %v2812_v16, %v2813_v28  ;;  %603 = vperm.xlu1 %8190, %v339_v3   ;;  %937 = vperm.xlu2 %8191, %v340_v17  }
 0x15e   :  { %v16604_v29 = vrot.slane %v9784_v32, 1  ;;  %v3456_v37 = vsel %vm1178_vm3, %v3453_v53, %v3455_v43  ;;  %v1899_v34 = vadd.f32 %v1698_v47, %v1417_v45  ;;  %v3018_v60 = vadd.f32 %v2814_v12, %v2537_v1 }
 0x15f   :  { %v1223_v55 = vsel %vm1178_vm3, %v1220_v59, %v16603_v49  ;;  %v3659_v2 = vadd.f32 %v3456_v37, %v3168_v9  ;;  %v3934_v44 = vrot.slane %v3730_v23, 2  ;;  %v10023_v11 = vadd.f32 %v3927_v13, %v3655_v56 }
 0x160   :  { %v1420_v24 = vadd.f32 %v1223_v55, %v714_v30  ;;  %v2340_v51 = vsel %vm1178_vm3, %v2337_v58, %v16604_v29  ;;  %v3242_v28 = vmul.f32 %v9192_v20, %v9808_v61  ;;  %v10029_v32 = vmul.f32 %v10014_v54, %v9808_v61 }
 0x161   :  { %v2540_v25 = vadd.f32 %v2340_v51, %v2049_v21  ;;  %16605 = vst [vmem:[#allocation18_spill] sm:$0xff] %v10023_v11  ;;  %v1010_v43 = vmul.f32 %v9055_v14, %v459_v38  ;;  %v10033_v45 = vmul.f32 %v9068_v19, %v464_v48  ;;  %v3937_v1 = vsel %vm1660_vm4, %v3934_v44, %v3936_v5 }
 0x162   :  { %v1984_v15 = vmul.f32 %v9110_v40, %v459_v38  ;;  %v2130_v16 = vmul.f32 %v9093_v31, %v459_v38  ;;  %v10039_v56 = vmul.f32 %v9115_v41, %v464_v48  ;;  %v10041_v6 = vadd.f32 %v3937_v1, %v3659_v2  ;;  %v182_v1 = vld [vmem:[%s16434_s0 + $0x168] sm:$0xff] }
 0x163   :  { %v1219_v61 = vrot.slane %v1010_v43, 1  ;;  %v3103_v52 = vmul.f32 %v9222_v36, %v459_v38  ;;  %v713_v13 = vmul.f32 %v9081_v27, %v459_v38  ;;  %v3248_v5 = vmul.f32 %v9192_v20, %v459_v38  ;;  %v474_v43 = vpop.permute.xlu1 %473  ;;  %247 = vst.msk [vmem:[#allocation2 + $0x261] sm:$0xff] %vm27_vm1, %v182_v1 }
 0x164   :  { %16606 = vst [vmem:[#allocation19_spill] sm:$0xff] %v10041_v6  ;;  %v2048_v21 = vadd.f32 %v1984_v15, %v1899_v34  ;;  %v2336_v30 = vrot.slane %v2130_v16, 1  ;;  %v10046_v9 = vadd.f32 %v3099_v63, %v3014_v39  ;;  %v3729_v48 = vmul.f32 %v10014_v54, %v459_v38 }
 0x165   :  { %v1221_v49 = vsel %vm1178_vm3, %v1219_v61, %v1220_v59  ;;  %v3167_v55 = vadd.f32 %v3103_v52, %v3018_v60  ;;  %v1702_v23 = vrot.slane %v10033_v45, 2  ;;  %v3452_v29 = vrot.slane %v3248_v5, 1  ;;  %v181_v45 = vld [vmem:[%s16434_s0 + $0x160] sm:$0xff] }
 0x166   :  { %v1419_v47 = vadd.f32 %v1221_v49, %v713_v13  ;;  %v2338_v12 = vsel %vm1178_vm3, %v2336_v30, %v2337_v58  ;;  %v1015_v51 = vmul.f32 %v9055_v14, %v873_v10  ;;  %v2818_v37 = vrot.slane %v10039_v56, 2  ;;  %246 = vst.msk [vmem:[#allocation2 + $0x259] sm:$0xff] %vm27_vm1, %v181_v45 }
 0x167   :  { %v2539_v34 = vadd.f32 %v2338_v12, %v2048_v21  ;;  %v3933_v57 = vrot.slane %v3729_v48, 2  ;;  %v10055_v39 = vmul.f32 %v9068_v19, %v873_v10  ;;  %v2135_v63 = vmul.f32 %v9093_v31, %v873_v10 }
 0x168   :  { %v1492_v59 = vmul.f32 %v9068_v19, %v459_v38  ;;  %v3454_v2 = vsel %vm1178_vm3, %v3452_v29, %v3453_v53  ;;  %v3442_v60 = vrot.slane %v3242_v28, 1  ;;  %v3923_v3 = vrot.slane %v10029_v32, 2 }
 0x169   :  { %v3658_v58 = vadd.f32 %v3454_v2, %v3167_v55  ;;  %v3935_v17 = vsel %vm1660_vm4, %v3933_v57, %v3934_v44  ;;  %v10069_v15 = vmul.f32 %v9115_v41, %v873_v10  ;;  %v3253_v53 = vmul.f32 %v9192_v20, %v873_v10 }
 0x16a   :  { %v2611_v28 = vmul.f32 %v9115_v41, %v459_v38  ;;  %v16607_v16 = vrot.slane %v9778_v7, 2  ;;  %v1227_v56 = vrot.slane %v1015_v51, 1  ;;  %v2821_v13 = vsel %vm1660_vm4, %v2818_v37, %v2820_v35 }
 0x16b   :  { %v10077_v61 = vadd.f32 %v3935_v17, %v3658_v58  ;;  %v2344_v21 = vrot.slane %v2135_v63, 1  ;;  %v1701_v30 = vrot.slane %v1492_v59, 2  ;;  %v3021_v5 = vadd.f32 %v2821_v13, %v2540_v25  ;;  %v469_v59 = vpop.permute.xlu0 %468 }
 0x16c   :  { %v1705_v44 = vsel %vm1660_vm4, %v1702_v23, %v16607_v16  ;;  %v1014_v38 = vmul.f32 %v9055_v14, %v474_v43  ;;  %v3444_v7 = vsel %vm1178_vm3, %v3442_v60, %v3443_v4  ;;  %v3734_v49 = vmul.f32 %v10014_v54, %v873_v10 }
 0x16d   :  { %16608 = vst [vmem:[#allocation20_spill] sm:$0xff] %v10077_v61  ;;  %v1902_v52 = vadd.f32 %v1705_v44, %v1420_v24  ;;  %v1987_v55 = vmul.f32 %v9110_v40, %v474_v43  ;;  %v2134_v24 = vmul.f32 %v9093_v31, %v474_v43  ;;  %v3460_v22 = vrot.slane %v3253_v53, 1  ;;  %v341_v45 = vld [vmem:[#allocation2 + $0x258] sm:$0xff]  ;;  %v342_v44 = vld [vmem:[#allocation2 + $0x260] sm:$0xff] }
 0x16e   :  { %v2817_v48 = vrot.slane %v2611_v28, 2  ;;  %v1225_v35 = vrot.slane %v1014_v38, 1  ;;  %v3106_v12 = vmul.f32 %v9222_v36, %v474_v43  ;;  %v716_v29 = vmul.f32 %v9081_v27, %v474_v43  ;;  %608 = vperm.xlu0 %8189, %v341_v45   ;;  %613 = vperm.xlu1 %8190, %v342_v44  }
 0x16f   :  { %v2051_v25 = vadd.f32 %v1987_v55, %v1902_v52  ;;  %v2342_v51 = vrot.slane %v2134_v24, 1  ;;  %v3252_v57 = vmul.f32 %v9192_v20, %v474_v43  ;;  %v3733_v10 = vmul.f32 %v10014_v54, %v474_v43 }
 0x170   :  { %v1228_v8 = vsel %vm1178_vm3, %v1225_v35, %v1227_v56  ;;  %v3170_v4 = vadd.f32 %v3106_v12, %v3021_v5  ;;  %v1703_v63 = vsel %vm1660_vm4, %v1701_v30, %v1702_v23  ;;  %v3941_v1 = vrot.slane %v3734_v49, 2  ;;  %v343_v56 = vld [vmem:[#allocation2 + $0x268] sm:$0x3] }
 0x171   :  { %v10096_v2 = vadd.f32 %v1228_v8, %v716_v29  ;;  %v2345_v60 = vsel %vm1178_vm3, %v2342_v51, %v2344_v21  ;;  %v3458_v58 = vrot.slane %v3252_v57, 1  ;;  %v1901_v17 = vadd.f32 %v1703_v63, %v1419_v47  ;;  %942 = vperm.xlu2 %8191, %v343_v56  }
 0x172   :  { %v2542_v53 = vadd.f32 %v2345_v60, %v2051_v25  ;;  %v3939_v28 = vrot.slane %v3733_v10, 2  ;;  %v2819_v16 = vsel %vm1660_vm4, %v2817_v48, %v2818_v37  ;;  %v3654_v52 = vadd.f32 %v3444_v7, %v10046_v9 }
 0x173   :  { %v3461_v23 = vsel %vm1178_vm3, %v3458_v58, %v3460_v22  ;;  %v3020_v13 = vadd.f32 %v2819_v16, %v2539_v34  ;;  %v1013_v30 = vmul.f32 %v9055_v14, %v469_v59  ;;  %v10104_v21 = vmul.f32 %v9068_v19, %v474_v43 }
 0x174   :  { %v3661_v47 = vadd.f32 %v3461_v23, %v3170_v4  ;;  %v3942_v5 = vsel %vm1660_vm4, %v3939_v28, %v3941_v1  ;;  %v1986_v38 = vmul.f32 %v9110_v40, %v469_v59  ;;  %v10109_v37 = vmul.f32 %v9115_v41, %v474_v43  ;;  %v10122_v43 = vpop.permute.xlu2 %877 }
 0x175   :  { %v1224_v49 = vrot.slane %v1013_v30, 1  ;;  %v2133_v9 = vmul.f32 %v9093_v31, %v469_v59  ;;  %v3105_v34 = vmul.f32 %v9222_v36, %v469_v59  ;;  %v715_v55 = vmul.f32 %v9081_v27, %v469_v59 }
 0x176   :  { %v10113_v7 = vadd.f32 %v3942_v5, %v3661_v47  ;;  %v2050_v24 = vadd.f32 %v1986_v38, %v1901_v17  ;;  %v3251_v22 = vmul.f32 %v9192_v20, %v469_v59  ;;  %v3925_v48 = vsel %vm1660_vm4, %v3923_v3, %v3924_v26 }
 0x177   :  { %v1226_v12 = vsel %vm1178_vm3, %v1224_v49, %v1225_v35  ;;  %v2341_v29 = vrot.slane %v2133_v9, 1  ;;  %v3169_v25 = vadd.f32 %v3105_v34, %v3020_v13  ;;  %v10125_v57 = vadd.f32 %v3925_v48, %v3654_v52  ;;  %v484_v52 = vpop.permute.xlu1 %483 }
 0x178   :  { %16609 = vst [vmem:[#allocation21_spill] sm:$0xff] %v10113_v7  ;;  %v1421_v8 = vadd.f32 %v1226_v12, %v715_v55  ;;  %v3457_v4 = vrot.slane %v3251_v22, 1  ;;  %v3732_v10 = vmul.f32 %v10014_v54, %v469_v59  ;;  %v1709_v63 = vrot.slane %v10055_v39, 2 }
 0x179   :  { %16610 = vst [vmem:[#allocation22_spill] sm:$0xff] %v10125_v57  ;;  %v1707_v62 = vrot.slane %v10104_v21, 2  ;;  %v2823_v32 = vrot.slane %v10109_v37, 2  ;;  %v2343_v26 = vsel %vm1178_vm3, %v2341_v29, %v2342_v51  ;;  %v1018_v3 = vmul.f32 %v9055_v14, %v10122_v43 }
 0x17a   :  { %v2541_v35 = vadd.f32 %v2343_v26, %v2050_v24  ;;  %v3459_v60 = vsel %vm1178_vm3, %v3457_v4, %v3458_v58  ;;  %v3938_v17 = vrot.slane %v3732_v10, 2  ;;  %v2825_v45 = vrot.slane %v10069_v15, 2  ;;  %v183_v15 = vld [vmem:[%s16434_s0 + $0x170] sm:$0xff] }
 0x17b   :  { %v1495_v1 = vmul.f32 %v9068_v19, %v469_v59  ;;  %v2614_v16 = vmul.f32 %v9115_v41, %v469_v59  ;;  %v3660_v39 = vadd.f32 %v3459_v60, %v3169_v25  ;;  %v10140_v44 = vsel %vm4191_vm2, %v10125_v57, 0.0  ;;  %v184_v59 = vld [vmem:[%s16434_s0 + $0x178] sm:$0xff]  ;;  %248 = vst.msk [vmem:[#allocation2 + $0x271] sm:$0xff] %vm27_vm1, %v183_v15  ;;  %v479_v60 = vpop.permute.xlu0 %478 }
 0x17c   :  { %v2138_v51 = vmul.f32 %v9093_v31, %v10122_v43  ;;  %v3256_v56 = vmul.f32 %v9192_v20, %v10122_v43  ;;  %v3940_v58 = vsel %vm1660_vm4, %v3938_v17, %v3939_v28  ;;  %v3737_v23 = vmul.f32 %v10014_v54, %v10122_v43  ;;  %249 = vst.msk [vmem:[#allocation2 + $0x279] sm:$0xff] %vm27_vm1, %v184_v59 }
 0x17d   :  { %v10155_v13 = vadd.f32 %v3940_v58, %v3660_v39  ;;  %v1710_v30 = vsel %vm1660_vm4, %v1707_v62, %v1709_v63  ;;  %v2826_v21 = vsel %vm1660_vm4, %v2823_v32, %v2825_v45  ;;  %v4206_v28 = vadd.f32 %v9772_v42, %v9956_v0 }
 0x17e   :  { %v1232_v47 = vrot.slane %v1018_v3, 1  ;;  %v1904_v5 = vadd.f32 %v1710_v30, %v10096_v2  ;;  %v3023_v38 = vadd.f32 %v2826_v21, %v2542_v53  ;;  %v1706_v37 = vrot.slane %v1495_v1, 2 }
 0x17f   :  { %16611 = vst [vmem:[#allocation23_spill] sm:$0xff] %v10155_v13  ;;  %v2822_v49 = vrot.slane %v2614_v16, 2  ;;  %v1017_v9 = vmul.f32 %v9055_v14, %v484_v52  ;;  %v1989_v34 = vmul.f32 %v9110_v40, %v484_v52  ;;  %v2349_v55 = vrot.slane %v2138_v51, 1 }
 0x180   :  { %v3465_v24 = vrot.slane %v3256_v56, 1  ;;  %v2137_v22 = vmul.f32 %v9093_v31, %v484_v52  ;;  %v3108_v48 = vmul.f32 %v9222_v36, %v484_v52  ;;  %v3946_v12 = vrot.slane %v3737_v23, 2 }
 0x181   :  { %v1230_v42 = vrot.slane %v1017_v9, 1  ;;  %v2053_v0 = vadd.f32 %v1989_v34, %v1904_v5  ;;  %v3255_v2 = vmul.f32 %v9192_v20, %v484_v52  ;;  %v718_v53 = vmul.f32 %v9081_v27, %v484_v52 }
 0x182   :  { %v2347_v29 = vrot.slane %v2137_v22, 1  ;;  %v3172_v25 = vadd.f32 %v3108_v48, %v3023_v38  ;;  %v3736_v4 = vmul.f32 %v10014_v54, %v484_v52  ;;  %v1708_v26 = vsel %vm1660_vm4, %v1706_v37, %v1707_v62  ;;  %v344_v39 = vld [vmem:[#allocation2 + $0x270] sm:$0xff] }
 0x183   :  { %v1233_v10 = vsel %vm1178_vm3, %v1230_v42, %v1232_v47  ;;  %v3463_v63 = vrot.slane %v3255_v2, 1  ;;  %v2824_v3 = vsel %vm1660_vm4, %v2822_v49, %v2823_v32  ;;  %v1903_v16 = vadd.f32 %v1708_v26, %v1421_v8  ;;  %v345_v59 = vld [vmem:[#allocation2 + $0x278] sm:$0xff]  ;;  %618 = vperm.xlu0 %8189, %v344_v39   ;;  %v346_v23 = vld [vmem:[#allocation2 + $0x280] sm:$0x3] }
 0x184   :  { %v1424_v17 = vadd.f32 %v1233_v10, %v718_v53  ;;  %v2350_v45 = vsel %vm1178_vm3, %v2347_v29, %v2349_v55  ;;  %v3944_v1 = vrot.slane %v3736_v4, 2  ;;  %v1500_v51 = vmul.f32 %v9068_v19, %v10122_v43  ;;  %623 = vperm.xlu1 %8190, %v345_v59   ;;  %947 = vperm.xlu2 %8191, %v346_v23  }
 0x185   :  { %v2544_v56 = vadd.f32 %v2350_v45, %v2053_v0  ;;  %v3466_v58 = vsel %vm1178_vm3, %v3463_v63, %v3465_v24  ;;  %v3022_v15 = vadd.f32 %v2824_v3, %v2541_v35  ;;  %v10179_v62 = vmul.f32 %v9068_v19, %v484_v52 }
 0x186   :  { %v3663_v32 = vadd.f32 %v3466_v58, %v3172_v25  ;;  %v3947_v30 = vsel %vm1660_vm4, %v3944_v1, %v3946_v12  ;;  %v1016_v21 = vmul.f32 %v9055_v14, %v479_v60  ;;  %v2619_v8 = vmul.f32 %v9115_v41, %v10122_v43  ;;  %v494_v58 = vpop.permute.xlu1 %493 }
 0x187   :  { %v10186_v47 = vmul.f32 %v9115_v41, %v484_v52  ;;  %v1988_v35 = vmul.f32 %v9110_v40, %v479_v60  ;;  %v2136_v5 = vmul.f32 %v9093_v31, %v479_v60  ;;  %v3107_v49 = vmul.f32 %v9222_v36, %v479_v60  ;;  %v10196_v52 = vpop.permute.xlu2 %882 }
 0x188   :  { %v10190_v38 = vadd.f32 %v3947_v30, %v3663_v32  ;;  %v1229_v37 = vrot.slane %v1016_v21, 1  ;;  %v3254_v9 = vmul.f32 %v9192_v20, %v479_v60  ;;  %v4208_v34 = vadd.f32 %v10140_v44, %v4206_v28 }
 0x189   :  { %v717_v55 = vmul.f32 %v9081_v27, %v479_v60  ;;  %v2052_v43 = vadd.f32 %v1988_v35, %v1903_v16  ;;  %v2346_v24 = vrot.slane %v2136_v5, 1  ;;  %v1712_v22 = vrot.slane %v10179_v62, 2 }
 0x18a   :  { %16612 = vst [vmem:[#allocation24_spill] sm:$0xff] %v10190_v38  ;;  %v1231_v48 = vsel %vm1178_vm3, %v1229_v37, %v1230_v42  ;;  %v3171_v12 = vadd.f32 %v3107_v49, %v3022_v15  ;;  %v3462_v0 = vrot.slane %v3254_v9, 1  ;;  %v2828_v2 = vrot.slane %v10186_v47, 2  ;;  %v186_v15 = vld [vmem:[%s16434_s0 + $0x188] sm:$0xff] }
 0x18b   :  { %v1423_v53 = vadd.f32 %v1231_v48, %v717_v55  ;;  %v2348_v25 = vsel %vm1178_vm3, %v2346_v24, %v2347_v29  ;;  %v3735_v4 = vmul.f32 %v10014_v54, %v479_v60  ;;  %v1714_v44 = vrot.slane %v1500_v51, 2  ;;  %251 = vst.msk [vmem:[#allocation2 + $0x291] sm:$0xff] %vm27_vm1, %v186_v15 }
 0x18c   :  { %v2830_v28 = vrot.slane %v2619_v8, 2  ;;  %v2543_v10 = vadd.f32 %v2348_v25, %v2052_v43  ;;  %v3464_v26 = vsel %vm1178_vm3, %v3462_v0, %v3463_v63  ;;  %v1021_v3 = vmul.f32 %v9055_v14, %v10196_v52  ;;  %v185_v63 = vld [vmem:[%s16434_s0 + $0x180] sm:$0xff] }
 0x18d   :  { %v1498_v45 = vmul.f32 %v9068_v19, %v479_v60  ;;  %v3662_v42 = vadd.f32 %v3464_v26, %v3171_v12  ;;  %v3943_v16 = vrot.slane %v3735_v4, 2  ;;  %v4209_v39 = vsel %vm4191_vm2, %v10023_v11, 0.0  ;;  %250 = vst.msk [vmem:[#allocation2 + $0x289] sm:$0xff] %vm27_vm1, %v185_v63  ;;  %v489_v26 = vpop.permute.xlu0 %488 }
 0x18e   :  { %v2141_v29 = vmul.f32 %v9093_v31, %v10196_v52  ;;  %v3259_v51 = vmul.f32 %v9192_v20, %v10196_v52  ;;  %v2617_v59 = vmul.f32 %v9115_v41, %v479_v60  ;;  %v1715_v62 = vsel %vm1660_vm4, %v1712_v22, %v1714_v44 }
 0x18f   :  { %v3945_v23 = vsel %vm1660_vm4, %v3943_v16, %v3944_v1  ;;  %v2831_v32 = vsel %vm1660_vm4, %v2828_v2, %v2830_v28  ;;  %v10224_v30 = vadd.f32 %v4209_v39, %v4208_v34  ;;  %v10228_v21 = vsel %vm4191_vm2, %v9986_v50, 0.0 }
 0x190   :  { %v10230_v8 = vadd.f32 %v3945_v23, %v3662_v42  ;;  %v1906_v47 = vadd.f32 %v1715_v62, %v1424_v17  ;;  %v1237_v60 = vrot.slane %v1021_v3, 1  ;;  %v1711_v35 = vrot.slane %v1498_v45, 2 }
 0x191   :  { %v3025_v1 = vadd.f32 %v2831_v32, %v2544_v56  ;;  %v1020_v5 = vmul.f32 %v9055_v14, %v494_v58  ;;  %v2354_v37 = vrot.slane %v2141_v29, 1  ;;  %v3470_v49 = vrot.slane %v3259_v51, 1 }
 0x192   :  { %16613 = vst [vmem:[#allocation25_spill] sm:$0xff] %v10230_v8  ;;  %v1991_v9 = vmul.f32 %v9110_v40, %v494_v58  ;;  %v2140_v34 = vmul.f32 %v9093_v31, %v494_v58  ;;  %v3740_v55 = vmul.f32 %v10014_v54, %v10196_v52  ;;  %v2827_v43 = vrot.slane %v2617_v59, 2  ;;  %v349_v23 = vld [vmem:[#allocation2 + $0x298] sm:$0x3] }
 0x193   :  { %v1235_v24 = vrot.slane %v1020_v5, 1  ;;  %v3110_v17 = vmul.f32 %v9222_v36, %v494_v58  ;;  %v720_v48 = vmul.f32 %v9081_v27, %v494_v58  ;;  %v3258_v56 = vmul.f32 %v9192_v20, %v494_v58  ;;  %952 = vperm.xlu2 %8191, %v349_v23  }
 0x194   :  { %v2055_v12 = vadd.f32 %v1991_v9, %v1906_v47  ;;  %v2352_v0 = vrot.slane %v2140_v34, 1  ;;  %v10243_v44 = vmul.f32 %v10014_v54, %v494_v58  ;;  %v1713_v28 = vsel %vm1660_vm4, %v1711_v35, %v1712_v22  ;;  %v347_v39 = vld [vmem:[#allocation2 + $0x288] sm:$0xff]  ;;  %v348_v59 = vld [vmem:[#allocation2 + $0x290] sm:$0xff] }
 0x195   :  { %v1238_v25 = vsel %vm1178_vm3, %v1235_v24, %v1237_v60  ;;  %v3174_v4 = vadd.f32 %v3110_v17, %v3025_v1  ;;  %v3468_v42 = vrot.slane %v3258_v56, 1  ;;  %v1905_v16 = vadd.f32 %v1713_v28, %v1423_v53  ;;  %628 = vperm.xlu0 %8189, %v347_v39   ;;  %633 = vperm.xlu1 %8190, %v348_v59   ;;  %v187_v28 = vld [vmem:[%s16434_s0 + $0x190] sm:$0xff] }
 0x196   :  { %v10246_v3 = vadd.f32 %v1238_v25, %v720_v48  ;;  %v2355_v45 = vsel %vm1178_vm3, %v2352_v0, %v2354_v37  ;;  %v3951_v29 = vrot.slane %v3740_v55, 2  ;;  %v3949_v63 = vrot.slane %v10243_v44, 2  ;;  %252 = vst.msk [vmem:[#allocation2 + $0x2a1] sm:$0xff] %vm27_vm1, %v187_v28 }
 0x197   :  { %v2546_v51 = vadd.f32 %v2355_v45, %v2055_v12  ;;  %v2829_v15 = vsel %vm1660_vm4, %v2827_v43, %v2828_v2  ;;  %v1503_v22 = vmul.f32 %v9068_v19, %v10196_v52  ;;  %v3471_v62 = vsel %vm1178_vm3, %v3468_v42, %v3470_v49  ;;  %v888_v49 = vpop.permute.xlu2 %887  ;;  %v188_v45 = vld [vmem:[%s16434_s0 + $0x198] sm:$0xff] }
 0x198   :  { %v3024_v32 = vadd.f32 %v2829_v15, %v2543_v10  ;;  %v1019_v47 = vmul.f32 %v9055_v14, %v489_v26  ;;  %v10256_v53 = vmul.f32 %v9068_v19, %v494_v58  ;;  %v3665_v60 = vadd.f32 %v3471_v62, %v3174_v4  ;;  %253 = vst.msk [vmem:[#allocation2 + $0x2a9] sm:$0xff] %vm27_vm1, %v188_v45 }
 0x199   :  { %v3952_v35 = vsel %vm1660_vm4, %v3949_v63, %v3951_v29  ;;  %v1990_v2 = vmul.f32 %v9110_v40, %v489_v26  ;;  %v10261_v1 = vmul.f32 %v9115_v41, %v494_v58  ;;  %v2139_v37 = vmul.f32 %v9093_v31, %v489_v26 }
 0x19a   :  { %v1234_v5 = vrot.slane %v1019_v47, 1  ;;  %v3109_v10 = vmul.f32 %v9222_v36, %v489_v26  ;;  %v10265_v9 = vadd.f32 %v3952_v35, %v3665_v60  ;;  %v719_v34 = vmul.f32 %v9081_v27, %v489_v26 }
 0x19b   :  { %v2054_v55 = vadd.f32 %v1990_v2, %v1905_v16  ;;  %v3257_v43 = vmul.f32 %v9192_v20, %v489_v26  ;;  %v2622_v17 = vmul.f32 %v9115_v41, %v10196_v52  ;;  %v2351_v58 = vrot.slane %v2139_v37, 1  ;;  %v504_v2 = vpop.permute.xlu1 %503 }
 0x19c   :  { %16614 = vst [vmem:[#allocation26_spill] sm:$0xff] %v10265_v9  ;;  %v1236_v48 = vsel %vm1178_vm3, %v1234_v5, %v1235_v24  ;;  %v3173_v12 = vadd.f32 %v3109_v10, %v3024_v32  ;;  %v1719_v56 = vrot.slane %v1503_v22, 2  ;;  %v3738_v44 = vmul.f32 %v10014_v54, %v489_v26 }
 0x19d   :  { %v10272_v25 = vadd.f32 %v1236_v48, %v719_v34  ;;  %v3467_v4 = vrot.slane %v3257_v43, 1  ;;  %v1024_v52 = vmul.f32 %v9055_v14, %v888_v49  ;;  %v1717_v24 = vrot.slane %v10256_v53, 2 }
 0x19e   :  { %v2833_v16 = vrot.slane %v10261_v1, 2  ;;  %v2353_v39 = vsel %vm1178_vm3, %v2351_v58, %v2352_v0  ;;  %v10287_v29 = vmul.f32 %v9068_v19, %v888_v49  ;;  %v3948_v23 = vrot.slane %v3738_v44, 2 }
 0x19f   :  { %v2545_v15 = vadd.f32 %v2353_v39, %v2054_v55  ;;  %v3469_v59 = vsel %vm1178_vm3, %v3467_v4, %v3468_v42  ;;  %v2835_v22 = vrot.slane %v2622_v17, 2  ;;  %v1501_v62 = vmul.f32 %v9068_v19, %v489_v26  ;;  %v350_v4 = vld [vmem:[#allocation2 + $0x2a0] sm:$0xff]  ;;  %v893_v39 = vpop.permute.xlu2 %892 }
 0x1a0   :  { %v2620_v32 = vmul.f32 %v9115_v41, %v489_v26  ;;  %v3664_v47 = vadd.f32 %v3469_v59, %v3173_v12  ;;  %v2144_v53 = vmul.f32 %v9093_v31, %v888_v49  ;;  %v10295_v0 = vmul.f32 %v9115_v41, %v888_v49  ;;  %638 = vperm.xlu0 %8189, %v350_v4  }
 0x1a1   :  { %v3262_v60 = vmul.f32 %v9192_v20, %v888_v49  ;;  %v3950_v35 = vsel %vm1660_vm4, %v3948_v23, %v3949_v63  ;;  %v3743_v42 = vmul.f32 %v10014_v54, %v888_v49  ;;  %v1720_v5 = vsel %vm1660_vm4, %v1717_v24, %v1719_v56 }
 0x1a2   :  { %v10300_v1 = vadd.f32 %v3950_v35, %v3664_v47  ;;  %v2836_v37 = vsel %vm1660_vm4, %v2833_v16, %v2835_v22  ;;  %v1242_v26 = vrot.slane %v1024_v52, 1  ;;  %v1724_v10 = vrot.slane %v10287_v29, 2  ;;  %v499_v35 = vpop.permute.xlu0 %498 }
 0x1a3   :  { %v1908_v34 = vadd.f32 %v1720_v5, %v10246_v3  ;;  %v3027_v55 = vadd.f32 %v2836_v37, %v2546_v51  ;;  %v1716_v43 = vrot.slane %v1501_v62, 2  ;;  %v2832_v17 = vrot.slane %v2620_v32, 2  ;;  %v351_v3 = vld [vmem:[#allocation2 + $0x2a8] sm:$0xff]  ;;  %v352_v51 = vld [vmem:[#allocation2 + $0x2b0] sm:$0x3] }
 0x1a4   :  { %16615 = vst [vmem:[#allocation27_spill] sm:$0xff] %v10300_v1  ;;  %v1023_v48 = vmul.f32 %v9055_v14, %v504_v2  ;;  %v1993_v63 = vmul.f32 %v9110_v40, %v504_v2  ;;  %v2359_v58 = vrot.slane %v2144_v53, 1  ;;  %v3475_v49 = vrot.slane %v3262_v60, 1  ;;  %643 = vperm.xlu1 %8190, %v351_v3   ;;  %957 = vperm.xlu2 %8191, %v352_v51  }
 0x1a5   :  { %v2143_v12 = vmul.f32 %v9093_v31, %v504_v2  ;;  %v3112_v56 = vmul.f32 %v9222_v36, %v504_v2  ;;  %v3956_v44 = vrot.slane %v3743_v42, 2  ;;  %v3261_v52 = vmul.f32 %v9192_v20, %v504_v2 }
 0x1a6   :  { %v1240_v28 = vrot.slane %v1023_v48, 1  ;;  %v2057_v45 = vadd.f32 %v1993_v63, %v1908_v34  ;;  %v722_v59 = vmul.f32 %v9081_v27, %v504_v2  ;;  %v3742_v62 = vmul.f32 %v10014_v54, %v504_v2 }
 0x1a7   :  { %v2357_v23 = vrot.slane %v2143_v12, 1  ;;  %v3176_v22 = vadd.f32 %v3112_v56, %v3027_v55  ;;  %v3473_v47 = vrot.slane %v3261_v52, 1  ;;  %v1718_v53 = vsel %vm1660_vm4, %v1716_v43, %v1717_v24 }
 0x1a8   :  { %v1243_v32 = vsel %vm1178_vm3, %v1240_v28, %v1242_v26  ;;  %v2834_v60 = vsel %vm1660_vm4, %v2832_v17, %v2833_v16  ;;  %v3954_v37 = vrot.slane %v3742_v62, 2  ;;  %v1907_v34 = vadd.f32 %v1718_v53, %v10272_v25  ;;  %v189_v17 = vld [vmem:[%s16434_s0 + $0x1a0] sm:$0xff]  ;;  %v190_v25 = vld [vmem:[%s16434_s0 + $0x1a8] sm:$0xff] }
 0x1a9   :  { %v1428_v42 = vadd.f32 %v1243_v32, %v722_v59  ;;  %v2360_v5 = vsel %vm1178_vm3, %v2357_v23, %v2359_v58  ;;  %v10319_v55 = vmul.f32 %v9055_v14, %v893_v39  ;;  %v3476_v63 = vsel %vm1178_vm3, %v3473_v47, %v3475_v49  ;;  %254 = vst.msk [vmem:[#allocation2 + $0x2b9] sm:$0xff] %vm27_vm1, %v189_v17 }
 0x1aa   :  { %v2548_v48 = vadd.f32 %v2360_v5, %v2057_v45  ;;  %v3026_v12 = vadd.f32 %v2834_v60, %v2545_v15  ;;  %v10323_v26 = vmul.f32 %v9068_v19, %v504_v2  ;;  %v3667_v24 = vadd.f32 %v3476_v63, %v3176_v22  ;;  %255 = vst.msk [vmem:[#allocation2 + $0x2c1] sm:$0xff] %vm27_vm1, %v190_v25 }
 0x1ab   :  { %v3957_v16 = vsel %vm1660_vm4, %v3954_v37, %v3956_v44  ;;  %v1022_v43 = vmul.f32 %v9055_v14, %v499_v35  ;;  %v10334_v58 = vmul.f32 %v9115_v41, %v504_v2  ;;  %v1992_v15 = vmul.f32 %v9110_v40, %v499_v35 }
 0x1ac   :  { %v2142_v49 = vmul.f32 %v9093_v31, %v499_v35  ;;  %v3111_v56 = vmul.f32 %v9222_v36, %v499_v35  ;;  %v10341_v4 = vmul.f32 %v9093_v31, %v893_v39  ;;  %v10343_v44 = vadd.f32 %v3957_v16, %v3667_v24 }
 0x1ad   :  { %v1239_v45 = vrot.slane %v1022_v43, 1  ;;  %v3260_v52 = vmul.f32 %v9192_v20, %v499_v35  ;;  %v721_v2 = vmul.f32 %v9081_v27, %v499_v35  ;;  %v2056_v3 = vadd.f32 %v1992_v15, %v1907_v34 }
 0x1ae   :  { %16616 = vst [vmem:[#allocation28_spill] sm:$0xff] %v10343_v44  ;;  %v2356_v51 = vrot.slane %v2142_v49, 1  ;;  %v3175_v59 = vadd.f32 %v3111_v56, %v3026_v12  ;;  %v1722_v22 = vrot.slane %v10323_v26, 2  ;;  %v3741_v53 = vmul.f32 %v10014_v54, %v499_v35  ;;  %v514_v49 = vpop.permute.xlu1 %513 }
 0x1af   :  { %v1241_v62 = vsel %vm1178_vm3, %v1239_v45, %v1240_v28  ;;  %v3472_v32 = vrot.slane %v3260_v52, 1  ;;  %v3265_v60 = vmul.f32 %v9192_v20, %v893_v39  ;;  %v2838_v5 = vrot.slane %v10334_v58, 2 }
 0x1b0   :  { %v1427_v63 = vadd.f32 %v1241_v62, %v721_v2  ;;  %v2358_v24 = vsel %vm1178_vm3, %v2356_v51, %v2357_v23  ;;  %v3746_v16 = vmul.f32 %v10014_v54, %v893_v39  ;;  %v3953_v12 = vrot.slane %v3741_v53, 2  ;;  %v353_v56 = vld [vmem:[#allocation2 + $0x2b8] sm:$0xff] }
 0x1b1   :  { %v2547_v43 = vadd.f32 %v2358_v24, %v2056_v3  ;;  %v3474_v34 = vsel %vm1178_vm3, %v3472_v32, %v3473_v47  ;;  %v2840_v26 = vrot.slane %v10295_v0, 2  ;;  %v1504_v28 = vmul.f32 %v9068_v19, %v499_v35  ;;  %v191_v0 = vld [vmem:[%s16434_s0 + $0x1b0] sm:$0xff]  ;;  %v354_v29 = vld [vmem:[#allocation2 + $0x2c0] sm:$0xff]  ;;  %648 = vperm.xlu0 %8189, %v353_v56  }
 0x1b2   :  { %v2623_v17 = vmul.f32 %v9115_v41, %v499_v35  ;;  %v3666_v25 = vadd.f32 %v3474_v34, %v3175_v59  ;;  %v10360_v15 = vmul.f32 %v9068_v19, %v893_v39  ;;  %v10363_v58 = vmul.f32 %v9115_v41, %v893_v39  ;;  %v192_v35 = vld [vmem:[%s16434_s0 + $0x1b8] sm:$0xff]  ;;  %256 = vst.msk [vmem:[#allocation2 + $0x2d1] sm:$0xff] %vm27_vm1, %v191_v0 }
 0x1b3   :  { %v3955_v23 = vsel %vm1660_vm4, %v3953_v12, %v3954_v37  ;;  %v1725_v47 = vsel %vm1660_vm4, %v1722_v22, %v1724_v10  ;;  %v1247_v45 = vrot.slane %v10319_v55, 1  ;;  %v2841_v37 = vsel %vm1660_vm4, %v2838_v5, %v2840_v26  ;;  %v355_v10 = vld [vmem:[#allocation2 + $0x2c8] sm:$0x3]  ;;  %653 = vperm.xlu1 %8190, %v354_v29   ;;  %257 = vst.msk [vmem:[#allocation2 + $0x2d9] sm:$0xff] %vm27_vm1, %v192_v35  ;;  %v509_v26 = vpop.permute.xlu0 %508 }
 0x1b4   :  { %v10376_v39 = vadd.f32 %v3955_v23, %v3666_v25  ;;  %v1910_v52 = vadd.f32 %v1725_v47, %v1428_v42  ;;  %v2364_v2 = vrot.slane %v10341_v4, 1  ;;  %v3480_v3 = vrot.slane %v3265_v60, 1  ;;  %962 = vperm.xlu2 %8191, %v355_v10  }
 0x1b5   :  { %v3961_v51 = vrot.slane %v3746_v16, 2  ;;  %v3029_v59 = vadd.f32 %v2841_v37, %v2548_v48  ;;  %v1721_v55 = vrot.slane %v1504_v28, 2  ;;  %v2837_v62 = vrot.slane %v2623_v17, 2 }
 0x1b6   :  { %16617 = vst [vmem:[#allocation29_spill] sm:$0xff] %v10376_v39  ;;  %v1026_v42 = vmul.f32 %v9055_v14, %v514_v49  ;;  %v1995_v32 = vmul.f32 %v9110_v40, %v514_v49  ;;  %v724_v53 = vmul.f32 %v9081_v27, %v514_v49  ;;  %v2146_v24 = vmul.f32 %v9093_v31, %v514_v49 }
 0x1b7   :  { %v3114_v34 = vmul.f32 %v9222_v36, %v514_v49  ;;  %v3264_v4 = vmul.f32 %v9192_v20, %v514_v49  ;;  %v10389_v48 = vmul.f32 %v9068_v19, %v514_v49  ;;  %v3745_v12 = vmul.f32 %v10014_v54, %v514_v49 }
 0x1b8   :  { %v1245_v60 = vrot.slane %v1026_v42, 1  ;;  %v2059_v16 = vadd.f32 %v1995_v32, %v1910_v52  ;;  %v2362_v28 = vrot.slane %v2146_v24, 1  ;;  %v10393_v17 = vmul.f32 %v9115_v41, %v514_v49  ;;  %v10400_v32 = vpop.permute.xlu2 %897 }
 0x1b9   :  { %v3178_v25 = vadd.f32 %v3114_v34, %v3029_v59  ;;  %v3478_v23 = vrot.slane %v3264_v4, 1  ;;  %v3959_v56 = vrot.slane %v3745_v12, 2  ;;  %v1723_v0 = vsel %vm1660_vm4, %v1721_v55, %v1722_v22  ;;  %v356_v42 = vld [vmem:[#allocation2 + $0x2d0] sm:$0xff] }
 0x1ba   :  { %v1248_v47 = vsel %vm1178_vm3, %v1245_v60, %v1247_v45  ;;  %v2839_v35 = vsel %vm1660_vm4, %v2837_v62, %v2838_v5  ;;  %v2365_v29 = vsel %vm1178_vm3, %v2362_v28, %v2364_v2  ;;  %v1909_v10 = vadd.f32 %v1723_v0, %v1427_v63  ;;  %v357_v34 = vld [vmem:[#allocation2 + $0x2d8] sm:$0xff]  ;;  %658 = vperm.xlu0 %8189, %v356_v42   ;;  %v358_v22 = vld [vmem:[#allocation2 + $0x2e0] sm:$0x3] }
 0x1bb   :  { %v1430_v37 = vadd.f32 %v1248_v47, %v724_v53  ;;  %v3481_v52 = vsel %vm1178_vm3, %v3478_v23, %v3480_v3  ;;  %v2550_v49 = vadd.f32 %v2365_v29, %v2059_v16  ;;  %v10405_v59 = vsel %vm1660_vm4, %v3959_v56, %v3961_v51  ;;  %663 = vperm.xlu1 %8190, %v357_v34   ;;  %v10415_v53 = vpop.permute.xlu1 %523 }
 0x1bc   :  { %v10402_v24 = vadd.f32 %v3481_v52, %v3178_v25  ;;  %16619 = vst [vmem:[#allocation31_spill] sm:$0xff] %v10405_v59  ;;  %v3028_v45 = vadd.f32 %v2839_v35, %v2547_v43  ;;  %v1729_v5 = vrot.slane %v10360_v15, 2  ;;  %v2845_v2 = vrot.slane %v10363_v58, 2  ;;  %967 = vperm.xlu2 %8191, %v358_v22  }
 0x1bd   :  { %v1025_v3 = vmul.f32 %v9055_v14, %v509_v26  ;;  %v1994_v63 = vmul.f32 %v9110_v40, %v509_v26  ;;  %v1727_v55 = vrot.slane %v10389_v48, 2  ;;  %v2145_v62 = vmul.f32 %v9093_v31, %v509_v26 }
 0x1be   :  { %16618 = vst [vmem:[#allocation30_spill] sm:$0xff] %v10402_v24  ;;  %v3113_v51 = vmul.f32 %v9222_v36, %v509_v26  ;;  %v3263_v43 = vmul.f32 %v9192_v20, %v509_v26  ;;  %v2843_v15 = vrot.slane %v10393_v17, 2  ;;  %v3744_v16 = vmul.f32 %v10014_v54, %v509_v26  ;;  %v10426_v54 = vpop.permute.xlu0 %518 }
 0x1bf   :  { %v1244_v4 = vrot.slane %v1025_v3, 1  ;;  %v2058_v58 = vadd.f32 %v1994_v63, %v1909_v10  ;;  %v723_v12 = vmul.f32 %v9081_v27, %v509_v26  ;;  %v2361_v25 = vrot.slane %v2145_v62, 1 }
 0x1c0   :  { %v3177_v47 = vadd.f32 %v3113_v51, %v3028_v45  ;;  %v3477_v48 = vrot.slane %v3263_v43, 1  ;;  %v1507_v35 = vmul.f32 %v9068_v19, %v509_v26  ;;  %v2626_v29 = vmul.f32 %v9115_v41, %v509_v26  ;;  %v193_v45 = vld [vmem:[%s16434_s0 + $0x1c0] sm:$0xff] }
 0x1c1   :  { %v1246_v0 = vsel %vm1178_vm3, %v1244_v4, %v1245_v60  ;;  %v3958_v52 = vrot.slane %v3744_v16, 2  ;;  %v2363_v34 = vsel %vm1178_vm3, %v2361_v25, %v2362_v28  ;;  %v1730_v10 = vsel %vm1660_vm4, %v1727_v55, %v1729_v5  ;;  %v194_v60 = vld [vmem:[%s16434_s0 + $0x1c8] sm:$0xff]  ;;  %258 = vst.msk [vmem:[#allocation2 + $0x2e9] sm:$0xff] %vm27_vm1, %v193_v45 }
 0x1c2   :  { %v1429_v42 = vadd.f32 %v1246_v0, %v723_v12  ;;  %v3479_v17 = vsel %vm1178_vm3, %v3477_v48, %v3478_v23  ;;  %v4212_v26 = vadd.f32 %v10228_v21, %v10224_v30  ;;  %v2549_v22 = vadd.f32 %v2363_v34, %v2058_v58  ;;  %259 = vst.msk [vmem:[#allocation2 + $0x2f1] sm:$0xff] %vm27_vm1, %v194_v60  ;;  %v10446_v21 = vpop.permute.xlu2 %902 }
 0x1c3   :  { %v3668_v3 = vadd.f32 %v3479_v17, %v3177_v47  ;;  %v3960_v28 = vsel %vm1660_vm4, %v3958_v52, %v3959_v56  ;;  %v2150_v23 = vmul.f32 %v9093_v31, %v10400_v32  ;;  %v1912_v5 = vadd.f32 %v1730_v10, %v1430_v37  ;;  %v10462_v0 = vpop.permute.xlu1 %533 }
 0x1c4   :  { %v2846_v63 = vsel %vm1660_vm4, %v2843_v15, %v2845_v2  ;;  %v1726_v62 = vrot.slane %v1507_v35, 2  ;;  %v2842_v51 = vrot.slane %v2626_v29, 2  ;;  %v4213_v30 = vsel %vm4191_vm2, %v9937_v18, 0.0 }
 0x1c5   :  { %v10442_v43 = vadd.f32 %v3960_v28, %v3668_v3  ;;  %v3031_v4 = vadd.f32 %v2846_v63, %v2550_v49  ;;  %v1997_v56 = vmul.f32 %v9110_v40, %v10415_v53  ;;  %v2149_v37 = vmul.f32 %v9093_v31, %v10415_v53 }
 0x1c6   :  { %v3116_v2 = vmul.f32 %v9222_v36, %v10415_v53  ;;  %v4214_v58 = vadd.f32 %v4213_v30, %v4212_v26  ;;  %v4215_v16 = vsel %vm4191_vm2, %v10077_v61, 0.0  ;;  %v10458_v49 = vmul.f32 %v9192_v20, %v10415_v53  ;;  %v10484_v63 = vpop.permute.xlu0 %528 }
 0x1c7   :  { %16620 = vst [vmem:[#allocation32_spill] sm:$0xff] %v10442_v43  ;;  %v2369_v12 = vrot.slane %v2150_v23, 1  ;;  %v2061_v25 = vadd.f32 %v1997_v56, %v1912_v5  ;;  %v2367_v47 = vrot.slane %v2149_v37, 1  ;;  %v1728_v35 = vsel %vm1660_vm4, %v1726_v62, %v1727_v55 }
 0x1c8   :  { %16621 = vst [vmem:[#allocation33_spill] sm:$0xff] %v10458_v49  ;;  %v10460_v48 = vadd.f32 %v3116_v2, %v3031_v4  ;;  %v2844_v29 = vsel %vm1660_vm4, %v2842_v51, %v2843_v15  ;;  %v4216_v52 = vadd.f32 %v4215_v16, %v4214_v58  ;;  %v1911_v17 = vadd.f32 %v1728_v35, %v1429_v42  ;;  %v359_v45 = vld [vmem:[#allocation2 + $0x2e8] sm:$0xff] }
 0x1c9   :  { %v2370_v34 = vsel %vm1178_vm3, %v2367_v47, %v2369_v12  ;;  %v3030_v10 = vadd.f32 %v2844_v29, %v2549_v22  ;;  %v10471_v26 = vmul.f32 %v9115_v41, %v10415_v53  ;;  %v16451_v3 = vrot.slane %v10458_v49, 1  ;;  %v360_v55 = vld [vmem:[#allocation2 + $0x2f0] sm:$0xff]  ;;  %668 = vperm.xlu0 %8189, %v359_v45   ;;  %v361_v15 = vld [vmem:[#allocation2 + $0x2f8] sm:$0x3] }
 0x1ca   :  { %16622 = vst [vmem:[#allocation34_spill] sm:$0xff] %v10460_v48  ;;  %v10467_v60 = vadd.f32 %v2370_v34, %v2061_v25  ;;  %v1996_v28 = vmul.f32 %v9110_v40, %v10426_v54  ;;  %v2148_v23 = vmul.f32 %v9093_v31, %v10426_v54  ;;  %v2629_v42 = vmul.f32 %v9115_v41, %v10426_v54  ;;  %v908_v34 = vpop.permute.xlu2 %907 }
 0x1cb   :  { %v3115_v22 = vmul.f32 %v9222_v36, %v10426_v54  ;;  %v3266_v5 = vmul.f32 %v9192_v20, %v10426_v54  ;;  %673 = vperm.xlu1 %8190, %v360_v55   ;;  %v4217_v62 = vsel %vm4191_vm2, %v10041_v6, 0.0  ;;  %v4219_v51 = vsel %vm4191_vm2, %v10155_v13, 0.0  ;;  %972 = vperm.xlu2 %8191, %v361_v15   ;;  %v195_v15 = vld [vmem:[%s16434_s0 + $0x1d0] sm:$0xff] }
 0x1cc   :  { %v10492_v4 = vmul.f32 %v9055_v14, %v10400_v32  ;;  %v2060_v30 = vadd.f32 %v1996_v28, %v1911_v17  ;;  %v10496_v56 = vmul.f32 %v9068_v19, %v10400_v32  ;;  %v2366_v37 = vrot.slane %v2148_v23, 1  ;;  %260 = vst.msk [vmem:[#allocation2 + $0x301] sm:$0xff] %vm27_vm1, %v195_v15 }
 0x1cd   :  { %v3179_v2 = vadd.f32 %v3115_v22, %v3030_v10  ;;  %v3482_v58 = vrot.slane %v3266_v5, 1  ;;  %v4218_v16 = vadd.f32 %v4217_v62, %v4216_v52  ;;  %v16452_v12 = vrot.slane %v10471_v26, 2  ;;  %v544_v62 = vpop.permute.xlu1 %543 }
 0x1ce   :  { %v2847_v25 = vrot.slane %v2629_v42, 2  ;;  %v10501_v35 = vsel %vm4191_vm2, %v10113_v7, 0.0  ;;  %v10505_v29 = vmul.f32 %v9115_v41, %v10400_v32  ;;  %v2368_v17 = vsel %vm1178_vm3, %v2366_v37, %v2367_v47  ;;  %v196_v47 = vld [vmem:[%s16434_s0 + $0x1d8] sm:$0xff] }
 0x1cf   :  { %16623 = vst [vmem:[#allocation35_spill] sm:$0xff] %v10501_v35  ;;  %v3484_v10 = vsel %vm1178_vm3, %v3482_v58, %v16451_v3  ;;  %v10511_v45 = vadd.f32 %v4219_v51, %v4218_v16  ;;  %v10515_v52 = vmul.f32 %v9192_v20, %v10400_v32  ;;  %v2551_v28 = vadd.f32 %v2368_v17, %v2060_v30  ;;  %v10551_v16 = vld [vmem:[%s16435_s1 + $0x8] ss:$0 sm:$0xff] }
 0x1d0   :  { %v10517_v55 = vadd.f32 %v3484_v10, %v3179_v2  ;;  %v10527_v23 = vsel %vm4191_vm2, %v10230_v8, 0.0  ;;  %v10533_v5 = vmul.f32 %v9093_v31, %v10446_v21  ;;  %v10538_v51 = vmul.f32 %v9115_v41, %v10446_v21  ;;  %261 = vst.msk [vmem:[#allocation2 + $0x309] sm:$0xff] %vm27_vm1, %v196_v47 }
 0x1d1   :  { %16624 = vst [vmem:[#allocation36_spill] sm:$0xff] %v10511_v45  ;;  %v1036_v30 = vmul.f32 %v9055_v14, %v908_v34  ;;  %v2849_v37 = vsel %vm1660_vm4, %v2847_v25, %v16452_v12  ;;  %v3117_v2 = vmul.f32 %v9222_v36, %v10484_v63  ;;  %v10555_v17 = vmul.f32 %v10551_v16, %v10400_v32  ;;  %v539_v25 = vpop.permute.xlu0 %538 }
 0x1d2   :  { %16625 = vst [vmem:[#allocation37_spill] sm:$0xff] %v10515_v52  ;;  %v1518_v10 = vmul.f32 %v9068_v19, %v908_v34  ;;  %v3032_v15 = vadd.f32 %v2849_v37, %v2551_v28  ;;  %v10561_v3 = vmul.f32 %v9055_v14, %v10446_v21  ;;  %v10565_v47 = vmul.f32 %v9068_v19, %v10446_v21  ;;  %v549_v50 = vpop.permute.xlu2 %548 }
 0x1d3   :  { %16626 = vst [vmem:[#allocation38_spill] sm:$0xff] %v10517_v55  ;;  %v10569_v12 = vmul.f32 %v9055_v14, %v10415_v53  ;;  %v10574_v34 = vmul.f32 %v9192_v20, %v10446_v21  ;;  %v10578_v28 = vmul.f32 %v9068_v19, %v10415_v53  ;;  %v1262_v22 = vrot.slane %v1036_v30, 1  ;;  %v362_v61 = vld [vmem:[#allocation2 + $0x300] sm:$0xff] }
 0x1d4   :  { %16627 = vst [vmem:[#allocation39_spill] sm:$0xff] %v10527_v23  ;;  %v10580_v37 = vadd.f32 %v3117_v2, %v3032_v15  ;;  %v1028_v42 = vmul.f32 %v9055_v14, %v10426_v54  ;;  %v1035_v8 = vmul.f32 %v9055_v14, %v544_v62  ;;  %v1744_v32 = vrot.slane %v1518_v10, 2  ;;  %678 = vperm.xlu0 %8189, %v362_v61  }
 0x1d5   :  { %v10588_v7 = vmul.f32 %v9081_v27, %v10415_v53  ;;  %v1510_v13 = vmul.f32 %v9068_v19, %v10426_v54  ;;  %v1517_v2 = vmul.f32 %v9068_v19, %v544_v62  ;;  %v1034_v30 = vmul.f32 %v9055_v14, %v539_v25  ;;  %v10603_v38 = vpop.permute.xlu1 %1956 }
 0x1d6   :  { %16628 = vst [vmem:[#allocation40_spill] sm:$0xff] %v10580_v37  ;;  %v1260_v6 = vrot.slane %v1035_v8, 1  ;;  %v1516_v58 = vmul.f32 %v9068_v19, %v539_v25  ;;  %v725_v10 = vmul.f32 %v9081_v27, %v10426_v54  ;;  %v730_v11 = vmul.f32 %v9081_v27, %v544_v62 }
 0x1d7   :  { %v1742_v57 = vrot.slane %v1517_v2, 2  ;;  %v363_v46 = vld [vmem:[#allocation2 + $0x308] sm:$0xff]  ;;  %v364_v33 = vld [vmem:[#allocation2 + $0x310] sm:$0x3]  ;;  %v1249_v43 = vrot.slane %v1028_v42, 1  ;;  %v1259_v15 = vrot.slane %v1034_v30, 1  ;;  %v729_v1 = vmul.f32 %v9081_v27, %v539_v25 }
 0x1d8   :  { %v1263_v8 = vsel %vm1178_vm3, %v1260_v6, %v1262_v22  ;;  %v1741_v44 = vrot.slane %v1516_v58, 2  ;;  %683 = vperm.xlu1 %8190, %v363_v46   ;;  %977 = vperm.xlu2 %8191, %v364_v33   ;;  %v1731_v39 = vrot.slane %v1510_v13, 2  ;;  %v10606_v62 = vmul.f32 %v9081_v27, %v549_v50 }
 0x1d9   :  { %v1436_v9 = vadd.f32 %v1263_v8, %v730_v11  ;;  %v1745_v18 = vsel %vm1660_vm4, %v1742_v57, %v1744_v32  ;;  %v10609_v61 = vmul.f32 %v9055_v14, %v549_v50  ;;  %v1261_v42 = vsel %vm1178_vm3, %v1259_v15, %v1260_v6 }
 0x1da   :  { %v1743_v22 = vsel %vm1660_vm4, %v1741_v44, %v1742_v57  ;;  %v10614_v33 = vmul.f32 %v9068_v19, %v549_v50  ;;  %v10617_v46 = vmul.f32 %v9093_v31, %v549_v50  ;;  %v1435_v13 = vadd.f32 %v1261_v42, %v729_v1 }
 0x1db   :  { %v10619_v11 = vadd.f32 %v1745_v18, %v1436_v9  ;;  %v10622_v58 = vmul.f32 %v9115_v41, %v549_v50  ;;  %v2002_v25 = vmul.f32 %v9110_v40, %v549_v50  ;;  %v10627_v32 = vmul.f32 %v9192_v20, %v10603_v38 }
 0x1dc   :  { %v1031_v6 = vmul.f32 %v9055_v14, %v10484_v63  ;;  %v1917_v57 = vadd.f32 %v1743_v22, %v1435_v13  ;;  %v10633_v44 = vmul.f32 %v10551_v16, %v10603_v38  ;;  %v10637_v18 = vmul.f32 %v9055_v14, %v10462_v0 }
 0x1dd   :  { %v16629_v9 = vrot.slane %v10569_v12, 1  ;;  %v727_v1 = vmul.f32 %v9081_v27, %v10484_v63  ;;  %v1513_v30 = vmul.f32 %v9068_v19, %v10484_v63  ;;  %v10651_v22 = vmul.f32 %v9068_v19, %v10462_v0 }
 0x1de   :  { %v1254_v2 = vrot.slane %v1031_v6, 1  ;;  %v10646_v8 = vadd.f32 %v2002_v25, %v1917_v57  ;;  %v16470_v42 = vrot.slane %v10637_v18, 1  ;;  %v16630_v13 = vrot.slane %v10578_v28, 2  ;;  %v10660_v25 = vpop.permute.xlu0 %1951  ;;  %v197_v57 = vld [vmem:[%s16434_s0 + $0x1e0] sm:$0xff] }
 0x1df   :  { %v1251_v50 = vsel %vm1178_vm3, %v1249_v43, %v16629_v9  ;;  %v1736_v9 = vrot.slane %v1513_v30, 2  ;;  %v2151_v6 = vmul.f32 %v9093_v31, %v10484_v63  ;;  %v2152_v30 = vmul.f32 %v9093_v31, %v10462_v0  ;;  %262 = vst.msk [vmem:[#allocation2 + $0x319] sm:$0xff] %vm27_vm1, %v197_v57 }
 0x1e0   :  { %v1431_v15 = vadd.f32 %v1251_v50, %v725_v10  ;;  %v1733_v43 = vsel %vm1660_vm4, %v1731_v39, %v16630_v13  ;;  %v1998_v10 = vmul.f32 %v9110_v40, %v10484_v63  ;;  %v198_v50 = vld [vmem:[%s16434_s0 + $0x1e8] sm:$0xff]  ;;  %v1256_v39 = vsel %vm1178_vm3, %v1254_v2, %v16470_v42  ;;  %v913_v2 = vpop.permute.xlu2 %912 }
 0x1e1   :  { %v2632_v13 = vmul.f32 %v9115_v41, %v10484_v63  ;;  %v2371_v45 = vrot.slane %v2151_v6, 1  ;;  %v10679_v55 = vmul.f32 %v9115_v41, %v10462_v0  ;;  %263 = vst.msk [vmem:[#allocation2 + $0x321] sm:$0xff] %vm27_vm1, %v198_v50  ;;  %v2372_v59 = vrot.slane %v2152_v30, 1 }
 0x1e2   :  { %v1913_v23 = vadd.f32 %v1733_v43, %v1431_v15  ;;  %v16471_v15 = vrot.slane %v10651_v22, 2  ;;  %v1433_v43 = vadd.f32 %v1256_v39, %v727_v1  ;;  %v2000_v37 = vmul.f32 %v9110_v40, %v10660_v25 }
 0x1e3   :  { %v2852_v24 = vrot.slane %v2632_v13, 2  ;;  %v2853_v6 = vrot.slane %v10679_v55, 2  ;;  %v2373_v50 = vsel %vm1178_vm3, %v2371_v45, %v2372_v59  ;;  %v3272_v39 = vmul.f32 %v9192_v20, %v10660_v25 }
 0x1e4   :  { %v2062_v35 = vadd.f32 %v1998_v10, %v1913_v23  ;;  %v1738_v42 = vsel %vm1660_vm4, %v1736_v9, %v16471_v15  ;;  %v3753_v9 = vmul.f32 %v10551_v16, %v10660_v25  ;;  %v10697_v30 = vmul.f32 %v9055_v14, %v913_v2 }
 0x1e5   :  { %v1915_v10 = vadd.f32 %v1738_v42, %v1433_v43  ;;  %v3119_v42 = vmul.f32 %v9222_v36, %v10660_v25  ;;  %v10704_v55 = vmul.f32 %v9068_v19, %v913_v2  ;;  %v2854_v45 = vsel %vm1660_vm4, %v2852_v24, %v2853_v6  ;;  %v199_v24 = vld [vmem:[%s16434_s0 + $0x1f0] sm:$0xff] }
 0x1e6   :  { %v2553_v13 = vadd.f32 %v2373_v50, %v2062_v35  ;;  %v3492_v43 = vrot.slane %v3272_v39, 1  ;;  %v3973_v1 = vrot.slane %v3753_v9, 2  ;;  %v1746_v57 = vrot.slane %v10614_v33, 2  ;;  %v365_v52 = vld [vmem:[#allocation2 + $0x318] sm:$0xff]  ;;  %v10732_v9 = vpop.permute.xlu1 %2100  ;;  %264 = vst.msk [vmem:[#allocation2 + $0x331] sm:$0xff] %vm27_vm1, %v199_v24 }
 0x1e7   :  { %v10699_v15 = vadd.f32 %v2000_v37, %v1915_v10  ;;  %v16631_v48 = vrot.slane %v10492_v4, 1  ;;  %v16632_v49 = vrot.slane %v10569_v12, 1  ;;  %v16633_v37 = vrot.slane %v10496_v56, 2  ;;  %v200_v39 = vld [vmem:[%s16434_s0 + $0x1f8] sm:$0xff]  ;;  %688 = vperm.xlu0 %8189, %v365_v52  }
 0x1e8   :  { %v3034_v23 = vadd.f32 %v2854_v45, %v2553_v13  ;;  %v16634_v10 = vrot.slane %v10578_v28, 2  ;;  %v16635_v12 = vrot.slane %v10627_v32, 1  ;;  %v366_v13 = vld [vmem:[#allocation2 + $0x320] sm:$0xff]  ;;  %v367_v45 = vld [vmem:[#allocation2 + $0x328] sm:$0x3]  ;;  %265 = vst.msk [vmem:[#allocation2 + $0x339] sm:$0xff] %vm27_vm1, %v200_v39 }
 0x1e9   :  { %v1253_v35 = vsel %vm1178_vm3, %v16632_v49, %v16631_v48  ;;  %v16636_v48 = vrot.slane %v10633_v44, 2  ;;  %693 = vperm.xlu1 %8190, %v366_v13   ;;  %982 = vperm.xlu2 %8191, %v367_v45   ;;  %v16639_v39 = vrot.slane %v10538_v51, 2 }
 0x1ea   :  { %v1735_v50 = vsel %vm1660_vm4, %v16634_v10, %v16633_v37  ;;  %v3494_v49 = vsel %vm1178_vm3, %v3492_v43, %v16635_v12  ;;  %v1432_v28 = vadd.f32 %v1253_v35, %v10588_v7  ;;  %v1267_v37 = vrot.slane %v10697_v30, 1  ;;  %v554_v12 = vpop.permute.xlu0 %553 }
 0x1eb   :  { %v3975_v56 = vsel %vm1660_vm4, %v3973_v1, %v16636_v48  ;;  %v10737_v10 = vmul.f32 %v9093_v31, %v913_v2  ;;  %v3183_v4 = vadd.f32 %v3119_v42, %v3034_v23  ;;  %v1999_v43 = vmul.f32 %v9110_v40, %v10462_v0 }
 0x1ec   :  { %v1749_v7 = vrot.slane %v10704_v55, 2  ;;  %v10743_v1 = vmul.f32 %v9115_v41, %v913_v2  ;;  %v1914_v52 = vadd.f32 %v1735_v50, %v1432_v28  ;;  %v16637_v30 = vrot.slane %v10533_v5, 1 }
 0x1ed   :  { %v3674_v35 = vadd.f32 %v3494_v49, %v3183_v4  ;;  %v8660_v23 = vmov -inf   ;;  %v3274_v42 = vmul.f32 %v9192_v20, %v10732_v9  ;;  %v3120_v2 = vmul.f32 %v9222_v36, %v10603_v38 }
 0x1ee   :  { %v2375_v24 = vsel %vm1178_vm3, %v2372_v59, %v16637_v30  ;;  %4910 = vst.msk [vmem:[#allocation3 + $0x170] sm:$0xff] %vm4191_vm2, %v8660_v23  ;;  %v2063_v55 = vadd.f32 %v1999_v43, %v1914_v52  ;;  %v3755_v5 = vmul.f32 %v10551_v16, %v10732_v9  ;;  %v1038_v59 = vmul.f32 %v9055_v14, %v554_v12  ;;  %v368_v30 = vld [vmem:[#allocation2 + $0x330] sm:$0xff] }
 0x1ef   :  { %4911 = vst.msk [vmem:[#allocation3 + $0x178] sm:$0x3] %vm4865_vm5, %v8660_v23  ;;  %v10760_v50 = vadd.f32 %v3975_v56, %v3674_v35  ;;  %v2856_v4 = vsel %vm1660_vm4, %v2853_v6, %v16639_v39  ;;  %v3495_v49 = vrot.slane %v3274_v42, 1  ;;  %v732_v48 = vmul.f32 %v9081_v27, %v554_v12  ;;  %1961 = vperm.xlu0 %8189, %v368_v30  }
 0x1f0   :  { %4863 = vst.msk [vmem:[#allocation3] sm:$0xff] %vm4191_vm2, %v8660_v23  ;;  %v2554_v28 = vadd.f32 %v2375_v24, %v2063_v55  ;;  %v3976_v13 = vrot.slane %v3755_v5, 2  ;;  %v1265_v45 = vrot.slane %v1038_v59, 1  ;;  %v1520_v43 = vmul.f32 %v9068_v19, %v554_v12 }
 0x1f1   :  { %16638 = vst [vmem:[#allocation41_spill] sm:$0xff] %v10760_v50  ;;  %v16640_v56 = vrot.slane %v10627_v32, 1  ;;  %v2003_v6 = vmul.f32 %v9110_v40, %v554_v12  ;;  %v2158_v52 = vmul.f32 %v9093_v31, %v554_v12  ;;  %v2639_v35 = vmul.f32 %v9115_v41, %v554_v12 }
 0x1f2   :  { %4864 = vst.msk [vmem:[#allocation3 + $0x8] sm:$0xff] %vm4191_vm2, %v8660_v23  ;;  %v3035_v24 = vadd.f32 %v2856_v4, %v2554_v28  ;;  %v16641_v42 = vrot.slane %v10633_v44, 2  ;;  %v16642_v32 = vrot.slane %v10609_v61, 1  ;;  %v1268_v59 = vsel %vm1178_vm3, %v1265_v45, %v1267_v37  ;;  %v370_v28 = vld [vmem:[#allocation2 + $0x340] sm:$0x3] }
 0x1f3   :  { %v3496_v51 = vsel %vm1178_vm3, %v16640_v56, %v3495_v49  ;;  %4866 = vst.msk [vmem:[#allocation3 + $0x10] sm:$0x3] %vm4865_vm5, %v8660_v23  ;;  %v1438_v39 = vadd.f32 %v1268_v59, %v732_v48  ;;  %v1747_v4 = vrot.slane %v1520_v43, 2  ;;  %v2067_v44 = vadd.f32 %v2003_v6, %v10619_v11  ;;  %v369_v49 = vld [vmem:[#allocation2 + $0x338] sm:$0xff]  ;;  %2105 = vperm.xlu2 %8191, %v370_v28  }
 0x1f4   :  { %v3977_v55 = vsel %vm1660_vm4, %v16641_v42, %v3976_v13  ;;  %4867 = vst.msk [vmem:[#allocation3 + $0x18] sm:$0xff] %vm4191_vm2, %v8660_v23  ;;  %v1266_v5 = vsel %vm1178_vm3, %v16642_v32, %v1265_v45  ;;  %v2862_v13 = vrot.slane %v10622_v58, 2  ;;  %v3184_v56 = vadd.f32 %v3120_v2, %v3035_v24  ;;  %1966 = vperm.xlu1 %8190, %v369_v49   ;;  %v10841_v42 = vpop.permute.xlu0 %558 }
 0x1f5   :  { %4868 = vst.msk [vmem:[#allocation3 + $0x20] sm:$0xff] %vm4191_vm2, %v8660_v23  ;;  %v1437_v12 = vadd.f32 %v1266_v5, %v10606_v62  ;;  %v2382_v61 = vrot.slane %v2158_v52, 1  ;;  %v2863_v37 = vrot.slane %v2639_v35, 2  ;;  %v2384_v45 = vrot.slane %v10737_v10, 1  ;;  %v10856_v5 = vpop.permute.xlu1 %563 }
 0x1f6   :  { %4869 = vst.msk [vmem:[#allocation3 + $0x28] sm:$0x3] %vm4865_vm5, %v8660_v23  ;;  %v2865_v62 = vrot.slane %v10743_v1, 2  ;;  %v1748_v11 = vsel %vm1660_vm4, %v1746_v57, %v1747_v4  ;;  %v1750_v58 = vsel %vm1660_vm4, %v1747_v4, %v1749_v7  ;;  %v3675_v2 = vadd.f32 %v3496_v51, %v3184_v56 }
 0x1f7   :  { %4870 = vst.msk [vmem:[#allocation3 + $0x30] sm:$0xff] %vm4191_vm2, %v8660_v23  ;;  %v1919_v48 = vadd.f32 %v1748_v11, %v1437_v12  ;;  %v10805_v43 = vadd.f32 %v1750_v58, %v1438_v39  ;;  %v16643_v10 = vrot.slane %v10617_v46, 1  ;;  %v2385_v33 = vsel %vm1178_vm3, %v2382_v61, %v2384_v45 }
 0x1f8   :  { %4871 = vst.msk [vmem:[#allocation3 + $0x38] sm:$0xff] %vm4191_vm2, %v8660_v23  ;;  %v2864_v7 = vsel %vm1660_vm4, %v2862_v13, %v2863_v37  ;;  %v2866_v51 = vsel %vm1660_vm4, %v2863_v37, %v2865_v62  ;;  %v10819_v52 = vmul.f32 %v10551_v16, %v10446_v21  ;;  %v10821_v46 = vadd.f32 %v3977_v55, %v3675_v2 }
 0x1f9   :  { %v2383_v1 = vsel %vm1178_vm3, %v16643_v10, %v2382_v61  ;;  %4872 = vst.msk [vmem:[#allocation3 + $0x40] sm:$0x3] %vm4865_vm5, %v8660_v23  ;;  %v2558_v35 = vadd.f32 %v2385_v33, %v2067_v44  ;;  %v10827_v30 = vmul.f32 %v10551_v16, %v10415_v53  ;;  %v10835_v24 = vmul.f32 %v9192_v20, %v10462_v0 }
 0x1fa   :  { %v2557_v57 = vadd.f32 %v2383_v1, %v10646_v8  ;;  %16644 = vst [vmem:[#allocation42_spill] sm:$0xff] %v10821_v46  ;;  %v10831_v8 = vmul.f32 %v10551_v16, %v10426_v54  ;;  %v10846_v53 = vmul.f32 %v10551_v16, %v10462_v0  ;;  %v10850_v54 = vmul.f32 %v9192_v20, %v10484_v63 }
 0x1fb   :  { %4873 = vst.msk [vmem:[#allocation3 + $0x48] sm:$0xff] %vm4191_vm2, %v8660_v23  ;;  %v10854_v32 = vadd.f32 %v2866_v51, %v2558_v35  ;;  %v10862_v39 = vmul.f32 %v10551_v16, %v10484_v63  ;;  %v10866_v4 = vmul.f32 %v9093_v31, %v10603_v38  ;;  %v10873_v49 = vmul.f32 %v9115_v41, %v10603_v38 }
 0x1fc   :  { %4874 = vst.msk [vmem:[#allocation3 + $0x50] sm:$0xff] %vm4191_vm2, %v8660_v23  ;;  %v10839_v21 = vadd.f32 %v2864_v7, %v2557_v57  ;;  %v1040_v63 = vmul.f32 %v9055_v14, %v10841_v42  ;;  %v2004_v28 = vmul.f32 %v9110_v40, %v10841_v42  ;;  %v10885_v61 = vmul.f32 %v9222_v36, %v10462_v0 }
 0x1fd   :  { %4875 = vst.msk [vmem:[#allocation3 + $0x58] sm:$0x3] %vm4865_vm5, %v8660_v23  ;;  %v1522_v11 = vmul.f32 %v9068_v19, %v10841_v42  ;;  %v10899_v10 = vmul.f32 %v9110_v40, %v10603_v38  ;;  %v2160_v33 = vmul.f32 %v9093_v31, %v10841_v42  ;;  %v2641_v7 = vmul.f32 %v9115_v41, %v10841_v42  ;;  %v10953_v57 = vpop.permute.xlu1 %917 }
 0x1fe   :  { %4876 = vst.msk [vmem:[#allocation3 + $0x60] sm:$0xff] %vm4191_vm2, %v8660_v23  ;;  %v2068_v58 = vadd.f32 %v2004_v28, %v1919_v48  ;;  %v1269_v48 = vrot.slane %v1040_v63, 1  ;;  %v10913_v38 = vmul.f32 %v9055_v14, %v10856_v5  ;;  %v10917_v51 = vmul.f32 %v9093_v31, %v10660_v25 }
 0x1ff   :  { %4877 = vst.msk [vmem:[#allocation3 + $0x68] sm:$0xff] %vm4191_vm2, %v8660_v23  ;;  %v10921_v35 = vmul.f32 %v9115_v41, %v10660_v25  ;;  %v10925_v28 = vmul.f32 %v9093_v31, %v10732_v9  ;;  %v10931_v63 = vmul.f32 %v9068_v19, %v10856_v5  ;;  %v1751_v44 = vrot.slane %v1522_v11, 2 }
 0x200   :  { %4878 = vst.msk [vmem:[#allocation3 + $0x70] sm:$0x3] %vm4865_vm5, %v8660_v23  ;;  %v16474_v2 = vrot.slane %v10913_v38, 1  ;;  %v2005_v25 = vmul.f32 %v9110_v40, %v10856_v5  ;;  %v2161_v45 = vmul.f32 %v9093_v31, %v10856_v5  ;;  %v733_v6 = vmul.f32 %v9081_v27, %v10841_v42 }
 0x201   :  { %4879 = vst.msk [vmem:[#allocation3 + $0x78] sm:$0xff] %vm4191_vm2, %v8660_v23  ;;  %v2386_v56 = vrot.slane %v2160_v33, 1  ;;  %v16475_v13 = vrot.slane %v10931_v63, 2  ;;  %v2642_v11 = vmul.f32 %v9115_v41, %v10856_v5  ;;  %v10949_v12 = vmul.f32 %v9115_v41, %v10732_v9 }
 0x202   :  { %4880 = vst.msk [vmem:[#allocation3 + $0x80] sm:$0xff] %vm4191_vm2, %v8660_v23  ;;  %v2867_v62 = vrot.slane %v2641_v7, 2  ;;  %v2387_v37 = vrot.slane %v2161_v45, 1  ;;  %v1271_v33 = vsel %vm1178_vm3, %v1269_v48, %v16474_v2  ;;  %v3124_v59 = vmul.f32 %v9222_v36, %v10856_v5 }
 0x203   :  { %4881 = vst.msk [vmem:[#allocation3 + $0x88] sm:$0x3] %vm4865_vm5, %v8660_v23  ;;  %v2868_v1 = vrot.slane %v2642_v11, 2  ;;  %v10964_v9 = vmul.f32 %v9192_v20, %v10856_v5  ;;  %v1439_v55 = vadd.f32 %v1271_v33, %v733_v6  ;;  %v2376_v45 = vrot.slane %v10917_v51, 1 }
 0x204   :  { %4882 = vst.msk [vmem:[#allocation3 + $0x90] sm:$0xff] %vm4191_vm2, %v8660_v23  ;;  %v2857_v7 = vrot.slane %v10921_v35, 2  ;;  %v1753_v48 = vsel %vm1660_vm4, %v1751_v44, %v16475_v13  ;;  %v2069_v11 = vadd.f32 %v2005_v25, %v10805_v43  ;;  %v10978_v2 = vmul.f32 %v10551_v16, %v10856_v5 }
 0x205   :  { %4883 = vst.msk [vmem:[#allocation3 + $0x98] sm:$0xff] %vm4191_vm2, %v8660_v23  ;;  %v10980_v6 = vadd.f32 %v1753_v48, %v1439_v55  ;;  %v2162_v51 = vmul.f32 %v9093_v31, %v10953_v57  ;;  %v2388_v35 = vsel %vm1178_vm3, %v2386_v56, %v2387_v37  ;;  %v2379_v33 = vrot.slane %v10925_v28, 1 }
 0x206   :  { %4884 = vst.msk [vmem:[#allocation3 + $0xa0] sm:$0x3] %vm4865_vm5, %v8660_v23  ;;  %v2559_v43 = vadd.f32 %v2388_v35, %v2068_v58  ;;  %v2643_v44 = vmul.f32 %v9115_v41, %v10953_v57  ;;  %v2869_v25 = vsel %vm1660_vm4, %v2867_v62, %v2868_v1  ;;  %v2860_v13 = vrot.slane %v10949_v12, 2 }
 0x207   :  { %4885 = vst.msk [vmem:[#allocation3 + $0xa8] sm:$0xff] %vm4191_vm2, %v8660_v23  ;;  %v2389_v48 = vrot.slane %v2162_v51, 1  ;;  %v3188_v56 = vadd.f32 %v3124_v59, %v10854_v32  ;;  %v3280_v35 = vmul.f32 %v9192_v20, %v10953_v57  ;;  %v3761_v12 = vmul.f32 %v10551_v16, %v10953_v57 }
 0x208   :  { %4886 = vst.msk [vmem:[#allocation3 + $0xb0] sm:$0xff] %vm4191_vm2, %v8660_v23  ;;  %v2870_v28 = vrot.slane %v2643_v44, 2  ;;  %v10998_v58 = vadd.f32 %v2869_v25, %v2559_v43  ;;  %v3984_v62 = vrot.slane %v10978_v2, 2  ;;  %v728_v32 = vmul.f32 %v9081_v27, %v10462_v0 }
 0x209   :  { %4887 = vst.msk [vmem:[#allocation3 + $0xb8] sm:$0x3] %vm4865_vm5, %v8660_v23  ;;  %v2390_v51 = vsel %vm1178_vm3, %v2387_v37, %v2389_v48  ;;  %v16647_v59 = vrot.slane %v10561_v3, 1  ;;  %v16648_v43 = vrot.slane %v10637_v18, 1  ;;  %v16649_v0 = vrot.slane %v10565_v47, 2 }
 0x20a   :  { %4888 = vst.msk [vmem:[#allocation3 + $0xc0] sm:$0xff] %vm4191_vm2, %v8660_v23  ;;  %v2560_v25 = vadd.f32 %v2390_v51, %v2069_v11  ;;  %v2871_v55 = vsel %vm1660_vm4, %v2868_v1, %v2870_v28  ;;  %v16650_v3 = vrot.slane %v10651_v22, 2  ;;  %v16651_v48 = vrot.slane %v10866_v4, 1 }
 0x20b   :  { %16645 = vst [vmem:[#allocation43_spill] sm:$0xff] %v10980_v6  ;;  %v1258_v44 = vsel %vm1178_vm3, %v16648_v43, %v16647_v59  ;;  %v3505_v6 = vrot.slane %v3280_v35, 1  ;;  %v16653_v35 = vrot.slane %v10964_v9, 1 }
 0x20c   :  { %4889 = vst.msk [vmem:[#allocation3 + $0xc8] sm:$0xff] %vm4191_vm2, %v8660_v23  ;;  %v1434_v37 = vadd.f32 %v1258_v44, %v728_v32  ;;  %v1740_v18 = vsel %vm1660_vm4, %v16650_v3, %v16649_v0  ;;  %v2378_v59 = vsel %vm1178_vm3, %v2376_v45, %v16651_v48  ;;  %v16652_v11 = vmov %v16651_v48 }
 0x20d   :  { %4890 = vst.msk [vmem:[#allocation3 + $0xd0] sm:$0x3] %vm4865_vm5, %v8660_v23  ;;  %v2380_v1 = vsel %vm1178_vm3, %v16652_v11, %v2379_v33  ;;  %v11033_v28 = vadd.f32 %v2871_v55, %v2560_v25  ;;  %v3506_v47 = vsel %vm1178_vm3, %v16653_v35, %v3505_v6  ;;  %v16654_v33 = vrot.slane %v10505_v29, 2  ;;  %v16658_v29 = vld [vmem:[#allocation37_spill] sm:$0xff]  ;;  %v16667_v11 = vld [vmem:[#allocation34_spill] sm:$0xff] }
 0x20e   :  { %4891 = vst.msk [vmem:[#allocation3 + $0xd8] sm:$0xff] %vm4191_vm2, %v8660_v23  ;;  %v3679_v4 = vadd.f32 %v3506_v47, %v3188_v56  ;;  %v1916_v45 = vadd.f32 %v1740_v18, %v1434_v37  ;;  %v16655_v55 = vrot.slane %v10471_v26, 2  ;;  %v16656_v32 = vrot.slane %v10873_v49, 2  ;;  %v16660_v26 = vld [vmem:[#allocation33_spill] sm:$0xff]  ;;  %v16668_v47 = vld [vmem:[#allocation40_spill] sm:$0xff] }
 0x20f   :  { %16646 = vst [vmem:[#allocation44_spill] sm:$0xff] %v10998_v58  ;;  %v3986_v58 = vrot.slane %v3761_v12, 2  ;;  %v2555_v12 = vadd.f32 %v2378_v59, %v10699_v15  ;;  %v16659_v44 = vrot.slane %v16658_v29, 1  ;;  %v16661_v25 = vrot.slane %v16660_v26, 1 }
 0x210   :  { %4892 = vst.msk [vmem:[#allocation3 + $0xe0] sm:$0xff] %vm4191_vm2, %v8660_v23  ;;  %v2851_v51 = vsel %vm1660_vm4, %v16655_v55, %v16654_v33  ;;  %v2859_v6 = vsel %vm1660_vm4, %v2857_v7, %v16656_v32  ;;  %v16657_v15 = vmov %v16656_v32  ;;  %v2065_v0 = vadd.f32 %v10899_v10, %v1916_v45 }
 0x211   :  { %4893 = vst.msk [vmem:[#allocation3 + $0xe8] sm:$0x3] %vm4865_vm5, %v8660_v23  ;;  %v3987_v22 = vsel %vm1660_vm4, %v3984_v62, %v3986_v58  ;;  %v2861_v58 = vsel %vm1660_vm4, %v16657_v15, %v2860_v13  ;;  %v3033_v56 = vadd.f32 %v2851_v51, %v10467_v60  ;;  %v11058_v43 = vadd.f32 %v2859_v6, %v2555_v12 }
 0x212   :  { %4894 = vst.msk [vmem:[#allocation3 + $0xf0] sm:$0xff] %vm4191_vm2, %v8660_v23  ;;  %v3486_v37 = vsel %vm1178_vm3, %v16661_v25, %v16659_v44  ;;  %v11067_v7 = vadd.f32 %v3987_v22, %v3679_v4  ;;  %v16663_v49 = vrot.slane %v10835_v24, 1  ;;  %v16664_v13 = vrot.slane %v10850_v54, 1  ;;  %v11087_v22 = vpop.permute.xlu2 %3072  ;;  %v16680_v25 = vld [vmem:[#allocation38_spill] sm:$0xff] }
 0x213   :  { %4895 = vst.msk [vmem:[#allocation3 + $0xf8] sm:$0xff] %vm4191_vm2, %v8660_v23  ;;  %v16665_v3 = vrot.slane %v10574_v34, 1  ;;  %v3278_v59 = vmul.f32 %v9192_v20, %v10841_v42  ;;  %v3182_v10 = vadd.f32 %v10885_v61, %v3033_v56  ;;  %v3671_v35 = vadd.f32 %v3486_v37, %v16667_v11  ;;  %v16677_v56 = vld [vmem:[#allocation30_spill] sm:$0xff] }
 0x214   :  { %4896 = vst.msk [vmem:[#allocation3 + $0x100] sm:$0x3] %vm4865_vm5, %v8660_v23  ;;  %v3489_v60 = vsel %vm1178_vm3, %v16664_v13, %v16663_v49  ;;  %v16666_v18 = vmov %v16663_v49  ;;  %v2556_v34 = vadd.f32 %v2380_v1, %v2065_v0  ;;  %v3123_v24 = vmul.f32 %v9222_v36, %v10841_v42  ;;  %v16686_v13 = vld [vmem:[#allocation35_spill] sm:$0xff] }
 0x215   :  { %4897 = vst.msk [vmem:[#allocation3 + $0x108] sm:$0xff] %vm4191_vm2, %v8660_v23  ;;  %v3491_v48 = vsel %vm1178_vm3, %v16666_v18, %v16665_v3  ;;  %v3672_v54 = vadd.f32 %v3489_v60, %v16668_v47  ;;  %v16669_v12 = vrot.slane %v10827_v30, 2  ;;  %v16670_v4 = vrot.slane %v10831_v8, 2  ;;  %v16678_v30 = vld [vmem:[#allocation31_spill] sm:$0xff] }
 0x216   :  { %4898 = vst.msk [vmem:[#allocation3 + $0x110] sm:$0xff] %vm4191_vm2, %v8660_v23  ;;  %v16671_v61 = vrot.slane %v10555_v17, 2  ;;  %v3673_v51 = vadd.f32 %v3491_v48, %v3182_v10  ;;  %v16673_v1 = vrot.slane %v10846_v53, 2  ;;  %v16674_v32 = vrot.slane %v10862_v39, 2  ;;  %v16688_v3 = vld [vmem:[#allocation39_spill] sm:$0xff] }
 0x217   :  { %16662 = vst [vmem:[#allocation37_spill] sm:$0xff] %v11067_v7  ;;  %v3965_v45 = vsel %vm1660_vm4, %v16670_v4, %v16669_v12  ;;  %v16672_v33 = vmov %v16669_v12  ;;  %v16675_v8 = vrot.slane %v10819_v52, 2  ;;  %v11117_v29 = vadd.f32 %v16678_v30, %v16677_v56  ;;  %v16692_v12 = vld [vmem:[#allocation29_spill] sm:$0xff] }
 0x218   :  { %4899 = vst.msk [vmem:[#allocation3 + $0x118] sm:$0x3] %vm4865_vm5, %v8660_v23  ;;  %v3967_v55 = vsel %vm1660_vm4, %v16672_v33, %v16671_v61  ;;  %v3970_v6 = vsel %vm1660_vm4, %v16674_v32, %v16673_v1  ;;  %v16676_v15 = vmov %v16673_v1  ;;  %v11121_v44 = vadd.f32 %v2861_v58, %v2556_v34  ;;  %v16685_v58 = vld [vmem:[#allocation36_spill] sm:$0xff] }
 0x219   :  { %4900 = vst.msk [vmem:[#allocation3 + $0x120] sm:$0xff] %vm4191_vm2, %v8660_v23  ;;  %v3972_v17 = vsel %vm1660_vm4, %v16676_v15, %v16675_v8  ;;  %v3187_v26 = vadd.f32 %v3123_v24, %v10839_v21  ;;  %v3759_v39 = vmul.f32 %v10551_v16, %v10841_v42  ;;  %v11127_v52 = vadd.f32 %v3965_v45, %v16680_v25  ;;  %v16695_v32 = vld [vmem:[#allocation32_spill] sm:$0xff] }
 0x21a   :  { %4901 = vst.msk [vmem:[#allocation3 + $0x128] sm:$0xff] %vm4191_vm2, %v8660_v23  ;;  %v3502_v53 = vrot.slane %v3278_v59, 1  ;;  %v11131_v37 = vadd.f32 %v3967_v55, %v3671_v35  ;;  %v11133_v0 = vadd.f32 %v3970_v6, %v3672_v54  ;;  %v11135_v49 = vadd.f32 %v3972_v17, %v3673_v51  ;;  %v16690_v35 = vld [vmem:[#allocation27_spill] sm:$0xff]  ;;  %v3222_v34 = vpop.permute.xlu2 %3221  ;;  %v16694_v51 = vld [vmem:[#allocation28_spill] sm:$0xff] }
 0x21b   :  { %16679 = vst [vmem:[#allocation33_spill] sm:$0xff] %v11117_v29  ;;  %v4222_v60 = vadd.f32 %v16686_v13, %v16685_v58  ;;  %v16687_v21 = vrot.slane %v10964_v9, 1  ;;  %v3983_v48 = vrot.slane %v3759_v39, 2  ;;  %v16689_v9 = vld [vmem:[#allocation24_spill] sm:$0xff]  ;;  %v4227_v47 = vsel %vm4191_vm2, %v16690_v35, 0.0 }
 0x21c   :  { %4902 = vst.msk [vmem:[#allocation3 + $0x130] sm:$0x3] %vm4865_vm5, %v8660_v23  ;;  %v4225_v11 = vsel %vm4191_vm2, %v16689_v9, 0.0  ;;  %v4231_v4 = vsel %vm4191_vm2, %v16692_v12, 0.0  ;;  %v4233_v1 = vsel %vm4191_vm2, %v16694_v51, 0.0  ;;  %v4235_v6 = vsel %vm4191_vm2, %v16695_v32, 0.0 }
 0x21d   :  { %16681 = vst [vmem:[#allocation34_spill] sm:$0xff] %v11127_v52  ;;  %v3504_v42 = vsel %vm1178_vm3, %v3502_v53, %v16687_v21  ;;  %v4224_v18 = vadd.f32 %v16688_v3, %v4222_v60  ;;  %v3985_v10 = vsel %vm1660_vm4, %v3983_v48, %v3984_v62  ;;  %v16691_v62 = vld [vmem:[#allocation26_spill] sm:$0xff]  ;;  %v3275_v17 = vmul.f32 %v9192_v20, %v11087_v22 }
 0x21e   :  { %4903 = vst.msk [vmem:[#allocation3 + $0x138] sm:$0xff] %vm4191_vm2, %v8660_v23  ;;  %v3678_v59 = vadd.f32 %v3504_v42, %v3187_v26  ;;  %v4229_v24 = vsel %vm4191_vm2, %v16691_v62, 0.0  ;;  %v11206_v56 = vmul.f32 %v10551_v16, %v11087_v22  ;;  %v11211_v30 = vmul.f32 %v9192_v20, %v3222_v34 }
 0x21f   :  { %16682 = vst [vmem:[#allocation40_spill] sm:$0xff] %v11131_v37  ;;  %v4226_v54 = vadd.f32 %v4225_v11, %v4224_v18  ;;  %v11214_v26 = vmul.f32 %v10551_v16, %v3222_v34  ;;  %v4237_v58 = vsel %vm4191_vm2, %v11117_v29, 0.0  ;;  %v4239_v13 = vsel %vm4191_vm2, %v11127_v52, 0.0 }
 0x220   :  { %16683 = vst [vmem:[#allocation30_spill] sm:$0xff] %v11133_v0  ;;  %v11182_v61 = vadd.f32 %v3985_v10, %v3678_v59  ;;  %v3121_v3 = vmul.f32 %v9222_v36, %v11087_v22  ;;  %v3497_v18 = vrot.slane %v3275_v17, 1  ;;  %v3978_v48 = vrot.slane %v11206_v56, 2 }
 0x221   :  { %16684 = vst [vmem:[#allocation31_spill] sm:$0xff] %v11135_v49  ;;  %v4228_v2 = vadd.f32 %v4227_v47, %v4226_v54  ;;  %v3500_v10 = vrot.slane %v11211_v30, 1  ;;  %v3981_v11 = vrot.slane %v11214_v26, 2  ;;  %v11256_v34 = vsel %vm4191_vm2, %v10821_v46, 0.0  ;;  %v373_v47 = vld [vmem:[#allocation2 + $0x358] sm:$0x3] }
 0x222   :  { %4904 = vst.msk [vmem:[#allocation3 + $0x140] sm:$0xff] %vm4191_vm2, %v8660_v23  ;;  %v923_v55 = vpop.permute.xlu2 %922  ;;  %v4243_v17 = vsel %vm4191_vm2, %v11133_v0, 0.0  ;;  %v1524_v30 = vmul.f32 %v9068_v19, %v10953_v57  ;;  %3226 = vperm.xlu2 %8191, %v373_v47  }
 0x223   :  { %4905 = vst.msk [vmem:[#allocation3 + $0x148] sm:$0x3] %vm4865_vm5, %v8660_v23  ;;  %v4230_v45 = vadd.f32 %v4229_v24, %v4228_v2  ;;  %v11219_v39 = vmul.f32 %v9055_v14, %v923_v55  ;;  %v11224_v25 = vmul.f32 %v9068_v19, %v923_v55  ;;  %v11227_v53 = vmul.f32 %v9093_v31, %v923_v55  ;;  %v371_v24 = vld [vmem:[#allocation2 + $0x348] sm:$0xff] }
 0x224   :  { %4906 = vst.msk [vmem:[#allocation3 + $0x150] sm:$0xff] %vm4191_vm2, %v8660_v23  ;;  %v11236_v60 = vmul.f32 %v9115_v41, %v923_v55  ;;  %v11239_v21 = vmul.f32 %v9192_v20, %v923_v55  ;;  %v11247_v59 = vmul.f32 %v10551_v16, %v923_v55  ;;  %3082 = vperm.xlu0 %8189, %v371_v24  }
 0x225   :  { %4907 = vst.msk [vmem:[#allocation3 + $0x158] sm:$0xff] %vm4191_vm2, %v8660_v23  ;;  %v4232_v33 = vadd.f32 %v4231_v4, %v4230_v45  ;;  %v1042_v4 = vmul.f32 %v9055_v14, %v10953_v57  ;;  %v3078_v45 = vpop.permute.xlu0 %3077 }
 0x226   :  { %4908 = vst.msk [vmem:[#allocation3 + $0x160] sm:$0x3] %vm4865_vm5, %v8660_v23  ;;  %v3122_v56 = vmul.f32 %v9222_v36, %v3078_v45 }
 0x227   :  { %4909 = vst.msk [vmem:[#allocation3 + $0x168] sm:$0xff] %vm4191_vm2, %v8660_v23  ;;  %v4234_v8 = vadd.f32 %v4233_v1, %v4232_v33  ;;  %v3276_v1 = vmul.f32 %v9192_v20, %v3078_v45 }
 0x228   :  { %4912 = vst.msk [vmem:[#allocation3 + $0x180] sm:$0xff] %vm4191_vm2, %v8660_v23 }
 0x229   :  { %4913 = vst.msk [vmem:[#allocation3 + $0x188] sm:$0xff] %vm4191_vm2, %v8660_v23  ;;  %v4236_v15 = vadd.f32 %v4235_v6, %v4234_v8  ;;  %v11270_v6 = vmul.f32 %v10551_v16, %v3078_v45  ;;  %v1272_v45 = vrot.slane %v1042_v4, 1  ;;  %v3185_v8 = vadd.f32 %v3121_v3, %v11058_v43 }
 0x22a   :  { %4914 = vst.msk [vmem:[#allocation3 + $0x190] sm:$0x3] %vm4865_vm5, %v8660_v23  ;;  %v928_v54 = vpop.permute.xlu2 %927  ;;  %v3186_v43 = vadd.f32 %v3122_v56, %v11121_v44  ;;  %v16696_v44 = vrot.slane %v10913_v38, 1  ;;  %v734_v38 = vmul.f32 %v9081_v27, %v10856_v5 }
 0x22b   :  { %4915 = vst.msk [vmem:[#allocation3 + $0x198] sm:$0xff] %vm4191_vm2, %v8660_v23  ;;  %v4238_v42 = vadd.f32 %v4237_v58, %v4236_v15  ;;  %v4241_v15 = vsel %vm4191_vm2, %v11131_v37, 0.0  ;;  %v11288_v2 = vmul.f32 %v9055_v14, %v928_v54  ;;  %v11291_v33 = vmul.f32 %v9068_v19, %v928_v54 }
 0x22c   :  { %4916 = vst.msk [vmem:[#allocation3 + $0x1a0] sm:$0xff] %vm4191_vm2, %v8660_v23  ;;  %v11297_v57 = vmul.f32 %v9093_v31, %v928_v54  ;;  %v11306_v4 = vmul.f32 %v9192_v20, %v928_v54  ;;  %v1273_v24 = vsel %vm1178_vm3, %v16696_v44, %v1272_v45 }
 0x22d   :  { %4917 = vst.msk [vmem:[#allocation3 + $0x1a8] sm:$0x3] %vm4865_vm5, %v8660_v23  ;;  %v4240_v22 = vadd.f32 %v4239_v13, %v4238_v42  ;;  %v3498_v13 = vrot.slane %v3276_v1, 1  ;;  %v3979_v42 = vrot.slane %v11270_v6, 2  ;;  %v1440_v5 = vadd.f32 %v1273_v24, %v734_v38 }
 0x22e   :  { %4918 = vst.msk [vmem:[#allocation3 + $0x1b0] sm:$0xff] %vm4191_vm2, %v8660_v23 }
 0x22f   :  { %4919 = vst.msk [vmem:[#allocation3 + $0x1b8] sm:$0xff] %vm4191_vm2, %v8660_v23  ;;  %v4242_v58 = vadd.f32 %v4241_v15, %v4240_v22  ;;  %v11300_v22 = vmul.f32 %v9115_v41, %v928_v54  ;;  %v3499_v6 = vsel %vm1178_vm3, %v3497_v18, %v3498_v13  ;;  %v372_v15 = vld [vmem:[#allocation2 + $0x350] sm:$0xff]  ;;  %v1754_v18 = vrot.slane %v1524_v30, 2 }
 0x230   :  { %16693 = vst [vmem:[#allocation38_spill] sm:$0xff] %v11182_v61  ;;  %v3676_v3 = vadd.f32 %v3499_v6, %v3185_v8  ;;  %3087 = vperm.xlu1 %8190, %v372_v15   ;;  %v3980_v55 = vsel %vm1660_vm4, %v3978_v48, %v3979_v42  ;;  %v4245_v8 = vsel %vm4191_vm2, %v11135_v49, 0.0 }
 0x231   :  { %4920 = vst.msk [vmem:[#allocation3 + $0x1c0] sm:$0x3] %vm4865_vm5, %v8660_v23  ;;  %v4244_v1 = vadd.f32 %v4243_v17, %v4242_v58  ;;  %v11312_v17 = vmul.f32 %v10551_v16, %v928_v54  ;;  %v3501_v58 = vsel %vm1178_vm3, %v3498_v13, %v3500_v10  ;;  %v4247_v54 = vsel %vm4191_vm2, %v10760_v50, 0.0  ;;  %v11333_v13 = vpop.permute.xlu1 %573 }
 0x232   :  { %4921 = vst.msk [vmem:[#allocation3 + $0x1c8] sm:$0xff] %vm4191_vm2, %v8660_v23  ;;  %v11325_v56 = vadd.f32 %v3980_v55, %v3676_v3  ;;  %v933_v30 = vpop.permute.xlu2 %932  ;;  %v3677_v15 = vadd.f32 %v3501_v58, %v3186_v43  ;;  %v11359_v58 = vmul.f32 %v9192_v20, %v11333_v13  ;;  %v11390_v3 = vmul.f32 %v9055_v14, %v11333_v13 }
 0x233   :  { %4922 = vst.msk [vmem:[#allocation3 + $0x1d0] sm:$0xff] %vm4191_vm2, %v8660_v23  ;;  %v4246_v47 = vadd.f32 %v4245_v8, %v4244_v1  ;;  %v16698_v1 = vrot.slane %v10931_v63, 2  ;;  %v11349_v10 = vmul.f32 %v9055_v14, %v933_v30  ;;  %v11352_v45 = vmul.f32 %v9068_v19, %v933_v30 }
 0x234   :  { %4923 = vst.msk [vmem:[#allocation3 + $0x1d8] sm:$0x3] %vm4865_vm5, %v8660_v23  ;;  %v11355_v43 = vmul.f32 %v9093_v31, %v933_v30  ;;  %v3982_v63 = vsel %vm1660_vm4, %v3979_v42, %v3981_v11  ;;  %v11369_v24 = vmul.f32 %v9115_v41, %v933_v30  ;;  %v11380_v26 = vmul.f32 %v10551_v16, %v933_v30 }
 0x235   :  { %4924 = vst.msk [vmem:[#allocation3 + $0x1e0] sm:$0xff] %vm4191_vm2, %v8660_v23  ;;  %v1755_v44 = vsel %vm1660_vm4, %v16698_v1, %v1754_v18  ;;  %v4248_v8 = vadd.f32 %v4247_v54, %v4246_v47  ;;  %v4251_v18 = vsel %vm4191_vm2, %v11325_v56, 0.0  ;;  %v11372_v54 = vmul.f32 %v9192_v20, %v933_v30 }
 0x236   :  { %4925 = vst.msk [vmem:[#allocation3 + $0x1e8] sm:$0xff] %vm4191_vm2, %v8660_v23  ;;  %v11377_v47 = vadd.f32 %v3982_v63, %v3677_v15  ;;  %v3126_v11 = vmul.f32 %v9222_v36, %v11333_v13  ;;  %v1922_v42 = vadd.f32 %v1755_v44, %v1440_v5  ;;  %v4255_v1 = vsel %vm4191_vm2, %v11182_v61, 0.0  ;;  %v569_v44 = vpop.permute.xlu0 %568 }
 0x237   :  { %4926 = vst.msk [vmem:[#allocation3 + $0x1f0] sm:$0x3] %vm4865_vm5, %v8660_v23  ;;  %v4250_v38 = vadd.f32 %v11256_v34, %v4248_v8  ;;  %v3508_v34 = vrot.slane %v11359_v58, 1  ;;  %v11399_v5 = vmul.f32 %v9093_v31, %v11333_v13  ;;  %v2007_v58 = vmul.f32 %v9110_v40, %v11333_v13 }
 0x238   :  { %4927 = vst.msk [vmem:[#allocation3 + $0x1f8] sm:$0xff] %vm4191_vm2, %v8660_v23  ;;  %v4253_v15 = vsel %vm4191_vm2, %v11377_v47, 0.0  ;;  %v3190_v30 = vadd.f32 %v3126_v11, %v11033_v28  ;;  %v1275_v63 = vrot.slane %v11390_v3, 1  ;;  %v16700_v55 = vrot.slane %v11239_v21, 1 }
 0x239   :  { %4928 = vst.msk [vmem:[#allocation3 + $0x200] sm:$0xff] %vm4191_vm2, %v8660_v23  ;;  %v4252_v16 = vadd.f32 %v4251_v18, %v4250_v38  ;;  %v11409_v18 = vld [vmem:[%s16435_s1 + $0x8] ss:$0 sm:$0xff]  ;;  %v1043_v6 = vmul.f32 %v9055_v14, %v569_v44  ;;  %v3281_v61 = vmul.f32 %v9192_v20, %v569_v44  ;;  %v2163_v28 = vmul.f32 %v9093_v31, %v569_v44  ;;  %v11489_v52 = vpop.permute.xlu1 %583 }
 0x23a   :  { %4929 = vst.msk [vmem:[#allocation3 + $0x208] sm:$0x3] %vm4865_vm5, %v8660_v23  ;;  %v11413_v38 = vmul.f32 %v11409_v18, %v11333_v13  ;;  %v3511_v48 = vsel %vm1178_vm3, %v3508_v34, %v16700_v55  ;;  %v3125_v11 = vmul.f32 %v9222_v36, %v569_v44  ;;  %v736_v21 = vmul.f32 %v9081_v27, %v11333_v13 }
 0x23b   :  { %4930 = vst.msk [vmem:[#allocation3 + $0x210] sm:$0xff] %vm4191_vm2, %v8660_v23  ;;  %v4254_v8 = vadd.f32 %v4253_v15, %v4252_v16  ;;  %v11442_v55 = vmul.f32 %v9068_v19, %v11333_v13  ;;  %v4257_v16 = vsel %vm4191_vm2, %v11067_v7, 0.0  ;;  %v2071_v15 = vadd.f32 %v2007_v58, %v1922_v42  ;;  %v16703_v58 = vld [vmem:[#allocation44_spill] sm:$0xff] }
 0x23c   :  { %4931 = vst.msk [vmem:[#allocation3 + $0x218] sm:$0xff] %vm4191_vm2, %v8660_v23  ;;  %v3989_v3 = vrot.slane %v11413_v38, 2  ;;  %v3681_v46 = vadd.f32 %v3511_v48, %v3190_v30  ;;  %v16701_v50 = vrot.slane %v11219_v39, 1  ;;  %v2006_v49 = vmul.f32 %v9110_v40, %v569_v44 }
 0x23d   :  { %4932 = vst.msk [vmem:[#allocation3 + $0x220] sm:$0x3] %vm4865_vm5, %v8660_v23  ;;  %v3762_v0 = vmul.f32 %v11409_v18, %v569_v44  ;;  %v4256_v42 = vadd.f32 %v4255_v1, %v4254_v8  ;;  %v2391_v30 = vrot.slane %v2163_v28, 1  ;;  %v3189_v7 = vadd.f32 %v3125_v11, %v16703_v58 }
 0x23e   :  { %4933 = vst.msk [vmem:[#allocation3 + $0x228] sm:$0xff] %vm4191_vm2, %v8660_v23  ;;  %v1278_v38 = vsel %vm1178_vm3, %v1275_v63, %v16701_v50  ;;  %v16704_v50 = vrot.slane %v11247_v59, 2  ;;  %v11475_v37 = vmul.f32 %v9115_v41, %v569_v44  ;;  %v16486_v8 = vrot.slane %v11442_v55, 2  ;;  %v938_v59 = vpop.permute.xlu2 %937 }
 0x23f   :  { %4934 = vst.msk [vmem:[#allocation3 + $0x230] sm:$0xff] %vm4191_vm2, %v8660_v23  ;;  %v1442_v1 = vadd.f32 %v1278_v38, %v736_v21  ;;  %v4258_v21 = vadd.f32 %v4257_v16, %v4256_v42  ;;  %v11511_v16 = vmul.f32 %v9093_v31, %v938_v59  ;;  %v11521_v42 = vmul.f32 %v9115_v41, %v938_v59 }
 0x240   :  { %4935 = vst.msk [vmem:[#allocation3 + $0x238] sm:$0x3] %vm4865_vm5, %v8660_v23  ;;  %v3992_v39 = vsel %vm1660_vm4, %v3989_v3, %v16704_v50  ;;  %v16706_v50 = vld [vmem:[#allocation43_spill] sm:$0xff]  ;;  %v16725_v51 = vrot.slane %v11349_v10, 1 }
 0x241   :  { %4936 = vst.msk [vmem:[#allocation3 + $0x240] sm:$0xff] %vm4191_vm2, %v8660_v23  ;;  %v11482_v11 = vadd.f32 %v3992_v39, %v3681_v46 }
 0x242   :  { %4937 = vst.msk [vmem:[#allocation3 + $0x248] sm:$0xff] %vm4191_vm2, %v8660_v23 }
 0x243   :  { %4938 = vst.msk [vmem:[#allocation3 + $0x250] sm:$0x3] %vm4865_vm5, %v8660_v23 }
 0x244   :  { %4939 = vst.msk [vmem:[#allocation3 + $0x258] sm:$0xff] %vm4191_vm2, %v8660_v23 }
 0x245   :  { %4940 = vst.msk [vmem:[#allocation3 + $0x260] sm:$0xff] %vm4191_vm2, %v8660_v23 }
 0x246   :  { %4941 = vst.msk [vmem:[#allocation3 + $0x268] sm:$0x3] %vm4865_vm5, %v8660_v23 }
 0x247   :  { %16697 = vst [vmem:[#allocation36_spill] sm:$0xff] %v11325_v56  ;;  %v3507_v56 = vrot.slane %v3281_v61, 1  ;;  %v1274_v61 = vrot.slane %v1043_v6, 1  ;;  %v11472_v6 = vmul.f32 %v9068_v19, %v569_v44 }
 0x248   :  { %4942 = vst.msk [vmem:[#allocation3 + $0x270] sm:$0xff] %vm4191_vm2, %v8660_v23 }
 0x249   :  { %4943 = vst.msk [vmem:[#allocation3 + $0x278] sm:$0xff] %vm4191_vm2, %v8660_v23  ;;  %v1276_v58 = vsel %vm1178_vm3, %v1274_v61, %v1275_v63  ;;  %v2872_v63 = vrot.slane %v11475_v37, 2  ;;  %v11515_v37 = vmul.f32 %v9192_v20, %v11489_v52 }
 0x24a   :  { %4944 = vst.msk [vmem:[#allocation3 + $0x280] sm:$0x3] %vm4865_vm5, %v8660_v23 }
 0x24b   :  { %4945 = vst.msk [vmem:[#allocation3 + $0x288] sm:$0xff] %vm4191_vm2, %v8660_v23 }
 0x24c   :  { %4946 = vst.msk [vmem:[#allocation3 + $0x290] sm:$0xff] %vm4191_vm2, %v8660_v23 }
 0x24d   :  { %4947 = vst.msk [vmem:[#allocation3 + $0x298] sm:$0x3] %vm4865_vm5, %v8660_v23 }
 0x24e   :  { %16699 = vst [vmem:[#allocation35_spill] sm:$0xff] %v11377_v47  ;;  %v2392_v47 = vrot.slane %v11399_v5, 1  ;;  %v11451_v5 = vmul.f32 %v9115_v41, %v11333_v13  ;;  %v16702_v13 = vrot.slane %v11227_v53, 1  ;;  %v3509_v53 = vsel %vm1178_vm3, %v3507_v56, %v3508_v34 }
 0x24f   :  { %4948 = vst.msk [vmem:[#allocation3 + $0x2a0] sm:$0xff] %vm4191_vm2, %v8660_v23  ;;  %v2070_v56 = vadd.f32 %v2006_v49, %v16706_v50  ;;  %v3988_v34 = vrot.slane %v3762_v0, 2  ;;  %v3680_v39 = vadd.f32 %v3509_v53, %v3189_v7  ;;  %v11499_v49 = vmul.f32 %v9055_v14, %v938_v59 }
 0x250   :  { %4949 = vst.msk [vmem:[#allocation3 + $0x2a8] sm:$0xff] %vm4191_vm2, %v8660_v23  ;;  %v2395_v48 = vsel %vm1178_vm3, %v2392_v47, %v16702_v13  ;;  %v16487_v28 = vrot.slane %v11451_v5, 2  ;;  %v735_v13 = vmul.f32 %v9081_v27, %v569_v44  ;;  %v2393_v46 = vsel %vm1178_vm3, %v2391_v30, %v2392_v47 }
 0x251   :  { %4950 = vst.msk [vmem:[#allocation3 + $0x2b0] sm:$0x3] %vm4865_vm5, %v8660_v23  ;;  %v2562_v38 = vadd.f32 %v2395_v48, %v2071_v15  ;;  %v11502_v0 = vmul.f32 %v9068_v19, %v938_v59  ;;  %v11508_v47 = vsel %vm4191_vm2, %v11482_v11, 0.0  ;;  %v2561_v15 = vadd.f32 %v2393_v46, %v2070_v56 }
 0x252   :  { %4951 = vst.msk [vmem:[#allocation3 + $0x2b8] sm:$0xff] %vm4191_vm2, %v8660_v23  ;;  %v1441_v7 = vadd.f32 %v1276_v58, %v735_v13  ;;  %v3990_v61 = vsel %vm1660_vm4, %v3988_v34, %v3989_v3  ;;  %v16707_v48 = vrot.slane %v11236_v60, 2  ;;  %v11534_v58 = vmul.f32 %v9055_v14, %v11489_v52 }
 0x253   :  { %4952 = vst.msk [vmem:[#allocation3 + $0x2c0] sm:$0xff] %vm4191_vm2, %v8660_v23  ;;  %v11530_v53 = vadd.f32 %v3990_v61, %v3680_v39  ;;  %v3128_v3 = vmul.f32 %v9222_v36, %v11489_v52  ;;  %v11544_v56 = vmul.f32 %v9093_v31, %v11489_v52  ;;  %v3513_v34 = vrot.slane %v11515_v37, 1 }
 0x254   :  { %4953 = vst.msk [vmem:[#allocation3 + $0x2c8] sm:$0x3] %vm4865_vm5, %v8660_v23  ;;  %v2876_v30 = vsel %vm1660_vm4, %v16487_v28, %v16707_v48  ;;  %v11551_v46 = vmul.f32 %v9192_v20, %v938_v59  ;;  %v16709_v39 = vrot.slane %v11224_v25, 2  ;;  %v11560_v48 = vmul.f32 %v11409_v18, %v11489_v52 }
 0x255   :  { %4954 = vst.msk [vmem:[#allocation3 + $0x2d0] sm:$0xff] %vm4191_vm2, %v8660_v23  ;;  %v3043_v13 = vadd.f32 %v2876_v30, %v2562_v38  ;;  %v579_v30 = vpop.permute.xlu0 %578  ;;  %v11566_v50 = vmul.f32 %v11409_v18, %v938_v59  ;;  %v738_v25 = vmul.f32 %v9081_v27, %v11489_v52  ;;  %v1280_v60 = vrot.slane %v11534_v58, 1 }
 0x256   :  { %4955 = vst.msk [vmem:[#allocation3 + $0x2d8] sm:$0xff] %vm4191_vm2, %v8660_v23  ;;  %v1760_v61 = vsel %vm1660_vm4, %v16486_v8, %v16709_v39  ;;  %v4259_v39 = vsel %vm4191_vm2, %v11530_v53, 0.0  ;;  %v2009_v44 = vmul.f32 %v9110_v40, %v11489_v52  ;;  %v16710_v59 = vrot.slane %v11306_v4, 1 }
 0x257   :  { %4956 = vst.msk [vmem:[#allocation3 + $0x2e0] sm:$0x3] %vm4865_vm5, %v8660_v23  ;;  %v1924_v38 = vadd.f32 %v1760_v61, %v1442_v1  ;;  %v3192_v8 = vadd.f32 %v3128_v3, %v3043_v13  ;;  %v2397_v1 = vrot.slane %v11544_v56, 1  ;;  %v1046_v37 = vmul.f32 %v9055_v14, %v579_v30 }
 0x258   :  { %4957 = vst.msk [vmem:[#allocation3 + $0x2e8] sm:$0xff] %vm4191_vm2, %v8660_v23  ;;  %v3516_v61 = vsel %vm1178_vm3, %v3513_v34, %v16710_v59  ;;  %v3284_v28 = vmul.f32 %v9192_v20, %v579_v30  ;;  %v11590_v13 = vmul.f32 %v9068_v19, %v11489_v52  ;;  %v3994_v3 = vrot.slane %v11560_v48, 2 }
 0x259   :  { %4958 = vst.msk [vmem:[#allocation3 + $0x2f0] sm:$0xff] %vm4191_vm2, %v8660_v23  ;;  %v16711_v56 = vrot.slane %v11451_v5, 2  ;;  %v16712_v59 = vmov 0.0   ;;  %v2166_v29 = vmul.f32 %v9093_v31, %v579_v30  ;;  %v2073_v58 = vadd.f32 %v2009_v44, %v1924_v38 }
 0x25a   :  { %4959 = vst.msk [vmem:[#allocation3 + $0x2f8] sm:$0x3] %vm4865_vm5, %v8660_v23  ;;  %v11604_v48 = vmul.f32 %v9115_v41, %v11489_v52  ;;  %v3683_v5 = vadd.f32 %v3516_v61, %v3192_v8  ;;  %v3512_v32 = vrot.slane %v3284_v28, 1  ;;  %v16716_v44 = vrot.slane %v11472_v6, 2 }
 0x25b   :  { %16705 = vst [vmem:[#allocation39_spill] sm:$0xff] %v11482_v11  ;;  %v2874_v4 = vsel %vm1660_vm4, %v2872_v63, %v16711_v56  ;;  %v4260_v11 = vadd.f32 %v4259_v39, %v4258_v21  ;;  %v16713_v21 = vrot.slane %v11288_v2, 1  ;;  %v16715_v56 = vrot.slane %v11442_v55, 2 }
 0x25c   :  { %4960 = vst.msk [vmem:[#allocation3 + $0x300] sm:$0xff] %vm4191_vm2, %v8660_v23  ;;  %v1279_v38 = vrot.slane %v1046_v37, 1  ;;  %v16717_v8 = vrot.slane %v11312_v17, 2  ;;  %v2008_v61 = vmul.f32 %v9110_v40, %v579_v30  ;;  %v11629_v55 = vmul.f32 %v9068_v19, %v579_v30 }
 0x25d   :  { %4961 = vst.msk [vmem:[#allocation3 + $0x308] sm:$0xff] %vm4191_vm2, %v8660_v23  ;;  %v1283_v63 = vsel %vm1178_vm3, %v1280_v60, %v16713_v21  ;;  %v1758_v52 = vsel %vm1660_vm4, %v16716_v44, %v16715_v56  ;;  %v2396_v6 = vrot.slane %v2166_v29, 1  ;;  %v11632_v37 = vmul.f32 %v9115_v41, %v579_v30 }
 0x25e   :  { %4962 = vst.msk [vmem:[#allocation3 + $0x310] sm:$0x3] %vm4865_vm5, %v8660_v23  ;;  %v3997_v2 = vsel %vm1660_vm4, %v3994_v3, %v16717_v8  ;;  %v1923_v28 = vadd.f32 %v1758_v52, %v1441_v7  ;;  %v16491_v7 = vrot.slane %v11590_v13, 2  ;;  %v1444_v56 = vadd.f32 %v1283_v63, %v738_v25 }
 0x25f   :  { %4963 = vst.msk [vmem:[#allocation3 + $0x318] sm:$0xff] %vm4191_vm2, %v8660_v23  ;;  %v11638_v21 = vadd.f32 %v3997_v2, %v3683_v5  ;;  %v2878_v44 = vrot.slane %v11604_v48, 2  ;;  %v11648_v52 = vadd.f32 %v11508_v47, %v4260_v11  ;;  %v737_v5 = vmul.f32 %v9081_v27, %v579_v30 }
 0x260   :  { %4964 = vst.msk [vmem:[#allocation3 + $0x320] sm:$0xff] %vm4191_vm2, %v8660_v23  ;;  %v2072_v8 = vadd.f32 %v2008_v61, %v1923_v28 }
 0x261   :  { %4965 = vst.msk [vmem:[#allocation3 + $0x328] sm:$0x3] %vm4865_vm5, %v8660_v23  ;;  %v11660_v11 = vsel %vm4191_vm2, %v11638_v21, 0.0 }
 0x262   :  { %16708 = vst [vmem:[#allocation44_spill] sm:$0xff] %v11530_v53  ;;  %v3042_v53 = vadd.f32 %v2874_v4, %v2561_v15  ;;  %v16714_v15 = vrot.slane %v11297_v57, 1  ;;  %v3765_v57 = vmul.f32 %v11409_v18, %v579_v30 }
 0x263   :  { %4966 = vst.msk [vmem:[#allocation3 + $0x330] sm:$0xff] %vm4191_vm2, %v8660_v23 }
 0x264   :  { %4967 = vst.msk [vmem:[#allocation3 + $0x338] sm:$0xff] %vm4191_vm2, %v8660_v23  ;;  %v2400_v39 = vsel %vm1178_vm3, %v2397_v1, %v16714_v15  ;;  %v3514_v15 = vsel %vm1178_vm3, %v3512_v32, %v3513_v34  ;;  %v3993_v32 = vrot.slane %v3765_v57, 2  ;;  %v594_v34 = vpop.permute.xlu1 %593 }
 0x265   :  { %4968 = vst.msk [vmem:[#allocation3 + $0x340] sm:$0x3] %vm4865_vm5, %v8660_v23  ;;  %v2564_v29 = vadd.f32 %v2400_v39, %v2073_v58  ;;  %v2398_v58 = vsel %vm1178_vm3, %v2396_v6, %v2397_v1  ;;  %v11680_v2 = vmul.f32 %v9192_v20, %v594_v34  ;;  %v16719_v6 = vrot.slane %v11300_v22, 2 }
 0x266   :  { %4969 = vst.msk [vmem:[#allocation3 + $0x348] sm:$0xff] %vm4191_vm2, %v8660_v23  ;;  %v2563_v28 = vadd.f32 %v2398_v58, %v2072_v8  ;;  %v3995_v61 = vsel %vm1660_vm4, %v3993_v32, %v3994_v3  ;;  %v740_v22 = vmul.f32 %v9081_v27, %v594_v34 }
 0x267   :  { %4970 = vst.msk [vmem:[#allocation3 + $0x350] sm:$0xff] %vm4191_vm2, %v8660_v23  ;;  %v3518_v8 = vrot.slane %v11680_v2, 1 }
 0x268   :  { %4971 = vst.msk [vmem:[#allocation3 + $0x358] sm:$0x3] %vm4865_vm5, %v8660_v23  ;;  %v3127_v23 = vmul.f32 %v9222_v36, %v579_v30 }
 0x269   :  { %6594 = vst.msk [vmem:[#allocation4 + $0x8] sm:$0x3] %vm4865_vm5, %v16712_v59 }
 0x26a   :  { %6596 = vst.msk [vmem:[#allocation4 + $0x18] sm:$0x3] %vm4865_vm5, %v16712_v59  ;;  %v3191_v4 = vadd.f32 %v3127_v23, %v3042_v53  ;;  %v1281_v53 = vsel %vm1178_vm3, %v1279_v38, %v1280_v60  ;;  %v943_v23 = vpop.permute.xlu2 %942  ;;  %v2877_v60 = vrot.slane %v11632_v37, 2  ;;  %v2881_v37 = vsel %vm1660_vm4, %v2878_v44, %v16719_v6  ;;  %v589_v6 = vpop.permute.xlu0 %588 }
 0x26b   :  { %6598 = vst.msk [vmem:[#allocation4 + $0x28] sm:$0x3] %vm4865_vm5, %v16712_v59  ;;  %v1443_v47 = vadd.f32 %v1281_v53, %v737_v5  ;;  %v11663_v30 = vmul.f32 %v9055_v14, %v943_v23  ;;  %v11666_v63 = vmul.f32 %v9068_v19, %v943_v23  ;;  %v11671_v1 = vmul.f32 %v9093_v31, %v943_v23 }
 0x26c   :  { %6600 = vst.msk [vmem:[#allocation4 + $0x38] sm:$0x3] %vm4865_vm5, %v16712_v59  ;;  %v3682_v48 = vadd.f32 %v3514_v15, %v3191_v4  ;;  %v11674_v39 = vmul.f32 %v9115_v41, %v943_v23  ;;  %v11677_v38 = vmul.f32 %v9192_v20, %v943_v23  ;;  %v11686_v57 = vmul.f32 %v11409_v18, %v943_v23 }
 0x26d   :  { %6602 = vst.msk [vmem:[#allocation4 + $0x48] sm:$0x3] %vm4865_vm5, %v16712_v59  ;;  %v3045_v15 = vadd.f32 %v2881_v37, %v2564_v29  ;;  %v11696_v53 = vmul.f32 %v9055_v14, %v594_v34  ;;  %v3130_v5 = vmul.f32 %v9222_v36, %v594_v34  ;;  %v11704_v23 = vmul.f32 %v9093_v31, %v594_v34 }
 0x26e   :  { %6604 = vst.msk [vmem:[#allocation4 + $0x58] sm:$0x3] %vm4865_vm5, %v16712_v59  ;;  %v11693_v4 = vadd.f32 %v3995_v61, %v3682_v48  ;;  %v16721_v48 = vrot.slane %v11291_v33, 2  ;;  %v3769_v29 = vmul.f32 %v11409_v18, %v594_v34  ;;  %v2879_v58 = vsel %vm1660_vm4, %v2877_v60, %v2878_v44 }
 0x26f   :  { %16718 = vst [vmem:[#allocation43_spill] sm:$0xff] %v11638_v21  ;;  %v1285_v32 = vrot.slane %v11696_v53, 1  ;;  %v3194_v3 = vadd.f32 %v3130_v5, %v3045_v15  ;;  %v3287_v17 = vmul.f32 %v9192_v20, %v589_v6  ;;  %v11739_v53 = vmul.f32 %v9068_v19, %v594_v34 }
 0x270   :  { %6606 = vst.msk [vmem:[#allocation4 + $0x68] sm:$0x3] %vm4865_vm5, %v16712_v59  ;;  %v1765_v61 = vsel %vm1660_vm4, %v16491_v7, %v16721_v48  ;;  %v4263_v33 = vsel %vm4191_vm2, %v11693_v4, 0.0  ;;  %v2011_v48 = vmul.f32 %v9110_v40, %v594_v34  ;;  %v3044_v15 = vadd.f32 %v2879_v58, %v2563_v28 }
 0x271   :  { %6608 = vst.msk [vmem:[#allocation4 + $0x78] sm:$0x3] %vm4865_vm5, %v16712_v59  ;;  %v1926_v37 = vadd.f32 %v1765_v61, %v1444_v56  ;;  %v2402_v56 = vrot.slane %v11704_v23, 1  ;;  %v16722_v61 = vrot.slane %v11372_v54, 1  ;;  %v1049_v5 = vmul.f32 %v9055_v14, %v589_v6 }
 0x272   :  { %6610 = vst.msk [vmem:[#allocation4 + $0x88] sm:$0x3] %vm4865_vm5, %v16712_v59  ;;  %v3129_v25 = vmul.f32 %v9222_v36, %v589_v6  ;;  %v11746_v54 = vmul.f32 %v9115_v41, %v594_v34  ;;  %v3999_v44 = vrot.slane %v3769_v29, 2  ;;  %v2169_v60 = vmul.f32 %v9093_v31, %v589_v6 }
 0x273   :  { %6612 = vst.msk [vmem:[#allocation4 + $0x98] sm:$0x3] %vm4865_vm5, %v16712_v59  ;;  %v3521_v2 = vsel %vm1178_vm3, %v3518_v8, %v16722_v61  ;;  %v3517_v23 = vrot.slane %v3287_v17, 1  ;;  %v4264_v61 = vadd.f32 %v4263_v33, %v11648_v52  ;;  %v2075_v7 = vadd.f32 %v2011_v48, %v1926_v37 }
 0x274   :  { %6614 = vst.msk [vmem:[#allocation4 + $0xa8] sm:$0x3] %vm4865_vm5, %v16712_v59  ;;  %v3685_v21 = vadd.f32 %v3521_v2, %v3194_v3  ;;  %v16723_v28 = vrot.slane %v11590_v13, 2  ;;  %v16724_v58 = vrot.slane %v11629_v55, 2  ;;  %v16726_v34 = vrot.slane %v11355_v43, 1 }
 0x275   :  { %6616 = vst.msk [vmem:[#allocation4 + $0xb8] sm:$0x3] %vm4865_vm5, %v16712_v59  ;;  %v3768_v17 = vmul.f32 %v11409_v18, %v589_v6  ;;  %v1284_v52 = vrot.slane %v1049_v5, 1  ;;  %v11763_v3 = vmul.f32 %v9068_v19, %v589_v6  ;;  %v2010_v13 = vmul.f32 %v9110_v40, %v589_v6  ;;  %v948_v5 = vpop.permute.xlu2 %947 }
 0x276   :  { %6618 = vst.msk [vmem:[#allocation4 + $0xc8] sm:$0x3] %vm4865_vm5, %v16712_v59  ;;  %v2405_v29 = vsel %vm1178_vm3, %v2402_v56, %v16726_v34  ;;  %v3193_v55 = vadd.f32 %v3129_v25, %v3044_v15  ;;  %v16727_v2 = vrot.slane %v11380_v26, 2  ;;  %v2401_v37 = vrot.slane %v2169_v60, 1 }
 0x277   :  { %16720 = vst [vmem:[#allocation45_spill] sm:$0xff] %v11693_v4  ;;  %v1763_v4 = vsel %vm1660_vm4, %v16724_v58, %v16723_v28  ;;  %v3519_v43 = vsel %vm1178_vm3, %v3517_v23, %v3518_v8  ;;  %v2566_v28 = vadd.f32 %v2405_v29, %v2075_v7  ;;  %v4266_v25 = vadd.f32 %v11660_v11, %v4264_v61  ;;  %v604_v58 = vpop.permute.xlu1 %603 }
 0x278   :  { %6620 = vst.msk [vmem:[#allocation4 + $0xd8] sm:$0x3] %vm4865_vm5, %v16712_v59  ;;  %v1925_v12 = vadd.f32 %v1763_v4, %v1443_v47  ;;  %v4002_v10 = vsel %vm1660_vm4, %v3999_v44, %v16727_v2  ;;  %v16495_v47 = vrot.slane %v11739_v53, 2  ;;  %v2883_v4 = vrot.slane %v11746_v54, 2 }
 0x279   :  { %6622 = vst.msk [vmem:[#allocation4 + $0xe8] sm:$0x3] %vm4865_vm5, %v16712_v59  ;;  %v11773_v48 = vadd.f32 %v4002_v10, %v3685_v21  ;;  %v739_v26 = vmul.f32 %v9081_v27, %v589_v6  ;;  %v3998_v15 = vrot.slane %v3768_v17, 2  ;;  %v1286_v60 = vsel %vm1178_vm3, %v1284_v52, %v1285_v32 }
 0x27a   :  { %6624 = vst.msk [vmem:[#allocation4 + $0xf8] sm:$0x3] %vm4865_vm5, %v16712_v59  ;;  %v1766_v34 = vrot.slane %v11763_v3, 2  ;;  %v2074_v8 = vadd.f32 %v2010_v13, %v1925_v12  ;;  %v11781_v21 = vmul.f32 %v9055_v14, %v948_v5  ;;  %v11784_v7 = vmul.f32 %v9068_v19, %v948_v5 }
 0x27b   :  { %6626 = vst.msk [vmem:[#allocation4 + $0x108] sm:$0x3] %vm4865_vm5, %v16712_v59  ;;  %v11788_v11 = vsel %vm4191_vm2, %v11773_v48, 0.0  ;;  %v3291_v12 = vmul.f32 %v9192_v20, %v604_v58  ;;  %v4000_v54 = vsel %vm1660_vm4, %v3998_v15, %v3999_v44  ;;  %v11799_v61 = vmul.f32 %v9192_v20, %v948_v5  ;;  %v599_v15 = vpop.permute.xlu0 %598 }
 0x27c   :  { %6628 = vst.msk [vmem:[#allocation4 + $0x118] sm:$0x3] %vm4865_vm5, %v16712_v59  ;;  %v16729_v29 = vrot.slane %v11369_v24, 2  ;;  %v11813_v24 = vmul.f32 %v11409_v18, %v948_v5  ;;  %v16732_v10 = vrot.slane %v11551_v46, 1  ;;  %v11837_v46 = vmul.f32 %v9068_v19, %v604_v58 }
 0x27d   :  { %6630 = vst.msk [vmem:[#allocation4 + $0x128] sm:$0x3] %vm4865_vm5, %v16712_v59  ;;  %v3523_v44 = vrot.slane %v3291_v12, 1 }
 0x27e   :  { %6632 = vst.msk [vmem:[#allocation4 + $0x138] sm:$0x3] %vm4865_vm5, %v16712_v59  ;;  %v1288_v59 = vsel %vm1178_vm3, %v1285_v32, %v16725_v51  ;;  %v2650_v51 = vmul.f32 %v9115_v41, %v589_v6  ;;  %v11791_v6 = vmul.f32 %v9093_v31, %v948_v5  ;;  %v11794_v32 = vmul.f32 %v9115_v41, %v948_v5 }
 0x27f   :  { %v1446_v33 = vadd.f32 %v1288_v59, %v740_v22  ;;  %16728 = vst [vmem:[#allocation46_spill] sm:$0xff] %v11773_v48  ;;  %v3684_v59 = vadd.f32 %v3519_v43, %v3193_v55  ;;  %v2403_v22 = vsel %vm1178_vm3, %v2401_v37, %v2402_v56  ;;  %v1445_v56 = vadd.f32 %v1286_v60, %v739_v26 }
 0x280   :  { %v2882_v23 = vrot.slane %v2650_v51, 2  ;;  %v2886_v17 = vsel %vm1660_vm4, %v2883_v4, %v16729_v29  ;;  %v2565_v52 = vadd.f32 %v2403_v22, %v2074_v8  ;;  %v3132_v55 = vmul.f32 %v9222_v36, %v604_v58 }
 0x281   :  { %v11804_v3 = vadd.f32 %v4000_v54, %v3684_v59  ;;  %v3047_v13 = vadd.f32 %v2886_v17, %v2566_v28  ;;  %v1053_v37 = vmul.f32 %v9055_v14, %v604_v58  ;;  %v2173_v26 = vmul.f32 %v9093_v31, %v604_v58 }
 0x282   :  { %v16731_v60 = vrot.slane %v11352_v45, 2  ;;  %v742_v59 = vmul.f32 %v9081_v27, %v604_v58  ;;  %v3772_v22 = vmul.f32 %v11409_v18, %v604_v58  ;;  %v2013_v54 = vmul.f32 %v9110_v40, %v604_v58 }
 0x283   :  { %16730 = vst [vmem:[#allocation47_spill] sm:$0xff] %v11804_v3  ;;  %v4267_v12 = vsel %vm4191_vm2, %v11804_v3, 0.0  ;;  %v3196_v29 = vadd.f32 %v3132_v55, %v3047_v13  ;;  %v1290_v17 = vrot.slane %v1053_v37, 1  ;;  %v3526_v45 = vsel %vm1178_vm3, %v3523_v44, %v16732_v10 }
 0x284   :  { %v1770_v8 = vsel %vm1660_vm4, %v16495_v47, %v16731_v60  ;;  %v2884_v43 = vsel %vm1660_vm4, %v2882_v23, %v2883_v4  ;;  %v3290_v60 = vmul.f32 %v9192_v20, %v599_v15  ;;  %v2407_v2 = vrot.slane %v2173_v26, 1 }
 0x285   :  { %v1928_v5 = vadd.f32 %v1770_v8, %v1446_v33  ;;  %v3046_v28 = vadd.f32 %v2884_v43, %v2565_v52  ;;  %v3131_v47 = vmul.f32 %v9222_v36, %v599_v15  ;;  %v4004_v48 = vrot.slane %v3772_v22, 2 }
 0x286   :  { %v1052_v33 = vmul.f32 %v9055_v14, %v599_v15  ;;  %v2172_v13 = vmul.f32 %v9093_v31, %v599_v15  ;;  %v3522_v55 = vrot.slane %v3290_v60, 1  ;;  %v4268_v37 = vadd.f32 %v4267_v12, %v4266_v25 }
 0x287   :  { %v11840_v4 = vmul.f32 %v9115_v41, %v604_v58  ;;  %v3687_v23 = vadd.f32 %v3526_v45, %v3196_v29  ;;  %v16733_v10 = vrot.slane %v11499_v49, 1  ;;  %v2077_v43 = vadd.f32 %v2013_v54, %v1928_v5  ;;  %v953_v54 = vpop.permute.xlu2 %952 }
 0x288   :  { %v16734_v26 = vrot.slane %v11739_v53, 2  ;;  %v3771_v22 = vmul.f32 %v11409_v18, %v599_v15  ;;  %v16735_v25 = vrot.slane %v11511_v16, 1  ;;  %v2012_v58 = vmul.f32 %v9110_v40, %v599_v15 }
 0x289   :  { %v1293_v52 = vsel %vm1178_vm3, %v1290_v17, %v16733_v10  ;;  %v3195_v51 = vadd.f32 %v3131_v47, %v3046_v28  ;;  %v16736_v29 = vrot.slane %v11566_v50, 2  ;;  %v1289_v45 = vrot.slane %v1052_v33, 1 }
 0x28a   :  { %v1768_v8 = vsel %vm1660_vm4, %v1766_v34, %v16734_v26  ;;  %v2410_v12 = vsel %vm1178_vm3, %v2407_v2, %v16735_v25  ;;  %v2406_v5 = vrot.slane %v2172_v13, 1  ;;  %v3524_v53 = vsel %vm1178_vm3, %v3522_v55, %v3523_v44  ;;  %v614_v55 = vpop.permute.xlu1 %613 }
 0x28b   :  { %v1927_v60 = vadd.f32 %v1768_v8, %v1445_v56  ;;  %v4007_v49 = vsel %vm1660_vm4, %v4004_v48, %v16736_v29  ;;  %v16497_v34 = vrot.slane %v11837_v46, 2  ;;  %v11861_v16 = vmul.f32 %v9068_v19, %v599_v15 }
 0x28c   :  { %v11858_v10 = vadd.f32 %v4007_v49, %v3687_v23  ;;  %v2653_v56 = vmul.f32 %v9115_v41, %v599_v15  ;;  %v1448_v26 = vadd.f32 %v1293_v52, %v742_v59  ;;  %v2568_v47 = vadd.f32 %v2410_v12, %v2077_v43 }
 0x28d   :  { %v2888_v50 = vrot.slane %v11840_v4, 2  ;;  %v4003_v28 = vrot.slane %v3771_v22, 2  ;;  %v4270_v33 = vadd.f32 %v11788_v11, %v4268_v37  ;;  %v2076_v13 = vadd.f32 %v2012_v58, %v1927_v60 }
 0x28e   :  { %16737 = vst [vmem:[#allocation48_spill] sm:$0xff] %v11858_v10  ;;  %v3686_v8 = vadd.f32 %v3524_v53, %v3195_v51  ;;  %v11867_v44 = vmul.f32 %v9055_v14, %v953_v54  ;;  %v741_v23 = vmul.f32 %v9081_v27, %v599_v15  ;;  %v1291_v25 = vsel %vm1178_vm3, %v1289_v45, %v1290_v17 }
 0x28f   :  { %v2408_v29 = vsel %vm1178_vm3, %v2406_v5, %v2407_v2  ;;  %v11873_v59 = vmul.f32 %v9068_v19, %v953_v54  ;;  %v11877_v4 = vsel %vm4191_vm2, %v11858_v10, 0.0  ;;  %v1771_v11 = vrot.slane %v11861_v16, 2 }
 0x290   :  { %v2887_v51 = vrot.slane %v2653_v56, 2  ;;  %v11881_v37 = vmul.f32 %v9093_v31, %v953_v54  ;;  %v4005_v52 = vsel %vm1660_vm4, %v4003_v28, %v4004_v48  ;;  %v11885_v15 = vmul.f32 %v9115_v41, %v953_v54 }
 0x291   :  { %v11888_v2 = vmul.f32 %v9192_v20, %v953_v54  ;;  %v3294_v17 = vmul.f32 %v9192_v20, %v614_v55  ;;  %v1447_v43 = vadd.f32 %v1291_v25, %v741_v23  ;;  %v2567_v22 = vadd.f32 %v2408_v29, %v2076_v13  ;;  %v609_v29 = vpop.permute.xlu0 %608 }
 0x292   :  { %v11891_v12 = vadd.f32 %v4005_v52, %v3686_v8  ;;  %v16739_v49 = vrot.slane %v11521_v42, 2  ;;  %v1056_v45 = vmul.f32 %v9055_v14, %v614_v55  ;;  %v2176_v5 = vmul.f32 %v9093_v31, %v614_v55 }
 0x293   :  { %v11902_v16 = vmul.f32 %v11409_v18, %v953_v54  ;;  %v3134_v28 = vmul.f32 %v9222_v36, %v614_v55  ;;  %v16740_v42 = vrot.slane %v11502_v0, 2  ;;  %v3528_v25 = vrot.slane %v3294_v17, 1 }
 0x294   :  { %16738 = vst [vmem:[#allocation49_spill] sm:$0xff] %v11891_v12  ;;  %v2891_v48 = vsel %vm1660_vm4, %v2888_v50, %v16739_v49  ;;  %v4271_v52 = vsel %vm4191_vm2, %v11891_v12, 0.0  ;;  %v2015_v49 = vmul.f32 %v9110_v40, %v614_v55  ;;  %v2412_v58 = vrot.slane %v2176_v5, 1 }
 0x295   :  { %v3049_v56 = vadd.f32 %v2891_v48, %v2568_v47  ;;  %v1775_v23 = vsel %vm1660_vm4, %v16497_v34, %v16740_v42  ;;  %v744_v47 = vmul.f32 %v9081_v27, %v614_v55  ;;  %v1295_v48 = vrot.slane %v1056_v45, 1 }
 0x296   :  { %v1930_v54 = vadd.f32 %v1775_v23, %v1448_v26  ;;  %v3775_v13 = vmul.f32 %v11409_v18, %v614_v55  ;;  %v2889_v0 = vsel %vm1660_vm4, %v2887_v51, %v2888_v50  ;;  %v3133_v42 = vmul.f32 %v9222_v36, %v609_v29 }
 0x297   :  { %v3198_v53 = vadd.f32 %v3134_v28, %v3049_v56  ;;  %v3048_v60 = vadd.f32 %v2889_v0, %v2567_v22  ;;  %v3293_v17 = vmul.f32 %v9192_v20, %v609_v29  ;;  %v11921_v8 = vmul.f32 %v9068_v19, %v614_v55 }
 0x298   :  { %v11924_v26 = vmul.f32 %v9115_v41, %v614_v55  ;;  %v16741_v23 = vrot.slane %v11677_v38, 1  ;;  %v1055_v5 = vmul.f32 %v9055_v14, %v609_v29  ;;  %v4272_v34 = vadd.f32 %v4271_v52, %v4270_v33 }
 0x299   :  { %v2079_v50 = vadd.f32 %v2015_v49, %v1930_v54  ;;  %v2175_v51 = vmul.f32 %v9093_v31, %v609_v29  ;;  %v3527_v22 = vrot.slane %v3293_v17, 1  ;;  %v16742_v56 = vrot.slane %v11663_v30, 1 }
 0x29a   :  { %v3531_v45 = vsel %vm1178_vm3, %v3528_v25, %v16741_v23  ;;  %v4009_v0 = vrot.slane %v3775_v13, 2  ;;  %v16743_v10 = vrot.slane %v11837_v46, 2  ;;  %v3774_v38 = vmul.f32 %v11409_v18, %v609_v29 }
 0x29b   :  { %v1298_v28 = vsel %vm1178_vm3, %v1295_v48, %v16742_v56  ;;  %v16744_v23 = vrot.slane %v11671_v1, 1  ;;  %v3689_v33 = vadd.f32 %v3531_v45, %v3198_v53  ;;  %v3197_v54 = vadd.f32 %v3133_v42, %v3048_v60  ;;  %v958_v45 = vpop.permute.xlu2 %957 }
 0x29c   :  { %v1773_v55 = vsel %vm1660_vm4, %v1771_v11, %v16743_v10  ;;  %v1294_v49 = vrot.slane %v1055_v5, 1  ;;  %v11942_v17 = vmul.f32 %v9068_v19, %v609_v29  ;;  %v2014_v30 = vmul.f32 %v9110_v40, %v609_v29 }
 0x29d   :  { %v2415_v12 = vsel %vm1178_vm3, %v2412_v58, %v16744_v23  ;;  %v1929_v52 = vadd.f32 %v1773_v55, %v1447_v43  ;;  %v3529_v13 = vsel %vm1178_vm3, %v3527_v22, %v3528_v25  ;;  %v16500_v10 = vrot.slane %v11921_v8, 2  ;;  %v624_v23 = vpop.permute.xlu1 %623 }
 0x29e   :  { %v2411_v11 = vrot.slane %v2175_v51, 1  ;;  %v11949_v1 = vmul.f32 %v9115_v41, %v609_v29  ;;  %v1450_v56 = vadd.f32 %v1298_v28, %v744_v47  ;;  %v2893_v43 = vrot.slane %v11924_v26, 2 }
 0x29f   :  { %v16745_v60 = vrot.slane %v11686_v57, 2  ;;  %v4008_v42 = vrot.slane %v3774_v38, 2  ;;  %v2570_v5 = vadd.f32 %v2415_v12, %v2079_v50  ;;  %v4274_v25 = vadd.f32 %v11877_v4, %v4272_v34 }
 0x2a0   :  { %v3688_v22 = vadd.f32 %v3529_v13, %v3197_v54  ;;  %v743_v51 = vmul.f32 %v9081_v27, %v609_v29  ;;  %v1296_v46 = vsel %vm1178_vm3, %v1294_v49, %v1295_v48  ;;  %v1776_v47 = vrot.slane %v11942_v17, 2 }
 0x2a1   :  { %v4012_v53 = vsel %vm1660_vm4, %v4009_v0, %v16745_v60  ;;  %v2078_v26 = vadd.f32 %v2014_v30, %v1929_v52  ;;  %v2413_v57 = vsel %vm1178_vm3, %v2411_v11, %v2412_v58  ;;  %v2892_v28 = vrot.slane %v11949_v1, 2 }
 0x2a2   :  { %v11955_v55 = vadd.f32 %v4012_v53, %v3689_v33  ;;  %v11964_v38 = vmul.f32 %v9055_v14, %v958_v45  ;;  %v11967_v12 = vmul.f32 %v9068_v19, %v958_v45  ;;  %v4010_v34 = vsel %vm1660_vm4, %v4008_v42, %v4009_v0 }
 0x2a3   :  { %v11971_v4 = vmul.f32 %v9093_v31, %v958_v45  ;;  %v11974_v29 = vmul.f32 %v9115_v41, %v958_v45  ;;  %v11977_v48 = vmul.f32 %v9192_v20, %v624_v23  ;;  %v1449_v50 = vadd.f32 %v1296_v46, %v743_v51 }
 0x2a4   :  { %16746 = vst [vmem:[#allocation50_spill] sm:$0xff] %v11955_v55  ;;  %v4277_v58 = vsel %vm4191_vm2, %v11955_v55, 0.0  ;;  %v11981_v33 = vadd.f32 %v4010_v34, %v3688_v22  ;;  %v16748_v52 = vrot.slane %v11674_v39, 2  ;;  %v2569_v0 = vadd.f32 %v2413_v57, %v2078_v26  ;;  %v619_v34 = vpop.permute.xlu0 %618 }
 0x2a5   :  { %v1059_v17 = vmul.f32 %v9055_v14, %v624_v23  ;;  %v3136_v30 = vmul.f32 %v9222_v36, %v624_v23  ;;  %v11990_v11 = vmul.f32 %v9192_v20, %v958_v45  ;;  %v2179_v1 = vmul.f32 %v9093_v31, %v624_v23 }
 0x2a6   :  { %16747 = vst [vmem:[#allocation51_spill] sm:$0xff] %v11981_v33  ;;  %v2896_v54 = vsel %vm1660_vm4, %v2893_v43, %v16748_v52  ;;  %v3533_v46 = vrot.slane %v11977_v48, 1  ;;  %v11998_v42 = vmul.f32 %v11409_v18, %v958_v45  ;;  %v16749_v22 = vrot.slane %v11666_v63, 2 }
 0x2a7   :  { %v3051_v49 = vadd.f32 %v2896_v54, %v2570_v5  ;;  %v4275_v5 = vsel %vm4191_vm2, %v11981_v33, 0.0  ;;  %v12008_v26 = vmul.f32 %v9068_v19, %v624_v23  ;;  %v12011_v57 = vmul.f32 %v11409_v18, %v624_v23 }
 0x2a8   :  { %v1780_v51 = vsel %vm1660_vm4, %v16500_v10, %v16749_v22  ;;  %v1300_v52 = vrot.slane %v1059_v17, 1  ;;  %v2017_v45 = vmul.f32 %v9110_v40, %v624_v23  ;;  %v746_v63 = vmul.f32 %v9081_v27, %v624_v23 }
 0x2a9   :  { %v1932_v48 = vadd.f32 %v1780_v51, %v1450_v56  ;;  %v3200_v54 = vadd.f32 %v3136_v30, %v3051_v49  ;;  %v2417_v53 = vrot.slane %v2179_v1, 1  ;;  %v16750_v39 = vrot.slane %v11799_v61, 1 }
 0x2aa   :  { %v4276_v13 = vadd.f32 %v4275_v5, %v4274_v25  ;;  %v1058_v55 = vmul.f32 %v9055_v14, %v619_v34  ;;  %v3296_v56 = vmul.f32 %v9192_v20, %v619_v34  ;;  %v12024_v49 = vmul.f32 %v9115_v41, %v624_v23 }
 0x2ab   :  { %v3536_v22 = vsel %vm1178_vm3, %v3533_v46, %v16750_v39  ;;  %v4014_v30 = vrot.slane %v12011_v57, 2  ;;  %v2178_v1 = vmul.f32 %v9093_v31, %v619_v34  ;;  %v16751_v61 = vrot.slane %v11781_v21, 1 }
 0x2ac   :  { %v2081_v25 = vadd.f32 %v2017_v45, %v1932_v48  ;;  %v3691_v5 = vadd.f32 %v3536_v22, %v3200_v54  ;;  %v2894_v51 = vsel %vm1660_vm4, %v2892_v28, %v2893_v43  ;;  %v16752_v10 = vrot.slane %v11791_v6, 1  ;;  %v963_v28 = vpop.permute.xlu2 %962 }
 0x2ad   :  { %v1303_v39 = vsel %vm1178_vm3, %v1300_v52, %v16751_v61  ;;  %v16753_v17 = vrot.slane %v11921_v8, 2  ;;  %v3050_v33 = vadd.f32 %v2894_v51, %v2569_v0  ;;  %v3135_v57 = vmul.f32 %v9222_v36, %v619_v34 }
 0x2ae   :  { %v2420_v60 = vsel %vm1178_vm3, %v2417_v53, %v16752_v10  ;;  %v1299_v62 = vrot.slane %v1058_v55, 1  ;;  %v2016_v21 = vmul.f32 %v9110_v40, %v619_v34  ;;  %v3532_v61 = vrot.slane %v3296_v56, 1 }
 0x2af   :  { %v1778_v23 = vsel %vm1660_vm4, %v1776_v47, %v16753_v17  ;;  %v16754_v48 = vrot.slane %v11813_v24, 2  ;;  %v12044_v6 = vmul.f32 %v9068_v19, %v619_v34  ;;  %v2416_v10 = vrot.slane %v2178_v1, 1 }
 0x2b0   :  { %v1931_v3 = vadd.f32 %v1778_v23, %v1449_v50  ;;  %v2659_v8 = vmul.f32 %v9115_v41, %v619_v34  ;;  %v1452_v47 = vadd.f32 %v1303_v39, %v746_v63  ;;  %v2898_v0 = vrot.slane %v12024_v49, 2  ;;  %v634_v63 = vpop.permute.xlu1 %633 }
 0x2b1   :  { %v4017_v43 = vsel %vm1660_vm4, %v4014_v30, %v16754_v48  ;;  %v3777_v55 = vmul.f32 %v11409_v18, %v619_v34  ;;  %v2572_v50 = vadd.f32 %v2420_v60, %v2081_v25  ;;  %v12051_v54 = vadd.f32 %v4277_v58, %v4276_v13 }
 0x2b2   :  { %v12048_v45 = vadd.f32 %v4017_v43, %v3691_v5  ;;  %v745_v24 = vmul.f32 %v9081_v27, %v619_v34  ;;  %v3199_v22 = vadd.f32 %v3135_v57, %v3050_v33  ;;  %v1301_v56 = vsel %vm1178_vm3, %v1299_v62, %v1300_v52 }
 0x2b3   :  { %v2080_v17 = vadd.f32 %v2016_v21, %v1931_v3  ;;  %v3534_v1 = vsel %vm1178_vm3, %v3532_v61, %v3533_v46  ;;  %v12057_v51 = vmul.f32 %v9055_v14, %v963_v28  ;;  %v1781_v49 = vrot.slane %v12044_v6, 2 }
 0x2b4   :  { %16755 = vst [vmem:[#allocation52_spill] sm:$0xff] %v12048_v45  ;;  %v2418_v39 = vsel %vm1178_vm3, %v2416_v10, %v2417_v53  ;;  %v2897_v5 = vrot.slane %v2659_v8, 2  ;;  %v12062_v58 = vmul.f32 %v9068_v19, %v963_v28  ;;  %v12066_v33 = vsel %vm4191_vm2, %v12048_v45, 0.0 }
 0x2b5   :  { %v4013_v62 = vrot.slane %v3777_v55, 2  ;;  %v12069_v3 = vmul.f32 %v9093_v31, %v963_v28  ;;  %v12072_v13 = vmul.f32 %v9115_v41, %v963_v28  ;;  %v1451_v46 = vadd.f32 %v1301_v56, %v745_v24 }
 0x2b6   :  { %v3690_v60 = vadd.f32 %v3534_v1, %v3199_v22  ;;  %v12075_v34 = vmul.f32 %v9192_v20, %v963_v28  ;;  %v3300_v53 = vmul.f32 %v9192_v20, %v634_v63  ;;  %v2571_v52 = vadd.f32 %v2418_v39, %v2080_v17  ;;  %v629_v1 = vpop.permute.xlu0 %628 }
 0x2b7   :  { %v12080_v23 = vmul.f32 %v11409_v18, %v963_v28  ;;  %v16756_v57 = vrot.slane %v11794_v32, 2  ;;  %v1062_v43 = vmul.f32 %v9055_v14, %v634_v63  ;;  %v3138_v6 = vmul.f32 %v9222_v36, %v634_v63 }
 0x2b8   :  { %v4015_v10 = vsel %vm1660_vm4, %v4013_v62, %v4014_v30  ;;  %v3538_v24 = vrot.slane %v3300_v53, 1  ;;  %v16758_v22 = vrot.slane %v11784_v7, 2  ;;  %v16759_v56 = vrot.slane %v12008_v26, 2 }
 0x2b9   :  { %v2901_v21 = vsel %vm1660_vm4, %v2898_v0, %v16756_v57  ;;  %v12091_v28 = vadd.f32 %v4015_v10, %v3690_v60  ;;  %v2182_v17 = vmul.f32 %v9093_v31, %v634_v63  ;;  %v748_v62 = vmul.f32 %v9081_v27, %v634_v63 }
 0x2ba   :  { %v3053_v48 = vadd.f32 %v2901_v21, %v2572_v50  ;;  %v1785_v50 = vsel %vm1660_vm4, %v16759_v56, %v16758_v22  ;;  %v3781_v53 = vmul.f32 %v11409_v18, %v634_v63  ;;  %v1305_v60 = vrot.slane %v1062_v43, 1 }
 0x2bb   :  { %16757 = vst [vmem:[#allocation53_spill] sm:$0xff] %v12091_v28  ;;  %v1934_v39 = vadd.f32 %v1785_v50, %v1452_v47  ;;  %v12104_v57 = vmul.f32 %v9068_v19, %v634_v63  ;;  %v2019_v7 = vmul.f32 %v9110_v40, %v634_v63  ;;  %v16760_v10 = vrot.slane %v11888_v2, 1 }
 0x2bc   :  { %v3202_v21 = vadd.f32 %v3138_v6, %v3053_v48  ;;  %v2899_v56 = vsel %vm1660_vm4, %v2897_v5, %v2898_v0  ;;  %v1061_v55 = vmul.f32 %v9055_v14, %v629_v1  ;;  %v3299_v47 = vmul.f32 %v9192_v20, %v629_v1 }
 0x2bd   :  { %v3541_v22 = vsel %vm1178_vm3, %v3538_v24, %v16760_v10  ;;  %v2422_v50 = vrot.slane %v2182_v17, 1  ;;  %v3052_v61 = vadd.f32 %v2899_v56, %v2571_v52  ;;  %v2181_v18 = vmul.f32 %v9093_v31, %v629_v1 }
 0x2be   :  { %v3137_v43 = vmul.f32 %v9222_v36, %v629_v1  ;;  %v4279_v30 = vsel %vm4191_vm2, %v12091_v28, 0.0  ;;  %v12118_v48 = vmul.f32 %v9115_v41, %v634_v63  ;;  %v4019_v2 = vrot.slane %v3781_v53, 2  ;;  %v12130_v63 = vld [vmem:[%s16435_s1 + $0x8] ss:$0 sm:$0xff] }
 0x2bf   :  { %v3537_v6 = vrot.slane %v3299_v47, 1  ;;  %v16761_v0 = vrot.slane %v11867_v44, 1  ;;  %v2083_v10 = vadd.f32 %v2019_v7, %v1934_v39  ;;  %v3693_v8 = vadd.f32 %v3541_v22, %v3202_v21 }
 0x2c0   :  { %v16762_v52 = vrot.slane %v12008_v26, 2  ;;  %v1304_v25 = vrot.slane %v1061_v55, 1  ;;  %v2018_v32 = vmul.f32 %v9110_v40, %v629_v1  ;;  %v3780_v53 = vmul.f32 %v12130_v63, %v629_v1 }
 0x2c1   :  { %v1308_v5 = vsel %vm1178_vm3, %v1305_v60, %v16761_v0  ;;  %v4280_v44 = vadd.f32 %v4279_v30, %v12051_v54  ;;  %v16763_v39 = vrot.slane %v11881_v37, 1  ;;  %v2421_v26 = vrot.slane %v2181_v18, 1  ;;  %v968_v18 = vpop.permute.xlu2 %967 }
 0x2c2   :  { %v1783_v17 = vsel %vm1660_vm4, %v1781_v49, %v16762_v52  ;;  %v3201_v21 = vadd.f32 %v3137_v43, %v3052_v61  ;;  %v16764_v49 = vrot.slane %v11902_v16, 2  ;;  %v12141_v55 = vmul.f32 %v9068_v19, %v629_v1 }
 0x2c3   :  { %v1933_v56 = vadd.f32 %v1783_v17, %v1451_v46  ;;  %v2425_v7 = vsel %vm1178_vm3, %v2422_v50, %v16763_v39  ;;  %v2662_v22 = vmul.f32 %v9115_v41, %v629_v1  ;;  %v3539_v47 = vsel %vm1178_vm3, %v3537_v6, %v3538_v24  ;;  %v644_v17 = vpop.permute.xlu1 %643 }
 0x2c4   :  { %v4022_v46 = vsel %vm1660_vm4, %v4019_v2, %v16764_v49  ;;  %v1454_v0 = vadd.f32 %v1308_v5, %v748_v62  ;;  %v16504_v54 = vrot.slane %v12104_v57, 2  ;;  %v2903_v37 = vrot.slane %v12118_v48, 2 }
 0x2c5   :  { %v12147_v30 = vadd.f32 %v4022_v46, %v3693_v8  ;;  %v2574_v61 = vadd.f32 %v2425_v7, %v2083_v10  ;;  %v1306_v16 = vsel %vm1178_vm3, %v1304_v25, %v1305_v60  ;;  %v2082_v43 = vadd.f32 %v2018_v32, %v1933_v56 }
 0x2c6   :  { %v4018_v52 = vrot.slane %v3780_v53, 2  ;;  %v4282_v39 = vadd.f32 %v12066_v33, %v4280_v44  ;;  %v747_v49 = vmul.f32 %v9081_v27, %v629_v1  ;;  %v2423_v24 = vsel %vm1178_vm3, %v2421_v26, %v2422_v50 }
 0x2c7   :  { %16765 = vst [vmem:[#allocation54_spill] sm:$0xff] %v12147_v30  ;;  %v3692_v62 = vadd.f32 %v3539_v47, %v3201_v21  ;;  %v1786_v6 = vrot.slane %v12141_v55, 2  ;;  %v2902_v5 = vrot.slane %v2662_v22, 2  ;;  %v12155_v8 = vmul.f32 %v9055_v14, %v968_v18 }
 0x2c8   :  { %v12158_v48 = vmul.f32 %v9068_v19, %v968_v18  ;;  %v12162_v25 = vsel %vm4191_vm2, %v12147_v30, 0.0  ;;  %v1453_v32 = vadd.f32 %v1306_v16, %v747_v49  ;;  %v12165_v33 = vmul.f32 %v9093_v31, %v968_v18 }
 0x2c9   :  { %v3303_v1 = vmul.f32 %v9192_v20, %v644_v17  ;;  %v2573_v60 = vadd.f32 %v2423_v24, %v2082_v43  ;;  %v4020_v50 = vsel %vm1660_vm4, %v4018_v52, %v4019_v2  ;;  %v12170_v10 = vmul.f32 %v9115_v41, %v968_v18  ;;  %v639_v52 = vpop.permute.xlu0 %638 }
 0x2ca   :  { %v16766_v56 = vrot.slane %v11885_v15, 2  ;;  %v12175_v44 = vadd.f32 %v4020_v50, %v3692_v62  ;;  %v12178_v26 = vmul.f32 %v9055_v14, %v644_v17  ;;  %v3140_v21 = vmul.f32 %v9222_v36, %v644_v17 }
 0x2cb   :  { %v2185_v2 = vmul.f32 %v9093_v31, %v644_v17  ;;  %v3543_v22 = vrot.slane %v3303_v1, 1  ;;  %v12186_v15 = vmul.f32 %v9192_v20, %v968_v18  ;;  %v16768_v16 = vrot.slane %v11873_v59, 2 }
 0x2cc   :  { %v2906_v53 = vsel %vm1660_vm4, %v2903_v37, %v16766_v56  ;;  %16767 = vst [vmem:[#allocation55_spill] sm:$0xff] %v12175_v44  ;;  %v3784_v43 = vmul.f32 %v12130_v63, %v644_v17  ;;  %v12196_v24 = vmul.f32 %v12130_v63, %v968_v18  ;;  %v750_v1 = vmul.f32 %v9081_v27, %v644_v17 }
 0x2cd   :  { %v3055_v7 = vadd.f32 %v2906_v53, %v2574_v61  ;;  %v1790_v61 = vsel %vm1660_vm4, %v16504_v54, %v16768_v16  ;;  %v4283_v50 = vsel %vm4191_vm2, %v12175_v44, 0.0  ;;  %v1310_v59 = vrot.slane %v12178_v26, 1 }
 0x2ce   :  { %v1936_v62 = vadd.f32 %v1790_v61, %v1454_v0  ;;  %v2021_v56 = vmul.f32 %v9110_v40, %v644_v17  ;;  %v2427_v16 = vrot.slane %v2185_v2, 1  ;;  %v16769_v55 = vrot.slane %v11990_v11, 1 }
 0x2cf   :  { %v3204_v53 = vadd.f32 %v3140_v21, %v3055_v7  ;;  %v2904_v49 = vsel %vm1660_vm4, %v2902_v5, %v2903_v37  ;;  %v3302_v18 = vmul.f32 %v9192_v20, %v639_v52  ;;  %v4024_v61 = vrot.slane %v3784_v43, 2 }
 0x2d0   :  { %v3546_v47 = vsel %vm1178_vm3, %v3543_v22, %v16769_v55  ;;  %v3054_v46 = vadd.f32 %v2904_v49, %v2573_v60  ;;  %v3139_v54 = vmul.f32 %v9222_v36, %v639_v52  ;;  %v12211_v26 = vmul.f32 %v9068_v19, %v644_v17 }
 0x2d1   :  { %v1064_v7 = vmul.f32 %v9055_v14, %v639_v52  ;;  %v2184_v21 = vmul.f32 %v9093_v31, %v639_v52  ;;  %v3542_v11 = vrot.slane %v3302_v18, 1  ;;  %v4284_v2 = vadd.f32 %v4283_v50, %v4282_v39 }
 0x2d2   :  { %v2085_v55 = vadd.f32 %v2021_v56, %v1936_v62  ;;  %v12216_v37 = vmul.f32 %v9115_v41, %v644_v17  ;;  %v3695_v5 = vadd.f32 %v3546_v47, %v3204_v53  ;;  %v16770_v0 = vrot.slane %v11964_v38, 1 }
 0x2d3   :  { %v16771_v43 = vrot.slane %v11971_v4, 1  ;;  %v16772_v30 = vrot.slane %v12104_v57, 2  ;;  %v3783_v18 = vmul.f32 %v12130_v63, %v639_v52  ;;  %v16773_v39 = vrot.slane %v11998_v42, 2 }
 0x2d4   :  { %v1313_v60 = vsel %vm1178_vm3, %v1310_v59, %v16770_v0  ;;  %v2020_v47 = vmul.f32 %v9110_v40, %v639_v52  ;;  %v3203_v38 = vadd.f32 %v3139_v54, %v3054_v46  ;;  %v1309_v50 = vrot.slane %v1064_v7, 1  ;;  %v973_v0 = vpop.permute.xlu2 %972 }
 0x2d5   :  { %v2430_v49 = vsel %vm1178_vm3, %v2427_v16, %v16771_v43  ;;  %v1788_v44 = vsel %vm1660_vm4, %v1786_v6, %v16772_v30  ;;  %v4027_v17 = vsel %vm1660_vm4, %v4024_v61, %v16773_v39  ;;  %v12233_v56 = vmul.f32 %v9068_v19, %v639_v52 }
 0x2d6   :  { %v1935_v62 = vadd.f32 %v1788_v44, %v1453_v32  ;;  %v2426_v4 = vrot.slane %v2184_v21, 1  ;;  %v3544_v53 = vsel %vm1178_vm3, %v3542_v11, %v3543_v22  ;;  %v16507_v30 = vrot.slane %v12211_v26, 2  ;;  %v654_v11 = vpop.permute.xlu1 %653 }
 0x2d7   :  { %v12238_v6 = vadd.f32 %v4027_v17, %v3695_v5  ;;  %v2665_v42 = vmul.f32 %v9115_v41, %v639_v52  ;;  %v1456_v32 = vadd.f32 %v1313_v60, %v750_v1  ;;  %v2576_v44 = vadd.f32 %v2430_v49, %v2085_v55 }
 0x2d8   :  { %v2908_v54 = vrot.slane %v12216_v37, 2  ;;  %v4023_v46 = vrot.slane %v3783_v18, 2  ;;  %v4286_v7 = vadd.f32 %v12162_v25, %v4284_v2  ;;  %v749_v21 = vmul.f32 %v9081_v27, %v639_v52 }
 0x2d9   :  { %16774 = vst [vmem:[#allocation56_spill] sm:$0xff] %v12238_v6  ;;  %v2084_v43 = vadd.f32 %v2020_v47, %v1935_v62  ;;  %v3694_v22 = vadd.f32 %v3544_v53, %v3203_v38  ;;  %v1311_v39 = vsel %vm1178_vm3, %v1309_v50, %v1310_v59  ;;  %v1791_v5 = vrot.slane %v12233_v56, 2 }
 0x2da   :  { %v2428_v17 = vsel %vm1178_vm3, %v2426_v4, %v2427_v16  ;;  %v12248_v57 = vmul.f32 %v9055_v14, %v973_v0  ;;  %v12252_v1 = vsel %vm4191_vm2, %v12238_v6, 0.0  ;;  %v2907_v55 = vrot.slane %v2665_v42, 2 }
 0x2db   :  { %v12255_v25 = vmul.f32 %v9068_v19, %v973_v0  ;;  %v12258_v52 = vmul.f32 %v9093_v31, %v973_v0  ;;  %v4025_v59 = vsel %vm1660_vm4, %v4023_v46, %v4024_v61  ;;  %v12262_v2 = vmul.f32 %v9115_v41, %v973_v0 }
 0x2dc   :  { %v12265_v16 = vmul.f32 %v9192_v20, %v973_v0  ;;  %v3306_v37 = vmul.f32 %v9192_v20, %v654_v11  ;;  %v1455_v60 = vadd.f32 %v1311_v39, %v749_v21  ;;  %v2575_v49 = vadd.f32 %v2428_v17, %v2084_v43  ;;  %v649_v39 = vpop.permute.xlu0 %648  ;;  %v978_v28 = vpop.permute.xlu2 %977 }
 0x2dd   :  { %v12268_v18 = vadd.f32 %v4025_v59, %v3694_v22  ;;  %v12271_v62 = vmul.f32 %v12130_v63, %v973_v0  ;;  %v16776_v38 = vrot.slane %v11974_v29, 2  ;;  %v1068_v50 = vmul.f32 %v9055_v14, %v654_v11 }
 0x2de   :  { %v2188_v56 = vmul.f32 %v9093_v31, %v654_v11  ;;  %v3142_v46 = vmul.f32 %v9222_v36, %v654_v11  ;;  %v16777_v43 = vrot.slane %v11967_v12, 2  ;;  %v3548_v22 = vrot.slane %v3306_v37, 1 }
 0x2df   :  { %16775 = vst [vmem:[#allocation57_spill] sm:$0xff] %v12268_v18  ;;  %v2911_v61 = vsel %vm1660_vm4, %v2908_v54, %v16776_v38  ;;  %v4287_v17 = vsel %vm4191_vm2, %v12268_v18, 0.0  ;;  %v2023_v38 = vmul.f32 %v9110_v40, %v654_v11  ;;  %v3787_v4 = vmul.f32 %v12130_v63, %v654_v11 }
 0x2e0   :  { %v3057_v42 = vadd.f32 %v2911_v61, %v2576_v44  ;;  %v1795_v29 = vsel %vm1660_vm4, %v16507_v30, %v16777_v43  ;;  %v1315_v61 = vrot.slane %v1068_v50, 1  ;;  %v2432_v0 = vrot.slane %v2188_v56, 1 }
 0x2e1   :  { %v1938_v44 = vadd.f32 %v1795_v29, %v1456_v32  ;;  %v2909_v12 = vsel %vm1660_vm4, %v2907_v55, %v2908_v54  ;;  %v3141_v43 = vmul.f32 %v9222_v36, %v649_v39  ;;  %v3305_v37 = vmul.f32 %v9192_v20, %v649_v39 }
 0x2e2   :  { %v3206_v21 = vadd.f32 %v3142_v46, %v3057_v42  ;;  %v3056_v53 = vadd.f32 %v2909_v12, %v2575_v49  ;;  %v752_v47 = vmul.f32 %v9081_v27, %v654_v11  ;;  %v12299_v30 = vmul.f32 %v9068_v19, %v654_v11 }
 0x2e3   :  { %v16778_v32 = vrot.slane %v12075_v34, 1  ;;  %v1067_v56 = vmul.f32 %v9055_v14, %v649_v39  ;;  %v4288_v29 = vadd.f32 %v4287_v17, %v4286_v7  ;;  %v12306_v54 = vmul.f32 %v9115_v41, %v654_v11 }
 0x2e4   :  { %v2187_v55 = vmul.f32 %v9093_v31, %v649_v39  ;;  %v3547_v49 = vrot.slane %v3305_v37, 1  ;;  %v16779_v42 = vrot.slane %v12057_v51, 1  ;;  %v2087_v12 = vadd.f32 %v2023_v38, %v1938_v44 }
 0x2e5   :  { %v3551_v50 = vsel %vm1178_vm3, %v3548_v22, %v16778_v32  ;;  %v4029_v59 = vrot.slane %v3787_v4, 2  ;;  %v3786_v6 = vmul.f32 %v12130_v63, %v649_v39  ;;  %v16780_v34 = vrot.slane %v12069_v3, 1 }
 0x2e6   :  { %v1318_v46 = vsel %vm1178_vm3, %v1315_v61, %v16779_v42  ;;  %v3697_v18 = vadd.f32 %v3551_v50, %v3206_v21  ;;  %v16781_v7 = vrot.slane %v12211_v26, 2  ;;  %v3205_v17 = vadd.f32 %v3141_v43, %v3056_v53 }
 0x2e7   :  { %v2435_v32 = vsel %vm1178_vm3, %v2432_v0, %v16780_v34  ;;  %v1314_v37 = vrot.slane %v1067_v56, 1  ;;  %v2022_v51 = vmul.f32 %v9110_v40, %v649_v39  ;;  %v3549_v42 = vsel %vm1178_vm3, %v3547_v49, %v3548_v22 }
 0x2e8   :  { %v1793_v11 = vsel %vm1660_vm4, %v1791_v5, %v16781_v7  ;;  %v1458_v44 = vadd.f32 %v1318_v46, %v752_v47  ;;  %v1797_v4 = vrot.slane %v12299_v30, 2  ;;  %v2913_v38 = vrot.slane %v12306_v54, 2 }
 0x2e9   :  { %v1937_v45 = vadd.f32 %v1793_v11, %v1455_v60  ;;  %v2431_v3 = vrot.slane %v2187_v55, 1  ;;  %v16782_v21 = vrot.slane %v12080_v23, 2  ;;  %v1549_v5 = vmul.f32 %v9068_v19, %v649_v39 }
 0x2ea   :  { %v2668_v60 = vmul.f32 %v9115_v41, %v649_v39  ;;  %v4028_v53 = vrot.slane %v3786_v6, 2  ;;  %v2578_v43 = vadd.f32 %v2435_v32, %v2087_v12  ;;  %v4290_v47 = vadd.f32 %v12252_v1, %v4288_v29  ;;  %v664_v1 = vpop.permute.xlu1 %663 }
 0x2eb   :  { %v4032_v26 = vsel %vm1660_vm4, %v4029_v59, %v16782_v21  ;;  %v3696_v22 = vadd.f32 %v3549_v42, %v3205_v17  ;;  %v1316_v30 = vsel %vm1178_vm3, %v1314_v37, %v1315_v61  ;;  %v2086_v56 = vadd.f32 %v2022_v51, %v1937_v45 }
 0x2ec   :  { %v12328_v50 = vadd.f32 %v4032_v26, %v3697_v18  ;;  %v12333_v54 = vmul.f32 %v9055_v14, %v978_v28  ;;  %v12336_v23 = vmul.f32 %v9068_v19, %v978_v28  ;;  %v751_v55 = vmul.f32 %v9081_v27, %v649_v39 }
 0x2ed   :  { %v2433_v49 = vsel %vm1178_vm3, %v2431_v3, %v2432_v0  ;;  %v12341_v6 = vmul.f32 %v9093_v31, %v978_v28  ;;  %v12344_v18 = vmul.f32 %v9115_v41, %v978_v28  ;;  %v1796_v29 = vrot.slane %v1549_v5, 2 }
 0x2ee   :  { %16783 = vst [vmem:[#allocation58_spill] sm:$0xff] %v12328_v50  ;;  %v2912_v61 = vrot.slane %v2668_v60, 2  ;;  %v4030_v45 = vsel %vm1660_vm4, %v4028_v53, %v4029_v59  ;;  %v12348_v46 = vmul.f32 %v9192_v20, %v978_v28  ;;  %v12352_v12 = vsel %vm4191_vm2, %v12328_v50, 0.0  ;;  %v659_v53 = vpop.permute.xlu0 %658 }
 0x2ef   :  { %v1457_v39 = vadd.f32 %v1316_v30, %v751_v55  ;;  %v12354_v0 = vadd.f32 %v4030_v45, %v3696_v22  ;;  %v12357_v34 = vmul.f32 %v12130_v63, %v978_v28  ;;  %v2577_v32 = vadd.f32 %v2433_v49, %v2086_v56 }
 0x2f0   :  { %v1071_v59 = vmul.f32 %v9055_v14, %v664_v1  ;;  %v16786_v51 = vrot.slane %v12062_v58, 2  ;;  %v3309_v3 = vmul.f32 %v9192_v20, %v664_v1  ;;  %v16787_v21 = vrot.slane %v12072_v13, 2 }
 0x2f1   :  { %16784 = vst [vmem:[#allocation59_spill] sm:$0xff] %v12354_v0  ;;  %v754_v5 = vmul.f32 %v9081_v27, %v664_v1  ;;  %v2191_v60 = vmul.f32 %v9093_v31, %v664_v1  ;;  %v4291_v22 = vsel %vm4191_vm2, %v12354_v0, 0.0  ;;  %v12378_v49 = vmul.f32 %v9068_v19, %v664_v1 }
 0x2f2   :  { %16785 = vst [vmem:[#allocation60_spill] sm:$0xff] %v12357_v34  ;;  %v1800_v42 = vsel %vm1660_vm4, %v1797_v4, %v16786_v51  ;;  %v2916_v26 = vsel %vm1660_vm4, %v2913_v38, %v16787_v21  ;;  %v1320_v55 = vrot.slane %v1071_v59, 1  ;;  %v2025_v13 = vmul.f32 %v9110_v40, %v664_v1 }
 0x2f3   :  { %v1940_v30 = vadd.f32 %v1800_v42, %v1458_v44  ;;  %v3059_v56 = vadd.f32 %v2916_v26, %v2578_v43  ;;  %v3144_v45 = vmul.f32 %v9222_v36, %v664_v1  ;;  %v3553_v51 = vrot.slane %v3309_v3, 1 }
 0x2f4   :  { %v2914_v21 = vsel %vm1660_vm4, %v2912_v61, %v2913_v38  ;;  %v1070_v28 = vmul.f32 %v9055_v14, %v659_v53  ;;  %v3308_v37 = vmul.f32 %v9192_v20, %v659_v53  ;;  %v2437_v11 = vrot.slane %v2191_v60, 1 }
 0x2f5   :  { %v3058_v7 = vadd.f32 %v2914_v21, %v2577_v32  ;;  %v2190_v44 = vmul.f32 %v9093_v31, %v659_v53  ;;  %v3143_v43 = vmul.f32 %v9222_v36, %v659_v53  ;;  %v12388_v59 = vmul.f32 %v9115_v41, %v664_v1 }
 0x2f6   :  { %v3790_v42 = vmul.f32 %v12130_v63, %v664_v1  ;;  %v1798_v26 = vsel %vm1660_vm4, %v1796_v29, %v1797_v4  ;;  %v3552_v3 = vrot.slane %v3308_v37, 1  ;;  %v16788_v38 = vrot.slane %v12155_v8, 1 }
 0x2f7   :  { %v2089_v58 = vadd.f32 %v2025_v13, %v1940_v30  ;;  %v3208_v17 = vadd.f32 %v3144_v45, %v3059_v56  ;;  %v1939_v60 = vadd.f32 %v1798_v26, %v1457_v39  ;;  %v16789_v32 = vrot.slane %v12186_v15, 1 }
 0x2f8   :  { %v1323_v61 = vsel %vm1178_vm3, %v1320_v55, %v16788_v38  ;;  %v1319_v50 = vrot.slane %v1070_v28, 1  ;;  %v2024_v0 = vmul.f32 %v9110_v40, %v659_v53  ;;  %v3789_v35 = vmul.f32 %v12130_v63, %v659_v53  ;;  %v983_v28 = vpop.permute.xlu2 %982 }
 0x2f9   :  { %v3556_v21 = vsel %vm1178_vm3, %v3553_v51, %v16789_v32  ;;  %v12400_v1 = vadd.f32 %v4291_v22, %v4290_v47  ;;  %v16790_v4 = vrot.slane %v12165_v33, 1  ;;  %v2436_v29 = vrot.slane %v2190_v44, 1 }
 0x2fa   :  { %v3207_v37 = vadd.f32 %v3143_v43, %v3058_v7  ;;  %v1802_v30 = vrot.slane %v12378_v49, 2  ;;  %v2918_v39 = vrot.slane %v12388_v59, 2  ;;  %v4034_v15 = vrot.slane %v3790_v42, 2  ;;  %v674_v42 = vpop.permute.xlu1 %673 }
 0x2fb   :  { %v2440_v8 = vsel %vm1178_vm3, %v2437_v11, %v16790_v4  ;;  %v3554_v56 = vsel %vm1178_vm3, %v3552_v3, %v3553_v51  ;;  %v1460_v13 = vadd.f32 %v1323_v61, %v754_v5  ;;  %v3699_v45 = vadd.f32 %v3556_v21, %v3208_v17 }
 0x2fc   :  { %v1552_v26 = vmul.f32 %v9068_v19, %v659_v53  ;;  %v2671_v47 = vmul.f32 %v9115_v41, %v659_v53  ;;  %v2580_v22 = vadd.f32 %v2440_v8, %v2089_v58  ;;  %v1321_v33 = vsel %vm1178_vm3, %v1319_v50, %v1320_v55 }
 0x2fd   :  { %v2088_v38 = vadd.f32 %v2024_v0, %v1939_v60  ;;  %v4033_v44 = vrot.slane %v3789_v35, 2  ;;  %v2438_v7 = vsel %vm1178_vm3, %v2436_v29, %v2437_v11  ;;  %v3698_v49 = vadd.f32 %v3554_v56, %v3207_v37 }
 0x2fe   :  { %v12413_v43 = vmul.f32 %v9055_v14, %v983_v28  ;;  %v12416_v51 = vmul.f32 %v9068_v19, %v983_v28  ;;  %v16791_v17 = vrot.slane %v12196_v24, 2  ;;  %v753_v59 = vmul.f32 %v9081_v27, %v659_v53 }
 0x2ff   :  { %v12423_v58 = vmul.f32 %v9093_v31, %v983_v28  ;;  %v12426_v35 = vmul.f32 %v9115_v41, %v983_v28  ;;  %v1801_v0 = vrot.slane %v1552_v26, 2  ;;  %v2917_v11 = vrot.slane %v2671_v47, 2 }
 0x300   :  { %v4037_v5 = vsel %vm1660_vm4, %v4034_v15, %v16791_v17  ;;  %v12431_v55 = vmul.f32 %v9192_v20, %v983_v28  ;;  %v1459_v3 = vadd.f32 %v1321_v33, %v753_v59  ;;  %v2579_v24 = vadd.f32 %v2438_v7, %v2088_v38 }
 0x301   :  { %v12428_v50 = vadd.f32 %v4037_v5, %v3699_v45  ;;  %v4035_v61 = vsel %vm1660_vm4, %v4033_v44, %v4034_v15  ;;  %v12435_v53 = vmul.f32 %v12130_v63, %v983_v28  ;;  %v16794_v4 = vrot.slane %v12158_v48, 2  ;;  %v669_v45 = vpop.permute.xlu0 %668 }
 0x302   :  { %v12437_v60 = vadd.f32 %v4035_v61, %v3698_v49  ;;  %v1074_v15 = vmul.f32 %v9055_v14, %v674_v42  ;;  %v16795_v26 = vrot.slane %v12170_v10, 2  ;;  %v2194_v33 = vmul.f32 %v9093_v31, %v674_v42 }
 0x303   :  { %16792 = vst [vmem:[#allocation61_spill] sm:$0xff] %v12435_v53  ;;  %v1805_v8 = vsel %vm1660_vm4, %v1802_v30, %v16794_v4  ;;  %v3312_v48 = vmul.f32 %v9192_v20, %v674_v42  ;;  %v756_v7 = vmul.f32 %v9081_v27, %v674_v42  ;;  %v2027_v10 = vmul.f32 %v9110_v40, %v674_v42 }
 0x304   :  { %16793 = vst [vmem:[#allocation62_spill] sm:$0xff] %v12437_v60  ;;  %v1942_v56 = vadd.f32 %v1805_v8, %v1460_v13  ;;  %v2921_v47 = vsel %vm1660_vm4, %v2918_v39, %v16795_v26  ;;  %v12456_v13 = vmul.f32 %v9068_v19, %v674_v42  ;;  %v12460_v49 = vsel %vm4191_vm2, %v12437_v60, 0.0 }
 0x305   :  { %v3061_v44 = vadd.f32 %v2921_v47, %v2580_v22  ;;  %v12464_v17 = vmul.f32 %v9115_v41, %v674_v42  ;;  %v1073_v5 = vmul.f32 %v9055_v14, %v669_v45  ;;  %v1325_v59 = vrot.slane %v1074_v15, 1 }
 0x306   :  { %v3146_v61 = vmul.f32 %v9222_v36, %v674_v42  ;;  %v2193_v22 = vmul.f32 %v9093_v31, %v669_v45  ;;  %v3311_v4 = vmul.f32 %v9192_v20, %v669_v45  ;;  %v2442_v8 = vrot.slane %v2194_v33, 1 }
 0x307   :  { %v3558_v26 = vrot.slane %v3312_v48, 1  ;;  %v3793_v47 = vmul.f32 %v12130_v63, %v674_v42  ;;  %v1803_v38 = vsel %vm1660_vm4, %v1801_v0, %v1802_v30  ;;  %v1807_v28 = vrot.slane %v12456_v13, 2  ;;  %v2106_v42 = vpop.permute.xlu2 %2105 }
 0x308   :  { %v1941_v21 = vadd.f32 %v1803_v38, %v1459_v3  ;;  %v2919_v32 = vsel %vm1660_vm4, %v2917_v11, %v2918_v39  ;;  %v2026_v37 = vmul.f32 %v9110_v40, %v669_v45  ;;  %v1324_v29 = vrot.slane %v1073_v5, 1 }
 0x309   :  { %v3060_v15 = vadd.f32 %v2919_v32, %v2579_v24  ;;  %v3145_v60 = vmul.f32 %v9222_v36, %v669_v45  ;;  %v3792_v9 = vmul.f32 %v12130_v63, %v669_v45  ;;  %v2091_v53 = vadd.f32 %v2027_v10, %v1942_v56 }
 0x30a   :  { %v3210_v33 = vadd.f32 %v3146_v61, %v3061_v44  ;;  %v2441_v48 = vrot.slane %v2193_v22, 1  ;;  %v3557_v34 = vrot.slane %v3311_v4, 1  ;;  %v16796_v30 = vrot.slane %v12248_v57, 1  ;;  %v684_v61 = vpop.permute.xlu1 %683 }
 0x30b   :  { %v16797_v3 = vrot.slane %v12258_v52, 1  ;;  %v16798_v11 = vrot.slane %v12265_v16, 1  ;;  %v4039_v32 = vrot.slane %v3793_v47, 2  ;;  %v755_v38 = vmul.f32 %v9081_v27, %v669_v45 }
 0x30c   :  { %v1328_v0 = vsel %vm1178_vm3, %v1325_v59, %v16796_v30  ;;  %v1555_v56 = vmul.f32 %v9068_v19, %v669_v45  ;;  %v2090_v44 = vadd.f32 %v2026_v37, %v1941_v21  ;;  %v2674_v13 = vmul.f32 %v9115_v41, %v669_v45 }
 0x30d   :  { %v2445_v39 = vsel %vm1178_vm3, %v2442_v8, %v16797_v3  ;;  %v3561_v24 = vsel %vm1178_vm3, %v3558_v26, %v16798_v11  ;;  %v1326_v57 = vsel %vm1178_vm3, %v1324_v29, %v1325_v59  ;;  %v3209_v10 = vadd.f32 %v3145_v60, %v3060_v15 }
 0x30e   :  { %v4038_v5 = vrot.slane %v3792_v9, 2  ;;  %v12491_v52 = vmul.f32 %v9093_v31, %v2106_v42  ;;  %v2443_v16 = vsel %vm1178_vm3, %v2441_v48, %v2442_v8  ;;  %v3559_v22 = vsel %vm1178_vm3, %v3557_v34, %v3558_v26 }
 0x30f   :  { %v12496_v4 = vmul.f32 %v9115_v41, %v2106_v42  ;;  %v12499_v47 = vmul.f32 %v9192_v20, %v2106_v42  ;;  %v1462_v21 = vadd.f32 %v1328_v0, %v756_v7  ;;  %v2582_v37 = vadd.f32 %v2445_v39, %v2091_v53  ;;  %v679_v7 = vpop.permute.xlu0 %678 }
 0x310   :  { %v2923_v29 = vrot.slane %v12464_v17, 2  ;;  %v12502_v60 = vadd.f32 %v3561_v24, %v3210_v33  ;;  %v16799_v9 = vrot.slane %v12271_v62, 2  ;;  %v1461_v59 = vadd.f32 %v1326_v57, %v755_v38 }
 0x311   :  { %v1806_v8 = vrot.slane %v1555_v56, 2  ;;  %v2922_v34 = vrot.slane %v2674_v13, 2  ;;  %v2581_v26 = vadd.f32 %v2443_v16, %v2090_v44  ;;  %v3700_v15 = vadd.f32 %v3559_v22, %v3209_v10 }
 0x312   :  { %v12507_v45 = vsel %vm1660_vm4, %v4039_v32, %v16799_v9  ;;  %v4040_v48 = vsel %vm1660_vm4, %v4038_v5, %v4039_v32  ;;  %v16800_v33 = vrot.slane %v12255_v25, 2  ;;  %v2197_v0 = vmul.f32 %v9093_v31, %v684_v61 }
 0x313   :  { %v12518_v3 = vmul.f32 %v12130_v63, %v2106_v42  ;;  %v12521_v11 = vmul.f32 %v9055_v14, %v684_v61  ;;  %v12524_v24 = vmul.f32 %v9068_v19, %v684_v61  ;;  %v16802_v32 = vrot.slane %v12262_v2, 2 }
 0x314   :  { %v1810_v62 = vsel %vm1660_vm4, %v1807_v28, %v16800_v33  ;;  %v2029_v25 = vmul.f32 %v9110_v40, %v684_v61  ;;  %v12531_v56 = vmul.f32 %v9115_v41, %v684_v61  ;;  %v2196_v44 = vmul.f32 %v9093_v31, %v679_v7 }
 0x315   :  { %16801 = vst [vmem:[#allocation63_spill] sm:$0xff] %v12518_v3  ;;  %v1944_v39 = vadd.f32 %v1810_v62, %v1462_v21  ;;  %v2926_v38 = vsel %vm1660_vm4, %v2923_v29, %v16802_v32  ;;  %v12534_v42 = vadd.f32 %v4040_v48, %v3700_v15  ;;  %v3148_v57 = vmul.f32 %v9222_v36, %v684_v61  ;;  %v12545_v48 = vpop.permute.xlu1 %693 }
 0x316   :  { %v3063_v13 = vadd.f32 %v2926_v38, %v2582_v37  ;;  %v1808_v10 = vsel %vm1660_vm4, %v1806_v8, %v1807_v28  ;;  %v2447_v5 = vrot.slane %v2197_v0, 1  ;;  %v12539_v16 = vmul.f32 %v9192_v20, %v684_v61 }
 0x317   :  { %16803 = vst [vmem:[#allocation64_spill] sm:$0xff] %v12534_v42  ;;  %v1943_v2 = vadd.f32 %v1808_v10, %v1461_v59  ;;  %v2028_v22 = vmul.f32 %v9110_v40, %v679_v7  ;;  %v758_v21 = vmul.f32 %v9081_v27, %v684_v61  ;;  %v1330_v9 = vrot.slane %v12521_v11, 1 }
 0x318   :  { %v1812_v33 = vrot.slane %v12524_v24, 2  ;;  %v2446_v15 = vrot.slane %v2196_v44, 1  ;;  %v2093_v37 = vadd.f32 %v2029_v25, %v1944_v39  ;;  %v16518_v62 = vrot.slane %v12531_v56, 2 }
 0x319   :  { %v12549_v28 = vmul.f32 %v12130_v63, %v684_v61  ;;  %v3314_v8 = vmul.f32 %v9192_v20, %v679_v7  ;;  %v12552_v59 = vadd.f32 %v3148_v57, %v3063_v13  ;;  %v2924_v0 = vsel %vm1660_vm4, %v2922_v34, %v2923_v29 }
 0x31a   :  { %v1076_v32 = vmul.f32 %v9055_v14, %v679_v7  ;;  %v2677_v11 = vmul.f32 %v9115_v41, %v679_v7  ;;  %v16804_v24 = vrot.slane %v12341_v6, 1  ;;  %v16517_v39 = vrot.slane %v12539_v16, 1 }
 0x31b   :  { %v3062_v25 = vadd.f32 %v2924_v0, %v2581_v26  ;;  %v2092_v44 = vadd.f32 %v2028_v22, %v1943_v2  ;;  %v1558_v61 = vmul.f32 %v9068_v19, %v679_v7  ;;  %v2448_v10 = vsel %vm1178_vm3, %v2446_v15, %v2447_v5 }
 0x31c   :  { %v2450_v38 = vsel %vm1178_vm3, %v2447_v5, %v16804_v24  ;;  %v3147_v13 = vmul.f32 %v9222_v36, %v679_v7  ;;  %v16805_v29 = vrot.slane %v12333_v54, 1  ;;  %v3562_v57 = vrot.slane %v3314_v8, 1  ;;  %v12575_v5 = vpop.permute.xlu2 %3226 }
 0x31d   :  { %v12568_v53 = vmul.f32 %v12130_v63, %v679_v7  ;;  %v12572_v24 = vmul.f32 %v9093_v31, %v12545_v48  ;;  %v1329_v2 = vrot.slane %v1076_v32, 1  ;;  %v2927_v22 = vrot.slane %v2677_v11, 2  ;;  %16806 = vst [vmem:[#allocation65_spill] sm:$0xff] %v12575_v5 }
 0x31e   :  { %v1333_v34 = vsel %vm1178_vm3, %v1330_v9, %v16805_v29  ;;  %v16807_v15 = vrot.slane %v12336_v23, 2  ;;  %v757_v8 = vmul.f32 %v9081_v27, %v679_v7  ;;  %v2583_v0 = vadd.f32 %v2448_v10, %v2092_v44  ;;  %v12581_v29 = vpop.permute.xlu0 %688 }
 0x31f   :  { %v1464_v6 = vadd.f32 %v1333_v34, %v758_v21  ;;  %v2031_v34 = vmul.f32 %v9110_v40, %v12545_v48  ;;  %v12585_v30 = vadd.f32 %v2450_v38, %v2093_v37  ;;  %v1811_v26 = vrot.slane %v1558_v61, 2  ;;  %v1967_v61 = vpop.permute.xlu1 %1966 }
 0x320   :  { %v1815_v54 = vsel %vm1660_vm4, %v1812_v33, %v16807_v15  ;;  %v3211_v32 = vadd.f32 %v3147_v13, %v3062_v25  ;;  %v2452_v11 = vrot.slane %v12572_v24, 1  ;;  %v3564_v23 = vsel %vm1178_vm3, %v3562_v57, %v16517_v39 }
 0x321   :  { %v1946_v21 = vadd.f32 %v1815_v54, %v1464_v6  ;;  %v12594_v7 = vmul.f32 %v9192_v20, %v12575_v5  ;;  %v12598_v44 = vmul.f32 %v9192_v20, %v12545_v48  ;;  %v12602_v37 = vmul.f32 %v12130_v63, %v12545_v48 }
 0x322   :  { %v2929_v38 = vsel %vm1660_vm4, %v2927_v22, %v16518_v62  ;;  %v12609_v25 = vmul.f32 %v9115_v41, %v12545_v48  ;;  %v1331_v10 = vsel %vm1178_vm3, %v1329_v2, %v1330_v9  ;;  %v3149_v57 = vmul.f32 %v9222_v36, %v12581_v29 }
 0x323   :  { %16808 = vst [vmem:[#allocation66_spill] sm:$0xff] %v12594_v7  ;;  %v3064_v13 = vadd.f32 %v2929_v38, %v2583_v0  ;;  %v2095_v6 = vadd.f32 %v2031_v34, %v1946_v21  ;;  %v1463_v24 = vadd.f32 %v1331_v10, %v757_v8  ;;  %v12616_v54 = vmul.f32 %v9192_v20, %v12581_v29 }
 0x324   :  { %16809 = vst [vmem:[#allocation67_spill] sm:$0xff] %v12602_v37  ;;  %v12620_v22 = vmul.f32 %v12130_v63, %v12581_v29  ;;  %v16811_v15 = vrot.slane %v12423_v58, 1  ;;  %v2199_v9 = vmul.f32 %v9093_v31, %v12581_v29  ;;  %v12627_v2 = vadd.f32 %v3564_v23, %v3211_v32 }
 0x325   :  { %v12631_v8 = vmul.f32 %v9222_v36, %v12545_v48  ;;  %v12635_v21 = vmul.f32 %v9192_v20, %v1967_v61  ;;  %v2933_v58 = vrot.slane %v12609_v25, 2  ;;  %v1813_v38 = vsel %vm1660_vm4, %v1811_v26, %v1812_v33 }
 0x326   :  { %16810 = vst [vmem:[#allocation68_spill] sm:$0xff] %v12620_v22  ;;  %v2455_v39 = vsel %vm1178_vm3, %v2452_v11, %v16811_v15  ;;  %v12640_v15 = vmul.f32 %v9093_v31, %v1967_v61  ;;  %v12644_v23 = vmul.f32 %v9115_v41, %v1967_v61  ;;  %v1945_v10 = vadd.f32 %v1813_v38, %v1463_v24  ;;  %v1962_v26 = vpop.permute.xlu0 %1961 }
 0x327   :  { %v2586_v32 = vadd.f32 %v2455_v39, %v2095_v6  ;;  %v2030_v0 = vmul.f32 %v9110_v40, %v12581_v29  ;;  %v12648_v62 = vadd.f32 %v3149_v57, %v3064_v13  ;;  %v2451_v25 = vrot.slane %v2199_v9, 1 }
 0x328   :  { %v2033_v5 = vmul.f32 %v9110_v40, %v1967_v61  ;;  %v3152_v7 = vmul.f32 %v9222_v36, %v1967_v61  ;;  %v3573_v33 = vrot.slane %v12635_v21, 1  ;;  %v12656_v39 = vmul.f32 %v12130_v63, %v1967_v61 }
 0x329   :  { %v16812_v6 = vrot.slane %v12426_v35, 2  ;;  %v2680_v57 = vmul.f32 %v9115_v41, %v12581_v29  ;;  %v1080_v24 = vmul.f32 %v9055_v14, %v12545_v48  ;;  %v1562_v9 = vmul.f32 %v9068_v19, %v12545_v48 }
 0x32a   :  { %v2457_v21 = vrot.slane %v12640_v15, 1  ;;  %v2938_v61 = vrot.slane %v12644_v23, 2  ;;  %v2094_v34 = vadd.f32 %v2030_v0, %v1945_v10  ;;  %v2453_v17 = vsel %vm1178_vm3, %v2451_v25, %v2452_v11 }
 0x32b   :  { %v2936_v13 = vsel %vm1660_vm4, %v2933_v58, %v16812_v6  ;;  %v3320_v35 = vmul.f32 %v9192_v20, %v1962_v26  ;;  %v1335_v6 = vrot.slane %v1080_v24, 1  ;;  %v1817_v3 = vrot.slane %v1562_v9, 2 }
 0x32c   :  { %v3067_v38 = vadd.f32 %v2936_v13, %v2586_v32  ;;  %v16813_v22 = vrot.slane %v12499_v47, 1  ;;  %v4054_v42 = vrot.slane %v12656_v39, 2  ;;  %v2032_v32 = vmul.f32 %v9110_v40, %v1962_v26 }
 0x32d   :  { %v760_v15 = vmul.f32 %v9081_v27, %v12545_v48  ;;  %v2932_v23 = vrot.slane %v2680_v57, 2  ;;  %v2202_v0 = vmul.f32 %v9093_v31, %v1962_v26  ;;  %v16814_v11 = vrot.slane %v12413_v43, 1 }
 0x32e   :  { %v12674_v37 = vsel %vm1178_vm3, %v3573_v33, %v16813_v22  ;;  %v1079_v47 = vmul.f32 %v9055_v14, %v12581_v29  ;;  %v2585_v25 = vadd.f32 %v2453_v17, %v2094_v34  ;;  %v2683_v22 = vmul.f32 %v9115_v41, %v1962_v26  ;;  %v3088_v14 = vpop.permute.xlu1 %3087 }
 0x32f   :  { %v1338_v10 = vsel %vm1178_vm3, %v1335_v6, %v16814_v11  ;;  %v1561_v40 = vmul.f32 %v9068_v19, %v12581_v29  ;;  %v12689_v24 = vadd.f32 %v3152_v7, %v3067_v38  ;;  %v3572_v48 = vrot.slane %v3320_v35, 1 }
 0x330   :  { %v1466_v13 = vadd.f32 %v1338_v10, %v760_v15  ;;  %v16815_v57 = vrot.slane %v12416_v51, 2  ;;  %v1334_v43 = vrot.slane %v1079_v47, 1  ;;  %v12695_v9 = vmul.f32 %v12130_v63, %v1962_v26 }
 0x331   :  { %v759_v41 = vmul.f32 %v9081_v27, %v12581_v29  ;;  %v1816_v17 = vrot.slane %v1561_v40, 2  ;;  %v2934_v34 = vsel %vm1660_vm4, %v2932_v23, %v2933_v58  ;;  %v2456_v19 = vrot.slane %v2202_v0, 1 }
 0x332   :  { %v1820_v31 = vsel %vm1660_vm4, %v1817_v3, %v16815_v57  ;;  %v3151_v7 = vmul.f32 %v9222_v36, %v1962_v26  ;;  %v1336_v38 = vsel %vm1178_vm3, %v1334_v43, %v1335_v6  ;;  %v3066_v51 = vadd.f32 %v2934_v34, %v2585_v25 }
 0x333   :  { %v1948_v11 = vadd.f32 %v1820_v31, %v1466_v13  ;;  %v2937_v35 = vrot.slane %v2683_v22, 2  ;;  %v1465_v15 = vadd.f32 %v1336_v38, %v759_v41  ;;  %v16816_v10 = vrot.slane %v12344_v18, 2 }
 0x334   :  { %v16817_v47 = vrot.slane %v12531_v56, 2  ;;  %v16818_v57 = vrot.slane %v12491_v52, 1  ;;  %v12711_v29 = vmul.f32 %v9192_v20, %v3088_v14  ;;  %v1818_v58 = vsel %vm1660_vm4, %v1816_v17, %v1817_v3  ;;  %v3083_v17 = vpop.permute.xlu0 %3082 }
 0x335   :  { %v3574_v6 = vsel %vm1178_vm3, %v3572_v48, %v3573_v33  ;;  %v4053_v23 = vrot.slane %v12695_v9, 2  ;;  %v2097_v18 = vadd.f32 %v2033_v5, %v1948_v11  ;;  %v1947_v0 = vadd.f32 %v1818_v58, %v1465_v15 }
 0x336   :  { %v2931_v13 = vsel %vm1660_vm4, %v16817_v47, %v16816_v10  ;;  %v2460_v27 = vsel %vm1178_vm3, %v2457_v21, %v16818_v57  ;;  %v16819_v56 = vrot.slane %v12496_v4, 2  ;;  %v3154_v52 = vmul.f32 %v9222_v36, %v3088_v14 }
 0x337   :  { %v3065_v26 = vadd.f32 %v2931_v13, %v12585_v30  ;;  %v2458_v22 = vsel %vm1178_vm3, %v2456_v19, %v2457_v21  ;;  %v16820_v40 = vrot.slane %v12348_v46, 1  ;;  %v16821_v3 = vrot.slane %v12539_v16, 1  ;;  %v16834_v13 = vld [vmem:[#allocation68_spill] sm:$0xff] }
 0x338   :  { %v2941_v25 = vsel %vm1660_vm4, %v2938_v61, %v16819_v56  ;;  %v3215_v31 = vadd.f32 %v3151_v7, %v3066_v51  ;;  %v12728_v33 = vmul.f32 %v12130_v63, %v3088_v14  ;;  %v2096_v5 = vadd.f32 %v2032_v32, %v1947_v0 }
 0x339   :  { %v3566_v30 = vsel %vm1178_vm3, %v16821_v3, %v16820_v40  ;;  %v16822_v48 = vrot.slane %v12598_v44, 1  ;;  %v16823_v4 = vrot.slane %v12616_v54, 1  ;;  %v3578_v9 = vrot.slane %v12711_v29, 1  ;;  %v16837_v3 = vld [vmem:[#allocation66_spill] sm:$0xff] }
 0x33a   :  { %v2939_v21 = vsel %vm1660_vm4, %v2937_v35, %v2938_v61  ;;  %v3214_v46 = vadd.f32 %v12631_v8, %v3065_v26  ;;  %v4294_v16 = vadd.f32 %v12352_v12, %v12400_v1  ;;  %v2588_v11 = vadd.f32 %v2460_v27, %v2097_v18 }
 0x33b   :  { %v3569_v43 = vsel %vm1178_vm3, %v16823_v4, %v16822_v48  ;;  %v2587_v41 = vadd.f32 %v2458_v22, %v2096_v5  ;;  %v16824_v63 = vrot.slane %v12431_v55, 1  ;;  %v16825_v32 = vmov %v16822_v48  ;;  %v16836_v22 = vld [vmem:[#allocation63_spill] sm:$0xff]  ;;  %v16838_v4 = vld [vmem:[#allocation61_spill] sm:$0xff] }
 0x33c   :  { %v3703_v54 = vadd.f32 %v3566_v30, %v12552_v59  ;;  %v3704_v34 = vadd.f32 %v3569_v43, %v12648_v62  ;;  %v16826_v61 = vrot.slane %v12549_v28, 2  ;;  %v16827_v8 = vrot.slane %v12568_v53, 2  ;;  %v16828_v62 = vld [vmem:[#allocation64_spill] sm:$0xff] }
 0x33d   :  { %v3571_v14 = vsel %vm1178_vm3, %v16825_v32, %v16824_v63  ;;  %v12754_v12 = vadd.f32 %v12507_v45, %v12502_v60  ;;  %v4296_v1 = vadd.f32 %v12460_v49, %v4294_v16  ;;  %v3068_v55 = vadd.f32 %v2939_v21, %v2587_v41  ;;  %v16829_v53 = vld [vmem:[#allocation60_spill] sm:$0xff] }
 0x33e   :  { %v4045_v19 = vsel %vm1660_vm4, %v16827_v8, %v16826_v61  ;;  %v4297_v59 = vsel %vm4191_vm2, %v12428_v50, 0.0  ;;  %v4299_v7 = vsel %vm4191_vm2, %v16828_v62, 0.0  ;;  %v3706_v38 = vadd.f32 %v3574_v6, %v3215_v31  ;;  %v8628_v28 = vld [vmem:[%s16435_s1 + $0x8] ss:$0 sm:$0xff] }
 0x33f   :  { %v12758_v44 = vadd.f32 %v4045_v19, %v12627_v2  ;;  %v16830_v51 = vrot.slane %v16829_v53, 2  ;;  %v16831_v35 = vmov %v16826_v61  ;;  %v4298_v45 = vadd.f32 %v4297_v59, %v4296_v1  ;;  %v16832_v2 = vld [vmem:[#allocation67_spill] sm:$0xff] }
 0x340   :  { %v3153_v49 = vmul.f32 %v9222_v36, %v3083_v17  ;;  %v3069_v15 = vadd.f32 %v2941_v25, %v2588_v11  ;;  %v3705_v10 = vadd.f32 %v3571_v14, %v3214_v46  ;;  %v16833_v47 = vrot.slane %v16832_v2, 2 }
 0x341   :  { %v4047_v60 = vsel %vm1660_vm4, %v16831_v35, %v16830_v51  ;;  %v16835_v57 = vrot.slane %v16834_v13, 2  ;;  %v3323_v29 = vmul.f32 %v9192_v20, %v3083_v17  ;;  %v4300_v6 = vadd.f32 %v4299_v7, %v4298_v45 }
 0x342   :  { %v4184_v58 = vadd.f32 %v4047_v60, %v3703_v54  ;;  %v3804_v18 = vmul.f32 %v8628_v28, %v3083_v17  ;;  %v4301_v36 = vsel %vm4191_vm2, %v12754_v12, 0.0  ;;  %v4303_v0 = vsel %vm4191_vm2, %v12758_v44, 0.0  ;;  %v16841_v54 = vld [vmem:[#allocation65_spill] sm:$0xff] }
 0x343   :  { %v4050_v27 = vsel %vm1660_vm4, %v16835_v57, %v16833_v47  ;;  %v3217_v56 = vadd.f32 %v3153_v49, %v3068_v55  ;;  %v3577_v25 = vrot.slane %v3323_v29, 1  ;;  %v4056_v40 = vrot.slane %v16836_v22, 2 }
 0x344   :  { %v4185_v26 = vadd.f32 %v4050_v27, %v3704_v34  ;;  %v3580_v20 = vrot.slane %v16837_v3, 1  ;;  %v3707_v30 = vadd.f32 %v12674_v37, %v12689_v24  ;;  %v4302_v31 = vadd.f32 %v4301_v36, %v4300_v6  ;;  %v16848_v3 = vld [vmem:[#allocation11_spill] sm:$0xff] }
 0x345   :  { %v4055_v5 = vsel %vm1660_vm4, %v4053_v23, %v4054_v42  ;;  %v4059_v48 = vrot.slane %v12728_v33, 2  ;;  %v16839_v43 = vrot.slane %v16838_v4, 2  ;;  %v16840_v21 = vmov %v16833_v47  ;;  %v16850_v4 = vld [vmem:[#allocation13_spill] sm:$0xff] }
 0x346   :  { %v3579_v16 = vsel %vm1178_vm3, %v3577_v25, %v3578_v9  ;;  %v4187_v11 = vadd.f32 %v4055_v5, %v3706_v38  ;;  %v4304_v63 = vadd.f32 %v4303_v0, %v4302_v31  ;;  %v4058_v32 = vrot.slane %v3804_v18, 2 }
 0x347   :  { %v4052_v46 = vsel %vm1660_vm4, %v16840_v21, %v16839_v43  ;;  %v3218_v37 = vadd.f32 %v3154_v52, %v3069_v15  ;;  %v4305_v24 = vsel %vm4191_vm2, %v4184_v58, 0.0  ;;  %v4307_v14 = vsel %vm4191_vm2, %v4185_v26, 0.0 }
 0x348   :  { %v4186_v41 = vadd.f32 %v4052_v46, %v3705_v10  ;;  %v3708_v23 = vadd.f32 %v3579_v16, %v3217_v56  ;;  %v3806_v33 = vmul.f32 %v8628_v28, %v16841_v54  ;;  %v3581_v17 = vsel %vm1178_vm3, %v3578_v9, %v3580_v20  ;;  %v16851_v46 = vld [vmem:[#allocation12_spill] sm:$0xff] }
 0x349   :  { %v4306_v34 = vadd.f32 %v4305_v24, %v4304_v63  ;;  %v4057_v61 = vsel %vm1660_vm4, %v4054_v42, %v4056_v40  ;;  %v4060_v1 = vsel %vm1660_vm4, %v4058_v32, %v4059_v48  ;;  %v3709_v55 = vadd.f32 %v3581_v17, %v3218_v37  ;;  %v16852_v37 = vld [vmem:[#allocation15_spill] sm:$0xff] }
 0x34a   :  { %v4188_v8 = vadd.f32 %v4057_v61, %v3707_v30  ;;  %v4309_v52 = vsel %vm4191_vm2, %v4186_v41, 0.0  ;;  %v4311_v59 = vsel %vm4191_vm2, %v4187_v11, 0.0  ;;  %v4189_v7 = vadd.f32 %v4060_v1, %v3708_v23  ;;  %v16849_v30 = vld [vmem:[#allocation10_spill] sm:$0xff] }
 0x34b   :  { %v4308_v19 = vadd.f32 %v4307_v14, %v4306_v34  ;;  %v4061_v38 = vrot.slane %v3806_v33, 2  ;;  %v16853_v33 = vld [vmem:[#allocation14_spill] sm:$0xff] }
 0x34c   :  { %v4313_v39 = vsel %vm4191_vm2, %v4188_v8, 0.0  ;;  %v4315_v42 = vsel %vm4191_vm2, %v4189_v7, 0.0 }
 0x34d   :  { %v4310_v53 = vadd.f32 %v4309_v52, %v4308_v19  ;;  %v4062_v51 = vsel %vm1660_vm4, %v4059_v48, %v4061_v38  ;;  %v16854_v19 = vld [vmem:[#allocation22_spill] sm:$0xff] }
 0x34e   :  { %v4190_v35 = vadd.f32 %v4062_v51, %v3709_v55 }
 0x34f   :  { %v4312_v9 = vadd.f32 %v4311_v59, %v4310_v53 }
 0x350   :  { %v4317_v49 = vsel %vm4191_vm2, %v4190_v35, 0.0 }
 0x351   :  { %v4314_v60 = vadd.f32 %v4313_v39, %v4312_v9 }
 0x353   :  { %v4316_v45 = vadd.f32 %v4315_v42, %v4314_v60 }
 0x355   :  { %v4318_v15 = vadd.f32 %v4317_v49, %v4316_v45  ;;  %v16859_v49 = vld [vmem:[#allocation16_spill] sm:$0xff] }
 0x357   :  { %v4319_v10 = vrot.slane %v4318_v15, 4 }
 0x359   :  { %v4320_v2 = vadd.f32 %v4319_v10, %v4318_v15 }
 0x35b   :  { %v4321_v47 = vrot.slane %v4320_v2, 2 }
 0x35d   :  { %v4322_v13 = vadd.f32 %v4321_v47, %v4320_v2 }
 0x35f   :  { %v4323_v57 = vrot.slane %v4322_v13, 1 }
 0x361   :  { %v4324_v27 = vadd.f32 %v4323_v57, %v4322_v13  ;;  %v16861_v13 = vld [vmem:[#allocation20_spill] sm:$0xff] }
 0x363   :  { %v12811_v29 = vmul.f32 0.001953125, %v4324_v27 }
 0x365   :  { %v12815_v6 = vsub.f32 %v12428_v50, %v12811_v29  ;;  %v12819_v28 = vsub.f32 %v16828_v62, %v12811_v29  ;;  %v12823_v18 = vsub.f32 %v12754_v12, %v12811_v29  ;;  %v12827_v36 = vsub.f32 %v12758_v44, %v12811_v29 }
 0x366   :  { %v12830_v0 = vsub.f32 %v4184_v58, %v12811_v29  ;;  %v12833_v56 = vsub.f32 %v4185_v26, %v12811_v29  ;;  %v12836_v50 = vsub.f32 %v4186_v41, %v12811_v29  ;;  %v12839_v62 = vsub.f32 %v4187_v11, %v12811_v29  ;;  %v16846_v58 = vld [vmem:[#allocation9_spill] sm:$0xff]  ;;  %v16847_v26 = vld [vmem:[#allocation8_spill] sm:$0xff] }
 0x367   :  { %16842 = vst [vmem:[#allocation64_spill] sm:$0xff] %v12815_v6  ;;  %v12842_v25 = vsub.f32 %v4188_v8, %v12811_v29  ;;  %v12845_v12 = vsub.f32 %v4189_v7, %v12811_v29  ;;  %v12848_v44 = vsub.f32 %v4190_v35, %v12811_v29  ;;  %v12852_v22 = vsub.f32 %v16846_v58, %v12811_v29  ;;  %v16855_v7 = vld [vmem:[#allocation18_spill] sm:$0xff]  ;;  %v16857_v35 = vld [vmem:[#allocation17_spill] sm:$0xff] }
 0x368   :  { %16843 = vst [vmem:[#allocation60_spill] sm:$0xff] %v12819_v28  ;;  %v12856_v40 = vsub.f32 %v16847_v26, %v12811_v29  ;;  %v12860_v20 = vsub.f32 %v16848_v3, %v12811_v29  ;;  %v12864_v31 = vsub.f32 %v16849_v30, %v12811_v29  ;;  %v12872_v43 = vsub.f32 %v16850_v4, %v12811_v29  ;;  %v16863_v3 = vld [vmem:[#allocation19_spill] sm:$0xff] }
 0x369   :  { %16844 = vst [vmem:[#allocation67_spill] sm:$0xff] %v12839_v62  ;;  %v4390_v5 = vmul.f32 %v12852_v22, %v12852_v22  ;;  %v12878_v16 = vsub.f32 %v16851_v46, %v12811_v29  ;;  %v12886_v24 = vsub.f32 %v16852_v37, %v12811_v29  ;;  %v12893_v17 = vsub.f32 %v16853_v33, %v12811_v29  ;;  %v16869_v33 = vld [vmem:[#allocation25_spill] sm:$0xff] }
 0x36a   :  { %16845 = vst [vmem:[#allocation68_spill] sm:$0xff] %v12848_v44  ;;  %v4391_v48 = vmul.f32 %v12856_v40, %v12856_v40  ;;  %v4392_v21 = vmul.f32 %v12860_v20, %v12860_v20  ;;  %v4393_v11 = vmul.f32 %v12864_v31, %v12864_v31  ;;  %v4394_v14 = vmul.f32 %v12872_v43, %v12872_v43 }
 0x36b   :  { %v4454_v41 = vsel %vm4191_vm2, %v4390_v5, 0.0  ;;  %v4395_v34 = vmul.f32 %v12878_v16, %v12878_v16  ;;  %v12900_v1 = vsub.f32 %v16854_v19, %v12811_v29  ;;  %v4396_v55 = vmul.f32 %v12886_v24, %v12886_v24 }
 0x36c   :  { %v4455_v63 = vsel %vm4191_vm2, %v4391_v48, 0.0  ;;  %v4457_v23 = vsel %vm4191_vm2, %v4392_v21, 0.0  ;;  %v4459_v61 = vsel %vm4191_vm2, %v4393_v11, 0.0  ;;  %v4461_v52 = vsel %vm4191_vm2, %v4394_v14, 0.0  ;;  %v16865_v21 = vld [vmem:[#allocation23_spill] sm:$0xff] }
 0x36d   :  { %v4456_v32 = vadd.f32 %v4455_v63, %v4454_v41  ;;  %v12907_v38 = vsub.f32 %v16855_v7, %v12811_v29  ;;  %v4397_v53 = vmul.f32 %v12893_v17, %v12893_v17  ;;  %v4463_v51 = vsel %vm4191_vm2, %v4395_v34, 0.0 }
 0x36e   :  { %v12914_v39 = vsub.f32 %v16857_v35, %v12811_v29  ;;  %v4398_v42 = vmul.f32 %v12900_v1, %v12900_v1  ;;  %v4465_v60 = vsel %vm4191_vm2, %v4396_v55, 0.0  ;;  %v12921_v15 = vsub.f32 %v16859_v49, %v12811_v29  ;;  %v16871_v55 = vld [vmem:[#allocation24_spill] sm:$0xff] }
 0x36f   :  { %v4458_v54 = vadd.f32 %v4457_v23, %v4456_v32  ;;  %16856 = vst [vmem:[#allocation63_spill] sm:$0xff] %v12907_v38  ;;  %v4399_v10 = vmul.f32 %v12907_v38, %v12907_v38  ;;  %v4467_v2 = vsel %vm4191_vm2, %v4397_v53, 0.0  ;;  %v12928_v57 = vsub.f32 %v16861_v13, %v12811_v29  ;;  %v16867_v32 = vld [vmem:[#allocation21_spill] sm:$0xff] }
 0x370   :  { %16858 = vst [vmem:[#allocation66_spill] sm:$0xff] %v12914_v39  ;;  %v4400_v27 = vmul.f32 %v12914_v39, %v12914_v39  ;;  %v4469_v58 = vsel %vm4191_vm2, %v4398_v42, 0.0  ;;  %v12935_v30 = vsub.f32 %v16863_v3, %v12811_v29  ;;  %v4401_v5 = vmul.f32 %v12921_v15, %v12921_v15  ;;  %v16877_v13 = vld [vmem:[#allocation29_spill] sm:$0xff] }
 0x371   :  { %v4460_v8 = vadd.f32 %v4459_v61, %v4458_v54  ;;  %16860 = vst [vmem:[#allocation61_spill] sm:$0xff] %v12921_v15  ;;  %v4471_v48 = vsel %vm4191_vm2, %v4399_v10, 0.0  ;;  %v12942_v46 = vsub.f32 %v16865_v21, %v12811_v29  ;;  %v4402_v11 = vmul.f32 %v12928_v57, %v12928_v57 }
 0x372   :  { %16862 = vst [vmem:[#allocation65_spill] sm:$0xff] %v12928_v57  ;;  %v4473_v41 = vsel %vm4191_vm2, %v4400_v27, 0.0  ;;  %v12949_v37 = vsub.f32 %v16867_v32, %v12811_v29  ;;  %v4403_v14 = vmul.f32 %v12935_v30, %v12935_v30  ;;  %v4475_v23 = vsel %vm4191_vm2, %v4401_v5, 0.0  ;;  %v16878_v5 = vld [vmem:[#allocation28_spill] sm:$0xff] }
 0x373   :  { %v4462_v59 = vadd.f32 %v4461_v52, %v4460_v8  ;;  %16864 = vst [vmem:[#allocation9_spill] sm:$0xff] %v12935_v30  ;;  %v12956_v34 = vsub.f32 %v16869_v33, %v12811_v29  ;;  %v4404_v61 = vmul.f32 %v12942_v46, %v12942_v46  ;;  %v4477_v8 = vsel %vm4191_vm2, %v4402_v11, 0.0 }
 0x374   :  { %16866 = vst [vmem:[#allocation8_spill] sm:$0xff] %v12942_v46  ;;  %v12963_v52 = vsub.f32 %v16871_v55, %v12811_v29  ;;  %v4479_v7 = vsel %vm4191_vm2, %v4403_v14, 0.0  ;;  %v12984_v27 = vsub.f32 %v16877_v13, %v12811_v29  ;;  %v16881_v55 = vld [vmem:[#allocation34_spill] sm:$0xff] }
 0x375   :  { %v4464_v9 = vadd.f32 %v4463_v51, %v4462_v59  ;;  %16868 = vst [vmem:[#allocation11_spill] sm:$0xff] %v12949_v37  ;;  %v4405_v59 = vmul.f32 %v12949_v37, %v12949_v37  ;;  %v16873_v51 = vld [vmem:[#allocation27_spill] sm:$0xff]  ;;  %v4406_v35 = vmul.f32 %v12956_v34, %v12956_v34  ;;  %v4481_v42 = vsel %vm4191_vm2, %v4404_v61, 0.0 }
 0x376   :  { %16870 = vst [vmem:[#allocation10_spill] sm:$0xff] %v12956_v34  ;;  %v4407_v10 = vmul.f32 %v12963_v52, %v12963_v52  ;;  %v4410_v32 = vmul.f32 %v12984_v27, %v12984_v27 }
 0x377   :  { %v4466_v45 = vadd.f32 %v4465_v60, %v4464_v9  ;;  %16872 = vst [vmem:[#allocation13_spill] sm:$0xff] %v12963_v52  ;;  %v12970_v9 = vsub.f32 %v16873_v51, %v12811_v29 }
 0x378   :  { %v4487_v21 = vsel %vm4191_vm2, %v4407_v10, 0.0 }
 0x379   :  { %v4468_v47 = vadd.f32 %v4467_v2, %v4466_v45  ;;  %16874 = vst [vmem:[#allocation12_spill] sm:$0xff] %v12970_v9  ;;  %v16875_v45 = vld [vmem:[#allocation26_spill] sm:$0xff]  ;;  %v4483_v2 = vsel %vm4191_vm2, %v4405_v59, 0.0  ;;  %v13012_v59 = vsub.f32 %v16881_v55, %v12811_v29 }
 0x37a   :  { %v12977_v49 = vsub.f32 %v16875_v45, %v12811_v29 }
 0x37b   :  { %v4470_v26 = vadd.f32 %v4469_v58, %v4468_v47  ;;  %v4408_v58 = vmul.f32 %v12970_v9, %v12970_v9  ;;  %v4414_v13 = vmul.f32 %v13012_v59, %v13012_v59 }
 0x37c   :  { %16876 = vst [vmem:[#allocation15_spill] sm:$0xff] %v12977_v49 }
 0x37d   :  { %v4472_v4 = vadd.f32 %v4471_v48, %v4470_v26  ;;  %v4485_v26 = vsel %vm4191_vm2, %v4406_v35, 0.0  ;;  %v12991_v48 = vsub.f32 %v16878_v5, %v12811_v29  ;;  %v4489_v14 = vsel %vm4191_vm2, %v4408_v58, 0.0  ;;  %v16882_v35 = vld [vmem:[#allocation40_spill] sm:$0xff] }
 0x37f   :  { %v4474_v63 = vadd.f32 %v4473_v41, %v4472_v4  ;;  %v4409_v4 = vmul.f32 %v12977_v49, %v12977_v49  ;;  %v16879_v41 = vld [vmem:[#allocation32_spill] sm:$0xff]  ;;  %v4411_v61 = vmul.f32 %v12991_v48, %v12991_v48 }
 0x381   :  { %v4476_v54 = vadd.f32 %v4475_v23, %v4474_v63  ;;  %v12998_v63 = vsub.f32 %v16879_v41, %v12811_v29  ;;  %v4495_v45 = vsel %vm4191_vm2, %v4411_v61, 0.0  ;;  %v16885_v41 = vld [vmem:[#allocation41_spill] sm:$0xff]  ;;  %v16886_v61 = vld [vmem:[#allocation42_spill] sm:$0xff] }
 0x383   :  { %v4478_v19 = vadd.f32 %v4477_v8, %v4476_v54  ;;  %v16880_v54 = vld [vmem:[#allocation33_spill] sm:$0xff]  ;;  %v4491_v8 = vsel %vm4191_vm2, %v4409_v4, 0.0 }
 0x384   :  { %v13005_v33 = vsub.f32 %v16880_v54, %v12811_v29 }
 0x385   :  { %v4480_v53 = vadd.f32 %v4479_v7, %v4478_v19  ;;  %v4412_v7 = vmul.f32 %v12998_v63, %v12998_v63 }
 0x387   :  { %v4482_v60 = vadd.f32 %v4481_v42, %v4480_v53  ;;  %v4493_v53 = vsel %vm4191_vm2, %v4410_v32, 0.0  ;;  %v13019_v42 = vsub.f32 %v16882_v35, %v12811_v29  ;;  %v4497_v58 = vsel %vm4191_vm2, %v4412_v7, 0.0 }
 0x388   :  { %v13040_v32 = vsub.f32 %v16885_v41, %v12811_v29 }
 0x389   :  { %v4484_v47 = vadd.f32 %v4483_v2, %v4482_v60  ;;  %v4413_v60 = vmul.f32 %v13005_v33, %v13005_v33  ;;  %v16883_v2 = vld [vmem:[#allocation30_spill] sm:$0xff]  ;;  %v4415_v4 = vmul.f32 %v13019_v42, %v13019_v42 }
 0x38a   :  { %v4418_v35 = vmul.f32 %v13040_v32, %v13040_v32 }
 0x38b   :  { %v4486_v3 = vadd.f32 %v4485_v26, %v4484_v47  ;;  %v13026_v47 = vsub.f32 %v16883_v2, %v12811_v29  ;;  %v4503_v55 = vsel %vm4191_vm2, %v4415_v4, 0.0 }
 0x38d   :  { %v4488_v11 = vadd.f32 %v4487_v21, %v4486_v3  ;;  %v16884_v3 = vld [vmem:[#allocation31_spill] sm:$0xff]  ;;  %v4499_v21 = vsel %vm4191_vm2, %v4413_v60, 0.0 }
 0x38e   :  { %v13033_v5 = vsub.f32 %v16884_v3, %v12811_v29  ;;  %v16889_v3 = vld [vmem:[#allocation38_spill] sm:$0xff] }
 0x38f   :  { %v4490_v23 = vadd.f32 %v4489_v14, %v4488_v11  ;;  %v4416_v14 = vmul.f32 %v13026_v47, %v13026_v47  ;;  %v13068_v4 = vsub.f32 %v16889_v3, %v12811_v29  ;;  %v16893_v3 = vld [vmem:[#allocation45_spill] sm:$0xff] }
 0x391   :  { %v4492_v19 = vadd.f32 %v4491_v8, %v4490_v23  ;;  %v4501_v23 = vsel %vm4191_vm2, %v4414_v13, 0.0  ;;  %v13047_v8 = vsub.f32 %v16886_v61, %v12811_v29  ;;  %v4505_v60 = vsel %vm4191_vm2, %v4416_v14, 0.0  ;;  %v16890_v14 = vld [vmem:[#allocation37_spill] sm:$0xff] }
 0x393   :  { %v4494_v51 = vadd.f32 %v4493_v53, %v4492_v19  ;;  %v4417_v19 = vmul.f32 %v13033_v5, %v13033_v5  ;;  %v16887_v53 = vld [vmem:[#allocation36_spill] sm:$0xff]  ;;  %v4419_v13 = vmul.f32 %v13047_v8, %v13047_v8 }
 0x395   :  { %v4496_v10 = vadd.f32 %v4495_v45, %v4494_v51  ;;  %v13054_v51 = vsub.f32 %v16887_v53, %v12811_v29  ;;  %v4511_v61 = vsel %vm4191_vm2, %v4419_v13, 0.0  ;;  %v4422_v53 = vmul.f32 %v13068_v4, %v13068_v4 }
 0x397   :  { %v4498_v26 = vadd.f32 %v4497_v58, %v4496_v10  ;;  %v16888_v10 = vld [vmem:[#allocation35_spill] sm:$0xff]  ;;  %v4507_v58 = vsel %vm4191_vm2, %v4417_v19, 0.0 }
 0x398   :  { %v13061_v2 = vsub.f32 %v16888_v10, %v12811_v29 }
 0x399   :  { %v4500_v11 = vadd.f32 %v4499_v21, %v4498_v26  ;;  %v4420_v21 = vmul.f32 %v13054_v51, %v13054_v51 }
 0x39b   :  { %v4502_v54 = vadd.f32 %v4501_v23, %v4500_v11  ;;  %v4509_v11 = vsel %vm4191_vm2, %v4418_v35, 0.0  ;;  %v13075_v23 = vsub.f32 %v16890_v14, %v12811_v29  ;;  %v4513_v35 = vsel %vm4191_vm2, %v4420_v21, 0.0 }
 0x39c   :  { %v4517_v21 = vsel %vm4191_vm2, %v4422_v53, 0.0 }
 0x39d   :  { %v4504_v7 = vadd.f32 %v4503_v55, %v4502_v54  ;;  %v4421_v54 = vmul.f32 %v13061_v2, %v13061_v2  ;;  %v16891_v55 = vld [vmem:[#allocation44_spill] sm:$0xff] }
 0x39f   :  { %v4506_v45 = vadd.f32 %v4505_v60, %v4504_v7  ;;  %v13082_v7 = vsub.f32 %v16891_v55, %v12811_v29  ;;  %v4515_v13 = vsel %vm4191_vm2, %v4421_v54, 0.0 }
 0x3a1   :  { %v4508_v26 = vadd.f32 %v4507_v58, %v4506_v45  ;;  %v16892_v45 = vld [vmem:[#allocation39_spill] sm:$0xff]  ;;  %v4423_v58 = vmul.f32 %v13075_v23, %v13075_v23 }
 0x3a2   :  { %v13089_v10 = vsub.f32 %v16892_v45, %v12811_v29 }
 0x3a3   :  { %v4510_v41 = vadd.f32 %v4509_v11, %v4508_v26  ;;  %v13096_v11 = vsub.f32 %v16893_v3, %v12811_v29  ;;  %v4519_v54 = vsel %vm4191_vm2, %v4423_v58, 0.0  ;;  %v16896_v3 = vld [vmem:[#allocation46_spill] sm:$0xff] }
 0x3a4   :  { %v4425_v55 = vmul.f32 %v13089_v10, %v13089_v10 }
 0x3a5   :  { %v4512_v19 = vadd.f32 %v4511_v61, %v4510_v41  ;;  %v4424_v41 = vmul.f32 %v13082_v7, %v13082_v7  ;;  %v16894_v61 = vld [vmem:[#allocation43_spill] sm:$0xff] }
 0x3a6   :  { %v4523_v58 = vsel %vm4191_vm2, %v4425_v55, 0.0 }
 0x3a7   :  { %v4514_v60 = vadd.f32 %v4513_v35, %v4512_v19  ;;  %v13103_v19 = vsub.f32 %v16894_v61, %v12811_v29  ;;  %v4521_v53 = vsel %vm4191_vm2, %v4424_v41, 0.0 }
 0x3a9   :  { %v4516_v26 = vadd.f32 %v4515_v13, %v4514_v60  ;;  %v16895_v60 = vld [vmem:[#allocation47_spill] sm:$0xff]  ;;  %v4426_v13 = vmul.f32 %v13096_v11, %v13096_v11  ;;  %v4427_v61 = vmul.f32 %v13103_v19, %v13103_v19 }
 0x3aa   :  { %v13110_v45 = vsub.f32 %v16895_v60, %v12811_v29 }
 0x3ab   :  { %v4518_v14 = vadd.f32 %v4517_v21, %v4516_v26  ;;  %v13117_v21 = vsub.f32 %v16896_v3, %v12811_v29  ;;  %v4525_v41 = vsel %vm4191_vm2, %v4426_v13, 0.0  ;;  %v4527_v55 = vsel %vm4191_vm2, %v4427_v61, 0.0 }
 0x3ac   :  { %v4428_v49 = vmul.f32 %v13110_v45, %v13110_v45 }
 0x3ad   :  { %v4520_v35 = vadd.f32 %v4519_v54, %v4518_v14  ;;  %v16897_v54 = vld [vmem:[#allocation49_spill] sm:$0xff]  ;;  %v4429_v9 = vmul.f32 %v13117_v21, %v13117_v21 }
 0x3ae   :  { %v13124_v60 = vsub.f32 %v16897_v54, %v12811_v29  ;;  %v4529_v13 = vsel %vm4191_vm2, %v4428_v49, 0.0 }
 0x3af   :  { %v4522_v26 = vadd.f32 %v4521_v53, %v4520_v35  ;;  %v16898_v53 = vld [vmem:[#allocation48_spill] sm:$0xff]  ;;  %v4531_v61 = vsel %vm4191_vm2, %v4429_v9, 0.0 }
 0x3b0   :  { %v13131_v3 = vsub.f32 %v16898_v53, %v12811_v29  ;;  %v4430_v52 = vmul.f32 %v13124_v60, %v13124_v60 }
 0x3b1   :  { %v4524_v14 = vadd.f32 %v4523_v58, %v4522_v26  ;;  %v16899_v58 = vld [vmem:[#allocation51_spill] sm:$0xff] }
 0x3b2   :  { %v13138_v54 = vsub.f32 %v16899_v58, %v12811_v29  ;;  %v4431_v34 = vmul.f32 %v13131_v3, %v13131_v3  ;;  %v4533_v49 = vsel %vm4191_vm2, %v4430_v52, 0.0 }
 0x3b3   :  { %v4526_v35 = vadd.f32 %v4525_v41, %v4524_v14  ;;  %v16900_v41 = vld [vmem:[#allocation50_spill] sm:$0xff] }
 0x3b4   :  { %v13145_v53 = vsub.f32 %v16900_v41, %v12811_v29  ;;  %v4432_v37 = vmul.f32 %v13138_v54, %v13138_v54  ;;  %v4535_v9 = vsel %vm4191_vm2, %v4431_v34, 0.0 }
 0x3b5   :  { %v4528_v26 = vadd.f32 %v4527_v55, %v4526_v35  ;;  %v16901_v55 = vld [vmem:[#allocation53_spill] sm:$0xff] }
 0x3b6   :  { %v13152_v58 = vsub.f32 %v16901_v55, %v12811_v29  ;;  %v4433_v46 = vmul.f32 %v13145_v53, %v13145_v53  ;;  %v4537_v52 = vsel %vm4191_vm2, %v4432_v37, 0.0 }
 0x3b7   :  { %v4530_v14 = vadd.f32 %v4529_v13, %v4528_v26  ;;  %v16902_v13 = vld [vmem:[#allocation52_spill] sm:$0xff] }
 0x3b8   :  { %v13159_v41 = vsub.f32 %v16902_v13, %v12811_v29  ;;  %v4434_v30 = vmul.f32 %v13152_v58, %v13152_v58  ;;  %v4539_v34 = vsel %vm4191_vm2, %v4433_v46, 0.0 }
 0x3b9   :  { %v4532_v35 = vadd.f32 %v4531_v61, %v4530_v14  ;;  %v16903_v61 = vld [vmem:[#allocation55_spill] sm:$0xff] }
 0x3ba   :  { %v13166_v55 = vsub.f32 %v16903_v61, %v12811_v29  ;;  %v4435_v57 = vmul.f32 %v13159_v41, %v13159_v41  ;;  %v4541_v37 = vsel %vm4191_vm2, %v4434_v30, 0.0 }
 0x3bb   :  { %v4534_v26 = vadd.f32 %v4533_v49, %v4532_v35  ;;  %v16905_v49 = vld [vmem:[#allocation54_spill] sm:$0xff] }
 0x3bc   :  { %16904 = vst [vmem:[#allocation14_spill] sm:$0xff] %v13166_v55  ;;  %v13173_v13 = vsub.f32 %v16905_v49, %v12811_v29  ;;  %v4436_v15 = vmul.f32 %v13166_v55, %v13166_v55  ;;  %v4543_v46 = vsel %vm4191_vm2, %v4435_v57, 0.0 }
 0x3bd   :  { %v4536_v14 = vadd.f32 %v4535_v9, %v4534_v26  ;;  %v16907_v9 = vld [vmem:[#allocation57_spill] sm:$0xff] }
 0x3be   :  { %16906 = vst [vmem:[#allocation22_spill] sm:$0xff] %v13173_v13  ;;  %v13180_v61 = vsub.f32 %v16907_v9, %v12811_v29  ;;  %v4437_v39 = vmul.f32 %v13173_v13, %v13173_v13  ;;  %v4545_v30 = vsel %vm4191_vm2, %v4436_v15, 0.0 }
 0x3bf   :  { %v4538_v35 = vadd.f32 %v4537_v52, %v4536_v14  ;;  %v16909_v52 = vld [vmem:[#allocation56_spill] sm:$0xff] }
 0x3c0   :  { %16908 = vst [vmem:[#allocation18_spill] sm:$0xff] %v13180_v61  ;;  %v13187_v49 = vsub.f32 %v16909_v52, %v12811_v29  ;;  %v4438_v38 = vmul.f32 %v13180_v61, %v13180_v61  ;;  %v4547_v57 = vsel %vm4191_vm2, %v4437_v39, 0.0 }
 0x3c1   :  { %v4540_v26 = vadd.f32 %v4539_v34, %v4538_v35  ;;  %v16910_v34 = vld [vmem:[#allocation59_spill] sm:$0xff] }
 0x3c2   :  { %v13194_v9 = vsub.f32 %v16910_v34, %v12811_v29  ;;  %v4439_v13 = vmul.f32 %v13187_v49, %v13187_v49  ;;  %v4549_v15 = vsel %vm4191_vm2, %v4438_v38, 0.0  ;;  %v4444_v38 = vmul.f32 %v12819_v28, %v12819_v28 }
 0x3c3   :  { %v4542_v14 = vadd.f32 %v4541_v37, %v4540_v26  ;;  %v16912_v37 = vld [vmem:[#allocation58_spill] sm:$0xff] }
 0x3c4   :  { %16911 = vst [vmem:[#allocation17_spill] sm:$0xff] %v13194_v9  ;;  %v13201_v52 = vsub.f32 %v16912_v37, %v12811_v29  ;;  %v4440_v61 = vmul.f32 %v13194_v9, %v13194_v9  ;;  %v4551_v37 = vsel %vm4191_vm2, %v4439_v13, 0.0  ;;  %v4445_v13 = vmul.f32 %v12823_v18, %v12823_v18 }
 0x3c5   :  { %v4544_v35 = vadd.f32 %v4543_v46, %v4542_v14  ;;  %v16914_v46 = vld [vmem:[#allocation62_spill] sm:$0xff] }
 0x3c6   :  { %16913 = vst [vmem:[#allocation16_spill] sm:$0xff] %v13201_v52  ;;  %v13208_v34 = vsub.f32 %v16914_v46, %v12811_v29  ;;  %v4443_v29 = vmul.f32 %v12815_v6, %v12815_v6 }
 0x3c7   :  { %v4546_v26 = vadd.f32 %v4545_v30, %v4544_v35  ;;  %v4441_v30 = vmul.f32 %v13201_v52, %v13201_v52 }
 0x3c8   :  { %16915 = vst [vmem:[#allocation20_spill] sm:$0xff] %v13208_v34  ;;  %v4442_v39 = vmul.f32 %v13208_v34, %v13208_v34 }
 0x3c9   :  { %v4548_v14 = vadd.f32 %v4547_v57, %v4546_v26  ;;  %v4553_v26 = vsel %vm4191_vm2, %v4440_v61, 0.0  ;;  %v4555_v46 = vsel %vm4191_vm2, %v4441_v30, 0.0  ;;  %v4561_v61 = vsel %vm4191_vm2, %v4444_v38, 0.0 }
 0x3ca   :  { %v4447_v30 = vmul.f32 %v12830_v0, %v12830_v0  ;;  %v4450_v38 = vmul.f32 %v12839_v62, %v12839_v62 }
 0x3cb   :  { %v4550_v35 = vadd.f32 %v4549_v15, %v4548_v14  ;;  %v4557_v14 = vsel %vm4191_vm2, %v4442_v39, 0.0 }
 0x3cd   :  { %v4552_v55 = vadd.f32 %v4551_v37, %v4550_v35  ;;  %v4559_v35 = vsel %vm4191_vm2, %v4443_v29, 0.0  ;;  %v4449_v29 = vmul.f32 %v12836_v50, %v12836_v50 }
 0x3cf   :  { %v4554_v57 = vadd.f32 %v4553_v26, %v4552_v55  ;;  %v4446_v55 = vmul.f32 %v12827_v36, %v12827_v36 }
 0x3d1   :  { %v4556_v9 = vadd.f32 %v4555_v46, %v4554_v57  ;;  %v4563_v57 = vsel %vm4191_vm2, %v4445_v13, 0.0  ;;  %v4565_v39 = vsel %vm4191_vm2, %v4446_v55, 0.0  ;;  %v4451_v13 = vmul.f32 %v12842_v25, %v12842_v25 }
 0x3d2   :  { %v4452_v55 = vmul.f32 %v12845_v12, %v12845_v12 }
 0x3d3   :  { %v4558_v15 = vadd.f32 %v4557_v14, %v4556_v9  ;;  %v4448_v9 = vmul.f32 %v12833_v56, %v12833_v56 }
 0x3d5   :  { %v4560_v37 = vadd.f32 %v4559_v35, %v4558_v15  ;;  %v4567_v15 = vsel %vm4191_vm2, %v4447_v30, 0.0  ;;  %v4453_v30 = vmul.f32 %v12848_v44, %v12848_v44 }
 0x3d7   :  { %v4562_v26 = vadd.f32 %v4561_v61, %v4560_v37  ;;  %v4569_v37 = vsel %vm4191_vm2, %v4448_v9, 0.0  ;;  %v4577_v9 = vsel %vm4191_vm2, %v4452_v55, 0.0 }
 0x3d9   :  { %v4564_v46 = vadd.f32 %v4563_v57, %v4562_v26  ;;  %v4571_v26 = vsel %vm4191_vm2, %v4449_v29, 0.0 }
 0x3db   :  { %v4566_v14 = vadd.f32 %v4565_v39, %v4564_v46  ;;  %v4573_v46 = vsel %vm4191_vm2, %v4450_v38, 0.0 }
 0x3dd   :  { %v4568_v35 = vadd.f32 %v4567_v15, %v4566_v14  ;;  %v4575_v14 = vsel %vm4191_vm2, %v4451_v13, 0.0 }
 0x3df   :  { %v4570_v61 = vadd.f32 %v4569_v37, %v4568_v35  ;;  %v4579_v37 = vsel %vm4191_vm2, %v4453_v30, 0.0  ;;  %v13257_v30 = vld [vmem:[%s16436_s2] ss:$0 sm:$0xff]  ;;  %s8665_s2 = smov 64  }
 0x3e1   :  { %v4572_v57 = vadd.f32 %v4571_v26, %v4570_v61 }
 0x3e3   :  { %v4574_v39 = vadd.f32 %v4573_v46, %v4572_v57 }
 0x3e5   :  { %v4576_v15 = vadd.f32 %v4575_v14, %v4574_v39 }
 0x3e7   :  { %v4578_v35 = vadd.f32 %v4577_v9, %v4576_v15 }
 0x3e9   :  { %v4580_v62 = vadd.f32 %v4579_v37, %v4578_v35 }
 0x3eb   :  { %v4581_v29 = vrot.slane %v4580_v62, 4 }
 0x3ed   :  { %v4582_v61 = vadd.f32 %v4581_v29, %v4580_v62 }
 0x3ef   :  { %v4583_v26 = vrot.slane %v4582_v61, 2 }
 0x3f1   :  { %v4584_v28 = vadd.f32 %v4583_v26, %v4582_v61 }
 0x3f3   :  { %v4585_v6 = vrot.slane %v4584_v28, 1 }
 0x3f5   :  { %v4586_v34 = vadd.f32 %v4585_v6, %v4584_v28  ;;  %v13264_v6 = vld [vmem:[%s16437_s3] ss:$0 sm:$0xff]  ;;  %s8666_s3 = smov 96  }
 0x3f7   :  { %v4587_v38 = vmul.f32 0.001953125, %v4586_v34 }
 0x3f9   :  { %v4588_v57 = vadd.f32 1e-05, %v4587_v38 }
 0x3fb   :  { %8460 = vrsqrt.f32 %v4588_v57  ;;  %vm4595_vm7 = vweird.f32 %v4588_v57 }
 0x401   :  { %v8461_v46 = vpop.eup %8460 }
 0x402   :  { %v4590_v44 = vmul.f32 %v8461_v46, %v4588_v57  ;;  %vm4596_vm6 = vweird.f32 %v8461_v46 }
 0x403   :  { %vm4597_vm8 = vmor %vm4595_vm7, %vm4596_vm6 }
 0x404   :  { %v4591_v52 = vmul.f32 %v8461_v46, %v4590_v44 }
 0x406   :  { %v4592_v13 = vmul.f32 0.5, %v4591_v52 }
 0x408   :  { %v4593_v39 = vsub.f32 1.5, %v4592_v13 }
 0x40a   :  { %v4594_v55 = vmul.f32 %v8461_v46, %v4593_v39 }
 0x40c   :  { %v13259_v62 = vsel %vm4597_vm8, %v8461_v46, %v4594_v55 }
 0x40d   :  { %v4654_v28 = vmul.f32 %v13259_v62, %v12823_v18  ;;  %v4655_v44 = vmul.f32 %v13259_v62, %v12827_v36  ;;  %v4656_v52 = vmul.f32 %v13259_v62, %v12830_v0  ;;  %v4657_v34 = vmul.f32 %v13259_v62, %v12833_v56 }
 0x40e   :  { %v4658_v14 = vmul.f32 %v13259_v62, %v12836_v50  ;;  %v4660_v15 = vmul.f32 %v13259_v62, %v12842_v25  ;;  %v4661_v9 = vmul.f32 %v13259_v62, %v12845_v12  ;;  %v4599_v55 = vmul.f32 %v13259_v62, %v12852_v22 }
 0x40f   :  { %v4722_v18 = vmul.f32 %v13257_v30, %v4654_v28  ;;  %v4723_v35 = vmul.f32 %v13257_v30, %v4655_v44  ;;  %v4724_v36 = vmul.f32 %v13257_v30, %v4656_v52  ;;  %v4725_v0 = vmul.f32 %v13257_v30, %v4657_v34 }
 0x410   :  { %v4726_v37 = vmul.f32 %v13257_v30, %v4658_v14  ;;  %v4728_v56 = vmul.f32 %v13257_v30, %v4660_v15  ;;  %v4729_v50 = vmul.f32 %v13257_v30, %v4661_v9  ;;  %v13299_v28 = vmul.f32 %v13259_v62, %v12856_v40 }
 0x411   :  { %v4790_v29 = vadd.f32 %v13264_v6, %v4722_v18  ;;  %v4791_v25 = vadd.f32 %v13264_v6, %v4723_v35  ;;  %v4792_v12 = vadd.f32 %v13264_v6, %v4724_v36  ;;  %v4793_v61 = vadd.f32 %v13264_v6, %v4725_v0  ;;  %v16916_v0 = vld [vmem:[#allocation14_spill] sm:$0xff] }
 0x412   :  { %v4794_v26 = vadd.f32 %v13264_v6, %v4726_v37  ;;  %v4796_v38 = vadd.f32 %v13264_v6, %v4728_v56  ;;  %v4797_v57 = vadd.f32 %v13264_v6, %v4729_v50  ;;  %v13304_v52 = vmul.f32 %v13259_v62, %v12860_v20  ;;  %v16917_v37 = vld [vmem:[#allocation22_spill] sm:$0xff]  ;;  %v16919_v50 = vld [vmem:[#allocation17_spill] sm:$0xff] }
 0x413   :  { %8462 = vtanh.f32 %v4790_v29  ;;  %v13308_v34 = vmul.f32 %v13259_v62, %v12864_v31  ;;  %v13312_v14 = vmul.f32 %v13259_v62, %v12872_v43  ;;  %v13316_v22 = vmul.f32 %v13259_v62, %v12878_v16  ;;  %v16918_v56 = vld [vmem:[#allocation18_spill] sm:$0xff]  ;;  %v16920_v29 = vld [vmem:[#allocation16_spill] sm:$0xff] }
 0x414   :  { %8464 = vtanh.f32 %v4791_v25  ;;  %v13321_v15 = vmul.f32 %v13259_v62, %v12886_v24  ;;  %v13325_v20 = vmul.f32 %v13259_v62, %v12893_v17  ;;  %v13329_v31 = vmul.f32 %v13259_v62, %v12900_v1  ;;  %v16921_v25 = vld [vmem:[#allocation20_spill] sm:$0xff] }
 0x415   :  { %8466 = vtanh.f32 %v4792_v12  ;;  %v4619_v43 = vmul.f32 %v13259_v62, %v12984_v27  ;;  %v4620_v9 = vmul.f32 %v13259_v62, %v12991_v48  ;;  %v4621_v24 = vmul.f32 %v13259_v62, %v12998_v63  ;;  %v16922_v12 = vld [vmem:[#allocation64_spill] sm:$0xff] }
 0x416   :  { %8468 = vtanh.f32 %v4793_v61  ;;  %v4622_v17 = vmul.f32 %v13259_v62, %v13005_v33  ;;  %v4623_v18 = vmul.f32 %v13259_v62, %v13012_v59  ;;  %v4624_v27 = vmul.f32 %v13259_v62, %v13019_v42 }
 0x417   :  { %8470 = vtanh.f32 %v4794_v26  ;;  %v4625_v35 = vmul.f32 %v13259_v62, %v13026_v47  ;;  %v4626_v48 = vmul.f32 %v13259_v62, %v13033_v5  ;;  %v4627_v63 = vmul.f32 %v13259_v62, %v13040_v32  ;;  %v16923_v26 = vld [vmem:[#allocation60_spill] sm:$0xff] }
 0x418   :  { %8472 = vtanh.f32 %v4796_v38  ;;  %v4628_v33 = vmul.f32 %v13259_v62, %v13047_v8  ;;  %v4629_v59 = vmul.f32 %v13259_v62, %v13054_v51  ;;  %v4630_v42 = vmul.f32 %v13259_v62, %v13061_v2 }
 0x419   :  { %v8463_v46 = vpop.eup %8462  ;;  %8474 = vtanh.f32 %v4797_v57  ;;  %v4631_v47 = vmul.f32 %v13259_v62, %v13068_v4  ;;  %v4632_v5 = vmul.f32 %v13259_v62, %v13075_v23  ;;  %v4633_v32 = vmul.f32 %v13259_v62, %v13082_v7  ;;  %v16924_v57 = vld [vmem:[#allocation67_spill] sm:$0xff] }
 0x41a   :  { %v8465_v13 = vpop.eup %8464  ;;  %5028 = vst.msk [vmem:[#allocation3 + $0x2d9] sm:$0xff] %vm4191_vm2, %v8463_v46  ;;  %v4634_v36 = vmul.f32 %v13259_v62, %v13089_v10  ;;  %v4635_v8 = vmul.f32 %v13259_v62, %v13096_v11  ;;  %v4636_v51 = vmul.f32 %v13259_v62, %v13103_v19  ;;  %v4637_v2 = vmul.f32 %v13259_v62, %v13110_v45 }
 0x41b   :  { %v8467_v39 = vpop.eup %8466  ;;  %5029 = vst.msk [vmem:[#allocation3 + $0x2e9] sm:$0xff] %vm4191_vm2, %v8465_v13  ;;  %v4638_v4 = vmul.f32 %v13259_v62, %v13117_v21  ;;  %v4639_v23 = vmul.f32 %v13259_v62, %v13124_v60  ;;  %v4640_v7 = vmul.f32 %v13259_v62, %v13131_v3  ;;  %v4641_v10 = vmul.f32 %v13259_v62, %v13138_v54  ;;  %v16925_v13 = vld [vmem:[#allocation68_spill] sm:$0xff] }
 0x41c   :  { %v8469_v44 = vpop.eup %8468  ;;  %5030 = vst.msk [vmem:[#allocation3 + $0x2f1] sm:$0xff] %vm4191_vm2, %v8467_v39  ;;  %v4642_v11 = vmul.f32 %v13259_v62, %v13145_v53  ;;  %v4643_v19 = vmul.f32 %v13259_v62, %v13152_v58  ;;  %v4644_v45 = vmul.f32 %v13259_v62, %v13159_v41  ;;  %v4645_v21 = vmul.f32 %v13259_v62, %v16916_v0 }
 0x41d   :  { %v8471_v40 = vpop.eup %8470  ;;  %5031 = vst.msk [vmem:[#allocation3 + $0x301] sm:$0xff] %vm4191_vm2, %v8469_v44  ;;  %v4646_v60 = vmul.f32 %v13259_v62, %v16917_v37  ;;  %v4647_v3 = vmul.f32 %v13259_v62, %v16918_v56  ;;  %v4648_v54 = vmul.f32 %v13259_v62, %v13187_v49  ;;  %v4649_v53 = vmul.f32 %v13259_v62, %v16919_v50 }
 0x41e   :  { %v8473_v16 = vpop.eup %8472  ;;  %5032 = vst.msk [vmem:[#allocation3 + $0x309] sm:$0xff] %vm4191_vm2, %v8471_v40  ;;  %v4650_v58 = vmul.f32 %v13259_v62, %v16920_v29  ;;  %v4651_v41 = vmul.f32 %v13259_v62, %v16921_v25  ;;  %v4652_v61 = vmul.f32 %v13259_v62, %v16922_v12  ;;  %v4653_v38 = vmul.f32 %v13259_v62, %v16923_v26 }
 0x41f   :  { %v8475_v1 = vpop.eup %8474  ;;  %5034 = vst.msk [vmem:[#allocation3 + $0x321] sm:$0xff] %vm4191_vm2, %v8473_v16  ;;  %v4659_v46 = vmul.f32 %v13259_v62, %v16924_v57  ;;  %v4662_v49 = vmul.f32 %v13259_v62, %v16925_v13  ;;  %v4667_v39 = vmul.f32 %v13257_v30, %v4599_v55  ;;  %v4687_v44 = vmul.f32 %v13257_v30, %v4619_v43 }
 0x420   :  { %5035 = vst.msk [vmem:[#allocation3 + $0x331] sm:$0xff] %vm4191_vm2, %v8475_v1  ;;  %v4688_v40 = vmul.f32 %v13257_v30, %v4620_v9  ;;  %v4689_v16 = vmul.f32 %v13257_v30, %v4621_v24  ;;  %v4690_v1 = vmul.f32 %v13257_v30, %v4622_v17  ;;  %v4691_v0 = vmul.f32 %v13257_v30, %v4623_v18 }
 0x421   :  { %v4692_v37 = vmul.f32 %v13257_v30, %v4624_v27  ;;  %v4693_v56 = vmul.f32 %v13257_v30, %v4625_v35  ;;  %v4694_v50 = vmul.f32 %v13257_v30, %v4626_v48  ;;  %v4695_v29 = vmul.f32 %v13257_v30, %v4627_v63 }
 0x422   :  { %v4696_v55 = vmul.f32 %v13257_v30, %v4628_v33  ;;  %v4697_v43 = vmul.f32 %v13257_v30, %v4629_v59  ;;  %v4698_v9 = vmul.f32 %v13257_v30, %v4630_v42  ;;  %v4699_v24 = vmul.f32 %v13257_v30, %v4631_v47 }
 0x423   :  { %v4700_v17 = vmul.f32 %v13257_v30, %v4632_v5  ;;  %v4701_v18 = vmul.f32 %v13257_v30, %v4633_v32  ;;  %v4702_v27 = vmul.f32 %v13257_v30, %v4634_v36  ;;  %v4703_v35 = vmul.f32 %v13257_v30, %v4635_v8 }
 0x424   :  { %v4704_v48 = vmul.f32 %v13257_v30, %v4636_v51  ;;  %v4705_v63 = vmul.f32 %v13257_v30, %v4637_v2  ;;  %v4706_v33 = vmul.f32 %v13257_v30, %v4638_v4  ;;  %v4707_v59 = vmul.f32 %v13257_v30, %v4639_v23 }
 0x425   :  { %v4708_v42 = vmul.f32 %v13257_v30, %v4640_v7  ;;  %v4709_v47 = vmul.f32 %v13257_v30, %v4641_v10  ;;  %v4710_v5 = vmul.f32 %v13257_v30, %v4642_v11  ;;  %v4711_v32 = vmul.f32 %v13257_v30, %v4643_v19 }
 0x426   :  { %v4712_v36 = vmul.f32 %v13257_v30, %v4644_v45  ;;  %v4713_v8 = vmul.f32 %v13257_v30, %v4645_v21  ;;  %v4714_v51 = vmul.f32 %v13257_v30, %v4646_v60  ;;  %v4715_v2 = vmul.f32 %v13257_v30, %v4647_v3 }
 0x427   :  { %v4716_v4 = vmul.f32 %v13257_v30, %v4648_v54  ;;  %v4717_v23 = vmul.f32 %v13257_v30, %v4649_v53  ;;  %v4718_v7 = vmul.f32 %v13257_v30, %v4650_v58  ;;  %v4719_v10 = vmul.f32 %v13257_v30, %v4651_v41  ;;  %v16926_v58 = vld [vmem:[#allocation63_spill] sm:$0xff]  ;;  %v16927_v41 = vld [vmem:[#allocation66_spill] sm:$0xff] }
 0x428   :  { %v4720_v11 = vmul.f32 %v13257_v30, %v4652_v61  ;;  %v4721_v19 = vmul.f32 %v13257_v30, %v4653_v38  ;;  %v4668_v45 = vmul.f32 %v13257_v30, %v13299_v28  ;;  %v4669_v21 = vmul.f32 %v13257_v30, %v13304_v52  ;;  %v16928_v28 = vld [vmem:[#allocation61_spill] sm:$0xff] }
 0x429   :  { %v4727_v60 = vmul.f32 %v13257_v30, %v4659_v46  ;;  %v4730_v3 = vmul.f32 %v13257_v30, %v4662_v49  ;;  %v4670_v54 = vmul.f32 %v13257_v30, %v13308_v34  ;;  %v4671_v53 = vmul.f32 %v13257_v30, %v13312_v14  ;;  %v16929_v52 = vld [vmem:[#allocation65_spill] sm:$0xff] }
 0x42a   :  { %v4608_v25 = vmul.f32 %v13259_v62, %v16926_v58  ;;  %v4609_v12 = vmul.f32 %v13259_v62, %v16927_v41  ;;  %v4610_v61 = vmul.f32 %v13259_v62, %v16928_v28  ;;  %v4611_v26 = vmul.f32 %v13259_v62, %v16929_v52  ;;  %v16932_v28 = vld [vmem:[#allocation11_spill] sm:$0xff] }
 0x42b   :  { %v4672_v38 = vmul.f32 %v13257_v30, %v13316_v22  ;;  %v4673_v34 = vmul.f32 %v13257_v30, %v13321_v15  ;;  %v4674_v14 = vmul.f32 %v13257_v30, %v13325_v20  ;;  %v4675_v57 = vmul.f32 %v13257_v30, %v13329_v31 }
 0x42c   :  { %v4735_v46 = vadd.f32 %v13264_v6, %v4667_v39  ;;  %v4736_v13 = vadd.f32 %v13264_v6, %v4668_v45  ;;  %v4737_v49 = vadd.f32 %v13264_v6, %v4669_v21  ;;  %v4738_v58 = vadd.f32 %v13264_v6, %v4670_v54 }
 0x42d   :  { %v4739_v41 = vadd.f32 %v13264_v6, %v4671_v53  ;;  %v13477_v22 = vadd.f32 %v13264_v6, %v4687_v44  ;;  %v13480_v15 = vadd.f32 %v13264_v6, %v4688_v40  ;;  %v13483_v20 = vadd.f32 %v13264_v6, %v4689_v16 }
 0x42e   :  { %v13486_v31 = vadd.f32 %v13264_v6, %v4690_v1  ;;  %v13489_v39 = vadd.f32 %v13264_v6, %v4691_v0  ;;  %v13492_v45 = vadd.f32 %v13264_v6, %v4692_v37  ;;  %v13495_v21 = vadd.f32 %v13264_v6, %v4693_v56 }
 0x42f   :  { %v13498_v44 = vadd.f32 %v13264_v6, %v4694_v50  ;;  %v13501_v40 = vadd.f32 %v13264_v6, %v4695_v29  ;;  %v13504_v16 = vadd.f32 %v13264_v6, %v4696_v55  ;;  %v13507_v1 = vadd.f32 %v13264_v6, %v4697_v43 }
 0x430   :  { %v13510_v0 = vadd.f32 %v13264_v6, %v4698_v9  ;;  %v13513_v37 = vadd.f32 %v13264_v6, %v4699_v24  ;;  %v13516_v56 = vadd.f32 %v13264_v6, %v4700_v17  ;;  %v13519_v50 = vadd.f32 %v13264_v6, %v4701_v18 }
 0x431   :  { %v13522_v29 = vadd.f32 %v13264_v6, %v4702_v27  ;;  %v13525_v55 = vadd.f32 %v13264_v6, %v4703_v35  ;;  %v13528_v43 = vadd.f32 %v13264_v6, %v4704_v48  ;;  %v13531_v9 = vadd.f32 %v13264_v6, %v4705_v63 }
 0x432   :  { %v13534_v24 = vadd.f32 %v13264_v6, %v4706_v33  ;;  %v13537_v17 = vadd.f32 %v13264_v6, %v4707_v59  ;;  %v13540_v18 = vadd.f32 %v13264_v6, %v4708_v42  ;;  %v13543_v27 = vadd.f32 %v13264_v6, %v4709_v47 }
 0x433   :  { %v13546_v35 = vadd.f32 %v13264_v6, %v4710_v5  ;;  %v13549_v48 = vadd.f32 %v13264_v6, %v4711_v32  ;;  %v13552_v63 = vadd.f32 %v13264_v6, %v4712_v36  ;;  %v13555_v33 = vadd.f32 %v13264_v6, %v4713_v8 }
 0x434   :  { %v13558_v59 = vadd.f32 %v13264_v6, %v4714_v51  ;;  %v13561_v42 = vadd.f32 %v13264_v6, %v4715_v2  ;;  %v13564_v47 = vadd.f32 %v13264_v6, %v4716_v4  ;;  %v13567_v5 = vadd.f32 %v13264_v6, %v4717_v23  ;;  %v16930_v23 = vld [vmem:[#allocation9_spill] sm:$0xff] }
 0x435   :  { %v13570_v32 = vadd.f32 %v13264_v6, %v4718_v7  ;;  %v13573_v36 = vadd.f32 %v13264_v6, %v4719_v10  ;;  %v13576_v8 = vadd.f32 %v13264_v6, %v4720_v11  ;;  %v13579_v51 = vadd.f32 %v13264_v6, %v4721_v19  ;;  %v16931_v11 = vld [vmem:[#allocation8_spill] sm:$0xff] }
 0x436   :  { %v13582_v2 = vadd.f32 %v13264_v6, %v4727_v60  ;;  %v13585_v4 = vadd.f32 %v13264_v6, %v4730_v3  ;;  %8476 = vtanh.f32 %v4735_v46  ;;  %v4612_v7 = vmul.f32 %v13259_v62, %v16930_v23 }
 0x437   :  { %v4676_v54 = vmul.f32 %v13257_v30, %v4608_v25  ;;  %v4740_v10 = vadd.f32 %v13264_v6, %v4672_v38  ;;  %8478 = vtanh.f32 %v4736_v13  ;;  %v4613_v53 = vmul.f32 %v13259_v62, %v16931_v11  ;;  %v16933_v25 = vld [vmem:[#allocation10_spill] sm:$0xff] }
 0x438   :  { %v4677_v19 = vmul.f32 %v13257_v30, %v4609_v12  ;;  %v4741_v60 = vadd.f32 %v13264_v6, %v4673_v34  ;;  %8480 = vtanh.f32 %v4737_v49  ;;  %v4614_v3 = vmul.f32 %v13259_v62, %v16932_v28  ;;  %v16934_v12 = vld [vmem:[#allocation13_spill] sm:$0xff]  ;;  %v16935_v28 = vld [vmem:[#allocation12_spill] sm:$0xff] }
 0x439   :  { %v4678_v52 = vmul.f32 %v13257_v30, %v4610_v61  ;;  %v4742_v46 = vadd.f32 %v13264_v6, %v4674_v14  ;;  %8482 = vtanh.f32 %v4738_v58  ;;  %v4615_v38 = vmul.f32 %v13259_v62, %v16933_v25 }
 0x43a   :  { %v4679_v13 = vmul.f32 %v13257_v30, %v4611_v26  ;;  %v4743_v23 = vadd.f32 %v13264_v6, %v4675_v57  ;;  %8484 = vtanh.f32 %v4739_v41  ;;  %v4616_v34 = vmul.f32 %v13259_v62, %v16934_v12  ;;  %v16936_v57 = vld [vmem:[#allocation15_spill] sm:$0xff] }
 0x43b   :  { %v4680_v49 = vmul.f32 %v13257_v30, %v4612_v7  ;;  %v4744_v11 = vadd.f32 %v13264_v6, %v4676_v54  ;;  %8486 = vtanh.f32 %v4740_v10  ;;  %v4617_v14 = vmul.f32 %v13259_v62, %v16935_v28 }
 0x43c   :  { %v8477_v61 = vpop.eup %8476  ;;  %v4681_v58 = vmul.f32 %v13257_v30, %v4613_v53  ;;  %v4745_v25 = vadd.f32 %v13264_v6, %v4677_v19  ;;  %8488 = vtanh.f32 %v4741_v60  ;;  %v4618_v41 = vmul.f32 %v13259_v62, %v16936_v57 }
 0x43d   :  { %v8479_v26 = vpop.eup %8478  ;;  %v4682_v12 = vmul.f32 %v13257_v30, %v4614_v3  ;;  %v4746_v7 = vadd.f32 %v13264_v6, %v4678_v52  ;;  %8490 = vtanh.f32 %v4742_v46  ;;  %4973 = vst.msk [vmem:[#allocation3 + $0x19] sm:$0xff] %vm4191_vm2, %v8477_v61  ;;  %v4683_v10 = vmul.f32 %v13257_v30, %v4615_v38 }
 0x43e   :  { %v8481_v54 = vpop.eup %8480  ;;  %v4747_v28 = vadd.f32 %v13264_v6, %v4679_v13  ;;  %8492 = vtanh.f32 %v4743_v23  ;;  %4974 = vst.msk [vmem:[#allocation3 + $0x21] sm:$0xff] %vm4191_vm2, %v8479_v26  ;;  %v4684_v19 = vmul.f32 %v13257_v30, %v4616_v34  ;;  %v4748_v62 = vadd.f32 %v13264_v6, %v4680_v49 }
 0x43f   :  { %v8483_v53 = vpop.eup %8482  ;;  %8494 = vtanh.f32 %v4744_v11  ;;  %4975 = vst.msk [vmem:[#allocation3 + $0x31] sm:$0xff] %vm4191_vm2, %v8481_v54  ;;  %v4685_v3 = vmul.f32 %v13257_v30, %v4617_v14  ;;  %v4749_v52 = vadd.f32 %v13264_v6, %v4681_v58  ;;  %v4686_v38 = vmul.f32 %v13257_v30, %v4618_v41 }
 0x440   :  { %v8485_v60 = vpop.eup %8484  ;;  %8496 = vtanh.f32 %v4745_v25  ;;  %4976 = vst.msk [vmem:[#allocation3 + $0x39] sm:$0xff] %vm4191_vm2, %v8483_v53  ;;  %v4750_v13 = vadd.f32 %v13264_v6, %v4682_v12  ;;  %v4751_v34 = vadd.f32 %v13264_v6, %v4683_v10  ;;  %v4752_v11 = vadd.f32 %v13264_v6, %v4684_v19 }
 0x441   :  { %v8487_v46 = vpop.eup %8486  ;;  %8498 = vtanh.f32 %v4746_v7  ;;  %4977 = vst.msk [vmem:[#allocation3 + $0x49] sm:$0xff] %vm4191_vm2, %v8485_v60  ;;  %v4753_v30 = vadd.f32 %v13264_v6, %v4685_v3  ;;  %v4754_v58 = vadd.f32 %v13264_v6, %v4686_v38 }
 0x442   :  { %v8489_v23 = vpop.eup %8488  ;;  %8500 = vtanh.f32 %v4747_v28  ;;  %4978 = vst.msk [vmem:[#allocation3 + $0x51] sm:$0xff] %vm4191_vm2, %v8487_v46 }
 0x443   :  { %v8491_v49 = vpop.eup %8490  ;;  %8502 = vtanh.f32 %v4748_v62  ;;  %4979 = vst.msk [vmem:[#allocation3 + $0x61] sm:$0xff] %vm4191_vm2, %v8489_v23 }
 0x444   :  { %v8493_v61 = vpop.eup %8492  ;;  %8504 = vtanh.f32 %v4749_v52  ;;  %4980 = vst.msk [vmem:[#allocation3 + $0x69] sm:$0xff] %vm4191_vm2, %v8491_v49 }
 0x445   :  { %v8495_v14 = vpop.eup %8494  ;;  %8506 = vtanh.f32 %v4750_v13  ;;  %4981 = vst.msk [vmem:[#allocation3 + $0x79] sm:$0xff] %vm4191_vm2, %v8493_v61 }
 0x446   :  { %v8497_v25 = vpop.eup %8496  ;;  %8508 = vtanh.f32 %v4751_v34  ;;  %4982 = vst.msk [vmem:[#allocation3 + $0x81] sm:$0xff] %vm4191_vm2, %v8495_v14 }
 0x447   :  { %v8499_v26 = vpop.eup %8498  ;;  %8510 = vtanh.f32 %v4752_v11  ;;  %4983 = vst.msk [vmem:[#allocation3 + $0x91] sm:$0xff] %vm4191_vm2, %v8497_v25 }
 0x448   :  { %v8501_v57 = vpop.eup %8500  ;;  %8512 = vtanh.f32 %v4753_v30  ;;  %4984 = vst.msk [vmem:[#allocation3 + $0x99] sm:$0xff] %vm4191_vm2, %v8499_v26  ;;  %v13701_v26 = vld [vmem:[#allocation3 + $0x1a0] sm:$0xff] }
 0x449   :  { %v8503_v41 = vpop.eup %8502  ;;  %8514 = vtanh.f32 %v4754_v58  ;;  %4985 = vst.msk [vmem:[#allocation3 + $0xa9] sm:$0xff] %vm4191_vm2, %v8501_v57 }
 0x44a   :  { %v8505_v6 = vpop.eup %8504  ;;  %8516 = vtanh.f32 %v13477_v22  ;;  %4986 = vst.msk [vmem:[#allocation3 + $0xb1] sm:$0xff] %vm4191_vm2, %v8503_v41 }
 0x44b   :  { %v8507_v12 = vpop.eup %8506  ;;  %8518 = vtanh.f32 %v13480_v15  ;;  %4987 = vst.msk [vmem:[#allocation3 + $0xc1] sm:$0xff] %vm4191_vm2, %v8505_v6 }
 0x44c   :  { %v8509_v7 = vpop.eup %8508  ;;  %8520 = vtanh.f32 %v13483_v20  ;;  %4988 = vst.msk [vmem:[#allocation3 + $0xc9] sm:$0xff] %vm4191_vm2, %v8507_v12  ;;  %v5090_v12 = vld [vmem:[#allocation3 + $0x1a8] sm:$0x3] }
 0x44d   :  { %v8511_v54 = vpop.eup %8510  ;;  %8522 = vtanh.f32 %v13486_v31  ;;  %4989 = vst.msk [vmem:[#allocation3 + $0xd9] sm:$0xff] %vm4191_vm2, %v8509_v7 }
 0x44e   :  { %v8513_v10 = vpop.eup %8512  ;;  %8524 = vtanh.f32 %v13489_v39  ;;  %4990 = vst.msk [vmem:[#allocation3 + $0xe1] sm:$0xff] %vm4191_vm2, %v8511_v54 }
 0x44f   :  { %v8515_v22 = vpop.eup %8514  ;;  %8526 = vtanh.f32 %v13492_v45  ;;  %4991 = vst.msk [vmem:[#allocation3 + $0xf1] sm:$0xff] %vm4191_vm2, %v8513_v10 }
 0x450   :  { %v8517_v15 = vpop.eup %8516  ;;  %8528 = vtanh.f32 %v13495_v21  ;;  %4992 = vst.msk [vmem:[#allocation3 + $0xf9] sm:$0xff] %vm4191_vm2, %v8515_v22 }
 0x451   :  { %v8519_v20 = vpop.eup %8518  ;;  %8530 = vtanh.f32 %v13498_v44  ;;  %v13655_v31 = vld [vmem:[#allocation3 + $0xb0] sm:$0xff]  ;;  %v5060_v28 = vld [vmem:[#allocation3 + $0xb8] sm:$0x3]  ;;  %4993 = vst.msk [vmem:[#allocation3 + $0x109] sm:$0xff] %vm4191_vm2, %v8517_v15 }
 0x452   :  { %v8521_v39 = vpop.eup %8520  ;;  %8532 = vtanh.f32 %v13501_v40  ;;  %v5277_v45 = vrot.slane %v13655_v31, 1  ;;  %v5279_v53 = vrot.slane %v5060_v28, 1  ;;  %v5565_v19 = vrot.slane %v13655_v31, 2  ;;  %4994 = vst.msk [vmem:[#allocation3 + $0x111] sm:$0xff] %vm4191_vm2, %v8519_v20 }
 0x453   :  { %v8523_v21 = vpop.eup %8522  ;;  %8534 = vtanh.f32 %v13504_v16  ;;  %v13663_v62 = vld [vmem:[#allocation3 + $0xc8] sm:$0xff]  ;;  %v5063_v44 = vld [vmem:[#allocation3 + $0xd0] sm:$0x3]  ;;  %v5567_v60 = vrot.slane %v5060_v28, 2  ;;  %4995 = vst.msk [vmem:[#allocation3 + $0x121] sm:$0xff] %vm4191_vm2, %v8521_v39  ;;  %v6114_v20 = vrot.slane %v13701_v26, 1 }
 0x454   :  { %v8525_v3 = vpop.eup %8524  ;;  %8536 = vtanh.f32 %v13507_v1  ;;  %v13670_v40 = vsel %vm1178_vm3, %v5277_v45, %v5279_v53  ;;  %v5282_v52 = vrot.slane %v13663_v62, 1  ;;  %v5284_v46 = vrot.slane %v5063_v44, 1  ;;  %4996 = vst.msk [vmem:[#allocation3 + $0x129] sm:$0xff] %vm4191_vm2, %v8523_v21  ;;  %v13736_v21 = vld [vmem:[#allocation3 + $0xa8] sm:$0xff] }
 0x455   :  { %v8527_v16 = vpop.eup %8526  ;;  %8538 = vtanh.f32 %v13510_v0  ;;  %v13675_v38 = vld [vmem:[#allocation3 + $0xe0] sm:$0xff]  ;;  %v5066_v13 = vld [vmem:[#allocation3 + $0xe8] sm:$0x3]  ;;  %v5480_v23 = vmax.f32 %v13655_v31, %v13670_v40  ;;  %v13682_v1 = vsel %vm1660_vm4, %v5565_v19, %v5567_v60  ;;  %v5570_v34 = vrot.slane %v13663_v62, 2  ;;  %4997 = vst.msk [vmem:[#allocation3 + $0x139] sm:$0xff] %vm4191_vm2, %v8525_v3 }
 0x456   :  { %v8529_v49 = vpop.eup %8528  ;;  %8540 = vtanh.f32 %v13513_v37  ;;  %v13690_v0 = vsel %vm1178_vm3, %v5282_v52, %v5284_v46  ;;  %v5287_v11 = vrot.slane %v13675_v38, 1  ;;  %v5289_v61 = vrot.slane %v5066_v13, 1  ;;  %4998 = vst.msk [vmem:[#allocation3 + $0x141] sm:$0xff] %vm4191_vm2, %v8527_v16  ;;  %v13742_v46 = vld [vmem:[#allocation3 + $0xc0] sm:$0xff]  ;;  %v13744_v16 = vld [vmem:[#allocation3 + $0xd8] sm:$0xff] }
 0x457   :  { %v8531_v30 = vpop.eup %8530  ;;  %8542 = vtanh.f32 %v13516_v56  ;;  %v13695_v14 = vld [vmem:[#allocation3 + $0xf8] sm:$0xff]  ;;  %v5482_v58 = vmax.f32 %v13663_v62, %v13690_v0  ;;  %v5572_v25 = vrot.slane %v5063_v44, 2  ;;  %v5575_v37 = vrot.slane %v13675_v38, 2  ;;  %4999 = vst.msk [vmem:[#allocation3 + $0x151] sm:$0xff] %vm4191_vm2, %v8529_v49 }
 0x458   :  { %v8533_v57 = vpop.eup %8532  ;;  %8544 = vtanh.f32 %v13519_v50  ;;  %v13707_v41 = vsel %vm1178_vm3, %v5287_v11, %v5289_v61  ;;  %v5577_v6 = vrot.slane %v5066_v13, 2  ;;  %5000 = vst.msk [vmem:[#allocation3 + $0x159] sm:$0xff] %vm4191_vm2, %v8531_v30  ;;  %v5768_v10 = vmax.f32 %v5480_v23, %v13682_v1  ;;  %v13756_v61 = vld [vmem:[#allocation3 + $0xf0] sm:$0xff] }
 0x459   :  { %v8535_v7 = vpop.eup %8534  ;;  %8546 = vtanh.f32 %v13522_v29  ;;  %v5484_v54 = vmax.f32 %v13675_v38, %v13707_v41  ;;  %v13717_v50 = vsel %vm1660_vm4, %v5570_v34, %v5572_v25  ;;  %5001 = vst.msk [vmem:[#allocation3 + $0x169] sm:$0xff] %vm4191_vm2, %v8533_v57  ;;  %v6116_v53 = vrot.slane %v5090_v12, 1 }
 0x45a   :  { %v8537_v22 = vpop.eup %8536  ;;  %8548 = vtanh.f32 %v13525_v55  ;;  %5002 = vst.msk [vmem:[#allocation3 + $0x171] sm:$0xff] %vm4191_vm2, %v8535_v7  ;;  %v13726_v29 = vsel %vm1660_vm4, %v5575_v37, %v5577_v6  ;;  %v5770_v15 = vmax.f32 %v5482_v58, %v13717_v50  ;;  %v5832_v55 = vmax.f32 %v5768_v10, %v13663_v62 }
 0x45b   :  { %16937 = vst [vmem:[#allocation19_spill] sm:$0xff] %v13726_v29  ;;  %v8539_v28 = vpop.eup %8538  ;;  %8550 = vtanh.f32 %v13528_v43  ;;  %v13733_v39 = vmax.f32 %v5484_v54, %v13726_v29  ;;  %v6192_v3 = vrot.slane %v13701_v26, 2  ;;  %v6194_v43 = vrot.slane %v5090_v12, 2 }
 0x45c   :  { %5003 = vst.msk [vmem:[#allocation3 + $0x181] sm:$0xff] %vm4191_vm2, %v8537_v22  ;;  %v8541_v44 = vpop.eup %8540  ;;  %8552 = vtanh.f32 %v13531_v9  ;;  %v5834_v60 = vmax.f32 %v5770_v15, %v13675_v38  ;;  %v5916_v49 = vmax.f32 %v5832_v55, %v13690_v0  ;;  %v13754_v9 = vsel %vm1178_vm3, %v6114_v20, %v6116_v53 }
 0x45d   :  { %5004 = vst.msk [vmem:[#allocation3 + $0x189] sm:$0xff] %vm4191_vm2, %v8539_v28  ;;  %v8543_v13 = vpop.eup %8542  ;;  %8554 = vtanh.f32 %v13534_v24  ;;  %v13766_v24 = vsel %vm1660_vm4, %v6192_v3, %v6194_v43  ;;  %v5276_v25 = vrot.slane %v13736_v21, 1  ;;  %v5286_v12 = vrot.slane %v13744_v16, 1  ;;  %v14014_v56 = vld [vmem:[#allocation3 + $0x140] sm:$0xff] }
 0x45e   :  { %5005 = vst.msk [vmem:[#allocation3 + $0x1c9] sm:$0xff] %vm4191_vm2, %v8541_v44  ;;  %v8545_v30 = vpop.eup %8544  ;;  %8556 = vtanh.f32 %v13537_v17  ;;  %v13760_v58 = vmax.f32 %v5834_v60, %v13707_v41  ;;  %v5994_v6 = vmax.f32 %v5916_v49, %v13717_v50  ;;  %v5281_v17 = vrot.slane %v13742_v46, 1 }
 0x45f   :  { %5006 = vst.msk [vmem:[#allocation3 + $0x1d1] sm:$0xff] %vm4191_vm2, %v8543_v13  ;;  %v8547_v57 = vpop.eup %8546  ;;  %8558 = vtanh.f32 %v13540_v18  ;;  %v13781_v18 = vsel %vm1178_vm3, %v5276_v25, %v5277_v45  ;;  %v13797_v45 = vsel %vm1178_vm3, %v5286_v12, %v5287_v11 }
 0x460   :  { %16938 = vst [vmem:[#allocation23_spill] sm:$0xff] %v13760_v58  ;;  %v8549_v7 = vpop.eup %8548  ;;  %8560 = vtanh.f32 %v13543_v27  ;;  %v6058_v15 = vmax.f32 %v5994_v6, %v13675_v38  ;;  %v13792_v55 = vsel %vm1178_vm3, %v5281_v17, %v5282_v52 }
 0x461   :  { %5007 = vst.msk [vmem:[#allocation3 + $0x1e1] sm:$0xff] %vm4191_vm2, %v8545_v30  ;;  %v8551_v22 = vpop.eup %8550  ;;  %8562 = vtanh.f32 %v13546_v35  ;;  %v13787_v27 = vld [vmem:[#allocation3 + $0x170] sm:$0xff]  ;;  %v5084_v28 = vld [vmem:[#allocation3 + $0x178] sm:$0x3] }
 0x462   :  { %5008 = vst.msk [vmem:[#allocation3 + $0x1e9] sm:$0xff] %vm4191_vm2, %v8547_v57  ;;  %v8553_v53 = vpop.eup %8552  ;;  %8564 = vtanh.f32 %v13549_v48  ;;  %v5317_v35 = vrot.slane %v13787_v27, 1  ;;  %v5319_v44 = vrot.slane %v5084_v28, 1  ;;  %v5605_v60 = vrot.slane %v13787_v27, 2 }
 0x463   :  { %5009 = vst.msk [vmem:[#allocation3 + $0x1f9] sm:$0xff] %vm4191_vm2, %v8549_v7  ;;  %v8555_v43 = vpop.eup %8554  ;;  %8566 = vtanh.f32 %v13552_v63  ;;  %v6142_v52 = vmax.f32 %v6058_v15, %v13707_v41  ;;  %v5607_v49 = vrot.slane %v5084_v28, 2  ;;  %v5479_v48 = vmax.f32 %v13736_v21, %v13781_v18 }
 0x464   :  { %5010 = vst.msk [vmem:[#allocation3 + $0x201] sm:$0xff] %vm4191_vm2, %v8551_v22  ;;  %v13806_v13 = vld [vmem:[#allocation3 + $0x188] sm:$0xff]  ;;  %v5087_v11 = vld [vmem:[#allocation3 + $0x190] sm:$0x3]  ;;  %v8557_v30 = vpop.eup %8556  ;;  %8568 = vtanh.f32 %v13555_v33  ;;  %v13815_v63 = vsel %vm1178_vm3, %v5317_v35, %v5319_v44 }
 0x465   :  { %5011 = vst.msk [vmem:[#allocation3 + $0x211] sm:$0xff] %vm4191_vm2, %v8553_v53  ;;  %v5888_v41 = vrot.slane %v13806_v13, 1  ;;  %v5890_v25 = vrot.slane %v5087_v11, 1  ;;  %v8559_v57 = vpop.eup %8558  ;;  %8570 = vtanh.f32 %v13558_v59  ;;  %v6220_v6 = vmax.f32 %v6142_v52, %v13726_v29  ;;  %v13842_v44 = vld [vmem:[#allocation3 + $0x168] sm:$0xff]  ;;  %v14037_v29 = vld [vmem:[#allocation3 + $0x78] sm:$0xff] }
 0x466   :  { %5012 = vst.msk [vmem:[#allocation3 + $0x219] sm:$0xff] %vm4191_vm2, %v8555_v43  ;;  %v5496_v33 = vmax.f32 %v13787_v27, %v13815_v63  ;;  %v13826_v17 = vsel %vm1660_vm4, %v5605_v60, %v5607_v49  ;;  %v8561_v12 = vpop.eup %8560  ;;  %8572 = vtanh.f32 %v13561_v42  ;;  %v5966_v7 = vrot.slane %v13806_v13, 2 }
 0x467   :  { %5013 = vst.msk [vmem:[#allocation3 + $0x229] sm:$0xff] %vm4191_vm2, %v8557_v30  ;;  %v13833_v59 = vsel %vm1178_vm3, %v5888_v41, %v5890_v25  ;;  %v5968_v22 = vrot.slane %v5087_v11, 2  ;;  %v8563_v15 = vpop.eup %8562  ;;  %8574 = vtanh.f32 %v13564_v47  ;;  %6333 = vmatpush.msra.mxu0 %v6220_v6  ;;  %8146 = vmatpush.msra.mxu3 %v6220_v6  ;;  %v5481_v42 = vmax.f32 %v13742_v46, %v13792_v55 }
 0x468   :  { %5014 = vst.msk [vmem:[#allocation3 + $0x231] sm:$0xff] %vm4191_vm2, %v8559_v57  ;;  %v5784_v28 = vmax.f32 %v5496_v33, %v13826_v17  ;;  %v5564_v53 = vrot.slane %v13736_v21, 2  ;;  %v8565_v43 = vpop.eup %8564  ;;  %8576 = vtanh.f32 %v13567_v5  ;;  %v5483_v52 = vmax.f32 %v13744_v16, %v13797_v45 }
 0x469   :  { %5015 = vst.msk [vmem:[#allocation3 + $0x241] sm:$0xff] %vm4191_vm2, %v8561_v12  ;;  %v13849_v47 = vsel %vm1660_vm4, %v5966_v7, %v5968_v22  ;;  %v5569_v11 = vrot.slane %v13742_v46, 2  ;;  %v8567_v49 = vpop.eup %8566  ;;  %8578 = vtanh.f32 %v13570_v32  ;;  %v5574_v25 = vrot.slane %v13744_v16, 2 }
 0x46a   :  { %5016 = vst.msk [vmem:[#allocation3 + $0x249] sm:$0xff] %vm4191_vm2, %v8563_v15  ;;  %v5848_v30 = vmax.f32 %v5784_v28, %v13806_v13  ;;  %v13860_v5 = vsel %vm1660_vm4, %v5564_v53, %v5565_v19  ;;  %v8569_v57 = vpop.eup %8568  ;;  %8580 = vtanh.f32 %v13573_v36  ;;  %v5316_v33 = vrot.slane %v13842_v44, 1  ;;  %v13887_v15 = vld [vmem:[#allocation3 + $0x180] sm:$0xff] }
 0x46b   :  { %5017 = vst.msk [vmem:[#allocation3 + $0x259] sm:$0xff] %vm4191_vm2, %v8565_v43  ;;  %v13868_v32 = vsel %vm1660_vm4, %v5569_v11, %v5570_v34  ;;  %v5767_v6 = vmax.f32 %v5479_v48, %v13860_v5  ;;  %v8571_v12 = vpop.eup %8570  ;;  %8582 = vtanh.f32 %v13576_v8  ;;  %v13878_v36 = vsel %vm1660_vm4, %v5574_v25, %v5575_v37 }
 0x46c   :  { %5018 = vst.msk [vmem:[#allocation3 + $0x261] sm:$0xff] %vm4191_vm2, %v8567_v49  ;;  %v5932_v19 = vmax.f32 %v5848_v30, %v13833_v59  ;;  %v5769_v22 = vmax.f32 %v5481_v42, %v13868_v32  ;;  %v8573_v34 = vpop.eup %8572  ;;  %8584 = vtanh.f32 %v13579_v51  ;;  %v13884_v48 = vmax.f32 %v5483_v52, %v13878_v36  ;;  %v13898_v42 = vld [vmem:[#allocation3 + $0x198] sm:$0xff] }
 0x46d   :  { %5019 = vst.msk [vmem:[#allocation3 + $0x271] sm:$0xff] %vm4191_vm2, %v8569_v57  ;;  %v5831_v8 = vmax.f32 %v5767_v6, %v13742_v46  ;;  %v13892_v38 = vsel %vm1178_vm3, %v5316_v33, %v5317_v35  ;;  %v8575_v37 = vpop.eup %8574  ;;  %8586 = vtanh.f32 %v13582_v2  ;;  %v5604_v52 = vrot.slane %v13842_v44, 2 }
 0x46e   :  { %16939 = vst [vmem:[#allocation21_spill] sm:$0xff] %v13878_v36  ;;  %v6010_v51 = vmax.f32 %v5932_v19, %v13849_v47  ;;  %v5833_v28 = vmax.f32 %v5769_v22, %v13744_v16  ;;  %v5495_v53 = vmax.f32 %v13842_v44, %v13892_v38  ;;  %v8577_v43 = vpop.eup %8576  ;;  %8588 = vtanh.f32 %v13585_v4  ;;  %v13924_v22 = vld [vmem:[#allocation3 + $0x98] sm:$0xff] }
 0x46f   :  { %5020 = vst.msk [vmem:[#allocation3 + $0x279] sm:$0xff] %vm4191_vm2, %v8571_v12  ;;  %v5915_v2 = vmax.f32 %v5831_v8, %v13792_v55  ;;  %v8579_v11 = vpop.eup %8578  ;;  %v5887_v25 = vrot.slane %v13887_v15, 1  ;;  %v5965_v4 = vrot.slane %v13887_v15, 2  ;;  %v13920_v33 = vsel %vm1660_vm4, %v5604_v52, %v5605_v60 }
 0x470   :  { %5021 = vst.msk [vmem:[#allocation3 + $0x289] sm:$0xff] %vm4191_vm2, %v8573_v34  ;;  %v6074_v49 = vmax.f32 %v6010_v51, %v13701_v26  ;;  %v13911_v30 = vmax.f32 %v5833_v28, %v13797_v45  ;;  %v8581_v57 = vpop.eup %8580  ;;  %v6113_v12 = vrot.slane %v13898_v42, 1  ;;  %v6191_v19 = vrot.slane %v13898_v42, 2  ;;  %v5057_v34 = vld [vmem:[#allocation3 + $0xa0] sm:$0x3] }
 0x471   :  { %5022 = vst.msk [vmem:[#allocation3 + $0x291] sm:$0xff] %vm4191_vm2, %v8575_v37  ;;  %v5993_v6 = vmax.f32 %v5915_v2, %v13868_v32  ;;  %v8583_v8 = vpop.eup %8582  ;;  %v5783_v28 = vmax.f32 %v5495_v53, %v13920_v33  ;;  %v13934_v60 = vsel %vm1178_vm3, %v5887_v25, %v5888_v41  ;;  %v5560_v26 = vrot.slane %v13924_v22, 2 }
 0x472   :  { %5023 = vst.msk [vmem:[#allocation3 + $0x2a1] sm:$0xff] %vm4191_vm2, %v8577_v43  ;;  %v6158_v37 = vmax.f32 %v6074_v49, %v13754_v9  ;;  %v13936_v43 = vld [vmem:[#allocation3 + $0x158] sm:$0xff]  ;;  %v8585_v2 = vpop.eup %8584  ;;  %v13943_v9 = vsel %vm1660_vm4, %v5965_v4, %v5966_v7  ;;  %v6115_v53 = vsel %vm1178_vm3, %v6113_v12, %v6114_v20  ;;  %v6193_v41 = vsel %vm1660_vm4, %v6191_v19, %v6192_v3  ;;  %v13959_v12 = vld [vmem:[#allocation3 + $0x90] sm:$0xff] }
 0x473   :  { %16940 = vst [vmem:[#allocation25_spill] sm:$0xff] %v13911_v30  ;;  %v6057_v52 = vmax.f32 %v5993_v6, %v13744_v16  ;;  %v8587_v49 = vpop.eup %8586  ;;  %v5847_v16 = vmax.f32 %v5783_v28, %v13887_v15  ;;  %v5274_v7 = vrot.slane %v5057_v34, 1  ;;  %v5562_v6 = vrot.slane %v5057_v34, 2 }
 0x474   :  { %5024 = vst.msk [vmem:[#allocation3 + $0x2a9] sm:$0xff] %vm4191_vm2, %v8579_v11  ;;  %v5081_v11 = vld [vmem:[#allocation3 + $0x160] sm:$0x3]  ;;  %v6236_v25 = vmax.f32 %v6158_v37, %v13766_v24  ;;  %v8589_v4 = vpop.eup %8588  ;;  %v5312_v3 = vrot.slane %v13936_v43, 1  ;;  %v5600_v37 = vrot.slane %v13936_v43, 2 }
 0x475   :  { %5025 = vst.msk [vmem:[#allocation3 + $0x2b9] sm:$0xff] %vm4191_vm2, %v8581_v57  ;;  %v5272_v57 = vrot.slane %v13924_v22, 1  ;;  %v6141_v20 = vmax.f32 %v6057_v52, %v13797_v45  ;;  %v5931_v24 = vmax.f32 %v5847_v16, %v13934_v60  ;;  %v13967_v45 = vld [vmem:[#allocation3 + $0x150] sm:$0xff]  ;;  %v5602_v52 = vrot.slane %v5081_v11, 2 }
 0x476   :  { %5026 = vst.msk [vmem:[#allocation3 + $0x2c1] sm:$0xff] %vm4191_vm2, %v8583_v8  ;;  %6398 = vmatpush.msra.mxu1 %v6236_v25  ;;  %8162 = vmatpush.msra.mxu2 %v6236_v25  ;;  %v5314_v8 = vrot.slane %v5081_v11, 1  ;;  %v5271_v16 = vrot.slane %v13959_v12, 1  ;;  %v5311_v11 = vrot.slane %v13967_v45, 1 }
 0x477   :  { %5027 = vst.msk [vmem:[#allocation3 + $0x2d1] sm:$0xff] %vm4191_vm2, %v8585_v2  ;;  %v13964_v19 = vsel %vm1178_vm3, %v5272_v57, %v5274_v7  ;;  %v6219_v34 = vmax.f32 %v6141_v20, %v13878_v36  ;;  %v13973_v2 = vsel %vm1660_vm4, %v5560_v26, %v5562_v6  ;;  %v5559_v7 = vrot.slane %v13959_v12, 2  ;;  %v5078_v36 = vld [vmem:[#allocation3 + $0x148] sm:$0x3] }
 0x478   :  { %5033 = vst.msk [vmem:[#allocation3 + $0x319] sm:$0xff] %vm4191_vm2, %v8587_v49  ;;  %v5478_v28 = vmax.f32 %v13924_v22, %v13964_v19  ;;  %v6009_v49 = vmax.f32 %v5931_v24, %v13943_v9  ;;  %v13977_v25 = vsel %vm1178_vm3, %v5312_v3, %v5314_v8  ;;  %v13985_v6 = vsel %vm1660_vm4, %v5600_v37, %v5602_v52  ;;  %v13988_v24 = vld [vmem:[#allocation3 + $0x80] sm:$0xff] }
 0x479   :  { %5036 = vst.msk [vmem:[#allocation3 + $0x339] sm:$0xff] %vm4191_vm2, %v8589_v4  ;;  %6334 = vmatpush.msra.mxu0 %v6219_v34  ;;  %8147 = vmatpush.msra.mxu3 %v6219_v34  ;;  %v5494_v20 = vmax.f32 %v13936_v43, %v13977_v25  ;;  %v13992_v51 = vsel %vm1178_vm3, %v5271_v16, %v5272_v57  ;;  %v5599_v34 = vrot.slane %v13967_v45, 2  ;;  %v5597_v30 = vrot.slane %v5078_v36, 2 }
 0x47a   :  { %v5766_v4 = vmax.f32 %v5478_v28, %v13973_v2  ;;  %v6073_v8 = vmax.f32 %v6009_v49, %v13898_v42  ;;  %v13995_v54 = vsel %vm1660_vm4, %v5559_v7, %v5560_v26  ;;  %v5054_v28 = vld [vmem:[#allocation3 + $0x88] sm:$0x3]  ;;  %v5477_v23 = vmax.f32 %v13959_v12, %v13992_v51 }
 0x47b   :  { %v5782_v52 = vmax.f32 %v5494_v20, %v13985_v6  ;;  %v14003_v10 = vsel %vm1178_vm3, %v5311_v11, %v5312_v3  ;;  %v14008_v26 = vsel %vm1660_vm4, %v5599_v34, %v5600_v37  ;;  %v5267_v49 = vrot.slane %v13988_v24, 1 }
 0x47c   :  { %v5830_v35 = vmax.f32 %v5766_v4, %v13655_v31  ;;  %v6157_v42 = vmax.f32 %v6073_v8, %v6115_v53  ;;  %v5493_v57 = vmax.f32 %v13967_v45, %v14003_v10  ;;  %v5765_v4 = vmax.f32 %v5477_v23, %v13995_v54 }
 0x47d   :  { %v5846_v7 = vmax.f32 %v5782_v52, %v13787_v27  ;;  %v5269_v20 = vrot.slane %v5054_v28, 1  ;;  %v5555_v11 = vrot.slane %v13988_v24, 2  ;;  %v5557_v8 = vrot.slane %v5054_v28, 2 }
 0x47e   :  { %v5914_v16 = vmax.f32 %v5830_v35, %v13670_v40  ;;  %v6235_v3 = vmax.f32 %v6157_v42, %v6193_v41  ;;  %v5781_v53 = vmax.f32 %v5493_v57, %v14008_v26  ;;  %v5829_v35 = vmax.f32 %v5765_v4, %v13736_v21 }
 0x47f   :  { %v5930_v34 = vmax.f32 %v5846_v7, %v13815_v63  ;;  %v14022_v52 = vsel %vm1178_vm3, %v5267_v49, %v5269_v20  ;;  %v14028_v42 = vsel %vm1660_vm4, %v5555_v11, %v5557_v8  ;;  %v5307_v28 = vrot.slane %v14014_v56, 1 }
 0x480   :  { %v5992_v37 = vmax.f32 %v5914_v16, %v13682_v1  ;;  %6399 = vmatpush.msra.mxu1 %v6235_v3  ;;  %8163 = vmatpush.msra.mxu2 %v6235_v3  ;;  %v5845_v23 = vmax.f32 %v5781_v53, %v13842_v44  ;;  %v5476_v41 = vmax.f32 %v13988_v24, %v14022_v52  ;;  %v5309_v4 = vrot.slane %v5078_v36, 1 }
 0x481   :  { %v6008_v16 = vmax.f32 %v5930_v34, %v13826_v17  ;;  %v5913_v7 = vmax.f32 %v5829_v35, %v13781_v18  ;;  %v5595_v53 = vrot.slane %v14014_v56, 2 }
 0x482   :  { %v6056_v57 = vmax.f32 %v5992_v37, %v13663_v62  ;;  %v5929_v20 = vmax.f32 %v5845_v23, %v13892_v38  ;;  %v5764_v3 = vmax.f32 %v5476_v41, %v14028_v42  ;;  %v14043_v37 = vsel %vm1178_vm3, %v5307_v28, %v5309_v4  ;;  %v14052_v41 = vld [vmem:[#allocation3 + $0x138] sm:$0xff] }
 0x483   :  { %v6072_v58 = vmax.f32 %v6008_v16, %v13806_v13  ;;  %v5991_v62 = vmax.f32 %v5913_v7, %v13860_v5  ;;  %v5492_v23 = vmax.f32 %v14014_v56, %v14043_v37  ;;  %v14050_v36 = vsel %vm1660_vm4, %v5595_v53, %v5597_v30 }
 0x484   :  { %v6140_v8 = vmax.f32 %v6056_v57, %v13690_v0  ;;  %v6007_v34 = vmax.f32 %v5929_v20, %v13920_v33  ;;  %v5828_v35 = vmax.f32 %v5764_v3, %v13924_v22  ;;  %v5266_v16 = vrot.slane %v14037_v29, 1 }
 0x485   :  { %v6156_v13 = vmax.f32 %v6072_v58, %v13833_v59  ;;  %v6055_v57 = vmax.f32 %v5991_v62, %v13742_v46  ;;  %v5780_v20 = vmax.f32 %v5492_v23, %v14050_v36  ;;  %v5554_v3 = vrot.slane %v14037_v29, 2 }
 0x486   :  { %v6218_v0 = vmax.f32 %v6140_v8, %v13717_v50  ;;  %v6071_v7 = vmax.f32 %v6007_v34, %v13887_v15  ;;  %v5912_v4 = vmax.f32 %v5828_v35, %v13964_v19  ;;  %v14065_v58 = vsel %vm1178_vm3, %v5266_v16, %v5267_v49  ;;  %v14073_v34 = vld [vmem:[#allocation3 + $0x68] sm:$0xff]  ;;  %v5051_v35 = vld [vmem:[#allocation3 + $0x70] sm:$0x3] }
 0x487   :  { %v6234_v30 = vmax.f32 %v6156_v13, %v13849_v47  ;;  %v6139_v50 = vmax.f32 %v6055_v57, %v13792_v55  ;;  %v5306_v46 = vrot.slane %v14052_v41, 1  ;;  %v5844_v8 = vmax.f32 %v5780_v20, %v13936_v43  ;;  %v14087_v16 = vld [vmem:[#allocation3 + $0x128] sm:$0xff] }
 0x488   :  { %6335 = vmatpush.msra.mxu0 %v6218_v0  ;;  %8148 = vmatpush.msra.mxu3 %v6218_v0  ;;  %v6155_v59 = vmax.f32 %v6071_v7, %v13934_v60  ;;  %v5990_v15 = vmax.f32 %v5912_v4, %v13973_v2  ;;  %v5475_v62 = vmax.f32 %v14037_v29, %v14065_v58  ;;  %v5594_v60 = vrot.slane %v14052_v41, 2 }
 0x489   :  { %6400 = vmatpush.msra.mxu1 %v6234_v30  ;;  %8164 = vmatpush.msra.mxu2 %v6234_v30  ;;  %v6217_v55 = vmax.f32 %v6139_v50, %v13868_v32  ;;  %v14077_v47 = vsel %vm1660_vm4, %v5554_v3, %v5555_v11  ;;  %v14080_v49 = vsel %vm1178_vm3, %v5306_v46, %v5307_v28  ;;  %v5262_v28 = vrot.slane %v14073_v34, 1  ;;  %v5075_v3 = vld [vmem:[#allocation3 + $0x130] sm:$0x3] }
 0x48a   :  { %v6233_v23 = vmax.f32 %v6155_v59, %v13943_v9  ;;  %v6054_v0 = vmax.f32 %v5990_v15, %v13655_v31  ;;  %v5928_v13 = vmax.f32 %v5844_v8, %v13977_v25  ;;  %v5763_v57 = vmax.f32 %v5475_v62, %v14077_v47  ;;  %v14109_v62 = vld [vmem:[#allocation3 + $0x60] sm:$0xff] }
 0x48b   :  { %6336 = vmatpush.msra.mxu0 %v6217_v55  ;;  %8149 = vmatpush.msra.mxu3 %v6217_v55  ;;  %v5491_v32 = vmax.f32 %v14052_v41, %v14080_v49  ;;  %v14092_v11 = vsel %vm1660_vm4, %v5594_v60, %v5595_v53  ;;  %v5264_v7 = vrot.slane %v5051_v35, 1  ;;  %v5550_v20 = vrot.slane %v14073_v34, 2 }
 0x48c   :  { %6401 = vmatpush.msra.mxu1 %v6233_v23  ;;  %8165 = vmatpush.msra.mxu2 %v6233_v23  ;;  %v6138_v31 = vmax.f32 %v6054_v0, %v13670_v40  ;;  %v6006_v9 = vmax.f32 %v5928_v13, %v13985_v6  ;;  %v5827_v4 = vmax.f32 %v5763_v57, %v13959_v12  ;;  %v5552_v53 = vrot.slane %v5051_v35, 2 }
 0x48d   :  { %v5779_v30 = vmax.f32 %v5491_v32, %v14092_v11  ;;  %v14101_v50 = vsel %vm1178_vm3, %v5262_v28, %v5264_v7  ;;  %v5302_v46 = vrot.slane %v14087_v16, 1  ;;  %v5304_v23 = vrot.slane %v5075_v3, 1 }
 0x48e   :  { %v6216_v59 = vmax.f32 %v6138_v31, %v13682_v1  ;;  %v6070_v15 = vmax.f32 %v6006_v9, %v13787_v27  ;;  %v5911_v40 = vmax.f32 %v5827_v4, %v13992_v51  ;;  %v5474_v8 = vmax.f32 %v14073_v34, %v14101_v50  ;;  %v14125_v9 = vld [vmem:[#allocation3 + $0x120] sm:$0xff] }
 0x48f   :  { %v5843_v55 = vmax.f32 %v5779_v30, %v13967_v45  ;;  %v14113_v60 = vsel %vm1660_vm4, %v5550_v20, %v5552_v53  ;;  %v5590_v35 = vrot.slane %v14087_v16, 2  ;;  %v5592_v13 = vrot.slane %v5075_v3, 2  ;;  %v14132_v53 = vld [vmem:[#allocation3 + $0x50] sm:$0xff] }
 0x490   :  { %6337 = vmatpush.msra.mxu0 %v6216_v59  ;;  %8150 = vmatpush.msra.mxu3 %v6216_v59  ;;  %v6154_v1 = vmax.f32 %v6070_v15, %v13815_v63  ;;  %v5989_v27 = vmax.f32 %v5911_v40, %v13995_v54  ;;  %v5762_v0 = vmax.f32 %v5474_v8, %v14113_v60  ;;  %v5261_v7 = vrot.slane %v14109_v62, 1 }
 0x491   :  { %v5927_v57 = vmax.f32 %v5843_v55, %v14003_v10  ;;  %v14121_v32 = vsel %vm1178_vm3, %v5302_v46, %v5304_v23  ;;  %v5549_v31 = vrot.slane %v14109_v62, 2  ;;  %v14136_v15 = vsel %vm1660_vm4, %v5590_v35, %v5592_v13 }
 0x492   :  { %v6232_v4 = vmax.f32 %v6154_v1, %v13826_v17  ;;  %v6053_v63 = vmax.f32 %v5989_v27, %v13736_v21  ;;  %v5826_v30 = vmax.f32 %v5762_v0, %v13988_v24  ;;  %v5490_v3 = vmax.f32 %v14087_v16, %v14121_v32  ;;  %v5048_v0 = vld [vmem:[#allocation3 + $0x58] sm:$0x3] }
 0x493   :  { %v6005_v59 = vmax.f32 %v5927_v57, %v14008_v26  ;;  %v14139_v40 = vsel %vm1178_vm3, %v5261_v7, %v5262_v28  ;;  %v14142_v8 = vsel %vm1660_vm4, %v5549_v31, %v5550_v20  ;;  %v5301_v23 = vrot.slane %v14125_v9, 1 }
 0x494   :  { %6402 = vmatpush.msra.mxu1 %v6232_v4  ;;  %8166 = vmatpush.msra.mxu2 %v6232_v4  ;;  %v6137_v21 = vmax.f32 %v6053_v63, %v13781_v18  ;;  %v5910_v17 = vmax.f32 %v5826_v30, %v14022_v52  ;;  %v5778_v55 = vmax.f32 %v5490_v3, %v14136_v15  ;;  %v5589_v28 = vrot.slane %v14125_v9, 2  ;;  %v14166_v30 = vld [vmem:[#allocation3 + $0x110] sm:$0xff] }
 0x495   :  { %v6069_v1 = vmax.f32 %v6005_v59, %v13842_v44  ;;  %v5473_v27 = vmax.f32 %v14109_v62, %v14139_v40  ;;  %v5257_v20 = vrot.slane %v14132_v53, 1  ;;  %v14157_v7 = vsel %vm1178_vm3, %v5301_v23, %v5302_v46 }
 0x496   :  { %v6215_v13 = vmax.f32 %v6137_v21, %v13860_v5  ;;  %v5988_v18 = vmax.f32 %v5910_v17, %v14028_v42  ;;  %v5842_v57 = vmax.f32 %v5778_v55, %v14014_v56  ;;  %v5489_v4 = vmax.f32 %v14125_v9, %v14157_v7 }
 0x497   :  { %v6153_v31 = vmax.f32 %v6069_v1, %v13892_v38  ;;  %v5761_v44 = vmax.f32 %v5473_v27, %v14142_v8  ;;  %v14164_v63 = vsel %vm1660_vm4, %v5589_v28, %v5590_v35  ;;  %v5259_v46 = vrot.slane %v5048_v0, 1  ;;  %v5072_v38 = vld [vmem:[#allocation3 + $0x118] sm:$0x3] }
 0x498   :  { %6338 = vmatpush.msra.mxu0 %v6215_v13  ;;  %8151 = vmatpush.msra.mxu3 %v6215_v13  ;;  %v6052_v5 = vmax.f32 %v5988_v18, %v13924_v22  ;;  %v5926_v3 = vmax.f32 %v5842_v57, %v14043_v37  ;;  %v5545_v59 = vrot.slane %v14132_v53, 2  ;;  %v5777_v55 = vmax.f32 %v5489_v4, %v14164_v63 }
 0x499   :  { %v6231_v21 = vmax.f32 %v6153_v31, %v13920_v33  ;;  %v5825_v17 = vmax.f32 %v5761_v44, %v14037_v29  ;;  %v5547_v35 = vrot.slane %v5048_v0, 2  ;;  %v14177_v27 = vsel %vm1178_vm3, %v5257_v20, %v5259_v46  ;;  %v14184_v0 = vld [vmem:[#allocation3 + $0x48] sm:$0xff] }
 0x49a   :  { %v6136_v23 = vmax.f32 %v6052_v5, %v13964_v19  ;;  %v6004_v1 = vmax.f32 %v5926_v3, %v14050_v36  ;;  %v5297_v22 = vrot.slane %v14166_v30, 1  ;;  %v5841_v33 = vmax.f32 %v5777_v55, %v14052_v41 }
 0x49b   :  { %6403 = vmatpush.msra.mxu1 %v6231_v21  ;;  %8167 = vmatpush.msra.mxu2 %v6231_v21  ;;  %v5909_v28 = vmax.f32 %v5825_v17, %v14065_v58  ;;  %v5472_v13 = vmax.f32 %v14132_v53, %v14177_v27  ;;  %v5299_v18 = vrot.slane %v5072_v38, 1  ;;  %v14189_v31 = vsel %vm1660_vm4, %v5545_v59, %v5547_v35  ;;  %v14198_v21 = vld [vmem:[#allocation3 + $0x108] sm:$0xff] }
 0x49c   :  { %v6214_v19 = vmax.f32 %v6136_v23, %v13973_v2  ;;  %v6068_v57 = vmax.f32 %v6004_v1, %v13936_v43  ;;  %v5585_v44 = vrot.slane %v14166_v30, 2  ;;  %v5925_v5 = vmax.f32 %v5841_v33, %v14080_v49 }
 0x49d   :  { %v5987_v4 = vmax.f32 %v5909_v28, %v14077_v47  ;;  %v5760_v3 = vmax.f32 %v5472_v13, %v14189_v31  ;;  %v14196_v46 = vsel %vm1178_vm3, %v5297_v22, %v5299_v18  ;;  %v5587_v17 = vrot.slane %v5072_v38, 2 }
 0x49e   :  { %6339 = vmatpush.msra.mxu0 %v6214_v19  ;;  %8152 = vmatpush.msra.mxu3 %v6214_v19  ;;  %v6152_v43 = vmax.f32 %v6068_v57, %v13977_v25  ;;  %v5488_v2 = vmax.f32 %v14166_v30, %v14196_v46  ;;  %v5256_v55 = vrot.slane %v14184_v0, 1  ;;  %v6003_v23 = vmax.f32 %v5925_v5, %v14092_v11 }
 0x49f   :  { %v6051_v35 = vmax.f32 %v5987_v4, %v13959_v12  ;;  %v5824_v1 = vmax.f32 %v5760_v3, %v14073_v34  ;;  %v5544_v28 = vrot.slane %v14184_v0, 2  ;;  %v14210_v13 = vsel %vm1660_vm4, %v5585_v44, %v5587_v17  ;;  %v14220_v4 = vld [vmem:[#allocation3 + $0x38] sm:$0xff] }
 0x4a0   :  { %v6230_v33 = vmax.f32 %v6152_v43, %v13985_v6  ;;  %v14213_v25 = vsel %vm1178_vm3, %v5256_v55, %v5257_v20  ;;  %v5296_v38 = vrot.slane %v14198_v21, 1  ;;  %v6067_v12 = vmax.f32 %v6003_v23, %v13967_v45  ;;  %v5045_v45 = vld [vmem:[#allocation3 + $0x40] sm:$0x3] }
 0x4a1   :  { %v6135_v18 = vmax.f32 %v6051_v35, %v13992_v51  ;;  %v5908_v19 = vmax.f32 %v5824_v1, %v14101_v50  ;;  %v5776_v57 = vmax.f32 %v5488_v2, %v14210_v13  ;;  %v5471_v6 = vmax.f32 %v14184_v0, %v14213_v25  ;;  %v5069_v23 = vld [vmem:[#allocation3 + $0x100] sm:$0x3] }
 0x4a2   :  { %6404 = vmatpush.msra.mxu1 %v6230_v33  ;;  %8168 = vmatpush.msra.mxu2 %v6230_v33  ;;  %v14225_v20 = vsel %vm1660_vm4, %v5544_v28, %v5545_v59  ;;  %v14228_v5 = vsel %vm1178_vm3, %v5296_v38, %v5297_v22  ;;  %v5584_v51 = vrot.slane %v14198_v21, 2  ;;  %v6151_v43 = vmax.f32 %v6067_v12, %v14003_v10 }
 0x4a3   :  { %v6213_v3 = vmax.f32 %v6135_v18, %v13995_v54  ;;  %v5986_v2 = vmax.f32 %v5908_v19, %v14113_v60  ;;  %v5840_v17 = vmax.f32 %v5776_v57, %v14087_v16  ;;  %v5759_v55 = vmax.f32 %v5471_v6, %v14225_v20 }
 0x4a4   :  { %v5487_v59 = vmax.f32 %v14198_v21, %v14228_v5  ;;  %v14239_v35 = vsel %vm1660_vm4, %v5584_v51, %v5585_v44  ;;  %v5252_v22 = vrot.slane %v14220_v4, 1  ;;  %v6229_v54 = vmax.f32 %v6151_v43, %v14008_v26 }
 0x4a5   :  { %6340 = vmatpush.msra.mxu0 %v6213_v3  ;;  %8153 = vmatpush.msra.mxu3 %v6213_v3  ;;  %v6050_v10 = vmax.f32 %v5986_v2, %v13988_v24  ;;  %v5924_v1 = vmax.f32 %v5840_v17, %v14121_v32  ;;  %v5254_v28 = vrot.slane %v5045_v45, 1  ;;  %v5823_v33 = vmax.f32 %v5759_v55, %v14109_v62 }
 0x4a6   :  { %v5775_v38 = vmax.f32 %v5487_v59, %v14239_v35  ;;  %v5540_v18 = vrot.slane %v14220_v4, 2  ;;  %v5542_v44 = vrot.slane %v5045_v45, 2  ;;  %6405 = vmatpush.msra.mxu1 %v6229_v54  ;;  %8169 = vmatpush.msra.mxu2 %v6229_v54  ;;  %v5294_v24 = vrot.slane %v5069_v23, 1  ;;  %v14260_v45 = vld [vmem:[#allocation3 + $0x30] sm:$0xff] }
 0x4a7   :  { %v6134_v12 = vmax.f32 %v6050_v10, %v14022_v52  ;;  %v6002_v19 = vmax.f32 %v5924_v1, %v14136_v15  ;;  %v14251_v26 = vsel %vm1178_vm3, %v5252_v22, %v5254_v28  ;;  %v5907_v57 = vmax.f32 %v5823_v33, %v14139_v40 }
 0x4a8   :  { %v5839_v6 = vmax.f32 %v5775_v38, %v14125_v9  ;;  %v5470_v51 = vmax.f32 %v14220_v4, %v14251_v26  ;;  %v14258_v3 = vsel %vm1660_vm4, %v5540_v18, %v5542_v44  ;;  %v16941_v2 = vrot.slane %v13695_v14, 1 }
 0x4a9   :  { %v6212_v52 = vmax.f32 %v6134_v12, %v14028_v42  ;;  %v6066_v43 = vmax.f32 %v6002_v19, %v14014_v56  ;;  %v5580_v55 = vrot.slane %v13695_v14, 2  ;;  %v5985_v59 = vmax.f32 %v5907_v57, %v14142_v8 }
 0x4aa   :  { %v14267_v17 = vsel %vm1178_vm3, %v16941_v2, %v5294_v24  ;;  %v5923_v54 = vmax.f32 %v5839_v6, %v14157_v7  ;;  %v5758_v10 = vmax.f32 %v5470_v51, %v14258_v3  ;;  %v5582_v42 = vrot.slane %v5069_v23, 2  ;;  %v14288_v6 = vld [vmem:[#allocation3 + $0x20] sm:$0xff] }
 0x4ab   :  { %v5486_v1 = vmax.f32 %v13695_v14, %v14267_v17  ;;  %6341 = vmatpush.msra.mxu0 %v6212_v52  ;;  %8154 = vmatpush.msra.mxu3 %v6212_v52  ;;  %v6150_v56 = vmax.f32 %v6066_v43, %v14043_v37  ;;  %v5251_v28 = vrot.slane %v14260_v45, 1  ;;  %v5539_v33 = vrot.slane %v14260_v45, 2 }
 0x4ac   :  { %v6049_v38 = vmax.f32 %v5985_v59, %v14037_v29  ;;  %v6001_v44 = vmax.f32 %v5923_v54, %v14164_v63  ;;  %v5822_v12 = vmax.f32 %v5758_v10, %v14132_v53  ;;  %v16942_v19 = vmov %v16941_v2  ;;  %v5042_v54 = vld [vmem:[#allocation3 + $0x28] sm:$0x3] }
 0x4ad   :  { %v16943_v24 = vrot.slane %v13756_v61, 1  ;;  %v6228_v37 = vmax.f32 %v6150_v56, %v14050_v36  ;;  %v14292_v23 = vsel %vm1660_vm4, %v5580_v55, %v5582_v42  ;;  %v14295_v29 = vsel %vm1178_vm3, %v5251_v28, %v5252_v22 }
 0x4ae   :  { %v14298_v51 = vsel %vm1660_vm4, %v5539_v33, %v5540_v18  ;;  %v6133_v52 = vmax.f32 %v6049_v38, %v14065_v58  ;;  %v6065_v43 = vmax.f32 %v6001_v44, %v14052_v41  ;;  %v5906_v2 = vmax.f32 %v5822_v12, %v14177_v27  ;;  %v14319_v44 = vld [vmem:[#allocation3 + $0x18] sm:$0xff] }
 0x4af   :  { %v14286_v57 = vsel %vm1178_vm3, %v16943_v24, %v16942_v19  ;;  %v5774_v59 = vmax.f32 %v5486_v1, %v14292_v23  ;;  %6406 = vmatpush.msra.mxu1 %v6228_v37  ;;  %8170 = vmatpush.msra.mxu2 %v6228_v37  ;;  %v5469_v36 = vmax.f32 %v14260_v45, %v14295_v29  ;;  %v5579_v18 = vrot.slane %v13756_v61, 2 }
 0x4b0   :  { %v5485_v22 = vmax.f32 %v13756_v61, %v14286_v57  ;;  %v5247_v10 = vrot.slane %v14288_v6, 1  ;;  %v6211_v58 = vmax.f32 %v6133_v52, %v14077_v47  ;;  %v6149_v41 = vmax.f32 %v6065_v43, %v14080_v49 }
 0x4b1   :  { %v5984_v56 = vmax.f32 %v5906_v2, %v14189_v31  ;;  %v5838_v1 = vmax.f32 %v5774_v59, %v14166_v30  ;;  %v5757_v42 = vmax.f32 %v5469_v36, %v14298_v51  ;;  %v14316_v28 = vsel %vm1660_vm4, %v5579_v18, %v5580_v55 }
 0x4b2   :  { %v5249_v33 = vrot.slane %v5042_v54, 1  ;;  %v5535_v38 = vrot.slane %v14288_v6, 2  ;;  %6342 = vmatpush.msra.mxu0 %v6211_v58  ;;  %8155 = vmatpush.msra.mxu3 %v6211_v58  ;;  %v6227_v47 = vmax.f32 %v6149_v41, %v14092_v11  ;;  %v5537_v19 = vrot.slane %v5042_v54, 2  ;;  %v14350_v41 = vld [vmem:[#allocation3 + $0x8] sm:$0xff] }
 0x4b3   :  { %v6048_v49 = vmax.f32 %v5984_v56, %v14073_v34  ;;  %v5922_v12 = vmax.f32 %v5838_v1, %v14196_v46  ;;  %v5821_v24 = vmax.f32 %v5757_v42, %v14184_v0  ;;  %v5773_v37 = vmax.f32 %v5485_v22, %v14316_v28 }
 0x4b4   :  { %v14327_v55 = vsel %vm1178_vm3, %v5247_v10, %v5249_v33  ;;  %v16944_v52 = vmax.f32 %v13733_v39, %v13695_v14  ;;  %6407 = vmatpush.msra.mxu1 %v6227_v47  ;;  %8171 = vmatpush.msra.mxu2 %v6227_v47  ;;  %v5246_v59 = vrot.slane %v14319_v44, 1  ;;  %v14341_v22 = vsel %vm1660_vm4, %v5535_v38, %v5537_v19 }
 0x4b5   :  { %v6132_v11 = vmax.f32 %v6048_v49, %v14101_v50  ;;  %v6000_v34 = vmax.f32 %v5922_v12, %v14210_v13  ;;  %v5468_v2 = vmax.f32 %v14288_v6, %v14327_v55  ;;  %v5905_v54 = vmax.f32 %v5821_v24, %v14213_v25  ;;  %v5039_v24 = vld [vmem:[#allocation3 + $0x10] sm:$0x3] }
 0x4b6   :  { %v5920_v43 = vmax.f32 %v16944_v52, %v14267_v17  ;;  %v5837_v36 = vmax.f32 %v5773_v37, %v14198_v21  ;;  %v14348_v58 = vsel %vm1178_vm3, %v5246_v59, %v5247_v10  ;;  %v5534_v10 = vrot.slane %v14319_v44, 2  ;;  %v5037_v59 = vld [vmem:[#allocation3] sm:$0xff] }
 0x4b7   :  { %v6210_v39 = vmax.f32 %v6132_v11, %v14113_v60  ;;  %v6064_v50 = vmax.f32 %v6000_v34, %v14087_v16  ;;  %v5756_v18 = vmax.f32 %v5468_v2, %v14341_v22  ;;  %v5983_v56 = vmax.f32 %v5905_v54, %v14225_v20 }
 0x4b8   :  { %v5998_v14 = vmax.f32 %v5920_v43, %v14292_v23  ;;  %v5921_v1 = vmax.f32 %v5837_v36, %v14228_v5  ;;  %v5467_v33 = vmax.f32 %v14319_v44, %v14348_v58  ;;  %v16945_v47 = vmax.f32 %v13884_v48, %v13756_v61 }
 0x4b9   :  { %6343 = vmatpush.msra.mxu0 %v6210_v39  ;;  %8156 = vmatpush.msra.mxu3 %v6210_v39  ;;  %v6148_v16 = vmax.f32 %v6064_v50, %v14121_v32  ;;  %v5820_v60 = vmax.f32 %v5756_v18, %v14220_v4  ;;  %v6047_v12 = vmax.f32 %v5983_v56, %v14109_v62  ;;  %v5242_v37 = vrot.slane %v14350_v41, 1  ;;  %v8629_v50 = vld [vmem:[#allocation3 + $0xf8] sm:$0xff]  ;;  %v16946_v18 = vld [vmem:[#allocation23_spill] sm:$0xff] }
 0x4ba   :  { %v6062_v42 = vmax.f32 %v5998_v14, %v14166_v30  ;;  %v5919_v49 = vmax.f32 %v16945_v47, %v14286_v57  ;;  %v5999_v30 = vmax.f32 %v5921_v1, %v14239_v35  ;;  %v14371_v43 = vsel %vm1660_vm4, %v5534_v10, %v5535_v38  ;;  %v14397_v10 = vld [vmem:[#allocation3 + $0x260] sm:$0xff] }
 0x4bb   :  { %v6226_v32 = vmax.f32 %v6148_v16, %v14136_v15  ;;  %v5904_v52 = vmax.f32 %v5820_v60, %v14251_v26  ;;  %v6131_v61 = vmax.f32 %v6047_v12, %v14139_v40  ;;  %v5244_v2 = vrot.slane %v5039_v24, 1 }
 0x4bc   :  { %v6146_v19 = vmax.f32 %v6062_v42, %v14196_v46  ;;  %v5997_v11 = vmax.f32 %v5919_v49, %v14316_v28  ;;  %v6063_v48 = vmax.f32 %v5999_v30, %v14125_v9  ;;  %v5755_v46 = vmax.f32 %v5467_v33, %v14371_v43  ;;  %v14401_v30 = vld [vmem:[#allocation3 + $0x278] sm:$0xff] }
 0x4bd   :  { %6408 = vmatpush.msra.mxu1 %v6226_v32  ;;  %8172 = vmatpush.msra.mxu2 %v6226_v32  ;;  %v5982_v34 = vmax.f32 %v5904_v52, %v14258_v3  ;;  %v5530_v38 = vrot.slane %v14350_v41, 2  ;;  %v6209_v54 = vmax.f32 %v6131_v61, %v14142_v8  ;;  %v5532_v36 = vrot.slane %v5039_v24, 2  ;;  %v8630_v24 = vld [vmem:[#allocation3 + $0xf0] sm:$0xff]  ;;  %v5117_v61 = vld [vmem:[#allocation3 + $0x280] sm:$0x3] }
 0x4be   :  { %v6224_v62 = vmax.f32 %v6146_v19, %v14210_v13  ;;  %v6061_v15 = vmax.f32 %v5997_v11, %v14198_v21  ;;  %v6147_v40 = vmax.f32 %v6063_v48, %v14157_v7  ;;  %v5819_v9 = vmax.f32 %v5755_v46, %v14260_v45  ;;  %v16947_v21 = vld [vmem:[#allocation19_spill] sm:$0xff]  ;;  %v16950_v32 = vld [vmem:[#allocation21_spill] sm:$0xff] }
 0x4bf   :  { %v6046_v13 = vmax.f32 %v5982_v34, %v14132_v53  ;;  %v5245_v39 = vsel %vm1178_vm3, %v5242_v37, %v5244_v2  ;;  %v16948_v56 = vmax.f32 %v16946_v18, %v16947_v21  ;;  %6344 = vmatpush.msra.mxu0 %v6209_v54  ;;  %8157 = vmatpush.msra.mxu3 %v6209_v54  ;;  %v5241_v33 = vrot.slane %v5037_v59, 1  ;;  %v14408_v48 = vld [vmem:[#allocation3 + $0x290] sm:$0xff]  ;;  %v14449_v18 = vld [vmem:[#allocation3 + $0x320] sm:$0xff] }
 0x4c0   :  { %v6145_v14 = vmax.f32 %v6061_v15, %v14228_v5  ;;  %v6225_v8 = vmax.f32 %v6147_v40, %v14164_v63  ;;  %v5903_v7 = vmax.f32 %v5819_v9, %v14295_v29  ;;  %v5466_v42 = vmax.f32 %v14350_v41, %v5245_v39  ;;  %v5114_v41 = vld [vmem:[#allocation3 + $0x268] sm:$0x3] }
 0x4c1   :  { %v6060_v1 = vmax.f32 %v16948_v56, %v8629_v50  ;;  %v6130_v53 = vmax.f32 %v6046_v13, %v14177_v27  ;;  %v5533_v16 = vsel %vm1660_vm4, %v5530_v38, %v5532_v36  ;;  %v5243_v49 = vsel %vm1178_vm3, %v5241_v33, %v5242_v37  ;;  %v6306_v39 = vld [vmem:[%s16439_s5 + $0x128] sm:$0xff] }
 0x4c2   :  { %v6223_v5 = vmax.f32 %v6145_v14, %v14239_v35  ;;  %6409 = vmatpush.msra.mxu1 %v6225_v8  ;;  %8173 = vmatpush.msra.mxu2 %v6225_v8  ;;  %v5981_v47 = vmax.f32 %v5903_v7, %v14298_v51  ;;  %v5754_v63 = vmax.f32 %v5466_v42, %v5533_v16  ;;  %v5529_v12 = vrot.slane %v5037_v59, 2  ;;  %v5138_v8 = vld [vmem:[#allocation3 + $0x328] sm:$0x3] }
 0x4c3   :  { %v6144_v60 = vmax.f32 %v6060_v1, %v14267_v17  ;;  %v6208_v27 = vmax.f32 %v6130_v53, %v14189_v31  ;;  %v5465_v19 = vmax.f32 %v5037_v59, %v5243_v49  ;;  %v16949_v17 = vld [vmem:[#allocation25_spill] sm:$0xff]  ;;  %v5120_v31 = vld [vmem:[#allocation3 + $0x298] sm:$0x3]  ;;  %v14415_v59 = vld [vmem:[#allocation3 + $0x2a8] sm:$0xff]  ;;  %v5359_v54 = vrot.slane %v5114_v41, 1 }
 0x4c4   :  { %v16951_v52 = vmax.f32 %v16949_v17, %v16950_v32  ;;  %6410 = vmatpush.msra.mxu1 %v6224_v62  ;;  %8174 = vmatpush.msra.mxu2 %v6224_v62  ;;  %v6045_v37 = vmax.f32 %v5981_v47, %v14184_v0  ;;  %v5818_v46 = vmax.f32 %v5754_v63, %v14288_v6  ;;  %v5362_v40 = vrot.slane %v14401_v30, 1  ;;  %v14472_v49 = vld [vmem:[#allocation3 + $0x338] sm:$0xff] }
 0x4c5   :  { %v6222_v35 = vmax.f32 %v6144_v60, %v14292_v23  ;;  %v5531_v34 = vsel %vm1660_vm4, %v5529_v12, %v5530_v38  ;;  %v5357_v23 = vrot.slane %v14397_v10, 1  ;;  %6345 = vmatpush.msra.mxu0 %v6208_v27  ;;  %8158 = vmatpush.msra.mxu3 %v6208_v27  ;;  %v5364_v6 = vrot.slane %v5117_v61, 1 }
 0x4c6   :  { %v6059_v11 = vmax.f32 %v16951_v52, %v8630_v24  ;;  %v5753_v15 = vmax.f32 %v5465_v19, %v5531_v34  ;;  %v6129_v62 = vmax.f32 %v6045_v37, %v14213_v25  ;;  %6411 = vmatpush.msra.mxu1 %v6223_v5  ;;  %8175 = vmatpush.msra.mxu2 %v6223_v5  ;;  %v5367_v38 = vrot.slane %v14408_v48, 1  ;;  %v14493_v52 = vld [vmem:[#allocation3 + $0x350] sm:$0xff] }
 0x4c7   :  { %v5902_v0 = vmax.f32 %v5818_v46, %v14327_v55  ;;  %v5369_v13 = vrot.slane %v5120_v31, 1  ;;  %v14433_v55 = vsel %vm1178_vm3, %v5362_v40, %v5364_v6  ;;  %v5645_v56 = vrot.slane %v14397_v10, 2  ;;  %v6305_v46 = vld [vmem:[%s16439_s5 + $0x120] sm:$0xff]  ;;  %v14514_v6 = vld [vmem:[#allocation3 + $0x258] sm:$0xff] }
 0x4c8   :  { %v6143_v2 = vmax.f32 %v6059_v11, %v14286_v57  ;;  %v5817_v9 = vmax.f32 %v5753_v15, %v14319_v44  ;;  %v14426_v57 = vsel %vm1178_vm3, %v5357_v23, %v5359_v54  ;;  %v6207_v14 = vmax.f32 %v6129_v62, %v14225_v20  ;;  %6412 = vmatpush.msra.mxu1 %v6222_v35  ;;  %v5144_v15 = vld [vmem:[#allocation3 + $0x358] sm:$0x3]  ;;  %v14707_v44 = vld [vmem:[#allocation3 + $0x2f0] sm:$0xff] }
 0x4c9   :  { %v5980_v25 = vmax.f32 %v5902_v0, %v14341_v22  ;;  %8176 = vmatpush.msra.mxu2 %v6222_v35  ;;  %v14443_v20 = vsel %vm1178_vm3, %v5367_v38, %v5369_v13  ;;  %v5512_v22 = vmax.f32 %v14397_v10, %v14426_v57  ;;  %v5514_v50 = vmax.f32 %v14401_v30, %v14433_v55 }
 0x4ca   :  { %v6221_v36 = vmax.f32 %v6143_v2, %v14316_v28  ;;  %v5901_v28 = vmax.f32 %v5817_v9, %v14348_v58  ;;  %6346 = vmatpush.msra.mxu0 %v6207_v14  ;;  %8159 = vmatpush.msra.mxu3 %v6207_v14  ;;  %v5516_v21 = vmax.f32 %v14408_v48, %v14443_v20  ;;  %v5647_v1 = vrot.slane %v5114_v41, 2 }
 0x4cb   :  { %v6044_v58 = vmax.f32 %v5980_v25, %v14220_v4  ;;  %v5650_v42 = vrot.slane %v14401_v30, 2  ;;  %v5652_v33 = vrot.slane %v5117_v61, 2  ;;  %v5655_v53 = vrot.slane %v14408_v48, 2  ;;  %v14524_v25 = vld [vmem:[#allocation3 + $0x270] sm:$0xff] }
 0x4cc   :  { %v5979_v7 = vmax.f32 %v5901_v28, %v14371_v43  ;;  %6413 = vmatpush.msra.mxu1 %v6221_v36  ;;  %8177 = vmatpush.msra.mxu2 %v6221_v36  ;;  %v14462_v4 = vsel %vm1660_vm4, %v5645_v56, %v5647_v1  ;;  %v5657_v16 = vrot.slane %v5120_v31, 2  ;;  %v5397_v60 = vrot.slane %v14449_v18, 1  ;;  %v14526_v28 = vld [vmem:[#allocation3 + $0x288] sm:$0xff] }
 0x4cd   :  { %v6128_v5 = vmax.f32 %v6044_v58, %v14251_v26  ;;  %6441 = vmatmul.f32.vlgmr.msra.gmra.mxu2 %v6306_v39  ;;  %v14469_v47 = vsel %vm1660_vm4, %v5650_v42, %v5652_v33  ;;  %v5800_v63 = vmax.f32 %v5512_v22, %v14462_v4  ;;  %v5399_v26 = vrot.slane %v5138_v8, 1  ;;  %v14528_v39 = vld [vmem:[#allocation3 + $0x2a0] sm:$0xff] }
 0x4ce   :  { %v6043_v43 = vmax.f32 %v5979_v7, %v14260_v45  ;;  %v14478_v41 = vsel %vm1660_vm4, %v5655_v53, %v5657_v16  ;;  %v5802_v27 = vmax.f32 %v5514_v50, %v14469_v47  ;;  %v5141_v45 = vld [vmem:[#allocation3 + $0x340] sm:$0x3]  ;;  %v5685_v35 = vrot.slane %v14449_v18, 2 }
 0x4cf   :  { %v6206_v12 = vmax.f32 %v6128_v5, %v14258_v3  ;;  %16952 = vst [vmem:[#allocation24_spill] sm:$0xff] %v14478_v41  ;;  %v14484_v24 = vmax.f32 %v5516_v21, %v14478_v41  ;;  %v5864_v17 = vmax.f32 %v5800_v63, %v14401_v30  ;;  %v14490_v3 = vsel %vm1178_vm3, %v5397_v60, %v5399_v26 }
 0x4d0   :  { %v6127_v19 = vmax.f32 %v6043_v43, %v14295_v29  ;;  %v5866_v32 = vmax.f32 %v5802_v27, %v14408_v48  ;;  %v5528_v11 = vmax.f32 %v14449_v18, %v14490_v3  ;;  %v5687_v29 = vrot.slane %v5138_v8, 2 }
 0x4d1   :  { %6347 = vmatpush.msra.mxu0 %v6206_v12  ;;  %8160 = vmatpush.msra.mxu3 %v6206_v12  ;;  %v5893_v61 = vrot.slane %v14472_v49, 1  ;;  %v5948_v31 = vmax.f32 %v5864_v17, %v14433_v55  ;;  %v5895_v2 = vrot.slane %v5141_v45, 1  ;;  %v5973_v0 = vrot.slane %v5141_v45, 2 }
 0x4d2   :  { %v6205_v37 = vmax.f32 %v6127_v19, %v14298_v51  ;;  %v14506_v54 = vmax.f32 %v5866_v32, %v14443_v20  ;;  %v14511_v62 = vsel %vm1660_vm4, %v5685_v35, %v5687_v29  ;;  %v5971_v51 = vrot.slane %v14472_v49, 2  ;;  %v14557_v19 = vld [vmem:[#allocation3 + $0x318] sm:$0xff]  ;;  %v14572_v29 = vld [vmem:[#allocation3 + $0x330] sm:$0xff] }
 0x4d3   :  { %v6026_v9 = vmax.f32 %v5948_v31, %v14469_v47  ;;  %v5816_v36 = vmax.f32 %v5528_v11, %v14511_v62  ;;  %v14521_v13 = vsel %vm1178_vm3, %v5893_v61, %v5895_v2  ;;  %v6119_v14 = vrot.slane %v14493_v52, 1 }
 0x4d4   :  { %16953 = vst [vmem:[#allocation27_spill] sm:$0xff] %v14506_v54  ;;  %6348 = vmatpush.msra.mxu0 %v6205_v37  ;;  %8161 = vmatpush.msra.mxu3 %v6205_v37  ;;  %v14535_v50 = vsel %vm1660_vm4, %v5971_v51, %v5973_v0  ;;  %v6121_v58 = vrot.slane %v5144_v15, 1  ;;  %v6197_v21 = vrot.slane %v14493_v52, 2  ;;  %v6199_v7 = vrot.slane %v5144_v15, 2 }
 0x4d5   :  { %6376 = vmatmul.f32.vlgmr.msra.gmra.mxu3 %v6305_v46  ;;  %v6090_v1 = vmax.f32 %v6026_v9, %v14408_v48  ;;  %v5880_v8 = vmax.f32 %v5816_v36, %v14472_v49  ;;  %v5356_v33 = vrot.slane %v14514_v6, 1  ;;  %v5361_v16 = vrot.slane %v14524_v25, 1 }
 0x4d6   :  { %v6122_v5 = vsel %vm1178_vm3, %v6119_v14, %v6121_v58  ;;  %v5366_v43 = vrot.slane %v14526_v28, 1  ;;  %v6200_v27 = vsel %vm1660_vm4, %v6197_v21, %v6199_v7  ;;  %v5644_v11 = vrot.slane %v14514_v6, 2 }
 0x4d7   :  { %v6174_v26 = vmax.f32 %v6090_v1, %v14443_v20  ;;  %v5964_v12 = vmax.f32 %v5880_v8, %v14521_v13  ;;  %v14555_v45 = vsel %vm1178_vm3, %v5356_v33, %v5357_v23  ;;  %v14562_v17 = vsel %vm1178_vm3, %v5361_v16, %v5362_v40  ;;  %v6309_v33 = vld [vmem:[%s16439_s5 + $0x140] sm:$0xff] }
 0x4d8   :  { %v14567_v20 = vsel %vm1178_vm3, %v5366_v43, %v5367_v38  ;;  %v5511_v32 = vmax.f32 %v14514_v6, %v14555_v45  ;;  %v5513_v40 = vmax.f32 %v14524_v25, %v14562_v17  ;;  %v14583_v38 = vsel %vm1660_vm4, %v5644_v11, %v5645_v56 }
 0x4d9   :  { %v6252_v23 = vmax.f32 %v6174_v26, %v14478_v41  ;;  %v6042_v37 = vmax.f32 %v5964_v12, %v14535_v50  ;;  %v5515_v46 = vmax.f32 %v14526_v28, %v14567_v20  ;;  %v5649_v31 = vrot.slane %v14524_v25, 2  ;;  %v14619_v26 = vld [vmem:[#allocation3 + $0x248] sm:$0xff] }
 0x4da   :  { %v5654_v15 = vrot.slane %v14526_v28, 2  ;;  %v5396_v2 = vrot.slane %v14557_v19, 1  ;;  %v5799_v9 = vmax.f32 %v5511_v32, %v14583_v38  ;;  %v5684_v36 = vrot.slane %v14557_v19, 2 }
 0x4db   :  { %6463 = vmatpush.msrb.mxu2 %v6252_v23  ;;  %v6106_v0 = vmax.f32 %v6042_v37, %v14493_v52  ;;  %v5892_v58 = vrot.slane %v14572_v29, 1  ;;  %v14595_v56 = vsel %vm1660_vm4, %v5649_v31, %v5650_v42  ;;  %v5970_v7 = vrot.slane %v14572_v29, 2  ;;  %v6310_v42 = vld [vmem:[%s16439_s5 + $0x148] sm:$0xff]  ;;  %v5111_v23 = vld [vmem:[#allocation3 + $0x250] sm:$0x3] }
 0x4dc   :  { %v14600_v1 = vsel %vm1660_vm4, %v5654_v15, %v5655_v53  ;;  %v14605_v8 = vsel %vm1178_vm3, %v5396_v2, %v5397_v60  ;;  %v5801_v48 = vmax.f32 %v5513_v40, %v14595_v56  ;;  %v5863_v43 = vmax.f32 %v5799_v9, %v14524_v25  ;;  %v5142_v60 = vld [vmem:[#allocation3 + $0x348] sm:$0xff]  ;;  %6444 = vmatmul.f32.gmra.mxu2 %v6310_v42 }
 0x4dd   :  { %16954 = vst [vmem:[#allocation26_spill] sm:$0xff] %v14600_v1  ;;  %v6190_v16 = vmax.f32 %v6106_v0, %v6122_v5  ;;  %v14616_v53 = vmax.f32 %v5515_v46, %v14600_v1  ;;  %6379 = vmatmul.f32.gmra.mxu3 %v6309_v33  ;;  %v5527_v12 = vmax.f32 %v14557_v19, %v14605_v8  ;;  %v6118_v15 = vrot.slane %v5142_v60, 1  ;;  %v14644_v0 = vld [vmem:[#allocation3 + $0x308] sm:$0xff] }
 0x4de   :  { %v14626_v32 = vsel %vm1660_vm4, %v5684_v36, %v5685_v35  ;;  %v14631_v5 = vsel %vm1178_vm3, %v5892_v58, %v5893_v61  ;;  %v14636_v11 = vsel %vm1660_vm4, %v5970_v7, %v5971_v51  ;;  %v5865_v40 = vmax.f32 %v5801_v48, %v14526_v28  ;;  %v5135_v58 = vld [vmem:[#allocation3 + $0x310] sm:$0x3]  ;;  %v14658_v48 = vld [vmem:[#allocation3 + $0x240] sm:$0xff] }
 0x4df   :  { %16955 = vst [vmem:[#allocation29_spill] sm:$0xff] %v14616_v53  ;;  %v6268_v37 = vmax.f32 %v6190_v16, %v6200_v27  ;;  %v5947_v35 = vmax.f32 %v5863_v43, %v14562_v17  ;;  %v5815_v31 = vmax.f32 %v5527_v12, %v14626_v32  ;;  %v6196_v61 = vrot.slane %v5142_v60, 2  ;;  %v14682_v43 = vld [vmem:[#allocation3 + $0x300] sm:$0xff] }
 0x4e0   :  { %v5352_v2 = vrot.slane %v14619_v26, 1  ;;  %v14647_v51 = vmax.f32 %v5865_v40, %v14567_v20  ;;  %v5354_v9 = vrot.slane %v5111_v23, 1  ;;  %v5640_v36 = vrot.slane %v14619_v26, 2 }
 0x4e1   :  { %6528 = vmatpush.msrb.mxu3 %v6268_v37  ;;  %v6025_v27 = vmax.f32 %v5947_v35, %v14595_v56  ;;  %v5879_v7 = vmax.f32 %v5815_v31, %v14572_v29  ;;  %v6120_v33 = vsel %vm1178_vm3, %v6118_v15, %v6119_v14  ;;  %v6198_v42 = vsel %vm1660_vm4, %v6196_v61, %v6197_v21 }
 0x4e2   :  { %16956 = vst [vmem:[#allocation28_spill] sm:$0xff] %v14647_v51  ;;  %v5642_v16 = vrot.slane %v5111_v23, 2  ;;  %v14664_v37 = vsel %vm1178_vm3, %v5352_v2, %v5354_v9  ;;  %v5392_v40 = vrot.slane %v14644_v0, 1  ;;  %v5394_v21 = vrot.slane %v5135_v58, 1 }
 0x4e3   :  { %v6089_v12 = vmax.f32 %v6025_v27, %v14526_v28  ;;  %v5963_v35 = vmax.f32 %v5879_v7, %v14631_v5  ;;  %v5510_v52 = vmax.f32 %v14619_v26, %v14664_v37  ;;  %v5680_v31 = vrot.slane %v14644_v0, 2 }
 0x4e4   :  { %v14671_v14 = vsel %vm1660_vm4, %v5640_v36, %v5642_v16  ;;  %v5682_v15 = vrot.slane %v5135_v58, 2  ;;  %v5351_v28 = vrot.slane %v14658_v48, 1  ;;  %v14679_v9 = vsel %vm1178_vm3, %v5392_v40, %v5394_v21  ;;  %v14684_v16 = vld [vmem:[#allocation3 + $0x230] sm:$0xff] }
 0x4e5   :  { %v6173_v23 = vmax.f32 %v6089_v12, %v14567_v20  ;;  %v6041_v61 = vmax.f32 %v5963_v35, %v14636_v11  ;;  %v5798_v27 = vmax.f32 %v5510_v52, %v14671_v14  ;;  %v5639_v7 = vrot.slane %v14658_v48, 2  ;;  %v5108_v52 = vld [vmem:[#allocation3 + $0x238] sm:$0x3] }
 0x4e6   :  { %v5526_v58 = vmax.f32 %v14644_v0, %v14679_v9  ;;  %v14690_v12 = vsel %vm1660_vm4, %v5680_v31, %v5682_v15  ;;  %v14693_v35 = vsel %vm1178_vm3, %v5351_v28, %v5352_v2  ;;  %v5391_v63 = vrot.slane %v14682_v43, 1 }
 0x4e7   :  { %v6251_v20 = vmax.f32 %v6173_v23, %v14600_v1  ;;  %v6105_v21 = vmax.f32 %v6041_v61, %v5142_v60  ;;  %v5862_v22 = vmax.f32 %v5798_v27, %v14397_v10  ;;  %v5509_v46 = vmax.f32 %v14658_v48, %v14693_v35 }
 0x4e8   :  { %v14699_v34 = vsel %vm1660_vm4, %v5639_v7, %v5640_v36  ;;  %v5814_v23 = vmax.f32 %v5526_v58, %v14690_v12  ;;  %v5679_v15 = vrot.slane %v14682_v43, 2  ;;  %v5347_v2 = vrot.slane %v14684_v16, 1 }
 0x4e9   :  { %6464 = vmatpush.msrb.mxu2 %v6251_v20  ;;  %v6189_v28 = vmax.f32 %v6105_v21, %v6120_v33  ;;  %v5946_v60 = vmax.f32 %v5862_v22, %v14426_v57  ;;  %v5797_v61 = vmax.f32 %v5509_v46, %v14699_v34  ;;  %v5349_v27 = vrot.slane %v5108_v52, 1  ;;  %v5132_v21 = vld [vmem:[#allocation3 + $0x2f8] sm:$0x3] }
 0x4ea   :  { %v5878_v36 = vmax.f32 %v5814_v23, %v14449_v18  ;;  %v14711_v7 = vsel %vm1178_vm3, %v5391_v63, %v5392_v40  ;;  %v14714_v20 = vsel %vm1660_vm4, %v5679_v15, %v5680_v31  ;;  %v5635_v58 = vrot.slane %v14684_v16, 2 }
 0x4eb   :  { %v6267_v1 = vmax.f32 %v6189_v28, %v6198_v42  ;;  %v6024_v33 = vmax.f32 %v5946_v60, %v14462_v4  ;;  %v5861_v22 = vmax.f32 %v5797_v61, %v14514_v6  ;;  %v5525_v46 = vmax.f32 %v14682_v43, %v14711_v7  ;;  %v14731_v60 = vld [vmem:[#allocation3 + $0x228] sm:$0xff] }
 0x4ec   :  { %v5962_v51 = vmax.f32 %v5878_v36, %v14490_v3  ;;  %v14723_v23 = vsel %vm1178_vm3, %v5347_v2, %v5349_v27  ;;  %v5637_v63 = vrot.slane %v5108_v52, 2  ;;  %v5387_v40 = vrot.slane %v14707_v44, 1 }
 0x4ed   :  { %6529 = vmatpush.msrb.mxu3 %v6267_v1  ;;  %v6088_v31 = vmax.f32 %v6024_v33, %v14401_v30  ;;  %v5945_v42 = vmax.f32 %v5861_v22, %v14555_v45  ;;  %v5813_v15 = vmax.f32 %v5525_v46, %v14714_v20  ;;  %v5508_v28 = vmax.f32 %v14684_v16, %v14723_v23 }
 0x4ee   :  { %v6040_v61 = vmax.f32 %v5962_v51, %v14511_v62  ;;  %v14735_v27 = vsel %vm1660_vm4, %v5635_v58, %v5637_v63  ;;  %v5389_v52 = vrot.slane %v5132_v21, 1  ;;  %v5675_v36 = vrot.slane %v14707_v44, 2 }
 0x4ef   :  { %v6172_v1 = vmax.f32 %v6088_v31, %v14433_v55  ;;  %v6023_v30 = vmax.f32 %v5945_v42, %v14583_v38  ;;  %v5877_v33 = vmax.f32 %v5813_v15, %v14557_v19  ;;  %v5796_v22 = vmax.f32 %v5508_v28, %v14735_v27  ;;  %v14751_v42 = vld [vmem:[#allocation3 + $0x2e8] sm:$0xff] }
 0x4f0   :  { %v6104_v46 = vmax.f32 %v6040_v61, %v14472_v49  ;;  %v14744_v41 = vsel %vm1178_vm3, %v5387_v40, %v5389_v52  ;;  %v5677_v51 = vrot.slane %v5132_v21, 2  ;;  %v5346_v63 = vrot.slane %v14731_v60, 1 }
 0x4f1   :  { %v6250_v54 = vmax.f32 %v6172_v1, %v14469_v47  ;;  %v6087_v53 = vmax.f32 %v6023_v30, %v14524_v25  ;;  %v5961_v55 = vmax.f32 %v5877_v33, %v14605_v8  ;;  %v5860_v31 = vmax.f32 %v5796_v22, %v14619_v26 }
 0x4f2   :  { %v6188_v15 = vmax.f32 %v6104_v46, %v14521_v13  ;;  %v5524_v49 = vmax.f32 %v14707_v44, %v14744_v41  ;;  %v14757_v28 = vsel %vm1660_vm4, %v5675_v36, %v5677_v51  ;;  %v14760_v21 = vsel %vm1178_vm3, %v5346_v63, %v5347_v2  ;;  %v14767_v13 = vld [vmem:[#allocation3 + $0x218] sm:$0xff]  ;;  %v5105_v46 = vld [vmem:[#allocation3 + $0x220] sm:$0x3] }
 0x4f3   :  { %6465 = vmatpush.msrb.mxu2 %v6250_v54  ;;  %v6171_v47 = vmax.f32 %v6087_v53, %v14562_v17  ;;  %v6039_v25 = vmax.f32 %v5961_v55, %v14626_v32  ;;  %v5944_v61 = vmax.f32 %v5860_v31, %v14664_v37  ;;  %v5507_v52 = vmax.f32 %v14731_v60, %v14760_v21  ;;  %v6313_v51 = vld [vmem:[%s16439_s5 + $0x160] sm:$0xff] }
 0x4f4   :  { %v6266_v1 = vmax.f32 %v6188_v15, %v14535_v50  ;;  %v5812_v30 = vmax.f32 %v5524_v49, %v14757_v28  ;;  %v5634_v33 = vrot.slane %v14731_v60, 2  ;;  %v5386_v2 = vrot.slane %v14751_v42, 1  ;;  %v6314_v50 = vld [vmem:[%s16439_s5 + $0x168] sm:$0xff]  ;;  %6382 = vmatmul.f32.gmra.mxu3 %v6313_v51  ;;  %v14817_v51 = vld [vmem:[#allocation3 + $0x210] sm:$0xff] }
 0x4f5   :  { %v6249_v54 = vmax.f32 %v6171_v47, %v14595_v56  ;;  %v6103_v17 = vmax.f32 %v6039_v25, %v14572_v29  ;;  %v6022_v53 = vmax.f32 %v5944_v61, %v14671_v14  ;;  %v5674_v22 = vrot.slane %v14751_v42, 2  ;;  %6447 = vmatmul.f32.gmra.mxu2 %v6314_v50  ;;  %v14796_v25 = vld [vmem:[#allocation3 + $0x2d8] sm:$0xff] }
 0x4f6   :  { %6530 = vmatpush.msrb.mxu3 %v6266_v1  ;;  %v5876_v63 = vmax.f32 %v5812_v30, %v14644_v0  ;;  %v14785_v56 = vsel %vm1660_vm4, %v5634_v33, %v5635_v58  ;;  %v14788_v29 = vsel %vm1178_vm3, %v5386_v2, %v5387_v40  ;;  %v5342_v55 = vrot.slane %v14767_v13, 1  ;;  %v5129_v33 = vld [vmem:[#allocation3 + $0x2e0] sm:$0x3] }
 0x4f7   :  { %6466 = vmatpush.msrb.mxu2 %v6249_v54  ;;  %v6187_v31 = vmax.f32 %v6103_v17, %v14631_v5  ;;  %v6086_v15 = vmax.f32 %v6022_v53, %v14397_v10  ;;  %v5795_v49 = vmax.f32 %v5507_v52, %v14785_v56  ;;  %v5523_v47 = vmax.f32 %v14751_v42, %v14788_v29 }
 0x4f8   :  { %v5960_v58 = vmax.f32 %v5876_v63, %v14679_v9  ;;  %v14800_v40 = vsel %vm1660_vm4, %v5674_v22, %v5675_v36  ;;  %v5344_v61 = vrot.slane %v5105_v46, 1  ;;  %v5630_v1 = vrot.slane %v14767_v13, 2 }
 0x4f9   :  { %v6265_v5 = vmax.f32 %v6187_v31, %v14636_v11  ;;  %v6170_v10 = vmax.f32 %v6086_v15, %v14426_v57  ;;  %v5859_v52 = vmax.f32 %v5795_v49, %v14658_v48  ;;  %v5811_v30 = vmax.f32 %v5523_v47, %v14800_v40 }
 0x4fa   :  { %v6038_v2 = vmax.f32 %v5960_v58, %v14690_v12  ;;  %v14809_v54 = vsel %vm1178_vm3, %v5342_v55, %v5344_v61  ;;  %v5632_v36 = vrot.slane %v5105_v46, 2  ;;  %v5382_v17 = vrot.slane %v14796_v25, 1 }
 0x4fb   :  { %6531 = vmatpush.msrb.mxu3 %v6265_v5  ;;  %v6248_v53 = vmax.f32 %v6170_v10, %v14462_v4  ;;  %v5943_v11 = vmax.f32 %v5859_v52, %v14693_v35  ;;  %v5875_v57 = vmax.f32 %v5811_v30, %v14682_v43  ;;  %v5506_v22 = vmax.f32 %v14767_v13, %v14809_v54 }
 0x4fc   :  { %v6102_v50 = vmax.f32 %v6038_v2, %v14449_v18  ;;  %v14821_v63 = vsel %vm1660_vm4, %v5630_v1, %v5632_v36  ;;  %v5384_v46 = vrot.slane %v5129_v33, 1  ;;  %v5670_v31 = vrot.slane %v14796_v25, 2  ;;  %v14838_v36 = vld [vmem:[#allocation3 + $0x2d0] sm:$0xff] }
 0x4fd   :  { %6467 = vmatpush.msrb.mxu2 %v6248_v53  ;;  %v6021_v4 = vmax.f32 %v5943_v11, %v14699_v34  ;;  %v5959_v15 = vmax.f32 %v5875_v57, %v14711_v7  ;;  %v5794_v49 = vmax.f32 %v5506_v22, %v14821_v63  ;;  %v5672_v47 = vrot.slane %v5129_v33, 2  ;;  %v14840_v33 = vld [vmem:[#allocation3 + $0x200] sm:$0xff] }
 0x4fe   :  { %v6186_v58 = vmax.f32 %v6102_v50, %v14490_v3  ;;  %v14829_v61 = vsel %vm1178_vm3, %v5382_v17, %v5384_v46  ;;  %v5341_v18 = vrot.slane %v14817_v51, 1  ;;  %v5629_v5 = vrot.slane %v14817_v51, 2 }
 0x4ff   :  { %v6085_v10 = vmax.f32 %v6021_v4, %v14514_v6  ;;  %v6037_v52 = vmax.f32 %v5959_v15, %v14714_v20  ;;  %v5858_v30 = vmax.f32 %v5794_v49, %v14684_v16  ;;  %v5522_v2 = vmax.f32 %v14796_v25, %v14829_v61  ;;  %v5102_v4 = vld [vmem:[#allocation3 + $0x208] sm:$0x3] }
 0x500   :  { %v6264_v3 = vmax.f32 %v6186_v58, %v14511_v62  ;;  %v14844_v53 = vsel %vm1660_vm4, %v5670_v31, %v5672_v47  ;;  %v14847_v11 = vsel %vm1178_vm3, %v5341_v18, %v5342_v55  ;;  %v14850_v6 = vsel %vm1660_vm4, %v5629_v5, %v5630_v1 }
 0x501   :  { %v6169_v57 = vmax.f32 %v6085_v10, %v14555_v45  ;;  %v6101_v22 = vmax.f32 %v6037_v52, %v14557_v19  ;;  %v5942_v50 = vmax.f32 %v5858_v30, %v14723_v23  ;;  %v5810_v46 = vmax.f32 %v5522_v2, %v14844_v53  ;;  %v14877_v2 = vld [vmem:[#allocation3 + $0x2c0] sm:$0xff] }
 0x502   :  { %6532 = vmatpush.msrb.mxu3 %v6264_v3  ;;  %v5505_v62 = vmax.f32 %v14817_v51, %v14847_v11  ;;  %v5381_v15 = vrot.slane %v14838_v36, 1  ;;  %v5669_v55 = vrot.slane %v14838_v36, 2  ;;  %v5337_v1 = vrot.slane %v14840_v33, 1  ;;  %v5126_v3 = vld [vmem:[#allocation3 + $0x2c8] sm:$0x3] }
 0x503   :  { %v6247_v49 = vmax.f32 %v6169_v57, %v14583_v38  ;;  %v6185_v45 = vmax.f32 %v6101_v22, %v14605_v8  ;;  %v6020_v19 = vmax.f32 %v5942_v50, %v14735_v27  ;;  %v5874_v47 = vmax.f32 %v5810_v46, %v14707_v44 }
 0x504   :  { %v5793_v58 = vmax.f32 %v5505_v62, %v14850_v6  ;;  %v14867_v18 = vsel %vm1178_vm3, %v5381_v15, %v5382_v17  ;;  %v14870_v5 = vsel %vm1660_vm4, %v5669_v55, %v5670_v31  ;;  %v5339_v10 = vrot.slane %v5102_v4, 1 }
 0x505   :  { %6468 = vmatpush.msrb.mxu2 %v6247_v49  ;;  %v6263_v52 = vmax.f32 %v6185_v45, %v14626_v32  ;;  %v6084_v38 = vmax.f32 %v6020_v19, %v14619_v26  ;;  %v5958_v8 = vmax.f32 %v5874_v47, %v14744_v41  ;;  %v5521_v30 = vmax.f32 %v14838_v36, %v14867_v18  ;;  %v14898_v47 = vld [vmem:[#allocation3 + $0x1f8] sm:$0xff] }
 0x506   :  { %v5857_v17 = vmax.f32 %v5793_v58, %v14731_v60  ;;  %v14881_v57 = vsel %vm1178_vm3, %v5337_v1, %v5339_v10  ;;  %v5625_v31 = vrot.slane %v14840_v33, 2  ;;  %v5627_v22 = vrot.slane %v5102_v4, 2 }
 0x507   :  { %6533 = vmatpush.msrb.mxu3 %v6263_v52  ;;  %v6168_v32 = vmax.f32 %v6084_v38, %v14664_v37  ;;  %v6036_v26 = vmax.f32 %v5958_v8, %v14757_v28  ;;  %v5809_v50 = vmax.f32 %v5521_v30, %v14870_v5  ;;  %v5504_v46 = vmax.f32 %v14840_v33, %v14881_v57 }
 0x508   :  { %v5941_v62 = vmax.f32 %v5857_v17, %v14760_v21  ;;  %v14891_v15 = vsel %vm1660_vm4, %v5625_v31, %v5627_v22  ;;  %v5377_v55 = vrot.slane %v14877_v2, 1  ;;  %v5379_v49 = vrot.slane %v5126_v3, 1  ;;  %v14910_v17 = vld [vmem:[#allocation3 + $0x2b8] sm:$0xff] }
 0x509   :  { %v6246_v4 = vmax.f32 %v6168_v32, %v14671_v14  ;;  %v6100_v45 = vmax.f32 %v6036_v26, %v14644_v0  ;;  %v5873_v37 = vmax.f32 %v5809_v50, %v14751_v42  ;;  %v5792_v19 = vmax.f32 %v5504_v46, %v14891_v15 }
 0x50a   :  { %v6019_v58 = vmax.f32 %v5941_v62, %v14785_v56  ;;  %v14902_v10 = vsel %vm1178_vm3, %v5377_v55, %v5379_v49  ;;  %v5665_v52 = vrot.slane %v14877_v2, 2  ;;  %v5667_v38 = vrot.slane %v5126_v3, 2  ;;  %v14922_v49 = vld [vmem:[#allocation3 + $0x1e8] sm:$0xff] }
 0x50b   :  { %6469 = vmatpush.msrb.mxu2 %v6246_v4  ;;  %v6184_v8 = vmax.f32 %v6100_v45, %v14679_v9  ;;  %v5957_v14 = vmax.f32 %v5873_v37, %v14788_v29  ;;  %v5856_v0 = vmax.f32 %v5792_v19, %v14767_v13  ;;  %v5520_v30 = vmax.f32 %v14877_v2, %v14902_v10  ;;  %v6318_v4 = vld [vmem:[%s16439_s5 + $0x188] sm:$0xff] }
 0x50c   :  { %v6083_v22 = vmax.f32 %v6019_v58, %v14658_v48  ;;  %v14914_v32 = vsel %vm1660_vm4, %v5665_v52, %v5667_v38  ;;  %v5336_v26 = vrot.slane %v14898_v47, 1  ;;  %v5624_v3 = vrot.slane %v14898_v47, 2  ;;  %v6317_v48 = vld [vmem:[%s16439_s5 + $0x180] sm:$0xff]  ;;  %6450 = vmatmul.f32.gmra.mxu2 %v6318_v4 }
 0x50d   :  { %v6262_v9 = vmax.f32 %v6184_v8, %v14690_v12  ;;  %v6035_v50 = vmax.f32 %v5957_v14, %v14800_v40  ;;  %v5940_v46 = vmax.f32 %v5856_v0, %v14809_v54  ;;  %v5808_v62 = vmax.f32 %v5520_v30, %v14914_v32  ;;  %6385 = vmatmul.f32.gmra.mxu3 %v6317_v48  ;;  %v5099_v14 = vld [vmem:[#allocation3 + $0x1f0] sm:$0x3] }
 0x50e   :  { %v6167_v45 = vmax.f32 %v6083_v22, %v14693_v35  ;;  %v14932_v12 = vsel %vm1178_vm3, %v5336_v26, %v5337_v1  ;;  %v14935_v37 = vsel %vm1660_vm4, %v5624_v3, %v5625_v31  ;;  %v5376_v19 = vrot.slane %v14910_v17, 1 }
 0x50f   :  { %6534 = vmatpush.msrb.mxu3 %v6262_v9  ;;  %v6099_v58 = vmax.f32 %v6035_v50, %v14682_v43  ;;  %v6018_v38 = vmax.f32 %v5940_v46, %v14821_v63  ;;  %v5872_v8 = vmax.f32 %v5808_v62, %v14796_v25  ;;  %v5503_v35 = vmax.f32 %v14898_v47, %v14932_v12  ;;  %v5123_v9 = vld [vmem:[#allocation3 + $0x2b0] sm:$0x3] }
 0x510   :  { %v6245_v1 = vmax.f32 %v6167_v45, %v14699_v34  ;;  %v14945_v31 = vsel %vm1178_vm3, %v5376_v19, %v5377_v55  ;;  %v5664_v0 = vrot.slane %v14910_v17, 2  ;;  %v5332_v30 = vrot.slane %v14922_v49, 1 }
 0x511   :  { %v6183_v22 = vmax.f32 %v6099_v58, %v14711_v7  ;;  %v6082_v43 = vmax.f32 %v6018_v38, %v14684_v16  ;;  %v5956_v26 = vmax.f32 %v5872_v8, %v14829_v61  ;;  %v5791_v3 = vmax.f32 %v5503_v35, %v14935_v37  ;;  %v14972_v8 = vld [vmem:[#allocation3 + $0x1e0] sm:$0xff] }
 0x512   :  { %6470 = vmatpush.msrb.mxu2 %v6245_v1  ;;  %v5519_v34 = vmax.f32 %v14910_v17, %v14945_v31  ;;  %v14956_v55 = vsel %vm1660_vm4, %v5664_v0, %v5665_v52  ;;  %v5334_v50 = vrot.slane %v5099_v14, 1  ;;  %v5620_v46 = vrot.slane %v14922_v49, 2 }
 0x513   :  { %v6261_v62 = vmax.f32 %v6183_v22, %v14714_v20  ;;  %v6166_v7 = vmax.f32 %v6082_v43, %v14723_v23  ;;  %v6034_v16 = vmax.f32 %v5956_v26, %v14844_v53  ;;  %v5855_v48 = vmax.f32 %v5791_v3, %v14817_v51 }
 0x514   :  { %v5807_v4 = vmax.f32 %v5519_v34, %v14956_v55  ;;  %v14965_v45 = vsel %vm1178_vm3, %v5332_v30, %v5334_v50  ;;  %v5622_v19 = vrot.slane %v5099_v14, 2  ;;  %v5374_v58 = vrot.slane %v5123_v9, 1 }
 0x515   :  { %6535 = vmatpush.msrb.mxu3 %v6261_v62  ;;  %v6244_v52 = vmax.f32 %v6166_v7, %v14735_v27  ;;  %v6098_v38 = vmax.f32 %v6034_v16, %v14707_v44  ;;  %v5939_v20 = vmax.f32 %v5855_v48, %v14847_v11  ;;  %v5502_v23 = vmax.f32 %v14922_v49, %v14965_v45 }
 0x516   :  { %v5871_v35 = vmax.f32 %v5807_v4, %v14838_v36  ;;  %v14976_v1 = vsel %vm1660_vm4, %v5620_v46, %v5622_v19  ;;  %v16957_v14 = vrot.slane %v14415_v59, 1  ;;  %v5660_v27 = vrot.slane %v14415_v59, 2 }
 0x517   :  { %6471 = vmatpush.msrb.mxu2 %v6244_v52  ;;  %v6182_v44 = vmax.f32 %v6098_v38, %v14744_v41  ;;  %v6017_v22 = vmax.f32 %v5939_v20, %v14850_v6  ;;  %v5790_v43 = vmax.f32 %v5502_v23, %v14976_v1  ;;  %v5662_v34 = vrot.slane %v5123_v9, 2 }
 0x518   :  { %v14981_v0 = vsel %vm1178_vm3, %v16957_v14, %v5374_v58  ;;  %v5955_v3 = vmax.f32 %v5871_v35, %v14867_v18  ;;  %v5331_v50 = vrot.slane %v14972_v8, 1  ;;  %v5619_v62 = vrot.slane %v14972_v8, 2  ;;  %v15002_v58 = vld [vmem:[#allocation3 + $0x1d0] sm:$0xff] }
 0x519   :  { %v5518_v26 = vmax.f32 %v14415_v59, %v14981_v0  ;;  %v6260_v7 = vmax.f32 %v6182_v44, %v14757_v28  ;;  %v6081_v16 = vmax.f32 %v6017_v22, %v14731_v60  ;;  %v5854_v41 = vmax.f32 %v5790_v43, %v14840_v33 }
 0x51a   :  { %v16958_v48 = vmov %v16957_v14  ;;  %v16959_v4 = vrot.slane %v14528_v39, 1  ;;  %v6033_v9 = vmax.f32 %v5955_v3, %v14870_v5  ;;  %v15006_v52 = vsel %vm1660_vm4, %v5660_v27, %v5662_v34  ;;  %v5096_v14 = vld [vmem:[#allocation3 + $0x1d8] sm:$0x3] }
 0x51b   :  { %v15009_v28 = vsel %vm1178_vm3, %v5331_v50, %v5332_v30  ;;  %v15012_v60 = vsel %vm1660_vm4, %v5619_v62, %v5620_v46  ;;  %6536 = vmatpush.msrb.mxu3 %v6260_v7  ;;  %v6165_v38 = vmax.f32 %v6081_v16, %v14760_v21  ;;  %v5938_v20 = vmax.f32 %v5854_v41, %v14881_v57 }
 0x51c   :  { %v15000_v19 = vsel %vm1178_vm3, %v16959_v4, %v16958_v48  ;;  %v5806_v23 = vmax.f32 %v5518_v26, %v15006_v52  ;;  %v5501_v35 = vmax.f32 %v14972_v8, %v15009_v28  ;;  %v6097_v44 = vmax.f32 %v6033_v9, %v14751_v42  ;;  %v15037_v48 = vld [vmem:[#allocation3 + $0x1c8] sm:$0xff] }
 0x51d   :  { %v5517_v30 = vmax.f32 %v14528_v39, %v15000_v19  ;;  %v5659_v22 = vrot.slane %v14528_v39, 2  ;;  %v5327_v46 = vrot.slane %v15002_v58, 1  ;;  %v6243_v43 = vmax.f32 %v6165_v38, %v14785_v56 }
 0x51e   :  { %v6016_v21 = vmax.f32 %v5938_v20, %v14891_v15  ;;  %v5870_v3 = vmax.f32 %v5806_v23, %v14877_v2  ;;  %v5789_v26 = vmax.f32 %v5501_v35, %v15012_v60  ;;  %v6181_v34 = vmax.f32 %v6097_v44, %v14788_v29  ;;  %v6322_v20 = vld [vmem:[%s16439_s5 + $0x1a8] sm:$0xff] }
 0x51f   :  { %v15030_v50 = vsel %vm1660_vm4, %v5659_v22, %v5660_v27  ;;  %v5329_v42 = vrot.slane %v5096_v14, 1  ;;  %v5615_v62 = vrot.slane %v15002_v58, 2  ;;  %6472 = vmatpush.msrb.mxu2 %v6243_v43  ;;  %v5617_v27 = vrot.slane %v5096_v14, 2 }
 0x520   :  { %v6080_v7 = vmax.f32 %v6016_v21, %v14767_v13  ;;  %v5954_v16 = vmax.f32 %v5870_v3, %v14902_v10  ;;  %v5853_v56 = vmax.f32 %v5789_v26, %v14898_v47  ;;  %v5805_v41 = vmax.f32 %v5517_v30, %v15030_v50  ;;  %v6321_v13 = vld [vmem:[%s16439_s5 + $0x1a0] sm:$0xff]  ;;  %6453 = vmatmul.f32.gmra.mxu2 %v6322_v20  ;;  %v6270_v26 = vld [vmem:[%s16439_s5 + $0x8] sm:$0xff] }
 0x521   :  { %v6259_v4 = vmax.f32 %v6181_v34, %v14800_v40  ;;  %v15041_v29 = vsel %vm1178_vm3, %v5327_v46, %v5329_v42  ;;  %v16960_v9 = vmax.f32 %v14484_v24, %v14415_v59  ;;  %6388 = vmatmul.f32.gmra.mxu3 %v6321_v13  ;;  %v15060_v24 = vsel %vm1660_vm4, %v5615_v62, %v5617_v27  ;;  %v5093_v13 = vld [vmem:[#allocation3 + $0x1c0] sm:$0x3] }
 0x522   :  { %v6164_v23 = vmax.f32 %v6080_v7, %v14809_v54  ;;  %v6032_v40 = vmax.f32 %v5954_v16, %v14914_v32  ;;  %v5937_v35 = vmax.f32 %v5853_v56, %v14932_v12  ;;  %v5869_v14 = vmax.f32 %v5805_v41, %v14910_v17  ;;  %v6269_v54 = vld [vmem:[%s16439_s5] sm:$0xff]  ;;  %6414 = vmatmul.f32.vlgmr.msra.gmra.mxu1 %v6270_v26 }
 0x523   :  { %v5952_v38 = vmax.f32 %v16960_v9, %v14981_v0  ;;  %6537 = vmatpush.msrb.mxu3 %v6259_v4  ;;  %v5500_v59 = vmax.f32 %v15002_v58, %v15041_v29  ;;  %v5326_v30 = vrot.slane %v15037_v48, 1  ;;  %6349 = vmatmul.f32.vlgmr.msra.gmra.mxu0 %v6269_v54  ;;  %v5092_v4 = vld [vmem:[#allocation3 + $0x1b8] sm:$0xff]  ;;  %v16961_v9 = vld [vmem:[#allocation29_spill] sm:$0xff]  ;;  %v6273_v54 = vld [vmem:[%s16439_s5 + $0x20] sm:$0xff] }
 0x524   :  { %v6242_v22 = vmax.f32 %v6164_v23, %v14821_v63  ;;  %v6096_v43 = vmax.f32 %v6032_v40, %v14796_v25  ;;  %v6015_v21 = vmax.f32 %v5937_v35, %v14935_v37  ;;  %v5953_v3 = vmax.f32 %v5869_v14, %v14945_v31 }
 0x525   :  { %v6030_v44 = vmax.f32 %v5952_v38, %v15006_v52  ;;  %v5788_v34 = vmax.f32 %v5500_v59, %v15060_v24  ;;  %v15077_v7 = vsel %vm1178_vm3, %v5326_v30, %v5327_v46  ;;  %v5614_v63 = vrot.slane %v15037_v48, 2 }
 0x526   :  { %6473 = vmatpush.msrb.mxu2 %v6242_v22  ;;  %v6180_v25 = vmax.f32 %v6096_v43, %v14829_v61  ;;  %v6079_v16 = vmax.f32 %v6015_v21, %v14817_v51  ;;  %v6031_v56 = vmax.f32 %v5953_v3, %v14956_v55  ;;  %v5499_v41 = vmax.f32 %v15037_v48, %v15077_v7  ;;  %v5091_v3 = vld [vmem:[#allocation3 + $0x1b0] sm:$0xff] }
 0x527   :  { %v6094_v42 = vmax.f32 %v6030_v44, %v14877_v2  ;;  %v5852_v27 = vmax.f32 %v5788_v34, %v14922_v49  ;;  %v15088_v46 = vsel %vm1660_vm4, %v5614_v63, %v5615_v62  ;;  %v16962_v38 = vmax.f32 %v16961_v9, %v14528_v39  ;;  %v6326_v62 = vld [vmem:[%s16439_s5 + $0x1c8] sm:$0xff]  ;;  %v16963_v63 = vld [vmem:[#allocation27_spill] sm:$0xff] }
 0x528   :  { %v6258_v51 = vmax.f32 %v6180_v25, %v14844_v53  ;;  %v6163_v20 = vmax.f32 %v6079_v16, %v14847_v11  ;;  %v6095_v23 = vmax.f32 %v6031_v56, %v14838_v36  ;;  %v5787_v40 = vmax.f32 %v5499_v41, %v15088_v46  ;;  %6456 = vmatmul.f32.gmra.mxu2 %v6326_v62  ;;  %v16964_v25 = vld [vmem:[#allocation24_spill] sm:$0xff]  ;;  %v6329_v62 = vld [vmem:[%s16439_s5 + $0x1e0] sm:$0xff] }
 0x529   :  { %v6178_v2 = vmax.f32 %v6094_v42, %v14902_v10  ;;  %v5951_v61 = vmax.f32 %v16962_v38, %v15000_v19  ;;  %v6325_v10 = vld [vmem:[%s16439_s5 + $0x1c0] sm:$0xff]  ;;  %v5936_v35 = vmax.f32 %v5852_v27, %v14965_v45  ;;  %v5322_v59 = vrot.slane %v5092_v4, 1  ;;  %v8631_v42 = vld [vmem:[#allocation3 + $0x2a8] sm:$0xff] }
 0x52a   :  { %6538 = vmatpush.msrb.mxu3 %v6258_v51  ;;  %v6241_v36 = vmax.f32 %v6163_v20, %v14850_v6  ;;  %v6179_v11 = vmax.f32 %v6095_v23, %v14867_v18  ;;  %v5851_v44 = vmax.f32 %v5787_v40, %v14972_v8  ;;  %v5324_v30 = vrot.slane %v5093_v13, 1  ;;  %v6274_v6 = vld [vmem:[%s16439_s5 + $0x28] sm:$0xff] }
 0x52b   :  { %v6256_v14 = vmax.f32 %v6178_v2, %v14914_v32  ;;  %v6029_v53 = vmax.f32 %v5951_v61, %v15030_v50  ;;  %v6014_v22 = vmax.f32 %v5936_v35, %v14976_v1  ;;  %v5610_v32 = vrot.slane %v5092_v4, 2  ;;  %6391 = vmatmul.f32.gmra.mxu3 %v6325_v10  ;;  %6352 = vmatmul.f32.gmra.mxu0 %v6273_v54  ;;  %v16966_v20 = vld [vmem:[#allocation28_spill] sm:$0xff] }
 0x52c   :  { %v5612_v21 = vrot.slane %v5093_v13, 2  ;;  %6474 = vmatpush.msrb.mxu2 %v6241_v36  ;;  %v6257_v18 = vmax.f32 %v6179_v11, %v14870_v5  ;;  %v5935_v26 = vmax.f32 %v5851_v44, %v15009_v28  ;;  %v5325_v34 = vsel %vm1178_vm3, %v5322_v59, %v5324_v30  ;;  %6417 = vmatmul.f32.gmra.mxu1 %v6274_v6  ;;  %v6293_v6 = vld [vmem:[%s16439_s5 + $0xc0] sm:$0xff] }
 0x52d   :  { %v6093_v43 = vmax.f32 %v6029_v53, %v14910_v17  ;;  %v16965_v17 = vmax.f32 %v16963_v63, %v16964_v25  ;;  %v6078_v56 = vmax.f32 %v6014_v22, %v14840_v33  ;;  %v5498_v27 = vmax.f32 %v5092_v4, %v5325_v34  ;;  %v16967_v33 = vld [vmem:[#allocation26_spill] sm:$0xff]  ;;  %v6298_v63 = vld [vmem:[%s16439_s5 + $0xe8] sm:$0xff]  ;;  %v6287_v25 = vld [vmem:[%s16439_s5 + $0x90] sm:$0xff] }
 0x52e   :  { %v5613_v2 = vsel %vm1660_vm4, %v5610_v32, %v5612_v21  ;;  %6539 = vmatpush.msrb.mxu3 %v6257_v18  ;;  %v6013_v5 = vmax.f32 %v5935_v26, %v15012_v60  ;;  %v5321_v38 = vrot.slane %v5091_v3, 1  ;;  %v5609_v61 = vrot.slane %v5091_v3, 2  ;;  %v6280_v22 = vld [vmem:[%s16439_s5 + $0x58] sm:$0xff]  ;;  %v6279_v21 = vld [vmem:[%s16439_s5 + $0x50] sm:$0xff]  ;;  %v6294_v18 = vld [vmem:[%s16439_s5 + $0xc8] sm:$0xff] }
 0x52f   :  { %v6092_v16 = vmax.f32 %v16965_v17, %v8631_v42  ;;  %v6177_v41 = vmax.f32 %v6093_v43, %v14945_v31  ;;  %v6162_v13 = vmax.f32 %v6078_v56, %v14881_v57  ;;  %v5786_v51 = vmax.f32 %v5498_v27, %v5613_v2  ;;  %v6289_v43 = vld [vmem:[%s16439_s5 + $0xa0] sm:$0xff]  ;;  %v6283_v26 = vld [vmem:[%s16439_s5 + $0x70] sm:$0xff]  ;;  %v6288_v34 = vld [vmem:[%s16439_s5 + $0x98] sm:$0xff] }
 0x530   :  { %v16968_v23 = vmax.f32 %v16966_v20, %v16967_v33  ;;  %6540 = vmatpush.msrb.mxu3 %v6256_v14  ;;  %v6077_v4 = vmax.f32 %v6013_v5, %v14898_v47  ;;  %v5323_v10 = vsel %vm1178_vm3, %v5321_v38, %v5322_v59  ;;  %v6330_v47 = vld [vmem:[%s16439_s5 + $0x1e8] sm:$0xff]  ;;  %v6277_v59 = vld [vmem:[%s16439_s5 + $0x40] sm:$0xff]  ;;  %v6292_v17 = vld [vmem:[%s16439_s5 + $0xb8] sm:$0xff] }
 0x531   :  { %v6176_v9 = vmax.f32 %v6092_v16, %v14981_v0  ;;  %v6255_v40 = vmax.f32 %v6177_v41, %v14956_v55  ;;  %v5611_v0 = vsel %vm1660_vm4, %v5609_v61, %v5610_v32  ;;  %v6240_v57 = vmax.f32 %v6162_v13, %v14891_v15  ;;  %6459 = vmatmul.f32.gmra.mxu2 %v6330_v47  ;;  %v6290_v32 = vld [vmem:[%s16439_s5 + $0xa8] sm:$0xff]  ;;  %v6297_v42 = vld [vmem:[%s16439_s5 + $0xe0] sm:$0xff]  ;;  %v6291_v16 = vld [vmem:[%s16439_s5 + $0xb0] sm:$0xff] }
 0x532   :  { %v6091_v31 = vmax.f32 %v16968_v23, %v14528_v39  ;;  %v5850_v35 = vmax.f32 %v5786_v51, %v15002_v58  ;;  %v5497_v53 = vmax.f32 %v5091_v3, %v5323_v10  ;;  %v6161_v55 = vmax.f32 %v6077_v4, %v14932_v12  ;;  %v6278_v12 = vld [vmem:[%s16439_s5 + $0x48] sm:$0xff]  ;;  %v6284_v3 = vld [vmem:[%s16439_s5 + $0x78] sm:$0xff]  ;;  %v6301_v2 = vld [vmem:[%s16439_s5 + $0x100] sm:$0xff] }
 0x533   :  { %6541 = vmatpush.msrb.mxu3 %v6255_v40  ;;  %v6254_v14 = vmax.f32 %v6176_v9, %v15006_v52  ;;  %6475 = vmatpush.msrb.mxu2 %v6240_v57  ;;  %v6296_v56 = vld [vmem:[%s16439_s5 + $0xd8] sm:$0xff]  ;;  %v6302_v5 = vld [vmem:[%s16439_s5 + $0x108] sm:$0xff]  ;;  %v6295_v38 = vld [vmem:[%s16439_s5 + $0xd0] sm:$0xff] }
 0x534   :  { %v6175_v39 = vmax.f32 %v6091_v31, %v15000_v19  ;;  %v5934_v15 = vmax.f32 %v5850_v35, %v15041_v29  ;;  %v5785_v58 = vmax.f32 %v5497_v53, %v5611_v0  ;;  %6394 = vmatmul.f32.gmra.mxu3 %v6329_v62  ;;  %v6239_v19 = vmax.f32 %v6161_v55, %v14935_v37  ;;  %v6272_v37 = vld [vmem:[%s16439_s5 + $0x18] sm:$0xff]  ;;  %v6299_v33 = vld [vmem:[%s16439_s5 + $0xf0] sm:$0xff] }
 0x535   :  { %6542 = vmatpush.msrb.mxu3 %v6254_v14  ;;  %6355 = vmatmul.f32.gmra.mxu0 %v6277_v59  ;;  %v6300_v61 = vld [vmem:[%s16439_s5 + $0xf8] sm:$0xff]  ;;  %v6303_v10 = vld [vmem:[%s16439_s5 + $0x110] sm:$0xff] }
 0x536   :  { %v6253_v36 = vmax.f32 %v6175_v39, %v15030_v50  ;;  %v6012_v52 = vmax.f32 %v5934_v15, %v15060_v24  ;;  %v5849_v11 = vmax.f32 %v5785_v58, %v15037_v48  ;;  %6476 = vmatpush.msrb.mxu2 %v6239_v19  ;;  %6420 = vmatmul.f32.gmra.mxu1 %v6278_v12  ;;  %v6281_v48 = vld [vmem:[%s16439_s5 + $0x60] sm:$0xff]  ;;  %v6304_v23 = vld [vmem:[%s16439_s5 + $0x118] sm:$0xff]  ;;  %v6307_v62 = vld [vmem:[%s16439_s5 + $0x130] sm:$0xff] }
 0x537   :  { %v6308_v0 = vld [vmem:[%s16439_s5 + $0x138] sm:$0xff]  ;;  %v6311_v35 = vld [vmem:[%s16439_s5 + $0x150] sm:$0xff] }
 0x538   :  { %6543 = vmatpush.msrb.mxu3 %v6253_v36  ;;  %v6076_v29 = vmax.f32 %v6012_v52, %v14922_v49  ;;  %v5933_v44 = vmax.f32 %v5849_v11, %v15077_v7  ;;  %v6282_v49 = vld [vmem:[%s16439_s5 + $0x68] sm:$0xff]  ;;  %v6312_v57 = vld [vmem:[%s16439_s5 + $0x158] sm:$0xff]  ;;  %v6315_v14 = vld [vmem:[%s16439_s5 + $0x170] sm:$0xff] }
 0x539   :  { %v6316_v53 = vld [vmem:[%s16439_s5 + $0x178] sm:$0xff]  ;;  %v6319_v15 = vld [vmem:[%s16439_s5 + $0x190] sm:$0xff] }
 0x53a   :  { %v6160_v50 = vmax.f32 %v6076_v29, %v14965_v45  ;;  %v6011_v30 = vmax.f32 %v5933_v44, %v15088_v46  ;;  %v6271_v46 = vld [vmem:[%s16439_s5 + $0x10] sm:$0xff]  ;;  %v6320_v59 = vld [vmem:[%s16439_s5 + $0x198] sm:$0xff] }
 0x53b   :  { %v6324_v58 = vld [vmem:[%s16439_s5 + $0x1b8] sm:$0xff]  ;;  %v6323_v12 = vld [vmem:[%s16439_s5 + $0x1b0] sm:$0xff] }
 0x53c   :  { %v6238_v24 = vmax.f32 %v6160_v50, %v14976_v1  ;;  %v6075_v54 = vmax.f32 %v6011_v30, %v14972_v8  ;;  %6544 = vmatmul.f32.vlgmr.msrb.gmra.mxu3 %v6272_v37  ;;  %v6276_v8 = vld [vmem:[%s16439_s5 + $0x38] sm:$0xff]  ;;  %v6285_v1 = vld [vmem:[%s16439_s5 + $0x80] sm:$0xff]  ;;  %v6327_v37 = vld [vmem:[%s16439_s5 + $0x1d0] sm:$0xff] }
 0x53d   :  { %6358 = vmatmul.f32.gmra.mxu0 %v6281_v48  ;;  %v6328_v11 = vld [vmem:[%s16439_s5 + $0x1d8] sm:$0xff] }
 0x53e   :  { %6477 = vmatpush.msrb.mxu2 %v6238_v24  ;;  %v6159_v7 = vmax.f32 %v6075_v54, %v15009_v28  ;;  %6423 = vmatmul.f32.gmra.mxu1 %v6282_v49  ;;  %v6286_v28 = vld [vmem:[%s16439_s5 + $0x88] sm:$0xff]  ;;  %v6332_v30 = vld [vmem:[%s16439_s5 + $0x1f8] sm:$0xff]  ;;  %v6331_v49 = vld [vmem:[%s16439_s5 + $0x1f0] sm:$0xff] }
 0x540   :  { %v6237_v45 = vmax.f32 %v6159_v7, %v15012_v60  ;;  %v6275_v60 = vld [vmem:[%s16439_s5 + $0x30] sm:$0xff]  ;;  %s8661_s5 = smov 32  }
 0x542   :  { %6478 = vmatpush.msrb.mxu2 %v6237_v45 }
 0x543   :  { %6479 = vmatmul.f32.vlgmr.msrb.gmra.mxu2 %v6271_v46 }
 0x544   :  { %6547 = vmatmul.f32.gmra.mxu3 %v6276_v8  ;;  %v15314_v8 = vld [vmem:[#allocation4] sm:$0xff] }
 0x545   :  { %6361 = vmatmul.f32.gmra.mxu0 %v6285_v1  ;;  %v7321_v1 = vld [vmem:[%s16438_s4 + $0x88] sm:$0xff] }
 0x546   :  { %6426 = vmatmul.f32.gmra.mxu1 %v6286_v28 }
 0x547   :  { %7433 = vmatpush.msrb.mxu1 %v7321_v1 }
 0x54b   :  { %6482 = vmatmul.f32.gmra.mxu2 %v6275_v60  ;;  %v6651_v60 = vld [vmem:[#allocation4 + $0x8] sm:$0x3] }
 0x54c   :  { %6550 = vmatmul.f32.gmra.mxu3 %v6280_v22  ;;  %v16969_v22 = vmov 0.0  }
 0x54d   :  { %6364 = vmatmul.f32.gmra.mxu0 %v6289_v43  ;;  %7635 = vst.msk [vmem:[#allocation4] sm:$0xff] %vm4191_vm2, %v16969_v22  ;;  %v7320_v43 = vld [vmem:[%s16438_s4 + $0x80] sm:$0xff] }
 0x54e   :  { %6429 = vmatmul.f32.gmra.mxu1 %v6290_v32  ;;  %7636 = vst.msk [vmem:[#allocation4 + $0x8] sm:$0x3] %vm4865_vm5, %v16969_v22 }
 0x54f   :  { %7434 = vmatpush.msrb.mxu1 %v7320_v43 }
 0x550   :  { %v6442_v27 = vpop.f32.mrf.mxu2 }
 0x553   :  { %6485 = vmatmul.f32.gmra.mxu2 %v6279_v21 }
 0x554   :  { %6553 = vmatmul.f32.gmra.mxu3 %v6284_v3 }
 0x555   :  { %6367 = vmatmul.f32.gmra.mxu0 %v6293_v6 }
 0x556   :  { %6432 = vmatmul.f32.gmra.mxu1 %v6294_v18 }
 0x558   :  { %v6377_v41 = vpop.f32.mrf.mxu3 }
 0x559   :  { %v15243_v9 = vadd.f32 %v6442_v27, %v6377_v41  ;;  %v6723_v41 = vrot.slane %v6651_v60, 1 }
 0x55b   :  { %6488 = vmatmul.f32.gmra.mxu2 %v6283_v26 }
 0x55c   :  { %6556 = vmatmul.f32.gmra.mxu3 %v6288_v34 }
 0x55d   :  { %6370 = vmatmul.f32.gmra.mxu0 %v6297_v42 }
 0x55e   :  { %6435 = vmatmul.f32.gmra.mxu1 %v6298_v63 }
 0x55f   :  { %v6445_v51 = vpop.f32.mrf.mxu2 }
 0x560   :  { %v6380_v13 = vpop.f32.mrf.mxu3 }
 0x561   :  { %v15251_v20 = vadd.f32 %v6445_v51, %v6380_v13 }
 0x563   :  { %6491 = vmatmul.f32.gmra.mxu2 %v6287_v25 }
 0x564   :  { %6559 = vmatmul.f32.gmra.mxu3 %v6292_v17  ;;  %v6818_v17 = vrot.slane %v15314_v8, 2 }
 0x565   :  { %6373 = vmatmul.f32.gmra.mxu0 %v6301_v2 }
 0x566   :  { %6438 = vmatmul.f32.gmra.mxu1 %v6302_v5 }
 0x56b   :  { %6494 = vmatmul.f32.gmra.mxu2 %v6291_v16  ;;  %v6819_v16 = vrot.slane %v6651_v60, 2 }
 0x56c   :  { %6562 = vmatmul.f32.gmra.mxu3 %v6296_v56  ;;  %v6722_v56 = vrot.slane %v15314_v8, 1 }
 0x573   :  { %6497 = vmatmul.f32.gmra.mxu2 %v6295_v38 }
 0x574   :  { %6565 = vmatmul.f32.gmra.mxu3 %v6300_v61 }
 0x577   :  { %v6383_v4 = vpop.f32.mrf.mxu3 }
 0x578   :  { %v6448_v31 = vpop.f32.mrf.mxu2 }
 0x579   :  { %v15259_v40 = vadd.f32 %v6448_v31, %v6383_v4  ;;  %v6724_v31 = vsel %vm1178_vm3, %v6722_v56, %v6723_v41 }
 0x57b   :  { %6500 = vmatmul.f32.gmra.mxu2 %v6299_v33 }
 0x57c   :  { %6568 = vmatmul.f32.gmra.mxu3 %v6304_v23  ;;  %v6820_v23 = vsel %vm1660_vm4, %v6818_v17, %v6819_v16 }
 0x583   :  { %6503 = vmatmul.f32.gmra.mxu2 %v6303_v10 }
 0x584   :  { %6571 = vmatmul.f32.gmra.mxu3 %v6308_v0 }
 0x58b   :  { %6506 = vmatmul.f32.gmra.mxu2 %v6307_v62 }
 0x58c   :  { %6574 = vmatmul.f32.gmra.mxu3 %v6312_v57 }
 0x58f   :  { %v6451_v47 = vpop.f32.mrf.mxu2 }
 0x590   :  { %v6386_v39 = vpop.f32.mrf.mxu3 }
 0x591   :  { %v15279_v55 = vadd.f32 %v6451_v47, %v6386_v39 }
 0x593   :  { %6509 = vmatmul.f32.gmra.mxu2 %v6311_v35 }
 0x594   :  { %6577 = vmatmul.f32.gmra.mxu3 %v6316_v53 }
 0x59b   :  { %6512 = vmatmul.f32.gmra.mxu2 %v6315_v14 }
 0x59c   :  { %6580 = vmatmul.f32.gmra.mxu3 %v6320_v59 }
 0x59f   :  { %v6415_v24 = vpop.f32.mrf.mxu1 }
 0x5a0   :  { %v6350_v48 = vpop.f32.mrf.mxu0 }
 0x5a1   :  { %v6416_v21 = vadd.f32 %v6415_v24, %v6350_v48 }
 0x5a3   :  { %6515 = vmatmul.f32.gmra.mxu2 %v6319_v15  ;;  %v6454_v36 = vpop.f32.mrf.mxu2 }
 0x5a4   :  { %6583 = vmatmul.f32.gmra.mxu3 %v6324_v58  ;;  %v6389_v19 = vpop.f32.mrf.mxu3 }
 0x5a5   :  { %v15296_v52 = vadd.f32 %v6454_v36, %v6389_v19 }
 0x5a8   :  { %v6353_v46 = vpop.f32.mrf.mxu0 }
 0x5a9   :  { %v6418_v28 = vpop.f32.mrf.mxu1 }
 0x5aa   :  { %v6419_v63 = vadd.f32 %v6418_v28, %v6353_v46 }
 0x5ab   :  { %6518 = vmatmul.f32.gmra.mxu2 %v6323_v12  ;;  %v6457_v44 = vpop.f32.mrf.mxu2 }
 0x5ac   :  { %6586 = vmatmul.f32.gmra.mxu3 %v6328_v11 }
 0x5ae   :  { %v6392_v29 = vpop.f32.mrf.mxu3 }
 0x5af   :  { %v15304_v50 = vadd.f32 %v6457_v44, %v6392_v29 }
 0x5b2   :  { %v6356_v3 = vpop.f32.mrf.mxu0 }
 0x5b3   :  { %6521 = vmatmul.f32.gmra.mxu2 %v6327_v37  ;;  %v6421_v18 = vpop.f32.mrf.mxu1 }
 0x5b4   :  { %6589 = vmatmul.f32.gmra.mxu3 %v6332_v30  ;;  %v6460_v7 = vpop.f32.mrf.mxu2  ;;  %v6422_v51 = vadd.f32 %v6421_v18, %v6356_v3 }
 0x5b7   :  { %v6395_v54 = vpop.f32.mrf.mxu3 }
 0x5b8   :  { %v15312_v45 = vadd.f32 %v6460_v7, %v6395_v54 }
 0x5ba   :  { %v6359_v5 = vpop.f32.mrf.mxu0 }
 0x5bb   :  { %6524 = vmatmul.f32.gmra.mxu2 %v6331_v49  ;;  %v6424_v38 = vpop.f32.mrf.mxu1 }
 0x5bc   :  { %v6425_v36 = vadd.f32 %v6424_v38, %v6359_v5 }
 0x5bf   :  { %v6545_v32 = vpop.f32.mrf.mxu3 }
 0x5c2   :  { %v6362_v58 = vpop.f32.mrf.mxu0 }
 0x5c3   :  { %v6427_v19 = vpop.f32.mrf.mxu1 }
 0x5c4   :  { %v6428_v43 = vadd.f32 %v6427_v19, %v6362_v58 }
 0x5c6   :  { %v6480_v6 = vpop.f32.mrf.mxu2 }
 0x5c7   :  { %v6481_v26 = vadd.f32 %v6480_v6, %v6416_v21  ;;  %v6548_v34 = vpop.f32.mrf.mxu3 }
 0x5c9   :  { %v15326_v42 = vadd.f32 %v6545_v32, %v6481_v26 }
 0x5cb   :  { %6634 = vst.msk [vmem:[#allocation4 + $0x11] sm:$0xff] %vm4191_vm2, %v15326_v42 }
 0x5ce   :  { %v6483_v25 = vpop.f32.mrf.mxu2 }
 0x5cf   :  { %v6484_v27 = vadd.f32 %v6483_v25, %v6419_v63  ;;  %v6551_v2 = vpop.f32.mrf.mxu3  ;;  %v6430_v25 = vpop.f32.mrf.mxu1 }
 0x5d1   :  { %v15332_v61 = vadd.f32 %v6548_v34, %v6484_v27  ;;  %v6365_v34 = vpop.f32.mrf.mxu0 }
 0x5d2   :  { %v15334_v13 = vld [vmem:[#allocation4 + $0x10] sm:$0xff]  ;;  %v6653_v33 = vld [vmem:[#allocation4 + $0x18] sm:$0x3] }
 0x5d3   :  { %7637 = vst.msk [vmem:[#allocation4 + $0x10] sm:$0xff] %vm4191_vm2, %v16969_v22  ;;  %v6821_v4 = vrot.slane %v15334_v13, 2  ;;  %v6822_v10 = vrot.slane %v6653_v33, 2  ;;  %v6725_v0 = vrot.slane %v15334_v13, 1  ;;  %v6726_v62 = vrot.slane %v6653_v33, 1 }
 0x5d4   :  { %6635 = vst.msk [vmem:[#allocation4 + $0x21] sm:$0xff] %vm4191_vm2, %v15332_v61  ;;  %v6431_v33 = vadd.f32 %v6430_v25, %v6365_v34 }
 0x5d5   :  { %v6823_v57 = vsel %vm1660_vm4, %v6821_v4, %v6822_v10  ;;  %7638 = vst.msk [vmem:[#allocation4 + $0x18] sm:$0x3] %vm4865_vm5, %v16969_v22  ;;  %v6727_v35 = vsel %vm1178_vm3, %v6725_v0, %v6726_v62 }
 0x5d6   :  { %v6486_v53 = vpop.f32.mrf.mxu2  ;;  %v8197_v39 = vpack.i.bf16 %v6823_v57, %v6820_v23  ;;  %v8192_v47 = vpack.i.bf16 %v6727_v35, %v6724_v31 }
 0x5d7   :  { %v6487_v14 = vadd.f32 %v6486_v53, %v6422_v51  ;;  %v6554_v59 = vpop.f32.mrf.mxu3 }
 0x5d8   :  { %8198 = vrot.lane.b32.xlu1 %v8197_v39, %s8661_s5  ;;  %8193 = vrot.lane.b32.xlu0 %v8192_v47, %s8662_s27  ;;  %v6433_v39 = vpop.f32.mrf.mxu1 }
 0x5d9   :  { %v15350_v15 = vadd.f32 %v6551_v2, %v6487_v14 }
 0x5db   :  { %6636 = vst.msk [vmem:[#allocation4 + $0x31] sm:$0xff] %vm4191_vm2, %v15350_v15  ;;  %v15354_v12 = vld [vmem:[#allocation4 + $0x20] sm:$0xff]  ;;  %v6655_v11 = vld [vmem:[#allocation4 + $0x28] sm:$0x3] }
 0x5dc   :  { %v8202_v29 = vpack.i.bf16 %v15354_v12, %v15334_v13  ;;  %7639 = vst.msk [vmem:[#allocation4 + $0x20] sm:$0xff] %vm4191_vm2, %v16969_v22  ;;  %v6824_v44 = vrot.slane %v15354_v12, 2  ;;  %v6825_v37 = vrot.slane %v6655_v11, 2  ;;  %v6728_v30 = vrot.slane %v15354_v12, 1 }
 0x5dd   :  { %7640 = vst.msk [vmem:[#allocation4 + $0x28] sm:$0x3] %vm4865_vm5, %v16969_v22  ;;  %v6729_v48 = vrot.slane %v6655_v11, 1 }
 0x5de   :  { %8203 = vrot.lane.b32.xlu2 %v8202_v29, %s8663_s28  ;;  %v6489_v24 = vpop.f32.mrf.mxu2  ;;  %v6826_v54 = vsel %vm1660_vm4, %v6824_v44, %v6825_v37 }
 0x5df   :  { %v6490_v49 = vadd.f32 %v6489_v24, %v6425_v36  ;;  %8130 = vmatmul.msk.f32.vlgmr.msrb.gmra.mxu1 %vm4191_vm2, %v6826_v54  ;;  %v8212_v7 = vpack.i.bf16 %v6826_v54, %v6823_v57  ;;  %v6730_v46 = vsel %vm1178_vm3, %v6728_v30, %v6729_v48  ;;  %v6557_v1 = vpop.f32.mrf.mxu3  ;;  %v6368_v57 = vpop.f32.mrf.mxu0 }
 0x5e0   :  { %v8207_v28 = vpack.i.bf16 %v6730_v46, %v6727_v35  ;;  %v6434_v11 = vadd.f32 %v6433_v39, %v6368_v57 }
 0x5e1   :  { %v15368_v60 = vadd.f32 %v6554_v59, %v6490_v49  ;;  %8213 = vrot.lane.b32.xlu1 %v8212_v7, %s8664_s29 }
 0x5e2   :  { %8208 = vrot.lane.b32.xlu0 %v8207_v28, %s8665_s2  ;;  %v15372_v32 = vld [vmem:[#allocation4 + $0x30] sm:$0xff]  ;;  %v6657_v21 = vld [vmem:[#allocation4 + $0x38] sm:$0x3] }
 0x5e3   :  { %6637 = vst.msk [vmem:[#allocation4 + $0x41] sm:$0xff] %vm4191_vm2, %v15368_v60  ;;  %v8217_v3 = vpack.i.bf16 %v15372_v32, %v15354_v12  ;;  %v6827_v6 = vrot.slane %v15372_v32, 2  ;;  %v6828_v18 = vrot.slane %v6657_v21, 2  ;;  %v6731_v26 = vrot.slane %v15372_v32, 1 }
 0x5e4   :  { %7641 = vst.msk [vmem:[#allocation4 + $0x30] sm:$0xff] %vm4191_vm2, %v16969_v22  ;;  %v6732_v63 = vrot.slane %v6657_v21, 1 }
 0x5e5   :  { %v6829_v17 = vsel %vm1660_vm4, %v6827_v6, %v6828_v18  ;;  %7642 = vst.msk [vmem:[#allocation4 + $0x38] sm:$0x3] %vm4865_vm5, %v16969_v22 }
 0x5e6   :  { %8218 = vrot.lane.b32.xlu2 %v8217_v3, %s8666_s3  ;;  %v6492_v16 = vpop.f32.mrf.mxu2  ;;  %v6733_v56 = vsel %vm1178_vm3, %v6731_v26, %v6732_v63  ;;  %v8232_v10 = vpack.i.bf16 %v6829_v17, %v6826_v54  ;;  %v6436_v3 = vpop.f32.mrf.mxu1 }
 0x5e7   :  { %v6493_v41 = vadd.f32 %v6492_v16, %v6428_v43  ;;  %8131 = vmatmul.msk.f32.gmra.mxu1 %vm4191_vm2, %v6829_v17  ;;  %v8227_v27 = vpack.i.bf16 %v6733_v56, %v6730_v46  ;;  %v6560_v2 = vpop.f32.mrf.mxu3  ;;  %v6371_v21 = vpop.f32.mrf.mxu0 }
 0x5e8   :  { %v6437_v34 = vadd.f32 %v6436_v3, %v6371_v21  ;;  %v15499_v21 = vld [vmem:[#allocation4 + $0xa0] sm:$0xff] }
 0x5e9   :  { %v15388_v5 = vadd.f32 %v6557_v1, %v6493_v41  ;;  %8228 = vrot.lane.b32.xlu1 %v8227_v27, %s8662_s27  ;;  %v15449_v41 = vld [vmem:[#allocation4 + $0x90] sm:$0xff]  ;;  %7655 = vst.msk [vmem:[#allocation4 + $0xa0] sm:$0xff] %vm4191_vm2, %v16969_v22 }
 0x5ea   :  { %v15391_v38 = vld [vmem:[#allocation4 + $0x40] sm:$0xff]  ;;  %8223 = vrot.lane.b32.xlu0 %v8227_v27, %s8667_s30  ;;  %v6659_v51 = vld [vmem:[#allocation4 + $0x48] sm:$0x3]  ;;  %7653 = vst.msk [vmem:[#allocation4 + $0x90] sm:$0xff] %vm4191_vm2, %v16969_v22 }
 0x5eb   :  { %7643 = vst.msk [vmem:[#allocation4 + $0x40] sm:$0xff] %vm4191_vm2, %v16969_v22  ;;  %v6830_v23 = vrot.slane %v15391_v38, 2  ;;  %v6831_v31 = vrot.slane %v6659_v51, 2  ;;  %v6734_v4 = vrot.slane %v15391_v38, 1  ;;  %v6735_v0 = vrot.slane %v6659_v51, 1 }
 0x5ec   :  { %6638 = vst.msk [vmem:[#allocation4 + $0x51] sm:$0xff] %vm4191_vm2, %v15388_v5  ;;  %v8237_v58 = vpack.i.bf16 %v15391_v38, %v15372_v32 }
 0x5ed   :  { %v15401_v62 = vsel %vm1660_vm4, %v6830_v23, %v6831_v31  ;;  %7644 = vst.msk [vmem:[#allocation4 + $0x48] sm:$0x3] %vm4865_vm5, %v16969_v22  ;;  %v6736_v53 = vsel %vm1178_vm3, %v6734_v4, %v6735_v0 }
 0x5ee   :  { %8233 = vrot.lane.b32.xlu2 %v8232_v10, %s8661_s5  ;;  %v6495_v35 = vpop.f32.mrf.mxu2  ;;  %v8242_v14 = vpack.i.bf16 %v6736_v53, %v6733_v56  ;;  %v8247_v44 = vpack.i.bf16 %v15401_v62, %v6829_v17  ;;  %v6439_v10 = vpop.f32.mrf.mxu1 }
 0x5ef   :  { %v6496_v47 = vadd.f32 %v6495_v35, %v6431_v33  ;;  %8132 = vmatmul.msk.f32.gmra.mxu1 %vm4191_vm2, %v15401_v62  ;;  %v6563_v59 = vpop.f32.mrf.mxu3  ;;  %v6374_v4 = vpop.f32.mrf.mxu0 }
 0x5f1   :  { %v15411_v19 = vadd.f32 %v6560_v2, %v6496_v47  ;;  %8243 = vrot.lane.b32.xlu1 %v8242_v14, %s8665_s2  ;;  %v15452_v2 = vld [vmem:[#allocation4 + $0x98] sm:$0x3] }
 0x5f2   :  { %8238 = vrot.lane.b32.xlu0 %v8237_v58, %s8663_s28  ;;  %7654 = vst.msk [vmem:[#allocation4 + $0x98] sm:$0x3] %vm4865_vm5, %v16969_v22 }
 0x5f3   :  { %v15415_v36 = vld [vmem:[#allocation4 + $0x50] sm:$0xff]  ;;  %6639 = vst.msk [vmem:[#allocation4 + $0x61] sm:$0xff] %vm4191_vm2, %v15411_v19  ;;  %v6661_v29 = vld [vmem:[#allocation4 + $0x58] sm:$0x3] }
 0x5f4   :  { %7645 = vst.msk [vmem:[#allocation4 + $0x50] sm:$0xff] %vm4191_vm2, %v16969_v22  ;;  %v6833_v37 = vrot.slane %v15415_v36, 2  ;;  %v6834_v30 = vrot.slane %v6661_v29, 2  ;;  %v6737_v48 = vrot.slane %v15415_v36, 1  ;;  %v6738_v24 = vrot.slane %v6661_v29, 1 }
 0x5f5   :  { %7646 = vst.msk [vmem:[#allocation4 + $0x58] sm:$0x3] %vm4865_vm5, %v16969_v22  ;;  %v8252_v28 = vpack.i.bf16 %v15415_v36, %v15391_v38 }
 0x5f6   :  { %8248 = vrot.lane.b32.xlu2 %v8247_v44, %s8664_s29  ;;  %v6498_v54 = vpop.f32.mrf.mxu2  ;;  %v6835_v49 = vsel %vm1660_vm4, %v6833_v37, %v6834_v30  ;;  %v6739_v46 = vsel %vm1178_vm3, %v6737_v48, %v6738_v24 }
 0x5f7   :  { %v6499_v7 = vadd.f32 %v6498_v54, %v6434_v11  ;;  %8133 = vmatmul.msk.f32.gmra.mxu1 %vm4191_vm2, %v6835_v49  ;;  %v6566_v1 = vpop.f32.mrf.mxu3  ;;  %v8257_v43 = vpack.i.bf16 %v6739_v46, %v6736_v53  ;;  %v8267_v23 = vpack.i.bf16 %v6835_v49, %v15401_v62  ;;  %v6440_v62 = vadd.f32 %v6439_v10, %v6374_v4 }
 0x5f9   :  { %v15432_v6 = vadd.f32 %v6563_v59, %v6499_v7  ;;  %8258 = vrot.lane.b32.xlu1 %v8257_v43, %s8667_s30 }
 0x5fa   :  { %v15434_v18 = vld [vmem:[#allocation4 + $0x60] sm:$0xff]  ;;  %8253 = vrot.lane.b32.xlu0 %v8252_v28, %s8666_s3  ;;  %v6663_v26 = vld [vmem:[#allocation4 + $0x68] sm:$0x3] }
 0x5fb   :  { %7647 = vst.msk [vmem:[#allocation4 + $0x60] sm:$0xff] %vm4191_vm2, %v16969_v22  ;;  %v6836_v63 = vrot.slane %v15434_v18, 2  ;;  %v6837_v25 = vrot.slane %v6663_v26, 2  ;;  %v6740_v16 = vrot.slane %v15434_v18, 1  ;;  %v6741_v56 = vrot.slane %v6663_v26, 1 }
 0x5fc   :  { %6640 = vst.msk [vmem:[#allocation4 + $0x71] sm:$0xff] %vm4191_vm2, %v15432_v6  ;;  %v8272_v31 = vpack.i.bf16 %v15434_v18, %v15415_v36 }
 0x5fd   :  { %v15444_v17 = vsel %vm1660_vm4, %v6836_v63, %v6837_v25  ;;  %7648 = vst.msk [vmem:[#allocation4 + $0x68] sm:$0x3] %vm4865_vm5, %v16969_v22  ;;  %v6742_v57 = vsel %vm1178_vm3, %v6740_v16, %v6741_v56  ;;  %v6671_v63 = vld [vmem:[#allocation4 + $0xa8] sm:$0x3]  ;;  %v7180_v16 = vrot.slane %v15449_v41, 2  ;;  %v7181_v56 = vrot.slane %v15452_v2, 2 }
 0x5fe   :  { %8263 = vrot.lane.b32.xlu2 %v8257_v43, %s8662_s27  ;;  %v6501_v27 = vpop.f32.mrf.mxu2  ;;  %v8277_v39 = vpack.i.bf16 %v6742_v57, %v6739_v46  ;;  %v8282_v30 = vpack.i.bf16 %v15444_v17, %v6835_v49  ;;  %7656 = vst.msk [vmem:[#allocation4 + $0xa8] sm:$0x3] %vm4865_vm5, %v16969_v22 }
 0x5ff   :  { %v6502_v51 = vadd.f32 %v6501_v27, %v6437_v34  ;;  %8134 = vmatmul.msk.f32.gmra.mxu1 %vm4191_vm2, %v15444_v17  ;;  %v6569_v33 = vpop.f32.mrf.mxu3 }
 0x601   :  { %v15463_v0 = vadd.f32 %v6566_v1, %v6502_v51  ;;  %8273 = vrot.lane.b32.xlu1 %v8272_v31, %s8663_s28 }
 0x602   :  { %8268 = vrot.lane.b32.xlu0 %v8267_v23, %s8661_s5  ;;  %v7182_v23 = vsel %vm1660_vm4, %v7180_v16, %v7181_v56 }
 0x603   :  { %v15468_v35 = vld [vmem:[#allocation4 + $0x70] sm:$0xff]  ;;  %6641 = vst.msk [vmem:[#allocation4 + $0x81] sm:$0xff] %vm4191_vm2, %v15463_v0  ;;  %v6665_v53 = vld [vmem:[#allocation4 + $0x78] sm:$0x3] }
 0x604   :  { %7649 = vst.msk [vmem:[#allocation4 + $0x70] sm:$0xff] %vm4191_vm2, %v16969_v22  ;;  %v6839_v47 = vrot.slane %v15468_v35, 2  ;;  %v6840_v14 = vrot.slane %v6665_v53, 2  ;;  %v6743_v59 = vrot.slane %v15468_v35, 1  ;;  %v6744_v58 = vrot.slane %v6665_v53, 1 }
 0x605   :  { %7650 = vst.msk [vmem:[#allocation4 + $0x78] sm:$0x3] %vm4865_vm5, %v16969_v22  ;;  %v8287_v48 = vpack.i.bf16 %v15468_v35, %v15434_v18 }
 0x606   :  { %8278 = vrot.lane.b32.xlu2 %v8277_v39, %s8665_s2  ;;  %v6504_v11 = vpop.f32.mrf.mxu2  ;;  %v6841_v29 = vsel %vm1660_vm4, %v6839_v47, %v6840_v14  ;;  %v6745_v54 = vsel %vm1178_vm3, %v6743_v59, %v6744_v58  ;;  %v6747_v39 = vrot.slane %v6671_v63, 1 }
 0x607   :  { %8135 = vmatmul.msk.f32.gmra.mxu1 %vm4191_vm2, %v6841_v29  ;;  %v6505_v44 = vadd.f32 %v6504_v11, %v6440_v62  ;;  %v6572_v37 = vpop.f32.mrf.mxu3  ;;  %v8292_v28 = vpack.i.bf16 %v6745_v54, %v6742_v57  ;;  %v8302_v25 = vpack.i.bf16 %v6841_v29, %v15444_v17  ;;  %v6746_v57 = vrot.slane %v15499_v21, 1 }
 0x609   :  { %v15484_v24 = vadd.f32 %v6569_v33, %v6505_v44  ;;  %8288 = vrot.lane.b32.xlu1 %v8287_v48, %s8666_s3  ;;  %v7126_v44 = vrot.slane %v15449_v41, 1 }
 0x60a   :  { %8283 = vrot.lane.b32.xlu0 %v8282_v30, %s8664_s29  ;;  %v15489_v7 = vld [vmem:[#allocation4 + $0x80] sm:$0xff]  ;;  %v6667_v46 = vld [vmem:[#allocation4 + $0x88] sm:$0x3] }
 0x60b   :  { %6642 = vst.msk [vmem:[#allocation4 + $0xb1] sm:$0xff] %vm4191_vm2, %v15484_v24  ;;  %v7020_v1 = vrot.slane %v15489_v7, 2  ;;  %v7021_v49 = vrot.slane %v6667_v46, 2  ;;  %v6966_v51 = vrot.slane %v15489_v7, 1  ;;  %v6967_v33 = vrot.slane %v6667_v46, 1 }
 0x60c   :  { %7651 = vst.msk [vmem:[#allocation4 + $0x80] sm:$0xff] %vm4191_vm2, %v16969_v22  ;;  %v8307_v17 = vpack.i.bf16 %v15489_v7, %v15468_v35 }
 0x60d   :  { %v7022_v43 = vsel %vm1660_vm4, %v7020_v1, %v7021_v49  ;;  %7652 = vst.msk [vmem:[#allocation4 + $0x88] sm:$0x3] %vm4865_vm5, %v16969_v22  ;;  %v6968_v4 = vsel %vm1178_vm3, %v6966_v51, %v6967_v33 }
 0x60e   :  { %8293 = vrot.lane.b32.xlu2 %v8292_v28, %s8667_s30  ;;  %v6507_v3 = vpop.f32.mrf.mxu2  ;;  %v8322_v59 = vpack.i.bf16 %v7022_v43, %v6841_v29  ;;  %v8317_v58 = vpack.i.bf16 %v6968_v4, %v6745_v54  ;;  %v6748_v54 = vsel %vm1178_vm3, %v6746_v57, %v6747_v39  ;;  %v7319_v57 = vld [vmem:[%s16438_s4 + $0x78] sm:$0xff] }
 0x60f   :  { %v6508_v26 = vadd.f32 %v6507_v3, %v15243_v9  ;;  %8136 = vmatmul.msk.f32.gmra.mxu1 %vm4191_vm2, %v7022_v43  ;;  %v6575_v34 = vpop.f32.mrf.mxu3  ;;  %v6843_v43 = vrot.slane %v6671_v63, 2  ;;  %7354 = vmatpush.msrb.mxu0 %v7319_v57  ;;  %v7310_v57 = vld [vmem:[%s16438_s4 + $0x30] sm:$0xff] }
 0x611   :  { %v15511_v27 = vadd.f32 %v6572_v37, %v6508_v26  ;;  %8303 = vrot.lane.b32.xlu1 %v8302_v25, %s8661_s5  ;;  %v7127_v37 = vrot.slane %v15452_v2, 1  ;;  %v8312_v2 = vpack.i.bf16 %v15449_v41, %v15489_v7 }
 0x612   :  { %8298 = vrot.lane.b32.xlu0 %v8292_v28, %s8662_s27  ;;  %v15518_v9 = vld [vmem:[#allocation4 + $0xb0] sm:$0xff]  ;;  %v6673_v31 = vld [vmem:[#allocation4 + $0xb8] sm:$0x3]  ;;  %v6842_v28 = vrot.slane %v15499_v21, 2 }
 0x613   :  { %6643 = vst.msk [vmem:[#allocation4 + $0xc1] sm:$0xff] %vm4191_vm2, %v15511_v27  ;;  %v6749_v47 = vrot.slane %v15518_v9, 1  ;;  %v6750_v14 = vrot.slane %v6673_v31, 1  ;;  %v7128_v49 = vsel %vm1178_vm3, %v7126_v44, %v7127_v37  ;;  %v6845_v41 = vrot.slane %v15518_v9, 2  ;;  %v7316_v37 = vld [vmem:[%s16438_s4 + $0x60] sm:$0xff] }
 0x614   :  { %7657 = vst.msk [vmem:[#allocation4 + $0xb0] sm:$0xff] %vm4191_vm2, %v16969_v22  ;;  %v6846_v7 = vrot.slane %v6673_v31, 2  ;;  %v8327_v25 = vpack.i.bf16 %v7128_v49, %v6968_v4  ;;  %v6844_v51 = vsel %vm1660_vm4, %v6842_v28, %v6843_v43 }
 0x615   :  { %7658 = vst.msk [vmem:[#allocation4 + $0xb8] sm:$0x3] %vm4865_vm5, %v16969_v22  ;;  %v6751_v46 = vsel %vm1178_vm3, %v6749_v47, %v6750_v14  ;;  %v7317_v14 = vld [vmem:[%s16438_s4 + $0x68] sm:$0xff] }
 0x616   :  { %8308 = vrot.lane.b32.xlu2 %v8307_v17, %s8663_s28  ;;  %v6510_v10 = vpop.f32.mrf.mxu2  ;;  %v8332_v26 = vpack.i.bf16 %v6751_v46, %v6748_v54  ;;  %v6847_v17 = vsel %vm1660_vm4, %v6845_v41, %v6846_v7  ;;  %v7313_v7 = vld [vmem:[%s16438_s4 + $0x48] sm:$0xff] }
 0x617   :  { %v6511_v53 = vadd.f32 %v6510_v10, %v15251_v20  ;;  %8137 = vmatmul.msk.f32.gmra.mxu1 %vm4191_vm2, %v7182_v23  ;;  %v6578_v62 = vpop.f32.mrf.mxu3  ;;  %v8337_v31 = vpack.i.bf16 %v6847_v17, %v6844_v51 }
 0x619   :  { %v15533_v11 = vadd.f32 %v6575_v34, %v6511_v53  ;;  %8323 = vrot.lane.b32.xlu1 %v8322_v59, %s8664_s29  ;;  %v7318_v53 = vld [vmem:[%s16438_s4 + $0x70] sm:$0xff] }
 0x61a   :  { %v15537_v30 = vld [vmem:[#allocation4 + $0xc0] sm:$0xff]  ;;  %8318 = vrot.lane.b32.xlu0 %v8317_v58, %s8665_s2  ;;  %v6675_v20 = vld [vmem:[#allocation4 + $0xc8] sm:$0x3]  ;;  %7355 = vmatpush.msrb.mxu0 %v7318_v53 }
 0x61b   :  { %7659 = vst.msk [vmem:[#allocation4 + $0xc0] sm:$0xff] %vm4191_vm2, %v16969_v22  ;;  %v6848_v48 = vrot.slane %v15537_v30, 2  ;;  %v6849_v29 = vrot.slane %v6675_v20, 2  ;;  %v6752_v63 = vrot.slane %v15537_v30, 1  ;;  %v6753_v33 = vrot.slane %v6675_v20, 1 }
 0x61c   :  { %6644 = vst.msk [vmem:[#allocation4 + $0xd1] sm:$0xff] %vm4191_vm2, %v15533_v11  ;;  %v8342_v58 = vpack.i.bf16 %v15537_v30, %v15518_v9  ;;  %7356 = vmatpush.msrb.mxu0 %v7317_v14 }
 0x61d   :  { %v15551_v1 = vsel %vm1660_vm4, %v6848_v48, %v6849_v29  ;;  %7660 = vst.msk [vmem:[#allocation4 + $0xc8] sm:$0x3] %vm4865_vm5, %v16969_v22 }
 0x61e   :  { %8313 = vrot.lane.b32.xlu2 %v8312_v2, %s8666_s3  ;;  %v6513_v3 = vpop.f32.mrf.mxu2  ;;  %7357 = vmatpush.msrb.mxu0 %v7316_v37  ;;  %v8352_v43 = vpack.i.bf16 %v15551_v1, %v6847_v17 }
 0x61f   :  { %v6514_v34 = vadd.f32 %v6513_v3, %v15259_v40  ;;  %8138 = vmatmul.msk.f32.gmra.mxu1 %vm4191_vm2, %v15551_v1  ;;  %v6581_v16 = vpop.f32.mrf.mxu3  ;;  %v7314_v3 = vld [vmem:[%s16438_s4 + $0x50] sm:$0xff] }
 0x621   :  { %v15562_v56 = vadd.f32 %v6578_v62, %v6514_v34  ;;  %8333 = vrot.lane.b32.xlu1 %v8332_v26, %s8662_s27  ;;  %v6754_v62 = vsel %vm1178_vm3, %v6752_v63, %v6753_v33  ;;  %v7312_v63 = vld [vmem:[%s16438_s4 + $0x40] sm:$0xff] }
 0x622   :  { %8328 = vrot.lane.b32.xlu0 %v8327_v25, %s8667_s30  ;;  %v8347_v44 = vpack.i.bf16 %v6754_v62, %v6751_v46  ;;  %v7315_v46 = vld [vmem:[%s16438_s4 + $0x58] sm:$0xff] }
 0x623   :  { %v15568_v40 = vld [vmem:[#allocation4 + $0xd0] sm:$0xff]  ;;  %6645 = vst.msk [vmem:[#allocation4 + $0xe1] sm:$0xff] %vm4191_vm2, %v15562_v56  ;;  %v6677_v23 = vld [vmem:[#allocation4 + $0xd8] sm:$0x3]  ;;  %7358 = vmatpush.msrb.mxu0 %v7315_v46 }
 0x624   :  { %7661 = vst.msk [vmem:[#allocation4 + $0xd0] sm:$0xff] %vm4191_vm2, %v16969_v22  ;;  %v6851_v4 = vrot.slane %v15568_v40, 2  ;;  %v6852_v10 = vrot.slane %v6677_v23, 2  ;;  %v6755_v48 = vrot.slane %v15568_v40, 1  ;;  %v6756_v29 = vrot.slane %v6677_v23, 1 }
 0x625   :  { %7662 = vst.msk [vmem:[#allocation4 + $0xd8] sm:$0x3] %vm4865_vm5, %v16969_v22  ;;  %7359 = vmatpush.msrb.mxu0 %v7314_v3  ;;  %v7306_v3 = vld [vmem:[%s16438_s4 + $0x10] sm:$0xff] }
 0x626   :  { %8338 = vrot.lane.b32.xlu2 %v8337_v31, %s8661_s5  ;;  %v6516_v39 = vpop.f32.mrf.mxu2  ;;  %v15587_v47 = vsel %vm1660_vm4, %v6851_v4, %v6852_v10  ;;  %v6757_v34 = vsel %vm1178_vm3, %v6755_v48, %v6756_v29 }
 0x627   :  { %v6517_v59 = vadd.f32 %v6516_v39, %v15279_v55  ;;  %8139 = vmatmul.msk.f32.gmra.mxu1 %vm4191_vm2, %v15587_v47  ;;  %v6584_v2 = vpop.f32.mrf.mxu3  ;;  %v8362_v51 = vpack.i.bf16 %v6757_v34, %v6754_v62  ;;  %7360 = vmatpush.msrb.mxu0 %v7313_v7  ;;  %v8372_v37 = vpack.i.bf16 %v15587_v47, %v15551_v1  ;;  %v7307_v1 = vld [vmem:[%s16438_s4 + $0x18] sm:$0xff] }
 0x629   :  { %v15600_v20 = vadd.f32 %v6581_v16, %v6517_v59  ;;  %8348 = vrot.lane.b32.xlu1 %v8347_v44, %s8665_s2  ;;  %v8357_v16 = vpack.i.bf16 %v15568_v40, %v15537_v30  ;;  %7361 = vmatpush.msrb.mxu0 %v7312_v63 }
 0x62a   :  { %v15603_v54 = vld [vmem:[#allocation4 + $0xe0] sm:$0xff]  ;;  %8343 = vrot.lane.b32.xlu0 %v8342_v58, %s8663_s28  ;;  %v6679_v55 = vld [vmem:[#allocation4 + $0xe8] sm:$0x3] }
 0x62b   :  { %7663 = vst.msk [vmem:[#allocation4 + $0xe0] sm:$0xff] %vm4191_vm2, %v16969_v22  ;;  %v6854_v49 = vrot.slane %v15603_v54, 2  ;;  %v6855_v28 = vrot.slane %v6679_v55, 2  ;;  %v6758_v53 = vrot.slane %v15603_v54, 1  ;;  %v6759_v62 = vrot.slane %v6679_v55, 1  ;;  %v7309_v58 = vld [vmem:[%s16438_s4 + $0x28] sm:$0xff] }
 0x62c   :  { %6646 = vst.msk [vmem:[#allocation4 + $0xf1] sm:$0xff] %vm4191_vm2, %v15600_v20  ;;  %v8377_v48 = vpack.i.bf16 %v15603_v54, %v15568_v40 }
 0x62d   :  { %v15620_v26 = vsel %vm1660_vm4, %v6854_v49, %v6855_v28  ;;  %7664 = vst.msk [vmem:[#allocation4 + $0xe8] sm:$0x3] %vm4865_vm5, %v16969_v22  ;;  %v6760_v55 = vsel %vm1178_vm3, %v6758_v53, %v6759_v62 }
 0x62e   :  { %8353 = vrot.lane.b32.xlu2 %v8352_v43, %s8664_s29  ;;  %v6519_v41 = vpop.f32.mrf.mxu2  ;;  %v8382_v43 = vpack.i.bf16 %v6760_v55, %v6757_v34  ;;  %v7305_v34 = vld [vmem:[%s16438_s4 + $0x8] sm:$0xff] }
 0x62f   :  { %v6520_v25 = vadd.f32 %v6519_v41, %v15296_v52  ;;  %8140 = vmatmul.msk.f32.gmra.mxu1 %vm4191_vm2, %v15620_v26  ;;  %v7311_v52 = vld [vmem:[%s16438_s4 + $0x38] sm:$0xff]  ;;  %v6587_v10 = vpop.f32.mrf.mxu3 }
 0x630   :  { %7362 = vmatpush.msrb.mxu0 %v7311_v52  ;;  %v8387_v52 = vpack.i.bf16 %v15620_v26, %v15587_v47 }
 0x631   :  { %v15637_v33 = vadd.f32 %v6584_v2, %v6520_v25  ;;  %8363 = vrot.lane.b32.xlu1 %v8362_v51, %s8667_s30 }
 0x632   :  { %8358 = vrot.lane.b32.xlu0 %v8357_v16, %s8666_s3  ;;  %7363 = vmatpush.msrb.mxu0 %v7310_v57 }
 0x633   :  { %v15644_v17 = vld [vmem:[#allocation4 + $0xf0] sm:$0xff]  ;;  %6647 = vst.msk [vmem:[#allocation4 + $0x101] sm:$0xff] %vm4191_vm2, %v15637_v33  ;;  %v6681_v23 = vld [vmem:[#allocation4 + $0xf8] sm:$0x3] }
 0x634   :  { %7665 = vst.msk [vmem:[#allocation4 + $0xf0] sm:$0xff] %vm4191_vm2, %v16969_v22  ;;  %v6857_v31 = vrot.slane %v15644_v17, 2  ;;  %v6858_v4 = vrot.slane %v6681_v23, 2  ;;  %7364 = vmatpush.msrb.mxu0 %v7309_v58  ;;  %v6761_v7 = vrot.slane %v15644_v17, 1  ;;  %v6762_v25 = vrot.slane %v6681_v23, 1 }
 0x635   :  { %7666 = vst.msk [vmem:[#allocation4 + $0xf8] sm:$0x3] %vm4865_vm5, %v16969_v22  ;;  %v8392_v23 = vpack.i.bf16 %v15644_v17, %v15603_v54 }
 0x636   :  { %8368 = vrot.lane.b32.xlu2 %v8362_v51, %s8662_s27  ;;  %v6522_v39 = vpop.f32.mrf.mxu2  ;;  %v15659_v14 = vsel %vm1660_vm4, %v6857_v31, %v6858_v4  ;;  %v7304_v4 = vld [vmem:[%s16438_s4] sm:$0xff] }
 0x637   :  { %v6523_v59 = vadd.f32 %v6522_v39, %v15304_v50  ;;  %8141 = vmatmul.msk.f32.gmra.mxu1 %vm4191_vm2, %v15659_v14  ;;  %v7308_v50 = vld [vmem:[%s16438_s4 + $0x20] sm:$0xff]  ;;  %v6590_v51 = vpop.f32.mrf.mxu3  ;;  %v8407_v58 = vpack.i.bf16 %v15659_v14, %v15620_v26 }
 0x638   :  { %v15667_v44 = vpop.permute.xlu2 %8203  ;;  %7365 = vmatpush.msrb.mxu0 %v7308_v50 }
 0x639   :  { %v15676_v29 = vadd.f32 %v6587_v10, %v6523_v59  ;;  %8378 = vrot.lane.b32.xlu1 %v8377_v48, %s8663_s28 }
 0x63a   :  { %v15679_v2 = vld [vmem:[#allocation4 + $0x100] sm:$0xff]  ;;  %8373 = vrot.lane.b32.xlu0 %v8372_v37, %s8661_s5  ;;  %v6683_v46 = vld [vmem:[#allocation4 + $0x108] sm:$0x3]  ;;  %7366 = vmatpush.msrb.mxu0 %v7307_v1 }
 0x63b   :  { %7667 = vst.msk [vmem:[#allocation4 + $0x100] sm:$0xff] %vm4191_vm2, %v16969_v22  ;;  %v6860_v49 = vrot.slane %v15679_v2, 2  ;;  %v6861_v28 = vrot.slane %v6683_v46, 2  ;;  %v6764_v48 = vrot.slane %v15679_v2, 1  ;;  %v6765_v50 = vrot.slane %v6683_v46, 1 }
 0x63c   :  { %6648 = vst.msk [vmem:[#allocation4 + $0x111] sm:$0xff] %vm4191_vm2, %v15676_v29  ;;  %7367 = vmatpush.msrb.mxu0 %v7306_v3  ;;  %v8412_v26 = vpack.i.bf16 %v15679_v2, %v15644_v17 }
 0x63d   :  { %v15695_v41 = vsel %vm1660_vm4, %v6860_v49, %v6861_v28  ;;  %7668 = vst.msk [vmem:[#allocation4 + $0x108] sm:$0x3] %vm4865_vm5, %v16969_v22 }
 0x63e   :  { %8383 = vrot.lane.b32.xlu2 %v8382_v43, %s8665_s2  ;;  %v6525_v16 = vpop.f32.mrf.mxu2  ;;  %7368 = vmatpush.msrb.mxu0 %v7305_v34 }
 0x63f   :  { %v6526_v63 = vadd.f32 %v6525_v16, %v15312_v45  ;;  %8142 = vmatmul.msk.f32.gmra.mxu1 %vm4191_vm2, %v15695_v41  ;;  %v6763_v45 = vsel %vm1178_vm3, %v6761_v7, %v6762_v25  ;;  %v6766_v7 = vsel %vm1178_vm3, %v6764_v48, %v6765_v50  ;;  %v8422_v16 = vpack.i.bf16 %v15695_v41, %v15659_v14  ;;  %v15772_v14 = vld [vmem:[#allocation4 + $0x138] sm:$0x3] }
 0x640   :  { %v15709_v31 = vpop.permute.xlu2 %8218  ;;  %7369 = vmatpush.msrb.mxu0 %v7304_v4  ;;  %v8397_v53 = vpack.i.bf16 %v6763_v45, %v6760_v55  ;;  %7674 = vst.msk [vmem:[#allocation4 + $0x138] sm:$0x3] %vm4865_vm5, %v16969_v22 }
 0x641   :  { %v15716_v10 = vadd.f32 %v6590_v51, %v6526_v63  ;;  %8393 = vrot.lane.b32.xlu1 %v8392_v23, %s8666_s3  ;;  %v8417_v63 = vpack.i.bf16 %v6766_v7, %v6763_v45 }
 0x642   :  { %8388 = vrot.lane.b32.xlu0 %v8387_v52, %s8664_s29 }
 0x643   :  { %v15721_v57 = vld [vmem:[#allocation4 + $0x110] sm:$0xff]  ;;  %6649 = vst.msk [vmem:[#allocation4 + $0x121] sm:$0xff] %vm4191_vm2, %v15716_v10  ;;  %v6685_v47 = vld [vmem:[#allocation4 + $0x118] sm:$0x3] }
 0x644   :  { %7669 = vst.msk [vmem:[#allocation4 + $0x110] sm:$0xff] %vm4191_vm2, %v16969_v22  ;;  %v6863_v62 = vrot.slane %v15721_v57, 2  ;;  %v6864_v39 = vrot.slane %v6685_v47, 2  ;;  %v6767_v23 = vrot.slane %v15721_v57, 1  ;;  %v6768_v4 = vrot.slane %v6685_v47, 1 }
 0x645   :  { %7670 = vst.msk [vmem:[#allocation4 + $0x118] sm:$0x3] %vm4865_vm5, %v16969_v22  ;;  %v8427_v47 = vpack.i.bf16 %v15721_v57, %v15679_v2 }
 0x646   :  { %8398 = vrot.lane.b32.xlu2 %v8397_v53, %s8667_s30  ;;  %v15732_v59 = vsel %vm1660_vm4, %v6863_v62, %v6864_v39  ;;  %v8205_v39 = vunpack.i.l.bf16 %v15667_v44  ;;  %v6769_v50 = vsel %vm1178_vm3, %v6767_v23, %v6768_v4 }
 0x647   :  { %8143 = vmatmul.msk.f32.gmra.mxu1 %vm4191_vm2, %v15732_v59 }
 0x648   :  { %v15738_v37 = vpop.permute.xlu2 %8233 }
 0x649   :  { %8408 = vrot.lane.b32.xlu1 %v8407_v58, %s8661_s5 }
 0x64a   :  { %8403 = vrot.lane.b32.xlu0 %v8397_v53, %s8662_s27  ;;  %v8199_v55 = vpop.permute.xlu1 %8198  ;;  %v8194_v1 = vpop.permute.xlu0 %8193  ;;  %v15743_v49 = vld [vmem:[#allocation4 + $0x120] sm:$0xff]  ;;  %v6687_v28 = vld [vmem:[#allocation4 + $0x128] sm:$0x3]  ;;  %v15766_v53 = vld [vmem:[#allocation4 + $0x130] sm:$0xff] }
 0x64b   :  { %7671 = vst.msk [vmem:[#allocation4 + $0x120] sm:$0xff] %vm4191_vm2, %v16969_v22  ;;  %v7023_v43 = vrot.slane %v15743_v49, 2  ;;  %v7024_v3 = vrot.slane %v6687_v28, 2  ;;  %v8195_v46 = vunpack.i.l.bf16 %v8194_v1  ;;  %v8200_v51 = vunpack.i.l.bf16 %v8199_v55 }
 0x64c   :  { %7672 = vst.msk [vmem:[#allocation4 + $0x128] sm:$0x3] %vm4865_vm5, %v16969_v22  ;;  %v8196_v58 = vunpack.i.h.bf16 %v8194_v1  ;;  %v6969_v1 = vrot.slane %v15743_v49, 1 }
 0x64d   :  { %v15755_v25 = vsel %vm1660_vm4, %v7023_v43, %v7024_v3  ;;  %v7186_v52 = vsel %vm4191_vm2, %v15314_v8, %v8195_v46  ;;  %7673 = vst.msk [vmem:[#allocation4 + $0x130] sm:$0xff] %vm4191_vm2, %v16969_v22  ;;  %v8201_v22 = vunpack.i.h.bf16 %v8199_v55  ;;  %v8220_v55 = vunpack.i.l.bf16 %v15709_v31 }
 0x64e   :  { %8413 = vrot.lane.b32.xlu2 %v8412_v26, %s8663_s28  ;;  %v7203_v8 = vsel %vm7202_vm9, %v7186_v52, %v8200_v51  ;;  %v7187_v51 = vsel %vm4191_vm2, %v15334_v13, %v8196_v58 }
 0x64f   :  { %8144 = vmatmul.msk.f32.gmra.mxu1 %vm4191_vm2, %v15755_v25  ;;  %v7220_v43 = vsel %vm7219_vm10, %v7203_v8, %v8205_v39  ;;  %v7204_v4 = vsel %vm7202_vm9, %v7187_v51, %v8201_v22 }
 0x650   :  { %v15761_v34 = vpop.permute.xlu2 %8248 }
 0x651   :  { %8423 = vrot.lane.b32.xlu1 %v8422_v16, %s8664_s29  ;;  %v8432_v16 = vpack.i.bf16 %v6769_v50, %v6766_v7  ;;  %v8442_v7 = vpack.i.bf16 %v15732_v59, %v15695_v41 }
 0x652   :  { %8418 = vrot.lane.b32.xlu0 %v8417_v63, %s8665_s2  ;;  %v6970_v63 = vrot.slane %v6687_v28, 1  ;;  %v8206_v28 = vunpack.i.h.bf16 %v15667_v44 }
 0x653   :  { %v8214_v62 = vpop.permute.xlu1 %8213 }
 0x654   :  { %v8209_v45 = vpop.permute.xlu0 %8208  ;;  %v8215_v26 = vunpack.i.l.bf16 %v8214_v62  ;;  %v6971_v39 = vsel %vm1178_vm3, %v6969_v1, %v6970_v63  ;;  %v8221_v1 = vunpack.i.h.bf16 %v15709_v31 }
 0x655   :  { %v8210_v48 = vunpack.i.l.bf16 %v8209_v45  ;;  %v8211_v13 = vunpack.i.h.bf16 %v8209_v45  ;;  %v8447_v45 = vpack.i.bf16 %v15743_v49, %v15721_v57  ;;  %v8452_v44 = vpack.i.bf16 %v6971_v39, %v6769_v50 }
 0x656   :  { %8428 = vrot.lane.b32.xlu2 %v8427_v47, %s8666_s3 }
 0x657   :  { %v7237_v3 = vsel %vm7236_vm11, %v7220_v43, %v8210_v48  ;;  %v8216_v48 = vunpack.i.h.bf16 %v8214_v62 }
 0x658   :  { %v15784_v46 = vpop.permute.xlu2 %8263  ;;  %v7254_v23 = vsel %vm7253_vm12, %v7237_v3, %v8215_v26  ;;  %v7221_v26 = vsel %vm7219_vm10, %v7204_v4, %v8206_v28 }
 0x659   :  { %8438 = vrot.lane.b32.xlu1 %v8432_v16, %s8662_s27  ;;  %v7271_v58 = vsel %vm7270_vm13, %v7254_v23, %v8220_v55  ;;  %v7238_v41 = vsel %vm7236_vm11, %v7221_v26, %v8211_v13  ;;  %v8235_v55 = vunpack.i.l.bf16 %v15738_v37  ;;  %v7130_v26 = vrot.slane %v15772_v14, 1  ;;  %s8668_s27 = smov [#allocation5]  }
 0x65a   :  { %8433 = vrot.lane.b32.xlu0 %v8432_v16, %s8667_s30  ;;  %v7255_v51 = vsel %vm7253_vm12, %v7238_v41, %v8216_v48  ;;  %v7129_v48 = vrot.slane %v15766_v53, 1 }
 0x65b   :  { %v8229_v52 = vpop.permute.xlu1 %8228  ;;  %v7272_v4 = vsel %vm7270_vm13, %v7255_v51, %v8221_v1 }
 0x65c   :  { %v8224_v8 = vpop.permute.xlu0 %8223  ;;  %v8230_v3 = vunpack.i.l.bf16 %v8229_v52  ;;  %v8231_v50 = vunpack.i.h.bf16 %v8229_v52  ;;  %v7131_v51 = vsel %vm1178_vm3, %v7129_v48, %v7130_v26 }
 0x65d   :  { %v8225_v47 = vunpack.i.l.bf16 %v8224_v8  ;;  %v8226_v16 = vunpack.i.h.bf16 %v8224_v8 }
 0x65e   :  { %8443 = vrot.lane.b32.xlu2 %v8442_v7, %s8661_s5  ;;  %v7188_v63 = vsel %vm4191_vm2, %v15354_v12, %v8230_v3  ;;  %v7189_v12 = vsel %vm4191_vm2, %v15372_v32, %v8231_v50 }
 0x65f   :  { %v7288_v43 = vsel %vm7287_vm14, %v7271_v58, %v8225_v47  ;;  %v7205_v13 = vsel %vm7202_vm9, %v7188_v63, %v8235_v55  ;;  %v7289_v28 = vsel %vm7287_vm14, %v7272_v4, %v8226_v16 }
 0x660   :  { %7370 = vmatmul.f32.vlgmr.msrb.gmra.mxu0 %v7288_v43  ;;  %v15805_v22 = vpop.permute.xlu2 %8278  ;;  %v8250_v43 = vunpack.i.l.bf16 %v15761_v34 }
 0x661   :  { %8453 = vrot.lane.b32.xlu1 %v8452_v44, %s8665_s2 }
 0x662   :  { %8448 = vrot.lane.b32.xlu0 %v8447_v45, %s8663_s28  ;;  %s8119_s28 = sshll.u32 %s8668_s27, 4  ;;  %s8120_s28 = int_to_ptr.vmem [resolvable:$true] %s8119_s28 }
 0x663   :  { %v8244_v62 = vpop.permute.xlu1 %8243 }
 0x664   :  { %v8239_v23 = vpop.permute.xlu0 %8238  ;;  %v8245_v8 = vunpack.i.l.bf16 %v8244_v62  ;;  %v8246_v45 = vunpack.i.h.bf16 %v8244_v62  ;;  %v8251_v62 = vunpack.i.h.bf16 %v15761_v34 }
 0x665   :  { %v8240_v7 = vunpack.i.l.bf16 %v8239_v23  ;;  %v8241_v47 = vunpack.i.h.bf16 %v8239_v23 }
 0x666   :  { %7054 = vrot.lane.b32.xlu2 %v15732_v59, %s8664_s29  ;;  %v8236_v59 = vunpack.i.h.bf16 %v15738_v37 }
 0x667   :  { %v7222_v31 = vsel %vm7219_vm10, %v7205_v13, %v8240_v7 }
 0x668   :  { %7373 = vmatmul.f32.gmra.mxu0 %v7289_v28  ;;  %v7239_v52 = vsel %vm7236_vm11, %v7222_v31, %v8245_v8  ;;  %v15827_v58 = vpop.permute.xlu2 %8293  ;;  %v7206_v3 = vsel %vm7202_vm9, %v7189_v12, %v8236_v59  ;;  %v8266_v31 = vunpack.i.h.bf16 %v15784_v46 }
 0x669   :  { %7160 = vrot.lane.b32.xlu1 %v6971_v39, %s8667_s30  ;;  %v7223_v39 = vsel %vm7219_vm10, %v7206_v3, %v8241_v47  ;;  %v7256_v37 = vsel %vm7253_vm12, %v7239_v52, %v8250_v43 }
 0x66a   :  { %7104 = vrot.lane.b32.xlu0 %v15743_v49, %s8666_s3  ;;  %v7240_v63 = vsel %vm7236_vm11, %v7223_v39, %v8246_v45  ;;  %v7191_v48 = vsel %vm4191_vm2, %v15415_v36, %v8266_v31 }
 0x66b   :  { %v8259_v32 = vpop.permute.xlu1 %8258  ;;  %v7257_v4 = vsel %vm7253_vm12, %v7240_v63, %v8251_v62 }
 0x66c   :  { %v8254_v41 = vpop.permute.xlu0 %8253  ;;  %v8260_v44 = vunpack.i.l.bf16 %v8259_v32  ;;  %v8261_v55 = vunpack.i.h.bf16 %v8259_v32 }
 0x66d   :  { %v8255_v49 = vunpack.i.l.bf16 %v8254_v41  ;;  %v8256_v23 = vunpack.i.h.bf16 %v8254_v41  ;;  %v8280_v41 = vunpack.i.l.bf16 %v15805_v22 }
 0x66e   :  { %7056 = vrot.lane.b32.xlu2 %v15755_v25, %s8664_s29  ;;  %v8265_v25 = vunpack.i.l.bf16 %v15784_v46 }
 0x66f   :  { %v7273_v16 = vsel %vm7270_vm13, %v7256_v37, %v8255_v49  ;;  %v7274_v28 = vsel %vm7270_vm13, %v7257_v4, %v8256_v23 }
 0x670   :  { %v7290_v1 = vsel %vm7287_vm14, %v7273_v16, %v8260_v44  ;;  %v15847_v13 = vpop.permute.xlu2 %8308  ;;  %v7190_v34 = vsel %vm4191_vm2, %v15391_v38, %v8265_v25  ;;  %v7291_v52 = vsel %vm7287_vm14, %v7274_v28, %v8261_v55  ;;  %v8295_v44 = vunpack.i.l.bf16 %v15827_v58 }
 0x671   :  { %7376 = vmatmul.f32.gmra.mxu0 %v7290_v1  ;;  %7162 = vrot.lane.b32.xlu1 %v7131_v51, %s8667_s30  ;;  %v8281_v51 = vunpack.i.h.bf16 %v15805_v22 }
 0x672   :  { %7106 = vrot.lane.b32.xlu0 %v15766_v53, %s8666_s3  ;;  %s8121_s3 = sshll.u32 %s16441_s7, 4  ;;  %s8122_s3 = int_to_ptr.hbm [resolvable:$true] %s8121_s3 }
 0x673   :  { %v8274_v50 = vpop.permute.xlu1 %8273 }
 0x674   :  { %v8269_v7 = vpop.permute.xlu0 %8268  ;;  %v8275_v12 = vunpack.i.l.bf16 %v8274_v50  ;;  %v8276_v26 = vunpack.i.h.bf16 %v8274_v50 }
 0x675   :  { %v8270_v8 = vunpack.i.l.bf16 %v8269_v7  ;;  %v8271_v47 = vunpack.i.h.bf16 %v8269_v7 }
 0x677   :  { %v7207_v59 = vsel %vm7202_vm9, %v7190_v34, %v8270_v8  ;;  %v7208_v46 = vsel %vm7202_vm9, %v7191_v48, %v8271_v47  ;;  %v8296_v8 = vunpack.i.h.bf16 %v15827_v58 }
 0x678   :  { %v7224_v43 = vsel %vm7219_vm10, %v7207_v59, %v8275_v12  ;;  %v7225_v39 = vsel %vm7219_vm10, %v7208_v46, %v8276_v26  ;;  %v8314_v37 = vpop.permute.xlu2 %8313 }
 0x679   :  { %7379 = vmatmul.f32.gmra.mxu0 %v7291_v52  ;;  %v7241_v49 = vsel %vm7236_vm11, %v7224_v43, %v8280_v41  ;;  %v7242_v62 = vsel %vm7236_vm11, %v7225_v39, %v8281_v51  ;;  %v8310_v52 = vunpack.i.l.bf16 %v15847_v13 }
 0x67b   :  { %v8289_v3 = vpop.permute.xlu1 %8288 }
 0x67c   :  { %v8284_v32 = vpop.permute.xlu0 %8283  ;;  %v8290_v45 = vunpack.i.l.bf16 %v8289_v3  ;;  %v8291_v23 = vunpack.i.h.bf16 %v8289_v3 }
 0x67d   :  { %v8285_v38 = vunpack.i.l.bf16 %v8284_v32  ;;  %v8286_v16 = vunpack.i.h.bf16 %v8284_v32 }
 0x67f   :  { %v7258_v36 = vsel %vm7253_vm12, %v7241_v49, %v8285_v38  ;;  %v7259_v25 = vsel %vm7253_vm12, %v7242_v62, %v8286_v16  ;;  %v8315_v38 = vunpack.i.l.bf16 %v8314_v37  ;;  %v8311_v16 = vunpack.i.h.bf16 %v15847_v13 }
 0x680   :  { %v7275_v1 = vsel %vm7270_vm13, %v7258_v36, %v8290_v45  ;;  %v7276_v4 = vsel %vm7270_vm13, %v7259_v25, %v8291_v23  ;;  %v8339_v31 = vpop.permute.xlu2 %8338 }
 0x681   :  { %v7292_v63 = vsel %vm7287_vm14, %v7275_v1, %v8295_v44  ;;  %v7293_v34 = vsel %vm7287_vm14, %v7276_v4, %v8296_v8  ;;  %v8340_v8 = vunpack.i.l.bf16 %v8339_v31 }
 0x682   :  { %7382 = vmatmul.f32.gmra.mxu0 %v7292_v63 }
 0x683   :  { %v8304_v55 = vpop.permute.xlu1 %8303 }
 0x684   :  { %v8299_v7 = vpop.permute.xlu0 %8298  ;;  %v8305_v28 = vunpack.i.l.bf16 %v8304_v55  ;;  %v8306_v58 = vunpack.i.h.bf16 %v8304_v55 }
 0x685   :  { %v8300_v50 = vunpack.i.l.bf16 %v8299_v7  ;;  %v8301_v48 = vunpack.i.h.bf16 %v8299_v7  ;;  %v8316_v7 = vunpack.i.h.bf16 %v8314_v37 }
 0x687   :  { %v7192_v22 = vsel %vm4191_vm2, %v15434_v18, %v8300_v50  ;;  %v7193_v18 = vsel %vm4191_vm2, %v15468_v35, %v8301_v48 }
 0x688   :  { %v7209_v12 = vsel %vm7202_vm9, %v7192_v22, %v8305_v28  ;;  %v8354_v32 = vpop.permute.xlu2 %8353  ;;  %v7210_v45 = vsel %vm7202_vm9, %v7193_v18, %v8306_v58 }
 0x689   :  { %v7226_v41 = vsel %vm7219_vm10, %v7209_v12, %v8310_v52  ;;  %v7227_v63 = vsel %vm7219_vm10, %v7210_v45, %v8311_v16 }
 0x68a   :  { %7385 = vmatmul.f32.gmra.mxu0 %v7293_v34 }
 0x68b   :  { %v8324_v47 = vpop.permute.xlu1 %8323 }
 0x68c   :  { %v8319_v59 = vpop.permute.xlu0 %8318  ;;  %v8325_v43 = vunpack.i.l.bf16 %v8324_v47  ;;  %v8326_v1 = vunpack.i.h.bf16 %v8324_v47 }
 0x68d   :  { %v8320_v26 = vunpack.i.l.bf16 %v8319_v59  ;;  %v8321_v49 = vunpack.i.h.bf16 %v8319_v59 }
 0x68f   :  { %v7243_v46 = vsel %vm7236_vm11, %v7226_v41, %v8320_v26  ;;  %v7244_v35 = vsel %vm7236_vm11, %v7227_v63, %v8321_v49  ;;  %v8341_v26 = vunpack.i.h.bf16 %v8339_v31  ;;  %v8355_v41 = vunpack.i.l.bf16 %v8354_v32 }
 0x690   :  { %v7260_v3 = vsel %vm7253_vm12, %v7243_v46, %v8325_v43  ;;  %v7261_v55 = vsel %vm7253_vm12, %v7244_v35, %v8326_v1  ;;  %v8369_v28 = vpop.permute.xlu2 %8368 }
 0x691   :  { %v7277_v51 = vsel %vm7270_vm13, %v7260_v3, %v8315_v38  ;;  %v7278_v12 = vsel %vm7270_vm13, %v7261_v55, %v8316_v7  ;;  %v8370_v1 = vunpack.i.l.bf16 %v8369_v28  ;;  %v8371_v7 = vunpack.i.h.bf16 %v8369_v28 }
 0x693   :  { %v8334_v39 = vpop.permute.xlu1 %8333 }
 0x694   :  { %v8329_v44 = vpop.permute.xlu0 %8328  ;;  %v8335_v62 = vunpack.i.l.bf16 %v8334_v39  ;;  %v8336_v34 = vunpack.i.h.bf16 %v8334_v39 }
 0x695   :  { %v8330_v36 = vunpack.i.l.bf16 %v8329_v44  ;;  %v8331_v25 = vunpack.i.h.bf16 %v8329_v44 }
 0x696   :  { %v7194_v50 = vsel %vm4191_vm2, %v15499_v21, %v8335_v62  ;;  %v7195_v37 = vsel %vm4191_vm2, %v15518_v9, %v8336_v34  ;;  %v7197_v34 = vsel %vm4191_vm2, %v15568_v40, %v8371_v7 }
 0x697   :  { %v7294_v23 = vsel %vm7287_vm14, %v7277_v51, %v8330_v36  ;;  %v7211_v47 = vsel %vm7202_vm9, %v7194_v50, %v8340_v8  ;;  %v7295_v52 = vsel %vm7287_vm14, %v7278_v12, %v8331_v25  ;;  %v7212_v18 = vsel %vm7202_vm9, %v7195_v37, %v8341_v26 }
 0x698   :  { %7388 = vmatmul.f32.gmra.mxu0 %v7294_v23  ;;  %v8384_v39 = vpop.permute.xlu2 %8383  ;;  %v8356_v51 = vunpack.i.h.bf16 %v8354_v32  ;;  %v7196_v50 = vsel %vm4191_vm2, %v15537_v30, %v8370_v1 }
 0x69b   :  { %v8349_v4 = vpop.permute.xlu1 %8348 }
 0x69c   :  { %v8344_v13 = vpop.permute.xlu0 %8343  ;;  %v8350_v59 = vunpack.i.l.bf16 %v8349_v4  ;;  %v8351_v3 = vunpack.i.h.bf16 %v8349_v4 }
 0x69d   :  { %v8345_v22 = vunpack.i.l.bf16 %v8344_v13  ;;  %v8346_v21 = vunpack.i.h.bf16 %v8344_v13 }
 0x69f   :  { %v7228_v48 = vsel %vm7219_vm10, %v7211_v47, %v8345_v22  ;;  %v7229_v49 = vsel %vm7219_vm10, %v7212_v18, %v8346_v21 }
 0x6a0   :  { %7391 = vmatmul.f32.gmra.mxu0 %v7295_v52  ;;  %v7245_v43 = vsel %vm7236_vm11, %v7228_v48, %v8350_v59  ;;  %v7246_v31 = vsel %vm7236_vm11, %v7229_v49, %v8351_v3  ;;  %v8399_v32 = vpop.permute.xlu2 %8398  ;;  %v8385_v59 = vunpack.i.l.bf16 %v8384_v39 }
 0x6a1   :  { %v7262_v44 = vsel %vm7253_vm12, %v7245_v43, %v8355_v41  ;;  %v7263_v62 = vsel %vm7253_vm12, %v7246_v31, %v8356_v51  ;;  %v8400_v26 = vunpack.i.l.bf16 %v8399_v32 }
 0x6a3   :  { %v8364_v46 = vpop.permute.xlu1 %8363 }
 0x6a4   :  { %v8359_v58 = vpop.permute.xlu0 %8358  ;;  %v8365_v45 = vunpack.i.l.bf16 %v8364_v46  ;;  %v8366_v63 = vunpack.i.h.bf16 %v8364_v46  ;;  %v8386_v46 = vunpack.i.h.bf16 %v8384_v39 }
 0x6a5   :  { %v8360_v38 = vunpack.i.l.bf16 %v8359_v58  ;;  %v8361_v36 = vunpack.i.h.bf16 %v8359_v58 }
 0x6a7   :  { %v7279_v16 = vsel %vm7270_vm13, %v7262_v44, %v8360_v38  ;;  %v7280_v55 = vsel %vm7270_vm13, %v7263_v62, %v8361_v36  ;;  %v8401_v36 = vunpack.i.h.bf16 %v8399_v32  ;;  %v7184_v32 = vrot.slane %v15772_v14, 2 }
 0x6a8   :  { %v7296_v9 = vsel %vm7287_vm14, %v7279_v16, %v8365_v45  ;;  %v7297_v22 = vsel %vm7287_vm14, %v7280_v55, %v8366_v63  ;;  %v8414_v45 = vpop.permute.xlu2 %8413 }
 0x6a9   :  { %7394 = vmatmul.f32.gmra.mxu0 %v7296_v9  ;;  %v8415_v62 = vunpack.i.l.bf16 %v8414_v45 }
 0x6ab   :  { %v8379_v35 = vpop.permute.xlu1 %8378 }
 0x6ac   :  { %v8374_v23 = vpop.permute.xlu0 %8373  ;;  %v8380_v13 = vunpack.i.l.bf16 %v8379_v35  ;;  %v8381_v12 = vunpack.i.h.bf16 %v8379_v35 }
 0x6ad   :  { %v8375_v25 = vunpack.i.l.bf16 %v8374_v23  ;;  %v8376_v4 = vunpack.i.h.bf16 %v8374_v23 }
 0x6af   :  { %v7213_v8 = vsel %vm7202_vm9, %v7196_v50, %v8375_v25  ;;  %v7214_v28 = vsel %vm7202_vm9, %v7197_v34, %v8376_v4  ;;  %v7183_v50 = vrot.slane %v15766_v53, 2 }
 0x6b0   :  { %v7230_v47 = vsel %vm7219_vm10, %v7213_v8, %v8380_v13  ;;  %v7231_v43 = vsel %vm7219_vm10, %v7214_v28, %v8381_v12  ;;  %v8429_v25 = vpop.permute.xlu2 %8428 }
 0x6b1   :  { %7397 = vmatmul.f32.gmra.mxu0 %v7297_v22  ;;  %v7247_v21 = vsel %vm7236_vm11, %v7230_v47, %v8385_v59  ;;  %v7248_v38 = vsel %vm7236_vm11, %v7231_v43, %v8386_v46  ;;  %v7185_v12 = vsel %vm1660_vm4, %v7183_v50, %v7184_v32  ;;  %v8430_v47 = vunpack.i.l.bf16 %v8429_v25 }
 0x6b2   :  { %8145 = vmatmul.msk.f32.gmra.mxu1 %vm4191_vm2, %v7185_v12 }
 0x6b3   :  { %v8394_v48 = vpop.permute.xlu1 %8393 }
 0x6b4   :  { %v8389_v52 = vpop.permute.xlu0 %8388  ;;  %v8395_v37 = vunpack.i.l.bf16 %v8394_v48  ;;  %v8396_v3 = vunpack.i.h.bf16 %v8394_v48  ;;  %v8416_v48 = vunpack.i.h.bf16 %v8414_v45 }
 0x6b5   :  { %v8390_v30 = vunpack.i.l.bf16 %v8389_v52  ;;  %v8391_v41 = vunpack.i.h.bf16 %v8389_v52 }
 0x6b7   :  { %v7264_v58 = vsel %vm7253_vm12, %v7247_v21, %v8390_v30  ;;  %v7265_v49 = vsel %vm7253_vm12, %v7248_v38, %v8391_v41  ;;  %v7436_v21 = vpop.f32.mrf.mxu1 }
 0x6b8   :  { %v7281_v40 = vsel %vm7270_vm13, %v7264_v58, %v8395_v37  ;;  %v7282_v31 = vsel %vm7270_vm13, %v7265_v49, %v8396_v3  ;;  %v8431_v3 = vunpack.i.h.bf16 %v8429_v25 }
 0x6b9   :  { %v7298_v18 = vsel %vm7287_vm14, %v7281_v40, %v8400_v26  ;;  %v7299_v1 = vsel %vm7287_vm14, %v7282_v31, %v8401_v36 }
 0x6ba   :  { %7400 = vmatmul.f32.gmra.mxu0 %v7298_v18 }
 0x6bb   :  { %v8409_v16 = vpop.permute.xlu1 %8408 }
 0x6bc   :  { %v8404_v44 = vpop.permute.xlu0 %8403  ;;  %v8410_v51 = vunpack.i.l.bf16 %v8409_v16  ;;  %v8411_v8 = vunpack.i.h.bf16 %v8409_v16 }
 0x6bd   :  { %v8405_v9 = vunpack.i.l.bf16 %v8404_v44  ;;  %v8406_v55 = vunpack.i.h.bf16 %v8404_v44 }
 0x6bf   :  { %v7198_v39 = vsel %vm4191_vm2, %v15603_v54, %v8405_v9  ;;  %v7199_v54 = vsel %vm4191_vm2, %v15644_v17, %v8406_v55  ;;  %v8444_v17 = vpop.permute.xlu2 %8443 }
 0x6c0   :  { %v7215_v63 = vsel %vm7202_vm9, %v7198_v39, %v8410_v51  ;;  %v7216_v59 = vsel %vm7202_vm9, %v7199_v54, %v8411_v8  ;;  %v8445_v38 = vunpack.i.l.bf16 %v8444_v17 }
 0x6c1   :  { %v7232_v13 = vsel %vm7219_vm10, %v7215_v63, %v8415_v62  ;;  %v7233_v14 = vsel %vm7219_vm10, %v7216_v59, %v8416_v48  ;;  %v8446_v62 = vunpack.i.h.bf16 %v8444_v17 }
 0x6c2   :  { %7403 = vmatmul.f32.gmra.mxu0 %v7299_v1  ;;  %v7439_v1 = vpop.f32.mrf.mxu1 }
 0x6c3   :  { %v8424_v35 = vpop.permute.xlu1 %8423 }
 0x6c4   :  { %v8419_v23 = vpop.permute.xlu0 %8418  ;;  %v8425_v4 = vunpack.i.l.bf16 %v8424_v35  ;;  %v8426_v26 = vunpack.i.h.bf16 %v8424_v35 }
 0x6c5   :  { %v8420_v7 = vunpack.i.l.bf16 %v8419_v23  ;;  %v8421_v28 = vunpack.i.h.bf16 %v8419_v23 }
 0x6c7   :  { %v7249_v22 = vsel %vm7236_vm11, %v7232_v13, %v8420_v7  ;;  %v7250_v58 = vsel %vm7236_vm11, %v7233_v14, %v8421_v28 }
 0x6c8   :  { %v7266_v34 = vsel %vm7253_vm12, %v7249_v22, %v8425_v4  ;;  %v7267_v18 = vsel %vm7253_vm12, %v7250_v58, %v8426_v26 }
 0x6c9   :  { %v7283_v37 = vsel %vm7270_vm13, %v7266_v34, %v8430_v47  ;;  %v7284_v36 = vsel %vm7270_vm13, %v7267_v18, %v8431_v3 }
 0x6cb   :  { %v8439_v52 = vpop.permute.xlu1 %8438 }
 0x6cc   :  { %v8434_v53 = vpop.permute.xlu0 %8433  ;;  %v8440_v43 = vunpack.i.l.bf16 %v8439_v52  ;;  %v8441_v9 = vunpack.i.h.bf16 %v8439_v52 }
 0x6cd   :  { %v8435_v30 = vunpack.i.l.bf16 %v8434_v53  ;;  %v8436_v46 = vunpack.i.h.bf16 %v8434_v53 }
 0x6ce   :  { %v7200_v40 = vsel %vm4191_vm2, %v15679_v2, %v8440_v43  ;;  %v7055_v2 = vpop.permute.xlu2 %7054  ;;  %v7201_v23 = vsel %vm4191_vm2, %v15721_v57, %v8441_v9  ;;  %v7442_v57 = vpop.f32.mrf.mxu1 }
 0x6cf   :  { %v7300_v41 = vsel %vm7287_vm14, %v7283_v37, %v8435_v30  ;;  %v7217_v31 = vsel %vm7202_vm9, %v7200_v40, %v8445_v38  ;;  %v7301_v39 = vsel %vm7287_vm14, %v7284_v36, %v8436_v46  ;;  %v7218_v50 = vsel %vm7202_vm9, %v7201_v23, %v8446_v62 }
 0x6d0   :  { %7406 = vmatmul.f32.gmra.mxu0 %v7300_v41 }
 0x6d3   :  { %v8454_v49 = vpop.permute.xlu1 %8453 }
 0x6d4   :  { %v8449_v45 = vpop.permute.xlu0 %8448  ;;  %v8455_v16 = vunpack.i.l.bf16 %v8454_v49  ;;  %v8456_v13 = vunpack.i.h.bf16 %v8454_v49 }
 0x6d5   :  { %v8450_v44 = vunpack.i.l.bf16 %v8449_v45  ;;  %v8451_v35 = vunpack.i.h.bf16 %v8449_v45 }
 0x6d6   :  { %v7057_v34 = vpop.permute.xlu2 %7056  ;;  %v7445_v14 = vpop.f32.mrf.mxu1 }
 0x6d7   :  { %v7234_v51 = vsel %vm7219_vm10, %v7217_v31, %v8450_v44  ;;  %v7235_v22 = vsel %vm7219_vm10, %v7218_v50, %v8451_v35 }
 0x6d8   :  { %7409 = vmatmul.f32.gmra.mxu0 %v7301_v39  ;;  %v7251_v63 = vsel %vm7236_vm11, %v7234_v51, %v8455_v16  ;;  %v7252_v32 = vsel %vm7236_vm11, %v7235_v22, %v8456_v13 }
 0x6d9   :  { %v7268_v55 = vsel %vm7253_vm12, %v7251_v63, %v7055_v2  ;;  %v7269_v59 = vsel %vm7253_vm12, %v7252_v32, %v7057_v34 }
 0x6db   :  { %v7161_v7 = vpop.permute.xlu1 %7160 }
 0x6dc   :  { %v7105_v25 = vpop.permute.xlu0 %7104 }
 0x6dd   :  { %v7285_v4 = vsel %vm7270_vm13, %v7268_v55, %v7105_v25  ;;  %v7371_v8 = vpop.f32.mrf.mxu0 }
 0x6de   :  { %v7302_v54 = vsel %vm7287_vm14, %v7285_v4, %v7161_v7  ;;  %v15955_v12 = vadd.f32 %v7436_v21, %v7371_v8  ;;  %v7448_v40 = vpop.f32.mrf.mxu1 }
 0x6e0   :  { %7412 = vmatmul.f32.gmra.mxu0 %v7302_v54  ;;  %v7484_v37 = vsel %vm4191_vm2, %v15955_v12, 0.0 }
 0x6e3   :  { %v7163_v28 = vpop.permute.xlu1 %7162 }
 0x6e4   :  { %v7107_v47 = vpop.permute.xlu0 %7106 }
 0x6e5   :  { %v7286_v53 = vsel %vm7270_vm13, %v7269_v59, %v7107_v47  ;;  %v7374_v52 = vpop.f32.mrf.mxu0 }
 0x6e6   :  { %v15959_v48 = vadd.f32 %v7439_v1, %v7374_v52  ;;  %v7303_v30 = vsel %vm7287_vm14, %v7286_v53, %v7163_v28  ;;  %v7451_v44 = vpop.f32.mrf.mxu1 }
 0x6e8   :  { %v7485_v17 = vsel %vm4191_vm2, %v15959_v48, 0.0  ;;  %7415 = vmatmul.f32.gmra.mxu0 %v7303_v30 }
 0x6e9   :  { %v7486_v21 = vadd.f32 %v7485_v17, %v7484_v37 }
 0x6ee   :  { %v7377_v26 = vpop.f32.mrf.mxu0  ;;  %v7454_v31 = vpop.f32.mrf.mxu1 }
 0x6ef   :  { %v15966_v43 = vadd.f32 %v7442_v57, %v7377_v26 }
 0x6f1   :  { %v7487_v41 = vsel %vm4191_vm2, %v15966_v43, 0.0 }
 0x6f2   :  { %v7488_v58 = vadd.f32 %v7487_v41, %v7486_v21 }
 0x6f6   :  { %v7380_v46 = vpop.f32.mrf.mxu0  ;;  %v7457_v51 = vpop.f32.mrf.mxu1 }
 0x6f7   :  { %v15970_v18 = vadd.f32 %v7445_v14, %v7380_v46 }
 0x6f9   :  { %v7489_v3 = vsel %vm4191_vm2, %v15970_v18, 0.0 }
 0x6fa   :  { %v7490_v38 = vadd.f32 %v7489_v3, %v7488_v58 }
 0x6fe   :  { %v7460_v2 = vpop.f32.mrf.mxu1 }
 0x6ff   :  { %v7383_v45 = vpop.f32.mrf.mxu0 }
 0x700   :  { %v15974_v49 = vadd.f32 %v7448_v40, %v7383_v45 }
 0x702   :  { %v7491_v16 = vsel %vm4191_vm2, %v15974_v49, 0.0 }
 0x703   :  { %v7492_v9 = vadd.f32 %v7491_v16, %v7490_v38 }
 0x706   :  { %v7463_v23 = vpop.f32.mrf.mxu1 }
 0x707   :  { %v7386_v36 = vpop.f32.mrf.mxu0 }
 0x708   :  { %v7452_v4 = vadd.f32 %v7451_v44, %v7386_v36 }
 0x70a   :  { %v7493_v54 = vsel %vm4191_vm2, %v7452_v4, 0.0 }
 0x70b   :  { %v7494_v47 = vadd.f32 %v7493_v54, %v7492_v9 }
 0x70e   :  { %v7466_v62 = vpop.f32.mrf.mxu1 }
 0x715   :  { %v7389_v39 = vpop.f32.mrf.mxu0 }
 0x716   :  { %v7469_v55 = vpop.f32.mrf.mxu1  ;;  %v7455_v8 = vadd.f32 %v7454_v31, %v7389_v39 }
 0x718   :  { %v7495_v57 = vsel %vm4191_vm2, %v7455_v8, 0.0 }
 0x719   :  { %v7496_v52 = vadd.f32 %v7495_v57, %v7494_v47 }
 0x71d   :  { %v7392_v1 = vpop.f32.mrf.mxu0 }
 0x71e   :  { %v7472_v50 = vpop.f32.mrf.mxu1  ;;  %v7458_v32 = vadd.f32 %v7457_v51, %v7392_v1 }
 0x720   :  { %v7497_v28 = vsel %vm4191_vm2, %v7458_v32, 0.0 }
 0x721   :  { %v7498_v17 = vadd.f32 %v7497_v28, %v7496_v52 }
 0x726   :  { %v7395_v63 = vpop.f32.mrf.mxu0  ;;  %v7475_v22 = vpop.f32.mrf.mxu1 }
 0x727   :  { %v7461_v34 = vadd.f32 %v7460_v2, %v7395_v63 }
 0x729   :  { %v7499_v30 = vsel %vm4191_vm2, %v7461_v34, 0.0 }
 0x72a   :  { %v7500_v41 = vadd.f32 %v7499_v30, %v7498_v17 }
 0x72e   :  { %v7398_v35 = vpop.f32.mrf.mxu0  ;;  %v7478_v26 = vpop.f32.mrf.mxu1 }
 0x72f   :  { %v7464_v53 = vadd.f32 %v7463_v23, %v7398_v35 }
 0x731   :  { %v7501_v21 = vsel %vm4191_vm2, %v7464_v53, 0.0 }
 0x732   :  { %v7502_v40 = vadd.f32 %v7501_v21, %v7500_v41 }
 0x736   :  { %v7481_v39 = vpop.f32.mrf.mxu1 }
 0x737   :  { %v7401_v25 = vpop.f32.mrf.mxu0 }
 0x738   :  { %v7467_v37 = vadd.f32 %v7466_v62, %v7401_v25 }
 0x73a   :  { %v7503_v58 = vsel %vm4191_vm2, %v7467_v37, 0.0 }
 0x73b   :  { %v7504_v44 = vadd.f32 %v7503_v58, %v7502_v40 }
 0x73f   :  { %v7404_v7 = vpop.f32.mrf.mxu0 }
 0x740   :  { %v15983_v14 = vadd.f32 %v7469_v55, %v7404_v7 }
 0x742   :  { %v7505_v38 = vsel %vm4191_vm2, %v15983_v14, 0.0 }
 0x743   :  { %v7506_v31 = vadd.f32 %v7505_v38, %v7504_v44 }
 0x74d   :  { %v7407_v13 = vpop.f32.mrf.mxu0 }
 0x74e   :  { %v15986_v46 = vadd.f32 %v7472_v50, %v7407_v13 }
 0x750   :  { %v7507_v16 = vsel %vm4191_vm2, %v15986_v46, 0.0 }
 0x751   :  { %v7508_v51 = vadd.f32 %v7507_v16, %v7506_v31 }
 0x755   :  { %v7410_v59 = vpop.f32.mrf.mxu0 }
 0x756   :  { %v15990_v45 = vadd.f32 %v7475_v22, %v7410_v59 }
 0x758   :  { %v7509_v36 = vsel %vm4191_vm2, %v15990_v45, 0.0 }
 0x759   :  { %v7510_v2 = vadd.f32 %v7509_v36, %v7508_v51 }
 0x75d   :  { %v7413_v3 = vpop.f32.mrf.mxu0 }
 0x75e   :  { %v15994_v9 = vadd.f32 %v7478_v26, %v7413_v3 }
 0x760   :  { %v7511_v1 = vsel %vm4191_vm2, %v15994_v9, 0.0 }
 0x761   :  { %v7512_v35 = vadd.f32 %v7511_v1, %v7510_v2 }
 0x765   :  { %v7416_v63 = vpop.f32.mrf.mxu0 }
 0x766   :  { %v7482_v23 = vadd.f32 %v7481_v39, %v7416_v63 }
 0x768   :  { %v7513_v62 = vsel %vm4191_vm2, %v7482_v23, 0.0 }
 0x769   :  { %v7514_v25 = vadd.f32 %v7513_v62, %v7512_v35 }
 0x76b   :  { %v7515_v55 = vrot.slane %v7514_v25, 4 }
 0x76d   :  { %v7516_v7 = vadd.f32 %v7515_v55, %v7514_v25 }
 0x76f   :  { %v7517_v50 = vrot.slane %v7516_v7, 2 }
 0x771   :  { %v7518_v13 = vadd.f32 %v7517_v50, %v7516_v7 }
 0x773   :  { %v7519_v22 = vrot.slane %v7518_v13, 1 }
 0x775   :  { %v7520_v54 = vadd.f32 %v7519_v22, %v7518_v13 }
 0x777   :  { %v7521_v57 = vmul.f32 0.0078125, %v7520_v54 }
 0x779   :  { %v16002_v47 = vsub.f32 %v15955_v12, %v7521_v57  ;;  %v16005_v59 = vsub.f32 %v15959_v48, %v7521_v57  ;;  %v16008_v28 = vsub.f32 %v15966_v43, %v7521_v57  ;;  %v16011_v52 = vsub.f32 %v15970_v18, %v7521_v57 }
 0x77a   :  { %v16014_v30 = vsub.f32 %v15974_v49, %v7521_v57  ;;  %v16022_v48 = vsub.f32 %v7452_v4, %v7521_v57  ;;  %v16028_v41 = vsub.f32 %v7455_v8, %v7521_v57  ;;  %v16033_v38 = vsub.f32 %v7458_v32, %v7521_v57 }
 0x77b   :  { %v7538_v17 = vmul.f32 %v16002_v47, %v16002_v47  ;;  %v7539_v21 = vmul.f32 %v16005_v59, %v16005_v59  ;;  %v7540_v12 = vmul.f32 %v16008_v28, %v16008_v28  ;;  %v7541_v43 = vmul.f32 %v16011_v52, %v16011_v52 }
 0x77c   :  { %v7542_v58 = vmul.f32 %v16014_v30, %v16014_v30  ;;  %v7543_v4 = vmul.f32 %v16022_v48, %v16022_v48  ;;  %v16038_v31 = vsub.f32 %v7461_v34, %v7521_v57  ;;  %v7544_v8 = vmul.f32 %v16028_v41, %v16028_v41 }
 0x77d   :  { %v7554_v18 = vsel %vm4191_vm2, %v7538_v17, 0.0  ;;  %v7555_v26 = vsel %vm4191_vm2, %v7539_v21, 0.0  ;;  %v7557_v40 = vsel %vm4191_vm2, %v7540_v12, 0.0  ;;  %v7559_v44 = vsel %vm4191_vm2, %v7541_v43, 0.0 }
 0x77e   :  { %v7556_v49 = vadd.f32 %v7555_v26, %v7554_v18  ;;  %v7561_v36 = vsel %vm4191_vm2, %v7542_v58, 0.0  ;;  %v16043_v39 = vsub.f32 %v7464_v53, %v7521_v57  ;;  %v7545_v32 = vmul.f32 %v16033_v38, %v16033_v38 }
 0x77f   :  { %v7563_v1 = vsel %vm4191_vm2, %v7543_v4, 0.0  ;;  %v16048_v63 = vsub.f32 %v7467_v37, %v7521_v57  ;;  %v7546_v34 = vmul.f32 %v16038_v31, %v16038_v31  ;;  %v7565_v35 = vsel %vm4191_vm2, %v7544_v8, 0.0 }
 0x780   :  { %v7558_v3 = vadd.f32 %v7557_v40, %v7556_v49  ;;  %v16054_v25 = vsub.f32 %v15983_v14, %v7521_v57  ;;  %v7547_v53 = vmul.f32 %v16043_v39, %v16043_v39  ;;  %v7567_v55 = vsel %vm4191_vm2, %v7545_v32, 0.0 }
 0x781   :  { %v16060_v50 = vsub.f32 %v15986_v46, %v7521_v57  ;;  %v7548_v37 = vmul.f32 %v16048_v63, %v16048_v63  ;;  %v7569_v13 = vsel %vm4191_vm2, %v7546_v34, 0.0  ;;  %v16066_v54 = vsub.f32 %v15990_v45, %v7521_v57 }
 0x782   :  { %v7560_v16 = vadd.f32 %v7559_v44, %v7558_v3  ;;  %v7549_v14 = vmul.f32 %v16054_v25, %v16054_v25  ;;  %v7571_v17 = vsel %vm4191_vm2, %v7547_v53, 0.0  ;;  %v16072_v12 = vsub.f32 %v15994_v9, %v7521_v57 }
 0x783   :  { %v7550_v46 = vmul.f32 %v16060_v50, %v16060_v50  ;;  %v7573_v43 = vsel %vm4191_vm2, %v7548_v37, 0.0  ;;  %v16077_v26 = vsub.f32 %v7482_v23, %v7521_v57  ;;  %v7551_v45 = vmul.f32 %v16066_v54, %v16066_v54 }
 0x784   :  { %v7562_v51 = vadd.f32 %v7561_v36, %v7560_v16  ;;  %v7575_v49 = vsel %vm4191_vm2, %v7549_v14, 0.0  ;;  %v7552_v40 = vmul.f32 %v16072_v12, %v16072_v12 }
 0x785   :  { %v7577_v9 = vsel %vm4191_vm2, %v7550_v46, 0.0  ;;  %v7553_v4 = vmul.f32 %v16077_v26, %v16077_v26  ;;  %v7579_v44 = vsel %vm4191_vm2, %v7551_v45, 0.0 }
 0x786   :  { %v7564_v2 = vadd.f32 %v7563_v1, %v7562_v51  ;;  %v7581_v23 = vsel %vm4191_vm2, %v7552_v40, 0.0 }
 0x787   :  { %v7583_v8 = vsel %vm4191_vm2, %v7553_v4, 0.0 }
 0x788   :  { %v7566_v62 = vadd.f32 %v7565_v35, %v7564_v2 }
 0x78a   :  { %v7568_v7 = vadd.f32 %v7567_v55, %v7566_v62 }
 0x78c   :  { %v7570_v22 = vadd.f32 %v7569_v13, %v7568_v7 }
 0x78e   :  { %v7572_v21 = vadd.f32 %v7571_v17, %v7570_v22 }
 0x790   :  { %v7574_v18 = vadd.f32 %v7573_v43, %v7572_v21 }
 0x792   :  { %v7576_v58 = vadd.f32 %v7575_v49, %v7574_v18 }
 0x794   :  { %v7578_v3 = vadd.f32 %v7577_v9, %v7576_v58 }
 0x796   :  { %v7580_v16 = vadd.f32 %v7579_v44, %v7578_v3 }
 0x798   :  { %v7582_v57 = vadd.f32 %v7581_v23, %v7580_v16 }
 0x79a   :  { %v7584_v36 = vadd.f32 %v7583_v8, %v7582_v57  ;;  %v16119_v57 = vld [vmem:[#allocation4 + $0x130] sm:$0xff]  ;;  %v7730_v8 = vld [vmem:[#allocation4 + $0x138] sm:$0x3] }
 0x79c   :  { %v7585_v51 = vrot.slane %v7584_v36, 4 }
 0x79e   :  { %v7586_v32 = vadd.f32 %v7585_v51, %v7584_v36 }
 0x7a0   :  { %v7587_v1 = vrot.slane %v7586_v32, 2 }
 0x7a2   :  { %v7588_v2 = vadd.f32 %v7587_v1, %v7586_v32  ;;  %v8014_v32 = vrot.slane %v16119_v57, 1  ;;  %v8015_v1 = vrot.slane %v7730_v8, 1 }
 0x7a4   :  { %v7589_v34 = vrot.slane %v7588_v2, 1 }
 0x7a6   :  { %v7590_v35 = vadd.f32 %v7589_v34, %v7588_v2  ;;  %v8038_v2 = vrot.slane %v16119_v57, 2  ;;  %v8039_v34 = vrot.slane %v7730_v8, 2 }
 0x7a8   :  { %v7591_v62 = vmul.f32 0.0078125, %v7590_v35 }
 0x7aa   :  { %v7592_v53 = vadd.f32 1e-05, %v7591_v62 }
 0x7ac   :  { %8590 = vrsqrt.f32 %v7592_v53  ;;  %vm7599_vm0 = vweird.f32 %v7592_v53 }
 0x7b2   :  { %v8591_v55 = vpop.eup %8590 }
 0x7b3   :  { %v7594_v7 = vmul.f32 %v8591_v55, %v7592_v53  ;;  %vm7600_vm15 = vweird.f32 %v8591_v55  ;;  %v16129_v53 = vsel %vm1178_vm3, %v8014_v32, %v8015_v1 }
 0x7b4   :  { %vm7601_vm1 = vmor %vm7599_vm0, %vm7600_vm15 }
 0x7b5   :  { %v7595_v37 = vmul.f32 %v8591_v55, %v7594_v7 }
 0x7b7   :  { %v7596_v13 = vmul.f32 0.5, %v7595_v37 }
 0x7b9   :  { %v7597_v22 = vsub.f32 1.5, %v7596_v13 }
 0x7bb   :  { %v7598_v14 = vmul.f32 %v8591_v55, %v7597_v22 }
 0x7bd   :  { %v7602_v17 = vsel %vm7601_vm1, %v8591_v55, %v7598_v14  ;;  %v16136_v14 = vsel %vm1660_vm4, %v8038_v2, %v8039_v34 }
 0x7be   :  { %v7603_v21 = vmul.f32 %v7602_v17, %v16002_v47  ;;  %v7604_v46 = vmul.f32 %v7602_v17, %v16005_v59  ;;  %v7608_v43 = vmul.f32 %v7602_v17, %v16022_v48  ;;  %v7609_v18 = vmul.f32 %v7602_v17, %v16028_v41 }
 0x7bf   :  { %v7605_v45 = vmul.f32 %v7602_v17, %v16008_v28  ;;  %v7606_v49 = vmul.f32 %v7602_v17, %v16011_v52  ;;  %v7607_v58 = vmul.f32 %v7602_v17, %v16014_v30  ;;  %v7610_v40 = vmul.f32 %v7602_v17, %v16033_v38 }
 0x7c0   :  { %8592 = vtanh.f32 %v7603_v21  ;;  %v7611_v47 = vmul.f32 %v7602_v17, %v16038_v31  ;;  %v7612_v59 = vmul.f32 %v7602_v17, %v16043_v39  ;;  %v7613_v41 = vmul.f32 %v7602_v17, %v16048_v63 }
 0x7c1   :  { %8594 = vtanh.f32 %v7604_v46  ;;  %v7614_v52 = vmul.f32 %v7602_v17, %v16054_v25  ;;  %v7615_v38 = vmul.f32 %v7602_v17, %v16060_v50  ;;  %v7616_v39 = vmul.f32 %v7602_v17, %v16066_v54 }
 0x7c2   :  { %8596 = vtanh.f32 %v7605_v45  ;;  %v7617_v9 = vmul.f32 %v7602_v17, %v16072_v12  ;;  %v7618_v3 = vmul.f32 %v7602_v17, %v16077_v26 }
 0x7c3   :  { %8598 = vtanh.f32 %v7606_v49 }
 0x7c4   :  { %8600 = vtanh.f32 %v7607_v58 }
 0x7c5   :  { %8602 = vtanh.f32 %v7608_v43 }
 0x7c6   :  { %v8593_v48 = vpop.eup %8592  ;;  %8604 = vtanh.f32 %v7609_v18 }
 0x7c7   :  { %v8595_v28 = vpop.eup %8594  ;;  %8606 = vtanh.f32 %v7610_v40  ;;  %7675 = vst.msk [vmem:[#allocation4 + $0x11] sm:$0xff] %vm4191_vm2, %v8593_v48 }
 0x7c8   :  { %v8597_v30 = vpop.eup %8596  ;;  %8608 = vtanh.f32 %v7611_v47  ;;  %7676 = vst.msk [vmem:[#allocation4 + $0x21] sm:$0xff] %vm4191_vm2, %v8595_v28 }
 0x7c9   :  { %v8599_v31 = vpop.eup %8598  ;;  %8610 = vtanh.f32 %v7612_v59  ;;  %7677 = vst.msk [vmem:[#allocation4 + $0x31] sm:$0xff] %vm4191_vm2, %v8597_v30 }
 0x7ca   :  { %v8601_v63 = vpop.eup %8600  ;;  %8612 = vtanh.f32 %v7613_v41  ;;  %7678 = vst.msk [vmem:[#allocation4 + $0x41] sm:$0xff] %vm4191_vm2, %v8599_v31 }
 0x7cb   :  { %v8603_v25 = vpop.eup %8602  ;;  %8614 = vtanh.f32 %v7614_v52  ;;  %7679 = vst.msk [vmem:[#allocation4 + $0x51] sm:$0xff] %vm4191_vm2, %v8601_v63 }
 0x7cc   :  { %v8605_v50 = vpop.eup %8604  ;;  %8616 = vtanh.f32 %v7615_v38  ;;  %7680 = vst.msk [vmem:[#allocation4 + $0x61] sm:$0xff] %vm4191_vm2, %v8603_v25 }
 0x7cd   :  { %v8607_v54 = vpop.eup %8606  ;;  %8618 = vtanh.f32 %v7616_v39  ;;  %7681 = vst.msk [vmem:[#allocation4 + $0x71] sm:$0xff] %vm4191_vm2, %v8605_v50 }
 0x7ce   :  { %v8609_v4 = vpop.eup %8608  ;;  %8620 = vtanh.f32 %v7617_v9  ;;  %7682 = vst.msk [vmem:[#allocation4 + $0x81] sm:$0xff] %vm4191_vm2, %v8607_v54 }
 0x7cf   :  { %v8611_v12 = vpop.eup %8610  ;;  %8622 = vtanh.f32 %v7618_v3  ;;  %7683 = vst.msk [vmem:[#allocation4 + $0xb1] sm:$0xff] %vm4191_vm2, %v8609_v4 }
 0x7d0   :  { %v8613_v26 = vpop.eup %8612  ;;  %7684 = vst.msk [vmem:[#allocation4 + $0xc1] sm:$0xff] %vm4191_vm2, %v8611_v12 }
 0x7d1   :  { %v8615_v44 = vpop.eup %8614  ;;  %7685 = vst.msk [vmem:[#allocation4 + $0xd1] sm:$0xff] %vm4191_vm2, %v8613_v26 }
 0x7d2   :  { %v8617_v16 = vpop.eup %8616  ;;  %7686 = vst.msk [vmem:[#allocation4 + $0xe1] sm:$0xff] %vm4191_vm2, %v8615_v44 }
 0x7d3   :  { %v8619_v23 = vpop.eup %8618  ;;  %7687 = vst.msk [vmem:[#allocation4 + $0xf1] sm:$0xff] %vm4191_vm2, %v8617_v16 }
 0x7d4   :  { %v8621_v36 = vpop.eup %8620  ;;  %7688 = vst.msk [vmem:[#allocation4 + $0x101] sm:$0xff] %vm4191_vm2, %v8619_v23 }
 0x7d5   :  { %v8623_v51 = vpop.eup %8622  ;;  %7689 = vst.msk [vmem:[#allocation4 + $0x111] sm:$0xff] %vm4191_vm2, %v8621_v36 }
 0x7d6   :  { %7690 = vst.msk [vmem:[#allocation4 + $0x121] sm:$0xff] %vm4191_vm2, %v8623_v51 }
 0x7d8   :  { %v16168_v16 = vld [vmem:[#allocation4 + $0xd0] sm:$0xff]  ;;  %v7718_v23 = vld [vmem:[#allocation4 + $0xd8] sm:$0x3] }
 0x7d9   :  { %v16126_v35 = vld [vmem:[#allocation4 + $0xe0] sm:$0xff]  ;;  %v7720_v62 = vld [vmem:[#allocation4 + $0xe8] sm:$0x3] }
 0x7da   :  { %v16131_v55 = vld [vmem:[#allocation4 + $0xf0] sm:$0xff]  ;;  %v7722_v7 = vld [vmem:[#allocation4 + $0xf8] sm:$0x3]  ;;  %v7799_v37 = vrot.slane %v16126_v35, 1  ;;  %v7800_v13 = vrot.slane %v7720_v62, 1  ;;  %v7879_v22 = vrot.slane %v16126_v35, 2 }
 0x7db   :  { %v16138_v17 = vld [vmem:[#allocation4 + $0x100] sm:$0xff]  ;;  %v7724_v21 = vld [vmem:[#allocation4 + $0x108] sm:$0x3]  ;;  %v7802_v46 = vrot.slane %v16131_v55, 1  ;;  %v7803_v43 = vrot.slane %v7722_v7, 1  ;;  %v7882_v18 = vrot.slane %v16131_v55, 2 }
 0x7dc   :  { %v16142_v45 = vld [vmem:[#allocation4 + $0x110] sm:$0xff]  ;;  %v7726_v49 = vld [vmem:[#allocation4 + $0x118] sm:$0x3]  ;;  %v7805_v58 = vrot.slane %v16138_v17, 1  ;;  %v7806_v40 = vrot.slane %v7724_v21, 1  ;;  %v7885_v47 = vrot.slane %v16138_v17, 2  ;;  %v16147_v59 = vsel %vm1178_vm3, %v7799_v37, %v7800_v13 }
 0x7dd   :  { %v7727_v48 = vld [vmem:[#allocation4 + $0x120] sm:$0xff]  ;;  %v7728_v41 = vld [vmem:[#allocation4 + $0x128] sm:$0x3]  ;;  %v7808_v28 = vrot.slane %v16142_v45, 1  ;;  %v7809_v52 = vrot.slane %v7726_v49, 1  ;;  %v7888_v30 = vrot.slane %v16142_v45, 2  ;;  %v16152_v38 = vsel %vm1178_vm3, %v7802_v46, %v7803_v43 }
 0x7de   :  { %v7889_v31 = vrot.slane %v7726_v49, 2  ;;  %v7946_v39 = vrot.slane %v7727_v48, 1  ;;  %v7947_v63 = vrot.slane %v7728_v41, 1  ;;  %v7970_v9 = vrot.slane %v7727_v48, 2  ;;  %v16180_v13 = vld [vmem:[#allocation4 + $0xc0] sm:$0xff] }
 0x7df   :  { %v16155_v25 = vsel %vm1178_vm3, %v7808_v28, %v7809_v52  ;;  %v7971_v3 = vrot.slane %v7728_v41, 2  ;;  %v16158_v50 = vsel %vm1178_vm3, %v7805_v58, %v7806_v40  ;;  %v7886_v54 = vrot.slane %v7724_v21, 2  ;;  %v7716_v41 = vld [vmem:[#allocation4 + $0xc8] sm:$0x3] }
 0x7e0   :  { %v7842_v4 = vadd.f32 %v16155_v25, %v16142_v45  ;;  %v16163_v12 = vsel %vm1660_vm4, %v7888_v30, %v7889_v31  ;;  %v7948_v26 = vsel %vm1178_vm3, %v7946_v39, %v7947_v63  ;;  %v7841_v44 = vadd.f32 %v16158_v50, %v16138_v17 }
 0x7e1   :  { %v7972_v8 = vsel %vm1660_vm4, %v7970_v9, %v7971_v3  ;;  %v16172_v36 = vsel %vm1660_vm4, %v7885_v47, %v7886_v54  ;;  %v7840_v51 = vadd.f32 %v16152_v38, %v16131_v55  ;;  %v7883_v32 = vrot.slane %v7722_v7, 2  ;;  %v16201_v9 = vld [vmem:[#allocation4 + $0xb0] sm:$0xff] }
 0x7e2   :  { %v7922_v1 = vadd.f32 %v16163_v12, %v7842_v4  ;;  %v7921_v2 = vadd.f32 %v16172_v36, %v7841_v44  ;;  %v7839_v34 = vadd.f32 %v16147_v59, %v16126_v35  ;;  %v7880_v37 = vrot.slane %v7720_v62, 2 }
 0x7e3   :  { %v16183_v21 = vsel %vm1660_vm4, %v7882_v18, %v7883_v32  ;;  %v7796_v46 = vrot.slane %v16168_v16, 1  ;;  %v7797_v43 = vrot.slane %v7718_v23, 1  ;;  %v7876_v49 = vrot.slane %v16168_v16, 2 }
 0x7e4   :  { %v7938_v58 = vadd.f32 %v7922_v1, %v7727_v48  ;;  %v7937_v7 = vadd.f32 %v7921_v2, %v16142_v45  ;;  %v7920_v40 = vadd.f32 %v16183_v21, %v7840_v51  ;;  %v16190_v47 = vsel %vm1660_vm4, %v7879_v22, %v7880_v37  ;;  %v7714_v1 = vld [vmem:[#allocation4 + $0xb8] sm:$0x3] }
 0x7e5   :  { %v7919_v62 = vadd.f32 %v16190_v47, %v7839_v34  ;;  %v16194_v28 = vsel %vm1178_vm3, %v7796_v46, %v7797_v43  ;;  %v7877_v18 = vrot.slane %v7718_v23, 2  ;;  %v7793_v52 = vrot.slane %v16180_v13, 1 }
 0x7e6   :  { %v7966_v30 = vadd.f32 %v7948_v26, %v7938_v58  ;;  %v7965_v31 = vadd.f32 %v7937_v7, %v16155_v25  ;;  %v7936_v39 = vadd.f32 %v7920_v40, %v16138_v17  ;;  %v7838_v63 = vadd.f32 %v16194_v28, %v16168_v16 }
 0x7e7   :  { %v7935_v22 = vadd.f32 %v7919_v62, %v16131_v55  ;;  %v16205_v3 = vsel %vm1660_vm4, %v7876_v49, %v7877_v18  ;;  %v7794_v54 = vrot.slane %v7716_v41, 1  ;;  %v7873_v4 = vrot.slane %v16180_v13, 2 }
 0x7e8   :  { %v7990_v44 = vadd.f32 %v7972_v8, %v7966_v30  ;;  %v7989_v23 = vadd.f32 %v7965_v31, %v16163_v12  ;;  %v7964_v51 = vadd.f32 %v7936_v39, %v16158_v50  ;;  %v7918_v32 = vadd.f32 %v16205_v3, %v7838_v63 }
 0x7e9   :  { %v7963_v2 = vadd.f32 %v7935_v22, %v16152_v38  ;;  %v16213_v34 = vsel %vm1178_vm3, %v7793_v52, %v7794_v54  ;;  %v7874_v37 = vrot.slane %v7716_v41, 2  ;;  %v7790_v46 = vrot.slane %v16201_v9, 1 }
 0x7ea   :  { %v8006_v43 = vadd.f32 %v7990_v44, %v16119_v57  ;;  %v8005_v49 = vadd.f32 %v7989_v23, %v7727_v48  ;;  %v7988_v58 = vadd.f32 %v7964_v51, %v16172_v36  ;;  %v7934_v7 = vadd.f32 %v7918_v32, %v16126_v35 }
 0x7eb   :  { %v7987_v40 = vadd.f32 %v7963_v2, %v16183_v21  ;;  %v7837_v62 = vadd.f32 %v16213_v34, %v16180_v13  ;;  %v16223_v18 = vsel %vm1660_vm4, %v7873_v4, %v7874_v37  ;;  %v7791_v52 = vrot.slane %v7714_v1, 1 }
 0x7ec   :  { %v8034_v41 = vadd.f32 %v16129_v53, %v8006_v43  ;;  %v8033_v30 = vadd.f32 %v8005_v49, %v7948_v26  ;;  %v8004_v31 = vadd.f32 %v7988_v58, %v16142_v45  ;;  %v7962_v57 = vadd.f32 %v7934_v7, %v16147_v59  ;;  %v7711_v26 = vld [vmem:[#allocation4 + $0xa0] sm:$0xff] }
 0x7ed   :  { %v8003_v48 = vadd.f32 %v7987_v40, %v16138_v17  ;;  %v7917_v39 = vadd.f32 %v16223_v18, %v7837_v62  ;;  %v16231_v63 = vsel %vm1178_vm3, %v7790_v46, %v7791_v52  ;;  %v7870_v22 = vrot.slane %v16201_v9, 2 }
 0x7ee   :  { %v8058_v54 = vadd.f32 %v16136_v14, %v8034_v41  ;;  %v8057_v4 = vadd.f32 %v8033_v30, %v7972_v8  ;;  %v8032_v44 = vadd.f32 %v8004_v31, %v16155_v25  ;;  %v7986_v53 = vadd.f32 %v7962_v57, %v16190_v47  ;;  %v7712_v8 = vld [vmem:[#allocation4 + $0xa8] sm:$0x3]  ;;  %v7706_v31 = vld [vmem:[#allocation4 + $0x78] sm:$0x3] }
 0x7ef   :  { %v8031_v45 = vadd.f32 %v8003_v48, %v16158_v50  ;;  %v7933_v23 = vadd.f32 %v7917_v39, %v16168_v16  ;;  %v7836_v17 = vadd.f32 %v16231_v63, %v16201_v9  ;;  %v7871_v51 = vrot.slane %v7714_v1, 2  ;;  %v16261_v39 = vld [vmem:[#allocation4 + $0x80] sm:$0xff] }
 0x7f0   :  { %v8074_v32 = vmul.f32 0.11111111, %v8058_v54  ;;  %v8073_v2 = vmul.f32 0.11111111, %v8057_v4  ;;  %v8056_v37 = vadd.f32 %v8032_v44, %v16163_v12  ;;  %v8002_v14 = vadd.f32 %v7986_v53, %v16131_v55  ;;  %v7708_v4 = vld [vmem:[#allocation4 + $0x88] sm:$0x3] }
 0x7f1   :  { %v8055_v25 = vadd.f32 %v8031_v45, %v16172_v36  ;;  %v7961_v46 = vadd.f32 %v7933_v23, %v16194_v28  ;;  %v16246_v43 = vsel %vm1660_vm4, %v7870_v22, %v7871_v51  ;;  %v7787_v50 = vrot.slane %v7711_v26, 1  ;;  %v16253_v36 = vld [vmem:[#allocation4 + $0x70] sm:$0xff] }
 0x7f2   :  { %v8090_v49 = vadd.f32 %v8074_v32, %v15716_v10  ;;  %v8089_v58 = vadd.f32 %v8073_v2, %v15676_v29  ;;  %v8072_v1 = vmul.f32 0.11111111, %v8056_v37  ;;  %v8030_v7 = vadd.f32 %v8002_v14, %v16152_v38  ;;  %v7709_v2 = vld [vmem:[#allocation4 + $0x90] sm:$0xff]  ;;  %v7710_v37 = vld [vmem:[#allocation4 + $0x98] sm:$0x3] }
 0x7f3   :  { %v8071_v40 = vmul.f32 0.11111111, %v8055_v25  ;;  %v7985_v12 = vadd.f32 %v7961_v46, %v16205_v3  ;;  %v7916_v55 = vadd.f32 %v16246_v43, %v7836_v17  ;;  %v7788_v62 = vrot.slane %v7712_v8, 1 }
 0x7f4   :  { %8092 = vmatpush.msra.mxu2 %v8090_v49  ;;  %v8088_v52 = vadd.f32 %v8072_v1, %v15637_v33  ;;  %v8054_v41 = vadd.f32 %v8030_v7, %v16183_v21  ;;  %v7867_v30 = vrot.slane %v7711_v26, 2  ;;  %v7868_v10 = vrot.slane %v7712_v8, 2 }
 0x7f5   :  { %v8087_v29 = vadd.f32 %v8071_v40, %v15600_v20  ;;  %v8001_v38 = vadd.f32 %v7985_v12, %v16126_v35  ;;  %v7932_v57 = vadd.f32 %v7916_v55, %v16180_v13  ;;  %v7789_v48 = vsel %vm1178_vm3, %v7787_v50, %v7788_v62  ;;  %v16288_v12 = vld [vmem:[#allocation4 + $0x60] sm:$0xff]  ;;  %v7704_v55 = vld [vmem:[#allocation4 + $0x68] sm:$0x3] }
 0x7f6   :  { %8093 = vmatpush.msra.mxu2 %v8089_v58  ;;  %v8070_v22 = vmul.f32 0.11111111, %v8054_v41  ;;  %v7835_v54 = vadd.f32 %v7789_v48, %v7711_v26  ;;  %v7869_v33 = vsel %vm1660_vm4, %v7867_v30, %v7868_v10  ;;  %v7784_v21 = vrot.slane %v16253_v36, 1 }
 0x7f7   :  { %v8029_v44 = vadd.f32 %v8001_v38, %v16147_v59  ;;  %v7960_v20 = vadd.f32 %v7932_v57, %v16213_v34  ;;  %v7785_v53 = vrot.slane %v7706_v31, 1  ;;  %v7864_v35 = vrot.slane %v16253_v36, 2  ;;  %v7702_v38 = vld [vmem:[#allocation4 + $0x58] sm:$0x3] }
 0x7f8   :  { %8094 = vmatpush.msra.mxu2 %v8088_v52  ;;  %v8086_v45 = vadd.f32 %v8070_v22, %v15562_v56  ;;  %v7915_v23 = vadd.f32 %v7869_v33, %v7835_v54  ;;  %v7865_v17 = vrot.slane %v7706_v31, 2  ;;  %v7943_v51 = vrot.slane %v16261_v39, 1 }
 0x7f9   :  { %v8053_v26 = vadd.f32 %v8029_v44, %v16190_v47  ;;  %v7984_v32 = vadd.f32 %v7960_v20, %v16223_v18  ;;  %v16273_v59 = vsel %vm1178_vm3, %v7784_v21, %v7785_v53  ;;  %v7944_v14 = vrot.slane %v7708_v4, 1 }
 0x7fa   :  { %8095 = vmatpush.msra.mxu2 %v8087_v29  ;;  %v7931_v8 = vadd.f32 %v7915_v23, %v16201_v9  ;;  %v7834_v56 = vadd.f32 %v16273_v59, %v16253_v36  ;;  %v16279_v25 = vsel %vm1660_vm4, %v7864_v35, %v7865_v17  ;;  %v7967_v46 = vrot.slane %v16261_v39, 2  ;;  %v16298_v29 = vld [vmem:[#allocation4 + $0x50] sm:$0xff]  ;;  %v7700_v23 = vld [vmem:[#allocation4 + $0x48] sm:$0x3] }
 0x7fb   :  { %v8069_v47 = vmul.f32 0.11111111, %v8053_v26  ;;  %v8000_v50 = vadd.f32 %v7984_v32, %v16168_v16  ;;  %v16284_v49 = vsel %vm1178_vm3, %v7943_v51, %v7944_v14  ;;  %v7968_v58 = vrot.slane %v7708_v4, 2 }
 0x7fc   :  { %8096 = vmatpush.msra.mxu2 %v8086_v45  ;;  %v7959_v1 = vadd.f32 %v7931_v8, %v16231_v63  ;;  %v7914_v9 = vadd.f32 %v16279_v25, %v7834_v56  ;;  %v8011_v7 = vrot.slane %v7709_v2, 1  ;;  %v8012_v40 = vrot.slane %v7710_v37, 1  ;;  %v16317_v45 = vld [vmem:[#allocation4 + $0x40] sm:$0xff]  ;;  %v16328_v56 = vld [vmem:[#allocation4 + $0x30] sm:$0xff] }
 0x7fd   :  { %v8085_v62 = vadd.f32 %v8069_v47, %v15533_v11  ;;  %v8028_v52 = vadd.f32 %v8000_v50, %v16194_v28  ;;  %v16293_v16 = vsel %vm1660_vm4, %v7967_v46, %v7968_v58  ;;  %v8035_v41 = vrot.slane %v7709_v2, 2  ;;  %v7698_v46 = vld [vmem:[#allocation4 + $0x38] sm:$0x3] }
 0x7fe   :  { %v7983_v30 = vadd.f32 %v7959_v1, %v16246_v43  ;;  %v7930_v10 = vadd.f32 %v7914_v9, %v16261_v39  ;;  %v8013_v63 = vsel %vm1178_vm3, %v8011_v7, %v8012_v40  ;;  %v8036_v31 = vrot.slane %v7710_v37, 2 }
 0x7ff   :  { %8097 = vmatpush.msra.mxu2 %v8085_v62  ;;  %v8052_v57 = vadd.f32 %v8028_v52, %v16205_v3  ;;  %v7781_v11 = vrot.slane %v16288_v12, 1  ;;  %v7782_v28 = vrot.slane %v7704_v55, 1  ;;  %v7861_v48 = vrot.slane %v16288_v12, 2 }
 0x800   :  { %v7999_v22 = vadd.f32 %v7983_v30, %v16180_v13  ;;  %v7958_v43 = vadd.f32 %v16284_v49, %v7930_v10  ;;  %v8037_v54 = vsel %vm1660_vm4, %v8035_v41, %v8036_v31  ;;  %v7862_v33 = vrot.slane %v7704_v55, 2  ;;  %v16344_v31 = vld [vmem:[#allocation4 + $0x20] sm:$0xff] }
 0x801   :  { %v8068_v4 = vmul.f32 0.11111111, %v8052_v57  ;;  %v16307_v21 = vsel %vm1178_vm3, %v7781_v11, %v7782_v28  ;;  %v7778_v44 = vrot.slane %v16298_v29, 1  ;;  %v7779_v20 = vrot.slane %v7702_v38, 1 }
 0x802   :  { %v8027_v3 = vadd.f32 %v7999_v22, %v16213_v34  ;;  %v7982_v53 = vadd.f32 %v16293_v16, %v7958_v43  ;;  %v7833_v35 = vadd.f32 %v16307_v21, %v16288_v12  ;;  %v16315_v13 = vsel %vm1660_vm4, %v7861_v48, %v7862_v33 }
 0x803   :  { %v8084_v17 = vadd.f32 %v8068_v4, %v15511_v27  ;;  %v16321_v51 = vsel %vm1178_vm3, %v7778_v44, %v7779_v20  ;;  %v7858_v26 = vrot.slane %v16298_v29, 2  ;;  %v7859_v32 = vrot.slane %v7702_v38, 2 }
 0x804   :  { %v8051_v34 = vadd.f32 %v8027_v3, %v16223_v18  ;;  %v7998_v37 = vadd.f32 %v7982_v53, %v7709_v2  ;;  %v7913_v14 = vadd.f32 %v16315_v13, %v7833_v35  ;;  %v7832_v8 = vadd.f32 %v16321_v51, %v16298_v29 }
 0x805   :  { %8098 = vmatpush.msra.mxu2 %v8084_v17  ;;  %v16331_v27 = vsel %vm1660_vm4, %v7858_v26, %v7859_v32  ;;  %v7775_v47 = vrot.slane %v16317_v45, 1  ;;  %v7776_v50 = vrot.slane %v7700_v23, 1  ;;  %v7855_v58 = vrot.slane %v16317_v45, 2  ;;  %v7694_v17 = vld [vmem:[#allocation4 + $0x18] sm:$0x3] }
 0x806   :  { %v8067_v1 = vmul.f32 0.11111111, %v8051_v34  ;;  %v8026_v18 = vadd.f32 %v8013_v63, %v7998_v37  ;;  %v7929_v2 = vadd.f32 %v7913_v14, %v16253_v36  ;;  %v7912_v9 = vadd.f32 %v16331_v27, %v7832_v8  ;;  %v7696_v63 = vld [vmem:[#allocation4 + $0x28] sm:$0x3] }
 0x807   :  { %v16338_v7 = vsel %vm1178_vm3, %v7775_v47, %v7776_v50  ;;  %v7856_v40 = vrot.slane %v7700_v23, 2  ;;  %v7772_v55 = vrot.slane %v16328_v56, 1  ;;  %v7773_v62 = vrot.slane %v7698_v46, 1  ;;  %v16365_v23 = vld [vmem:[#allocation4 + $0x10] sm:$0xff] }
 0x808   :  { %v8083_v52 = vadd.f32 %v8067_v1, %v15484_v24  ;;  %v8050_v41 = vadd.f32 %v8037_v54, %v8026_v18  ;;  %v7957_v30 = vadd.f32 %v7929_v2, %v16273_v59  ;;  %v7928_v10 = vadd.f32 %v7912_v9, %v16288_v12  ;;  %v7691_v2 = vld [vmem:[#allocation4] sm:$0xff] }
 0x809   :  { %v7831_v38 = vadd.f32 %v16338_v7, %v16317_v45  ;;  %v16349_v57 = vsel %vm1660_vm4, %v7855_v58, %v7856_v40  ;;  %v16352_v11 = vsel %vm1178_vm3, %v7772_v55, %v7773_v62  ;;  %v7852_v28 = vrot.slane %v16328_v56, 2 }
 0x80a   :  { %8099 = vmatpush.msra.mxu2 %v8083_v52  ;;  %v8066_v24 = vmul.f32 0.11111111, %v8050_v41  ;;  %v7981_v48 = vadd.f32 %v7957_v30, %v16279_v25  ;;  %v7956_v22 = vadd.f32 %v7928_v10, %v16307_v21  ;;  %v7830_v43 = vadd.f32 %v16352_v11, %v16328_v56 }
 0x80b   :  { %v7911_v54 = vadd.f32 %v16349_v57, %v7831_v38  ;;  %v7853_v33 = vrot.slane %v7698_v46, 2  ;;  %v7769_v4 = vrot.slane %v16344_v31, 1  ;;  %v7770_v44 = vrot.slane %v7696_v63, 1 }
 0x80c   :  { %v8082_v20 = vadd.f32 %v8066_v24, %v15463_v0  ;;  %v7997_v3 = vadd.f32 %v7981_v48, %v16261_v39  ;;  %v7980_v53 = vadd.f32 %v7956_v22, %v16315_v13  ;;  %v7849_v35 = vrot.slane %v16344_v31, 2 }
 0x80d   :  { %v7927_v26 = vadd.f32 %v7911_v54, %v16298_v29  ;;  %v16369_v32 = vsel %vm1660_vm4, %v7852_v28, %v7853_v33  ;;  %v16372_v34 = vsel %vm1178_vm3, %v7769_v4, %v7770_v44  ;;  %v7850_v37 = vrot.slane %v7696_v63, 2 }
 0x80e   :  { %8100 = vmatpush.msra.mxu2 %v8082_v20  ;;  %v8025_v0 = vadd.f32 %v7997_v3, %v16284_v49  ;;  %v7996_v39 = vadd.f32 %v7980_v53, %v16253_v36  ;;  %v7910_v14 = vadd.f32 %v16369_v32, %v7830_v43  ;;  %v7829_v8 = vadd.f32 %v16372_v34, %v16344_v31 }
 0x80f   :  { %v7955_v46 = vadd.f32 %v7927_v26, %v16321_v51  ;;  %v16381_v47 = vsel %vm1660_vm4, %v7849_v35, %v7850_v37  ;;  %v7766_v50 = vrot.slane %v16365_v23, 1  ;;  %v7767_v58 = vrot.slane %v7694_v17, 1 }
 0x810   :  { %v8049_v1 = vadd.f32 %v8025_v0, %v16293_v16  ;;  %v8024_v18 = vadd.f32 %v7996_v39, %v16273_v59  ;;  %v7926_v49 = vadd.f32 %v7910_v14, %v16317_v45  ;;  %v7909_v36 = vadd.f32 %v16381_v47, %v7829_v8  ;;  %v7692_v59 = vld [vmem:[#allocation4 + $0x8] sm:$0x3] }
 0x811   :  { %v7979_v9 = vadd.f32 %v7955_v46, %v16331_v27  ;;  %v7768_v40 = vsel %vm1178_vm3, %v7766_v50, %v7767_v58  ;;  %v7846_v55 = vrot.slane %v16365_v23, 2  ;;  %v7847_v62 = vrot.slane %v7694_v17, 2 }
 0x812   :  { %v8065_v52 = vmul.f32 0.11111111, %v8049_v1  ;;  %v8048_v41 = vadd.f32 %v8024_v18, %v16279_v25  ;;  %v7954_v30 = vadd.f32 %v7926_v49, %v16338_v7  ;;  %v7925_v16 = vadd.f32 %v7909_v36, %v16328_v56 }
 0x813   :  { %v7995_v10 = vadd.f32 %v7979_v9, %v16288_v12  ;;  %v7828_v63 = vadd.f32 %v7768_v40, %v16365_v23  ;;  %v7848_v38 = vsel %vm1660_vm4, %v7846_v55, %v7847_v62  ;;  %v7763_v28 = vrot.slane %v7691_v2, 1 }
 0x814   :  { %v8081_v24 = vadd.f32 %v8065_v52, %v15432_v6  ;;  %v8064_v48 = vmul.f32 0.11111111, %v8048_v41  ;;  %v7978_v22 = vadd.f32 %v7954_v30, %v16349_v57  ;;  %v7953_v43 = vadd.f32 %v7925_v16, %v16352_v11 }
 0x815   :  { %v8023_v25 = vadd.f32 %v7995_v10, %v16307_v21  ;;  %v7908_v54 = vadd.f32 %v7848_v38, %v7828_v63  ;;  %v7764_v33 = vrot.slane %v7692_v59, 1  ;;  %v7843_v4 = vrot.slane %v7691_v2, 2 }
 0x816   :  { %8101 = vmatpush.msra.mxu2 %v8081_v24  ;;  %v8080_v12 = vadd.f32 %v8064_v48, %v15411_v19  ;;  %v7994_v44 = vadd.f32 %v7978_v22, %v16298_v29  ;;  %v7977_v20 = vadd.f32 %v7953_v43, %v16369_v32  ;;  %v7844_v3 = vrot.slane %v7692_v59, 2 }
 0x817   :  { %v8047_v6 = vadd.f32 %v8023_v25, %v16315_v13  ;;  %v7924_v53 = vadd.f32 %v7908_v54, %v16344_v31  ;;  %v7765_v35 = vsel %vm1178_vm3, %v7763_v28, %v7764_v33 }
 0x818   :  { %8102 = vmatpush.msra.mxu2 %v8080_v12  ;;  %v8022_v21 = vadd.f32 %v7994_v44, %v16321_v51  ;;  %v7993_v17 = vadd.f32 %v7977_v20, %v16317_v45  ;;  %v7827_v26 = vadd.f32 %v7765_v35, %v7691_v2  ;;  %v7845_v37 = vsel %vm1660_vm4, %v7843_v4, %v7844_v3 }
 0x819   :  { %v8063_v19 = vmul.f32 0.11111111, %v8047_v6  ;;  %v7952_v29 = vadd.f32 %v7924_v53, %v16372_v34 }
 0x81a   :  { %v8046_v0 = vadd.f32 %v8022_v21, %v16331_v27  ;;  %v8021_v39 = vadd.f32 %v7993_v17, %v16338_v7  ;;  %v7907_v13 = vadd.f32 %v7845_v37, %v7827_v26 }
 0x81b   :  { %v8079_v14 = vadd.f32 %v8063_v19, %v15388_v5  ;;  %v7976_v8 = vadd.f32 %v7952_v29, %v16381_v47 }
 0x81c   :  { %v8062_v46 = vmul.f32 0.11111111, %v8046_v0  ;;  %v8045_v51 = vadd.f32 %v8021_v39, %v16349_v57  ;;  %v7923_v45 = vadd.f32 %v7907_v13, %v16365_v23 }
 0x81d   :  { %8103 = vmatpush.msra.mxu2 %v8079_v14  ;;  %v7992_v50 = vadd.f32 %v7976_v8, %v16328_v56 }
 0x81e   :  { %v8078_v58 = vadd.f32 %v8062_v46, %v15368_v60  ;;  %v8061_v1 = vmul.f32 0.11111111, %v8045_v51  ;;  %v7951_v18 = vadd.f32 %v7923_v45, %v7768_v40 }
 0x81f   :  { %v8020_v27 = vadd.f32 %v7992_v50, %v16352_v11 }
 0x820   :  { %8104 = vmatpush.msra.mxu2 %v8078_v58  ;;  %v8077_v7 = vadd.f32 %v8061_v1, %v15350_v15  ;;  %v7975_v5 = vadd.f32 %v7951_v18, %v7848_v38  ;;  %v8091_v15 = vld [vmem:[%s16440_s6] sm:$0xff] }
 0x821   :  { %v8044_v49 = vadd.f32 %v8020_v27, %v16369_v32 }
 0x822   :  { %8105 = vmatpush.msra.mxu2 %v8077_v7  ;;  %v7991_v57 = vadd.f32 %v7975_v5, %v16344_v31 }
 0x823   :  { %v8060_v36 = vmul.f32 0.11111111, %v8044_v49 }
 0x824   :  { %v8019_v23 = vadd.f32 %v7991_v57, %v16372_v34 }
 0x825   :  { %v8076_v56 = vadd.f32 %v8060_v36, %v15332_v61 }
 0x826   :  { %v8043_v60 = vadd.f32 %v8019_v23, %v16381_v47 }
 0x827   :  { %8106 = vmatpush.msra.mxu2 %v8076_v56 }
 0x828   :  { %v8059_v2 = vmul.f32 0.11111111, %v8043_v60 }
 0x82a   :  { %v8075_v11 = vadd.f32 %v8059_v2, %v15326_v42 }
 0x82c   :  { %8107 = vmatpush.msra.mxu2 %v8075_v11 }
 0x82d   :  { %8108 = vmatmul.f32.vlgmr.msra.gmra.mxu2 %v8091_v15 }
 0x8b0   :  { %v8109_v31 = vpop.f32.mrf.mxu2 }
 0x8b1   :  { %v8112_v61 = vmul.f32 0.0625, %v8109_v31 }
 0x8b3   :  { %8113 = vst.msk [vmem:[#allocation5] sm:$0xff] %vm4191_vm2, %v8112_v61 }
 0x8b4   :  { %8124 = dma.vmem_to_hbm [thread:$0]  %s8120_s28, 128, %s8122_s3, [#allocation6]  }
 0x8b5   :  { %8656 = dma.done.wait [#allocation6], 128  }
 0x8b6   :  { %8657 = vsyncadd [#allocation6], 4294967168 }
 0x8b7   :  { %8129 = vsyncpa [#allocation6], 1 }

</bundles_post_ra>
